<compile_context>
chip_gen: v7x
topology: tpu7x:2x2x1
jax: 0.10.0
libtpu: 0.0.40
codegen_flags: <defaults>
</compile_context>

<pallas_src>
import jax
import jax.numpy as jnp
import numpy as np
from jax.experimental import pallas as pl
from jax.experimental.pallas import tpu as pltpu


# ---------------------------------------------------------------------------
# Constant 0/1 matrices (numpy; become literals under jit)
# ---------------------------------------------------------------------------
def _pool_select_matrix(h, w):
    """(h*w, (h//2)*(w//2)): selects the top-left corner of each 2x2 block."""
    s = np.zeros((h * w, (h // 2) * (w // 2)), np.float32)
    for yy in range(h // 2):
        for xx in range(w // 2):
            s[(2 * yy) * w + 2 * xx, yy * (w // 2) + xx] = 1.0
    return s


def _upsample_matrix(h, w):
    """(h*w, (2h)*(2w)): nearest-neighbor 2x duplication."""
    u = np.zeros((h * w, 4 * h * w), np.float32)
    for yy in range(h):
        for xx in range(w):
            p = yy * w + xx
            for a in (0, 1):
                for b in (0, 1):
                    u[p, (2 * yy + a) * (2 * w) + (2 * xx + b)] = 1.0
    return u


def _pick_batch_tile(n, max_b=8):
    """Largest B<=max_b dividing n that keeps the folded grid >= 2 steps (v7x)."""
    for b in range(min(max_b, n), 0, -1):
        if n % b == 0 and n // b >= 2:
            return b
    return n


# ---------------------------------------------------------------------------
# Fused kernel (one batch tile of B images per grid step)
# ---------------------------------------------------------------------------
def make_fused_kernel(H, W, B):
    HW = H * W
    H2, W2 = H // 2, W // 2
    H4, W4 = H // 4, W // 4

    def kernel(x_ref, w1_ref, b1_ref, w2_ref, b2_ref, w3_ref, b3_ref,
               w4_ref, b4_ref, w5_ref, b5_ref, s1_ref, s2_ref, u1_ref, u2_ref,
               o_ref, pad_ref, col_ref):

        # ------- hoisted per-spatial-size out-of-bounds masks (feedback #3) -------
        mask_cache = {}

        def get_masks(h, w):
            if (h, w) not in mask_cache:
                hw = h * w
                p = jax.lax.broadcasted_iota(jnp.int32, (1, B * hw), 1)
                xc = p % w            # column within image
                rc = p % hw           # flat position within image
                not_left = xc != 0
                not_right = xc != (w - 1)
                not_top = rc >= w            # row within image != 0
                not_bot = rc < (hw - w)      # row within image != h-1
                taps = {}
                for dy in range(3):
                    for dx in range(3):
                        conds = []
                        if dy == 0:
                            conds.append(not_top)
                        if dy == 2:
                            conds.append(not_bot)
                        if dx == 0:
                            conds.append(not_left)
                        if dx == 2:
                            conds.append(not_right)
                        m = None
                        for c in conds:
                            m = c if m is None else (m & c)
                        taps[(dy, dx)] = m
                mask_cache[(h, w)] = taps
            return mask_cache[(h, w)]

        # ------- conv3x3(stride=1, pad=1) + bias on a (cin, B*h*w) slab -------
        def conv3x3(x, w_ref, b_ref, cin, cout, h, w, use_col_scratch=False):
            hw = h * w
            bhw = B * hw
            off = w + 1                       # zero header/footer width
            masks = get_masks(h, w)
            # halo-only zero fill (feedback #2) + single data store
            pad_ref[0:cin, 0:off] = jnp.zeros((cin, off), jnp.float32)
            pad_ref[0:cin, off:off + bhw] = x
            pad_ref[0:cin, off + bhw:off + bhw + off] = jnp.zeros((cin, off), jnp.float32)

            patches = []
            for dy in range(3):
                for dx in range(3):
                    s = dy * w + dx           # static lane shift for this tap
                    patch = pad_ref[0:cin, s:s + bhw]
                    m = masks[(dy, dx)]
                    if m is not None:         # zero out-of-bounds / cross-image reads
                        patch = jnp.where(m, patch, 0.0)
                    patches.append(patch)

            if use_col_scratch:               # cin=1: keep VMEM scratch path (feedback #4)
                for k, pch in enumerate(patches):
                    col_ref[k * cin:(k + 1) * cin, 0:bhw] = pch
                col = col_ref[0:9 * cin, 0:bhw]
            else:                             # cin>=8: sublane-aligned in-register concat
                col = jnp.concatenate(patches, axis=0)

            acc = jnp.dot(w_ref[...], col, preferred_element_type=jnp.float32)
            return acc + b_ref[...]           # bias (cout, 1) broadcasts over lanes

        # ------- 2x2/stride-2 max pool on a (cout, B*h*w) slab -------
        def maxpool2(y, s_ref, cout, h, w):
            hw = h * w
            bhw = B * hw
            pad_ref[0:cout, 0:bhw] = y
            # keep the finite zero tail so the shifted reads of the last image are defined
            pad_ref[0:cout, bhw:bhw + w + 1] = jnp.zeros((cout, w + 1), jnp.float32)
            m = jnp.maximum(
                jnp.maximum(pad_ref[0:cout, 0:bhw], pad_ref[0:cout, 1:1 + bhw]),
                jnp.maximum(pad_ref[0:cout, w:w + bhw], pad_ref[0:cout, w + 1:w + 1 + bhw]))
            # lane-dense downsample via block-diagonal 0/1 selection matmul
            return jnp.dot(m, s_ref[...], preferred_element_type=jnp.float32)

        x = x_ref[0]                                                      # (1, B*HW)
        # --- encoder ---
        h = jnp.maximum(conv3x3(x, w1_ref, b1_ref, 1, 16, H, W, use_col_scratch=True), 0.0)
        h = maxpool2(h, s1_ref, 16, H, W)                                 # (16, B*H2*W2)
        h = jnp.maximum(conv3x3(h, w2_ref, b2_ref, 16, 8, H2, W2), 0.0)
        h = maxpool2(h, s2_ref, 8, H2, W2)                                # (8, B*H4*W4)
        # --- decoder ---
        h = jnp.maximum(conv3x3(h, w3_ref, b3_ref, 8, 16, H4, W4), 0.0)
        h = jnp.dot(h, u1_ref[...], preferred_element_type=jnp.float32)   # (16, B*H2*W2)
        h = jnp.maximum(conv3x3(h, w4_ref, b4_ref, 16, 8, H2, W2), 0.0)
        h = jnp.dot(h, u2_ref[...], preferred_element_type=jnp.float32)   # (8, B*HW)
        h = conv3x3(h, w5_ref, b5_ref, 8, 1, H, W)                        # (1, B*HW)
        o_ref[0] = jax.nn.sigmoid(h).astype(o_ref.dtype)

    return kernel


# ---------------------------------------------------------------------------
# Wrapper
# ---------------------------------------------------------------------------
@jax.jit
def forward(params, x_nchw):
    N, C, H, W = x_nchw.shape                  # expects C == 1, H, W divisible by 4
    HW = H * W
    B = _pick_batch_tile(N)                    # batch tile folded onto the lane axis
    G = N // B                                 # grid length (>= 2 when N allows)
    BHW = B * HW
    x_flat = x_nchw.reshape(G, 1, BHW).astype(jnp.float32)

    def prep(w, b):                            # HWIO (3,3,cin,cout) -> (cout, 9*cin)
        cout, cin = w.shape[-1], w.shape[2]
        wm = jnp.transpose(w, (3, 0, 1, 2)).reshape(cout, 9 * cin)  # rows: (dy*3+dx)*cin+ci
        return wm, b.reshape(cout, 1)

    w1, b1 = prep(*params["enc1"])
    w2, b2 = prep(*params["enc2"])
    w3, b3 = prep(*params["dec1"])
    w4, b4 = prep(*params["dec2"])
    w5, b5 = prep(*params["dec3"])

    eye_b = np.eye(B, dtype=np.float32)        # block-diagonal over the batch tile
    s1 = jnp.asarray(np.kron(eye_b, _pool_select_matrix(H, W)))
    s2 = jnp.asarray(np.kron(eye_b, _pool_select_matrix(H // 2, W // 2)))
    u1 = jnp.asarray(np.kron(eye_b, _upsample_matrix(H // 4, W // 4)))
    u2 = jnp.asarray(np.kron(eye_b, _upsample_matrix(H // 2, W // 2)))

    consts = (w1, b1, w2, b2, w3, b3, w4, b4, w5, b5, s1, s2, u1, u2)

    out_flat = pl.pallas_call(
        make_fused_kernel(H, W, B),
        out_shape=jax.ShapeDtypeStruct((G, 1, BHW), jnp.float32),
        grid=(G,),
        in_specs=[pl.BlockSpec((1, 1, BHW), lambda n: (n, 0, 0))]
                 + [pl.BlockSpec(a.shape, lambda n: (0, 0)) for a in consts],
        out_specs=pl.BlockSpec((1, 1, BHW), lambda n: (n, 0, 0)),
        scratch_shapes=[
            pltpu.VMEM((16, BHW + 2 * (W + 1)), jnp.float32),  # padded flat slab buffer
            pltpu.VMEM((9, BHW), jnp.float32),                 # im2col scratch (cin=1 conv only)
        ],
        compiler_params=pltpu.CompilerParams(
            dimension_semantics=("parallel",),                 # batch tiles over v7x's 2 TCs
            vmem_limit_bytes=32 * 1024 * 1024),
    )(x_flat, *consts)
    return out_flat.reshape(N, 1, H, W)


# ---------------------------------------------------------------------------
# Deterministic synthetic params (shapes match nn.Conv2d(cin, cout, 3, 1, 1))
# ---------------------------------------------------------------------------
def init_params(key):
    def conv_init(k, cin, cout):
        k1, k2 = jax.random.split(k)
        bound = 1.0 / np.sqrt(cin * 9)
        w = jax.random.uniform(k1, (3, 3, cin, cout), jnp.float32, -bound, bound)  # HWIO
        b = jax.random.uniform(k2, (cout,), jnp.float32, -bound, bound)
        return w, b

    keys = jax.random.split(key, 5)
    return {
        "enc1": conv_init(keys[0], 1, 16),
        "enc2": conv_init(keys[1], 16, 8),
        "dec1": conv_init(keys[2], 8, 16),
        "dec2": conv_init(keys[3], 16, 8),
        "dec3": conv_init(keys[4], 8, 1),
    }


# ---------------------------------------------------------------------------
# Pure-JAX reference (correctness check only)
# ---------------------------------------------------------------------------
def _ref_conv(x, w, b):
    y = jax.lax.conv_general_dilated(
        x, w, window_strides=(1, 1), padding="SAME",
        dimension_numbers=("NHWC", "HWIO", "NHWC"))
    return y + b


def _ref_maxpool2(x):
    return jax.lax.reduce_window(x, -jnp.inf, jax.lax.max,
                                 (1, 2, 2, 1), (1, 2, 2, 1), "VALID")


def _ref_upsample2(x):
    x = jnp.repeat(x, 2, axis=1)
    return jnp.repeat(x, 2, axis=2)


def ref_forward(params, x_nchw):
    x = jnp.transpose(x_nchw, (0, 2, 3, 1))
    h = _ref_maxpool2(jax.nn.relu(_ref_conv(x, *params["enc1"])))
    h = _ref_maxpool2(jax.nn.relu(_ref_conv(h, *params["enc2"])))
    h = jax.nn.relu(_ref_conv(h, *params["dec1"]))
    h = _ref_upsample2(h)
    h = jax.nn.relu(_ref_conv(h, *params["dec2"]))
    h = _ref_upsample2(h)
    h = jax.nn.sigmoid(_ref_conv(h, *params["dec3"]))
    return jnp.transpose(h, (0, 3, 1, 2))


if __name__ == "__main__":
    key = jax.random.PRNGKey(0)
    k_param, k_x = jax.random.split(key)
    params = init_params(k_param)

    # Small image-like input in [0, 1]; NCHW like the PyTorch module expects.
    # N=8 exercises the batch-folded path (B=4 per grid step, grid=(2,)).
    x = jax.random.uniform(k_x, (8, 1, 16, 16), jnp.float32)

    out = jax.block_until_ready(forward(params, x))
    assert out.shape == (8, 1, 16, 16), out.shape

    ref = jax.block_until_ready(ref_forward(params, x))
    np.testing.assert_allclose(np.asarray(out), np.asarray(ref),
                               atol=1e-4, rtol=1e-4)

    print("KERNEL_OK")
</pallas_src>

<mosaic_0001>
module attributes {stable_mosaic.version = 11 : i64} {
  func.func @kernel(%arg0: i32, %arg1: memref<1x1x1024xf32, #tpu.memory_space<vmem>>, %arg2: memref<16x9xf32, #tpu.memory_space<vmem>>, %arg3: memref<16x1xf32, #tpu.memory_space<vmem>>, %arg4: memref<8x144xf32, #tpu.memory_space<vmem>>, %arg5: memref<8x1xf32, #tpu.memory_space<vmem>>, %arg6: memref<16x72xf32, #tpu.memory_space<vmem>>, %arg7: memref<16x1xf32, #tpu.memory_space<vmem>>, %arg8: memref<8x144xf32, #tpu.memory_space<vmem>>, %arg9: memref<8x1xf32, #tpu.memory_space<vmem>>, %arg10: memref<1x72xf32, #tpu.memory_space<vmem>>, %arg11: memref<1x1xf32, #tpu.memory_space<vmem>>, %arg12: memref<1024x256xf32, #tpu.memory_space<vmem>>, %arg13: memref<256x64xf32, #tpu.memory_space<vmem>>, %arg14: memref<64x256xf32, #tpu.memory_space<vmem>>, %arg15: memref<256x1024xf32, #tpu.memory_space<vmem>>, %arg16: memref<1x1x1024xf32, #tpu.memory_space<vmem>>, %arg17: memref<16x1058xf32, #tpu.memory_space<vmem>>, %arg18: memref<9x1024xf32, #tpu.memory_space<vmem>>) attributes {dimension_semantics = [#tpu.dimension_semantics<parallel>], iteration_bounds = array<i64: 2>, scalar_prefetch = 0 : i64, scratch_operands = 2 : i64, tpu.core_type = #tpu.core_type<tc>, window_params = [{transform_indices = @transform_0, window_bounds = array<i64: 1, 1, 1024>}, {pipeline_mode = #tpu.pipeline_mode<synchronous>, transform_indices = @transform_1, window_bounds = array<i64: 16, 9>}, {pipeline_mode = #tpu.pipeline_mode<synchronous>, transform_indices = @transform_2, window_bounds = array<i64: 16, 1>}, {pipeline_mode = #tpu.pipeline_mode<synchronous>, transform_indices = @transform_3, window_bounds = array<i64: 8, 144>}, {pipeline_mode = #tpu.pipeline_mode<synchronous>, transform_indices = @transform_4, window_bounds = array<i64: 8, 1>}, {pipeline_mode = #tpu.pipeline_mode<synchronous>, transform_indices = @transform_5, window_bounds = array<i64: 16, 72>}, {pipeline_mode = #tpu.pipeline_mode<synchronous>, transform_indices = @transform_6, window_bounds = array<i64: 16, 1>}, {pipeline_mode = #tpu.pipeline_mode<synchronous>, transform_indices = @transform_7, window_bounds = array<i64: 8, 144>}, {pipeline_mode = #tpu.pipeline_mode<synchronous>, transform_indices = @transform_8, window_bounds = array<i64: 8, 1>}, {pipeline_mode = #tpu.pipeline_mode<synchronous>, transform_indices = @transform_9, window_bounds = array<i64: 1, 72>}, {pipeline_mode = #tpu.pipeline_mode<synchronous>, transform_indices = @transform_10, window_bounds = array<i64: 1, 1>}, {pipeline_mode = #tpu.pipeline_mode<synchronous>, transform_indices = @transform_11, window_bounds = array<i64: 1024, 256>}, {pipeline_mode = #tpu.pipeline_mode<synchronous>, transform_indices = @transform_12, window_bounds = array<i64: 256, 64>}, {pipeline_mode = #tpu.pipeline_mode<synchronous>, transform_indices = @transform_13, window_bounds = array<i64: 64, 256>}, {pipeline_mode = #tpu.pipeline_mode<synchronous>, transform_indices = @transform_14, window_bounds = array<i64: 256, 1024>}, {transform_indices = @transform_15, window_bounds = array<i64: 1, 1, 1024>}]} {
    %c0 = arith.constant 0 : index
    %c0_0 = arith.constant 0 : index
    %c0_1 = arith.constant 0 : index
    %0 = vector.load %arg1[%c0, %c0_0, %c0_1] : memref<1x1x1024xf32, #tpu.memory_space<vmem>>, vector<1x1x1024xf32>
    %1 = vector.shape_cast %0 : vector<1x1x1024xf32> to vector<1x1024xf32>
    %2 = tpu.iota {dimensions = array<i32: 1>} : vector<1x1024xi32>
    %c16_i32 = arith.constant 16 : i32
    %c0_i32 = arith.constant 0 : i32
    %3 = arith.cmpi eq, %c16_i32, %c0_i32 : i32
    %c1_i32 = arith.constant 1 : i32
    %4 = arith.select %3, %c1_i32, %c16_i32 : i32
    %5 = vector.broadcast %4 : i32 to vector<1x1024xi32>
    %6 = arith.remsi %2, %5 : vector<1x1024xi32>
    %c0_i32_2 = arith.constant 0 : i32
    %7 = vector.broadcast %c0_i32_2 : i32 to vector<1x1024xi32>
    %8 = arith.cmpi ne, %6, %7 : vector<1x1024xi32>
    %c0_i32_3 = arith.constant 0 : i32
    %9 = vector.broadcast %c0_i32_3 : i32 to vector<1x1024xi32>
    %10 = arith.cmpi slt, %6, %9 : vector<1x1024xi32>
    %c0_i32_4 = arith.constant 0 : i32
    %11 = arith.cmpi slt, %4, %c0_i32_4 : i32
    %12 = vector.broadcast %11 : i1 to vector<1x1024xi1>
    %13 = vector.broadcast %12 : vector<1x1024xi1> to vector<1x1024xi1>
    %14 = arith.xori %10, %13 : vector<1x1024xi1>
    %15 = arith.andi %14, %8 : vector<1x1024xi1>
    %16 = vector.broadcast %4 : i32 to vector<1x1024xi32>
    %17 = arith.addi %6, %16 : vector<1x1024xi32>
    %18 = arith.select %15, %17, %6 : vector<1x1024xi1>, vector<1x1024xi32>
    %c256_i32 = arith.constant 256 : i32
    %c0_i32_5 = arith.constant 0 : i32
    %19 = arith.cmpi eq, %c256_i32, %c0_i32_5 : i32
    %c1_i32_6 = arith.constant 1 : i32
    %20 = arith.select %19, %c1_i32_6, %c256_i32 : i32
    %21 = vector.broadcast %20 : i32 to vector<1x1024xi32>
    %22 = arith.remsi %2, %21 : vector<1x1024xi32>
    %c0_i32_7 = arith.constant 0 : i32
    %23 = vector.broadcast %c0_i32_7 : i32 to vector<1x1024xi32>
    %24 = arith.cmpi ne, %22, %23 : vector<1x1024xi32>
    %c0_i32_8 = arith.constant 0 : i32
    %25 = vector.broadcast %c0_i32_8 : i32 to vector<1x1024xi32>
    %26 = arith.cmpi slt, %22, %25 : vector<1x1024xi32>
    %c0_i32_9 = arith.constant 0 : i32
    %27 = arith.cmpi slt, %20, %c0_i32_9 : i32
    %28 = vector.broadcast %27 : i1 to vector<1x1024xi1>
    %29 = vector.broadcast %28 : vector<1x1024xi1> to vector<1x1024xi1>
    %30 = arith.xori %26, %29 : vector<1x1024xi1>
    %31 = arith.andi %30, %24 : vector<1x1024xi1>
    %32 = vector.broadcast %20 : i32 to vector<1x1024xi32>
    %33 = arith.addi %22, %32 : vector<1x1024xi32>
    %34 = arith.select %31, %33, %22 : vector<1x1024xi1>, vector<1x1024xi32>
    %c0_i32_10 = arith.constant 0 : i32
    %35 = vector.broadcast %c0_i32_10 : i32 to vector<1x1024xi32>
    %36 = arith.cmpi ne, %18, %35 : vector<1x1024xi32>
    %c15_i32 = arith.constant 15 : i32
    %37 = vector.broadcast %c15_i32 : i32 to vector<1x1024xi32>
    %38 = arith.cmpi ne, %18, %37 : vector<1x1024xi32>
    %c16_i32_11 = arith.constant 16 : i32
    %39 = vector.broadcast %c16_i32_11 : i32 to vector<1x1024xi32>
    %40 = arith.cmpi sge, %34, %39 : vector<1x1024xi32>
    %c240_i32 = arith.constant 240 : i32
    %41 = vector.broadcast %c240_i32 : i32 to vector<1x1024xi32>
    %42 = arith.cmpi slt, %34, %41 : vector<1x1024xi32>
    %43 = arith.andi %40, %36 : vector<1x1024xi1>
    %44 = arith.andi %40, %38 : vector<1x1024xi1>
    %45 = arith.andi %42, %36 : vector<1x1024xi1>
    %46 = arith.andi %42, %38 : vector<1x1024xi1>
    %cst = arith.constant 0.000000e+00 : f32
    %47 = vector.broadcast %cst : f32 to vector<1x17xf32>
    %c0_12 = arith.constant 0 : index
    %c0_13 = arith.constant 0 : index
    %48 = vector.load %arg17[%c0_12, %c0_13] : memref<16x1058xf32, #tpu.memory_space<vmem>>, vector<1x17xf32>
    tpu.vector_store %arg17[%c0_12, %c0_13], %47 {strides = array<i32>} : memref<16x1058xf32, #tpu.memory_space<vmem>>, vector<1x17xf32>,
    %c0_14 = arith.constant 0 : index
    %c17 = arith.constant 17 : index
    %49 = vector.load %arg17[%c0_14, %c17] : memref<16x1058xf32, #tpu.memory_space<vmem>>, vector<1x1024xf32>
    tpu.vector_store %arg17[%c0_14, %c17], %1 {strides = array<i32>} : memref<16x1058xf32, #tpu.memory_space<vmem>>, vector<1x1024xf32>,
    %cst_15 = arith.constant 0.000000e+00 : f32
    %50 = vector.broadcast %cst_15 : f32 to vector<1x17xf32>
    %c0_16 = arith.constant 0 : index
    %c1041 = arith.constant 1041 : index
    %51 = vector.load %arg17[%c0_16, %c1041] : memref<16x1058xf32, #tpu.memory_space<vmem>>, vector<1x17xf32>
    tpu.vector_store %arg17[%c0_16, %c1041], %50 {strides = array<i32>} : memref<16x1058xf32, #tpu.memory_space<vmem>>, vector<1x17xf32>,
    %c0_17 = arith.constant 0 : index
    %c0_18 = arith.constant 0 : index
    %52 = vector.load %arg17[%c0_17, %c0_18] : memref<16x1058xf32, #tpu.memory_space<vmem>>, vector<1x1024xf32>
    %cst_19 = arith.constant 0.000000e+00 : f32
    %53 = vector.broadcast %cst_19 : f32 to vector<1x1024xf32>
    %54 = arith.select %43, %52, %53 : vector<1x1024xi1>, vector<1x1024xf32>
    %c0_20 = arith.constant 0 : index
    %c1 = arith.constant 1 : index
    %55 = vector.load %arg17[%c0_20, %c1] : memref<16x1058xf32, #tpu.memory_space<vmem>>, vector<1x1024xf32>
    %cst_21 = arith.constant 0.000000e+00 : f32
    %56 = vector.broadcast %cst_21 : f32 to vector<1x1024xf32>
    %57 = arith.select %40, %55, %56 : vector<1x1024xi1>, vector<1x1024xf32>
    %c0_22 = arith.constant 0 : index
    %c2 = arith.constant 2 : index
    %58 = vector.load %arg17[%c0_22, %c2] : memref<16x1058xf32, #tpu.memory_space<vmem>>, vector<1x1024xf32>
    %cst_23 = arith.constant 0.000000e+00 : f32
    %59 = vector.broadcast %cst_23 : f32 to vector<1x1024xf32>
    %60 = arith.select %44, %58, %59 : vector<1x1024xi1>, vector<1x1024xf32>
    %c0_24 = arith.constant 0 : index
    %c16 = arith.constant 16 : index
    %61 = vector.load %arg17[%c0_24, %c16] : memref<16x1058xf32, #tpu.memory_space<vmem>>, vector<1x1024xf32>
    %cst_25 = arith.constant 0.000000e+00 : f32
    %62 = vector.broadcast %cst_25 : f32 to vector<1x1024xf32>
    %63 = arith.select %36, %61, %62 : vector<1x1024xi1>, vector<1x1024xf32>
    %c0_26 = arith.constant 0 : index
    %c17_27 = arith.constant 17 : index
    %64 = vector.load %arg17[%c0_26, %c17_27] : memref<16x1058xf32, #tpu.memory_space<vmem>>, vector<1x1024xf32>
    %c0_28 = arith.constant 0 : index
    %c18 = arith.constant 18 : index
    %65 = vector.load %arg17[%c0_28, %c18] : memref<16x1058xf32, #tpu.memory_space<vmem>>, vector<1x1024xf32>
    %cst_29 = arith.constant 0.000000e+00 : f32
    %66 = vector.broadcast %cst_29 : f32 to vector<1x1024xf32>
    %67 = arith.select %38, %65, %66 : vector<1x1024xi1>, vector<1x1024xf32>
    %c0_30 = arith.constant 0 : index
    %c32 = arith.constant 32 : index
    %68 = vector.load %arg17[%c0_30, %c32] : memref<16x1058xf32, #tpu.memory_space<vmem>>, vector<1x1024xf32>
    %cst_31 = arith.constant 0.000000e+00 : f32
    %69 = vector.broadcast %cst_31 : f32 to vector<1x1024xf32>
    %70 = arith.select %45, %68, %69 : vector<1x1024xi1>, vector<1x1024xf32>
    %c0_32 = arith.constant 0 : index
    %c33 = arith.constant 33 : index
    %71 = vector.load %arg17[%c0_32, %c33] : memref<16x1058xf32, #tpu.memory_space<vmem>>, vector<1x1024xf32>
    %cst_33 = arith.constant 0.000000e+00 : f32
    %72 = vector.broadcast %cst_33 : f32 to vector<1x1024xf32>
    %73 = arith.select %42, %71, %72 : vector<1x1024xi1>, vector<1x1024xf32>
    %c0_34 = arith.constant 0 : index
    %c34 = arith.constant 34 : index
    %74 = vector.load %arg17[%c0_34, %c34] : memref<16x1058xf32, #tpu.memory_space<vmem>>, vector<1x1024xf32>
    %cst_35 = arith.constant 0.000000e+00 : f32
    %75 = vector.broadcast %cst_35 : f32 to vector<1x1024xf32>
    %76 = arith.select %46, %74, %75 : vector<1x1024xi1>, vector<1x1024xf32>
    %c0_36 = arith.constant 0 : index
    %c0_37 = arith.constant 0 : index
    %77 = vector.load %arg18[%c0_36, %c0_37] : memref<9x1024xf32, #tpu.memory_space<vmem>>, vector<1x1024xf32>
    tpu.vector_store %arg18[%c0_36, %c0_37], %54 {strides = array<i32>} : memref<9x1024xf32, #tpu.memory_space<vmem>>, vector<1x1024xf32>,
    %c1_38 = arith.constant 1 : index
    %c0_39 = arith.constant 0 : index
    %78 = vector.load %arg18[%c1_38, %c0_39] : memref<9x1024xf32, #tpu.memory_space<vmem>>, vector<1x1024xf32>
    tpu.vector_store %arg18[%c1_38, %c0_39], %57 {strides = array<i32>} : memref<9x1024xf32, #tpu.memory_space<vmem>>, vector<1x1024xf32>,
    %c2_40 = arith.constant 2 : index
    %c0_41 = arith.constant 0 : index
    %79 = vector.load %arg18[%c2_40, %c0_41] : memref<9x1024xf32, #tpu.memory_space<vmem>>, vector<1x1024xf32>
    tpu.vector_store %arg18[%c2_40, %c0_41], %60 {strides = array<i32>} : memref<9x1024xf32, #tpu.memory_space<vmem>>, vector<1x1024xf32>,
    %c3 = arith.constant 3 : index
    %c0_42 = arith.constant 0 : index
    %80 = vector.load %arg18[%c3, %c0_42] : memref<9x1024xf32, #tpu.memory_space<vmem>>, vector<1x1024xf32>
    tpu.vector_store %arg18[%c3, %c0_42], %63 {strides = array<i32>} : memref<9x1024xf32, #tpu.memory_space<vmem>>, vector<1x1024xf32>,
    %c4 = arith.constant 4 : index
    %c0_43 = arith.constant 0 : index
    %81 = vector.load %arg18[%c4, %c0_43] : memref<9x1024xf32, #tpu.memory_space<vmem>>, vector<1x1024xf32>
    tpu.vector_store %arg18[%c4, %c0_43], %64 {strides = array<i32>} : memref<9x1024xf32, #tpu.memory_space<vmem>>, vector<1x1024xf32>,
    %c5 = arith.constant 5 : index
    %c0_44 = arith.constant 0 : index
    %82 = vector.load %arg18[%c5, %c0_44] : memref<9x1024xf32, #tpu.memory_space<vmem>>, vector<1x1024xf32>
    tpu.vector_store %arg18[%c5, %c0_44], %67 {strides = array<i32>} : memref<9x1024xf32, #tpu.memory_space<vmem>>, vector<1x1024xf32>,
    %c6 = arith.constant 6 : index
    %c0_45 = arith.constant 0 : index
    %83 = vector.load %arg18[%c6, %c0_45] : memref<9x1024xf32, #tpu.memory_space<vmem>>, vector<1x1024xf32>
    tpu.vector_store %arg18[%c6, %c0_45], %70 {strides = array<i32>} : memref<9x1024xf32, #tpu.memory_space<vmem>>, vector<1x1024xf32>,
    %c7 = arith.constant 7 : index
    %c0_46 = arith.constant 0 : index
    %84 = vector.load %arg18[%c7, %c0_46] : memref<9x1024xf32, #tpu.memory_space<vmem>>, vector<1x1024xf32>
    tpu.vector_store %arg18[%c7, %c0_46], %73 {strides = array<i32>} : memref<9x1024xf32, #tpu.memory_space<vmem>>, vector<1x1024xf32>,
    %c8 = arith.constant 8 : index
    %c0_47 = arith.constant 0 : index
    %85 = vector.load %arg18[%c8, %c0_47] : memref<9x1024xf32, #tpu.memory_space<vmem>>, vector<1x1024xf32>
    tpu.vector_store %arg18[%c8, %c0_47], %76 {strides = array<i32>} : memref<9x1024xf32, #tpu.memory_space<vmem>>, vector<1x1024xf32>,
    %c0_48 = arith.constant 0 : index
    %c0_49 = arith.constant 0 : index
    %86 = vector.load %arg18[%c0_48, %c0_49] : memref<9x1024xf32, #tpu.memory_space<vmem>>, vector<9x1024xf32>
    %c0_50 = arith.constant 0 : index
    %c0_51 = arith.constant 0 : index
    %87 = vector.load %arg2[%c0_50, %c0_51] : memref<16x9xf32, #tpu.memory_space<vmem>>, vector<16x9xf32>
    %cst_52 = arith.constant dense<0.000000e+00> : vector<16x1024xf32>
    %88 = tpu.matmul %87, %86, %cst_52 {dimension_numbers = #tpu.dot_dimension_numbers<[1], [0], [0], [1], [0, 0, 1, 1], [], []>} : vector<16x9xf32>, vector<9x1024xf32>, vector<16x1024xf32> -> vector<16x1024xf32>
    %c0_53 = arith.constant 0 : index
    %c0_54 = arith.constant 0 : index
    %89 = vector.load %arg3[%c0_53, %c0_54] : memref<16x1xf32, #tpu.memory_space<vmem>>, vector<16x1xf32>
    %90 = vector.broadcast %89 : vector<16x1xf32> to vector<16x1024xf32>
    %91 = arith.addf %88, %90 : vector<16x1024xf32>
    %cst_55 = arith.constant 0.000000e+00 : f32
    %92 = vector.broadcast %cst_55 : f32 to vector<16x1024xf32>
    %93 = arith.maximumf %91, %92 : vector<16x1024xf32>
    %c0_56 = arith.constant 0 : index
    %c0_57 = arith.constant 0 : index
    %94 = vector.load %arg17[%c0_56, %c0_57] : memref<16x1058xf32, #tpu.memory_space<vmem>>, vector<16x1024xf32>
    tpu.vector_store %arg17[%c0_56, %c0_57], %93 {strides = array<i32>} : memref<16x1058xf32, #tpu.memory_space<vmem>>, vector<16x1024xf32>,
    %cst_58 = arith.constant 0.000000e+00 : f32
    %95 = vector.broadcast %cst_58 : f32 to vector<16x17xf32>
    %c0_59 = arith.constant 0 : index
    %c1024 = arith.constant 1024 : index
    %96 = vector.load %arg17[%c0_59, %c1024] : memref<16x1058xf32, #tpu.memory_space<vmem>>, vector<16x17xf32>
    tpu.vector_store %arg17[%c0_59, %c1024], %95 {strides = array<i32>} : memref<16x1058xf32, #tpu.memory_space<vmem>>, vector<16x17xf32>,
    %c0_60 = arith.constant 0 : index
    %c0_61 = arith.constant 0 : index
    %97 = vector.load %arg17[%c0_60, %c0_61] : memref<16x1058xf32, #tpu.memory_space<vmem>>, vector<16x1024xf32>
    %c0_62 = arith.constant 0 : index
    %c1_63 = arith.constant 1 : index
    %98 = vector.load %arg17[%c0_62, %c1_63] : memref<16x1058xf32, #tpu.memory_space<vmem>>, vector<16x1024xf32>
    %99 = arith.maximumf %97, %98 : vector<16x1024xf32>
    %c0_64 = arith.constant 0 : index
    %c16_65 = arith.constant 16 : index
    %100 = vector.load %arg17[%c0_64, %c16_65] : memref<16x1058xf32, #tpu.memory_space<vmem>>, vector<16x1024xf32>
    %c0_66 = arith.constant 0 : index
    %c17_67 = arith.constant 17 : index
    %101 = vector.load %arg17[%c0_66, %c17_67] : memref<16x1058xf32, #tpu.memory_space<vmem>>, vector<16x1024xf32>
    %102 = arith.maximumf %100, %101 : vector<16x1024xf32>
    %103 = arith.maximumf %99, %102 : vector<16x1024xf32>
    %c0_68 = arith.constant 0 : index
    %c0_69 = arith.constant 0 : index
    %104 = vector.load %arg12[%c0_68, %c0_69] : memref<1024x256xf32, #tpu.memory_space<vmem>>, vector<1024x256xf32>
    %cst_70 = arith.constant dense<0.000000e+00> : vector<16x256xf32>
    %105 = tpu.matmul %103, %104, %cst_70 {dimension_numbers = #tpu.dot_dimension_numbers<[1], [0], [0], [1], [0, 0, 1, 1], [], []>} : vector<16x1024xf32>, vector<1024x256xf32>, vector<16x256xf32> -> vector<16x256xf32>
    %106 = tpu.iota {dimensions = array<i32: 1>} : vector<1x256xi32>
    %c8_i32 = arith.constant 8 : i32
    %c0_i32_71 = arith.constant 0 : i32
    %107 = arith.cmpi eq, %c8_i32, %c0_i32_71 : i32
    %c1_i32_72 = arith.constant 1 : i32
    %108 = arith.select %107, %c1_i32_72, %c8_i32 : i32
    %109 = vector.broadcast %108 : i32 to vector<1x256xi32>
    %110 = arith.remsi %106, %109 : vector<1x256xi32>
    %c0_i32_73 = arith.constant 0 : i32
    %111 = vector.broadcast %c0_i32_73 : i32 to vector<1x256xi32>
    %112 = arith.cmpi ne, %110, %111 : vector<1x256xi32>
    %c0_i32_74 = arith.constant 0 : i32
    %113 = vector.broadcast %c0_i32_74 : i32 to vector<1x256xi32>
    %114 = arith.cmpi slt, %110, %113 : vector<1x256xi32>
    %c0_i32_75 = arith.constant 0 : i32
    %115 = arith.cmpi slt, %108, %c0_i32_75 : i32
    %116 = vector.broadcast %115 : i1 to vector<1x256xi1>
    %117 = vector.broadcast %116 : vector<1x256xi1> to vector<1x256xi1>
    %118 = arith.xori %114, %117 : vector<1x256xi1>
    %119 = arith.andi %118, %112 : vector<1x256xi1>
    %120 = vector.broadcast %108 : i32 to vector<1x256xi32>
    %121 = arith.addi %110, %120 : vector<1x256xi32>
    %122 = arith.select %119, %121, %110 : vector<1x256xi1>, vector<1x256xi32>
    %c64_i32 = arith.constant 64 : i32
    %c0_i32_76 = arith.constant 0 : i32
    %123 = arith.cmpi eq, %c64_i32, %c0_i32_76 : i32
    %c1_i32_77 = arith.constant 1 : i32
    %124 = arith.select %123, %c1_i32_77, %c64_i32 : i32
    %125 = vector.broadcast %124 : i32 to vector<1x256xi32>
    %126 = arith.remsi %106, %125 : vector<1x256xi32>
    %c0_i32_78 = arith.constant 0 : i32
    %127 = vector.broadcast %c0_i32_78 : i32 to vector<1x256xi32>
    %128 = arith.cmpi ne, %126, %127 : vector<1x256xi32>
    %c0_i32_79 = arith.constant 0 : i32
    %129 = vector.broadcast %c0_i32_79 : i32 to vector<1x256xi32>
    %130 = arith.cmpi slt, %126, %129 : vector<1x256xi32>
    %c0_i32_80 = arith.constant 0 : i32
    %131 = arith.cmpi slt, %124, %c0_i32_80 : i32
    %132 = vector.broadcast %131 : i1 to vector<1x256xi1>
    %133 = vector.broadcast %132 : vector<1x256xi1> to vector<1x256xi1>
    %134 = arith.xori %130, %133 : vector<1x256xi1>
    %135 = arith.andi %134, %128 : vector<1x256xi1>
    %136 = vector.broadcast %124 : i32 to vector<1x256xi32>
    %137 = arith.addi %126, %136 : vector<1x256xi32>
    %138 = arith.select %135, %137, %126 : vector<1x256xi1>, vector<1x256xi32>
    %c0_i32_81 = arith.constant 0 : i32
    %139 = vector.broadcast %c0_i32_81 : i32 to vector<1x256xi32>
    %140 = arith.cmpi ne, %122, %139 : vector<1x256xi32>
    %c7_i32 = arith.constant 7 : i32
    %141 = vector.broadcast %c7_i32 : i32 to vector<1x256xi32>
    %142 = arith.cmpi ne, %122, %141 : vector<1x256xi32>
    %c8_i32_82 = arith.constant 8 : i32
    %143 = vector.broadcast %c8_i32_82 : i32 to vector<1x256xi32>
    %144 = arith.cmpi sge, %138, %143 : vector<1x256xi32>
    %c56_i32 = arith.constant 56 : i32
    %145 = vector.broadcast %c56_i32 : i32 to vector<1x256xi32>
    %146 = arith.cmpi slt, %138, %145 : vector<1x256xi32>
    %147 = arith.andi %144, %140 : vector<1x256xi1>
    %148 = arith.andi %144, %142 : vector<1x256xi1>
    %149 = arith.andi %146, %140 : vector<1x256xi1>
    %150 = arith.andi %146, %142 : vector<1x256xi1>
    %cst_83 = arith.constant 0.000000e+00 : f32
    %151 = vector.broadcast %cst_83 : f32 to vector<16x9xf32>
    %c0_84 = arith.constant 0 : index
    %c0_85 = arith.constant 0 : index
    %152 = vector.load %arg17[%c0_84, %c0_85] : memref<16x1058xf32, #tpu.memory_space<vmem>>, vector<16x9xf32>
    tpu.vector_store %arg17[%c0_84, %c0_85], %151 {strides = array<i32>} : memref<16x1058xf32, #tpu.memory_space<vmem>>, vector<16x9xf32>,
    %c0_86 = arith.constant 0 : index
    %c9 = arith.constant 9 : index
    %153 = vector.load %arg17[%c0_86, %c9] : memref<16x1058xf32, #tpu.memory_space<vmem>>, vector<16x256xf32>
    tpu.vector_store %arg17[%c0_86, %c9], %105 {strides = array<i32>} : memref<16x1058xf32, #tpu.memory_space<vmem>>, vector<16x256xf32>,
    %cst_87 = arith.constant 0.000000e+00 : f32
    %154 = vector.broadcast %cst_87 : f32 to vector<16x9xf32>
    %c0_88 = arith.constant 0 : index
    %c265 = arith.constant 265 : index
    %155 = vector.load %arg17[%c0_88, %c265] : memref<16x1058xf32, #tpu.memory_space<vmem>>, vector<16x9xf32>
    tpu.vector_store %arg17[%c0_88, %c265], %154 {strides = array<i32>} : memref<16x1058xf32, #tpu.memory_space<vmem>>, vector<16x9xf32>,
    %c0_89 = arith.constant 0 : index
    %c0_90 = arith.constant 0 : index
    %156 = vector.load %arg17[%c0_89, %c0_90] : memref<16x1058xf32, #tpu.memory_space<vmem>>, vector<16x256xf32>
    %cst_91 = arith.constant 0.000000e+00 : f32
    %157 = vector.shape_cast %147 : vector<1x256xi1> to vector<1x256xi1>
    %158 = vector.broadcast %157 : vector<1x256xi1> to vector<16x256xi1>
    %159 = vector.broadcast %cst_91 : f32 to vector<16x256xf32>
    %160 = arith.select %158, %156, %159 : vector<16x256xi1>, vector<16x256xf32>
    %c0_92 = arith.constant 0 : index
    %c1_93 = arith.constant 1 : index
    %161 = vector.load %arg17[%c0_92, %c1_93] : memref<16x1058xf32, #tpu.memory_space<vmem>>, vector<16x256xf32>
    %cst_94 = arith.constant 0.000000e+00 : f32
    %162 = vector.shape_cast %144 : vector<1x256xi1> to vector<1x256xi1>
    %163 = vector.broadcast %162 : vector<1x256xi1> to vector<16x256xi1>
    %164 = vector.broadcast %cst_94 : f32 to vector<16x256xf32>
    %165 = arith.select %163, %161, %164 : vector<16x256xi1>, vector<16x256xf32>
    %c0_95 = arith.constant 0 : index
    %c2_96 = arith.constant 2 : index
    %166 = vector.load %arg17[%c0_95, %c2_96] : memref<16x1058xf32, #tpu.memory_space<vmem>>, vector<16x256xf32>
    %cst_97 = arith.constant 0.000000e+00 : f32
    %167 = vector.shape_cast %148 : vector<1x256xi1> to vector<1x256xi1>
    %168 = vector.broadcast %167 : vector<1x256xi1> to vector<16x256xi1>
    %169 = vector.broadcast %cst_97 : f32 to vector<16x256xf32>
    %170 = arith.select %168, %166, %169 : vector<16x256xi1>, vector<16x256xf32>
    %c0_98 = arith.constant 0 : index
    %c8_99 = arith.constant 8 : index
    %171 = vector.load %arg17[%c0_98, %c8_99] : memref<16x1058xf32, #tpu.memory_space<vmem>>, vector<16x256xf32>
    %cst_100 = arith.constant 0.000000e+00 : f32
    %172 = vector.shape_cast %140 : vector<1x256xi1> to vector<1x256xi1>
    %173 = vector.broadcast %172 : vector<1x256xi1> to vector<16x256xi1>
    %174 = vector.broadcast %cst_100 : f32 to vector<16x256xf32>
    %175 = arith.select %173, %171, %174 : vector<16x256xi1>, vector<16x256xf32>
    %c0_101 = arith.constant 0 : index
    %c9_102 = arith.constant 9 : index
    %176 = vector.load %arg17[%c0_101, %c9_102] : memref<16x1058xf32, #tpu.memory_space<vmem>>, vector<16x256xf32>
    %c0_103 = arith.constant 0 : index
    %c10 = arith.constant 10 : index
    %177 = vector.load %arg17[%c0_103, %c10] : memref<16x1058xf32, #tpu.memory_space<vmem>>, vector<16x256xf32>
    %cst_104 = arith.constant 0.000000e+00 : f32
    %178 = vector.shape_cast %142 : vector<1x256xi1> to vector<1x256xi1>
    %179 = vector.broadcast %178 : vector<1x256xi1> to vector<16x256xi1>
    %180 = vector.broadcast %cst_104 : f32 to vector<16x256xf32>
    %181 = arith.select %179, %177, %180 : vector<16x256xi1>, vector<16x256xf32>
    %c0_105 = arith.constant 0 : index
    %c16_106 = arith.constant 16 : index
    %182 = vector.load %arg17[%c0_105, %c16_106] : memref<16x1058xf32, #tpu.memory_space<vmem>>, vector<16x256xf32>
    %cst_107 = arith.constant 0.000000e+00 : f32
    %183 = vector.shape_cast %149 : vector<1x256xi1> to vector<1x256xi1>
    %184 = vector.broadcast %183 : vector<1x256xi1> to vector<16x256xi1>
    %185 = vector.broadcast %cst_107 : f32 to vector<16x256xf32>
    %186 = arith.select %184, %182, %185 : vector<16x256xi1>, vector<16x256xf32>
    %c0_108 = arith.constant 0 : index
    %c17_109 = arith.constant 17 : index
    %187 = vector.load %arg17[%c0_108, %c17_109] : memref<16x1058xf32, #tpu.memory_space<vmem>>, vector<16x256xf32>
    %cst_110 = arith.constant 0.000000e+00 : f32
    %188 = vector.shape_cast %146 : vector<1x256xi1> to vector<1x256xi1>
    %189 = vector.broadcast %188 : vector<1x256xi1> to vector<16x256xi1>
    %190 = vector.broadcast %cst_110 : f32 to vector<16x256xf32>
    %191 = arith.select %189, %187, %190 : vector<16x256xi1>, vector<16x256xf32>
    %c0_111 = arith.constant 0 : index
    %c18_112 = arith.constant 18 : index
    %192 = vector.load %arg17[%c0_111, %c18_112] : memref<16x1058xf32, #tpu.memory_space<vmem>>, vector<16x256xf32>
    %cst_113 = arith.constant 0.000000e+00 : f32
    %193 = vector.shape_cast %150 : vector<1x256xi1> to vector<1x256xi1>
    %194 = vector.broadcast %193 : vector<1x256xi1> to vector<16x256xi1>
    %195 = vector.broadcast %cst_113 : f32 to vector<16x256xf32>
    %196 = arith.select %194, %192, %195 : vector<16x256xi1>, vector<16x256xf32>
    %197 = tpu.concatenate %160, %165, %170, %175, %176, %181, %186, %191, %196 in 0 : vector<16x256xf32>, vector<16x256xf32>, vector<16x256xf32>, vector<16x256xf32>, vector<16x256xf32>, vector<16x256xf32>, vector<16x256xf32>, vector<16x256xf32>, vector<16x256xf32> -> vector<144x256xf32>
    %c0_114 = arith.constant 0 : index
    %c0_115 = arith.constant 0 : index
    %198 = vector.load %arg4[%c0_114, %c0_115] : memref<8x144xf32, #tpu.memory_space<vmem>>, vector<8x144xf32>
    %cst_116 = arith.constant dense<0.000000e+00> : vector<8x256xf32>
    %199 = tpu.matmul %198, %197, %cst_116 {dimension_numbers = #tpu.dot_dimension_numbers<[1], [0], [0], [1], [0, 0, 1, 1], [], []>} : vector<8x144xf32>, vector<144x256xf32>, vector<8x256xf32> -> vector<8x256xf32>
    %c0_117 = arith.constant 0 : index
    %c0_118 = arith.constant 0 : index
    %200 = vector.load %arg5[%c0_117, %c0_118] : memref<8x1xf32, #tpu.memory_space<vmem>>, vector<8x1xf32>
    %201 = vector.broadcast %200 : vector<8x1xf32> to vector<8x256xf32>
    %202 = arith.addf %199, %201 : vector<8x256xf32>
    %cst_119 = arith.constant 0.000000e+00 : f32
    %203 = vector.broadcast %cst_119 : f32 to vector<8x256xf32>
    %204 = arith.maximumf %202, %203 : vector<8x256xf32>
    %c0_120 = arith.constant 0 : index
    %c0_121 = arith.constant 0 : index
    %205 = vector.load %arg17[%c0_120, %c0_121] : memref<16x1058xf32, #tpu.memory_space<vmem>>, vector<8x256xf32>
    tpu.vector_store %arg17[%c0_120, %c0_121], %204 {strides = array<i32>} : memref<16x1058xf32, #tpu.memory_space<vmem>>, vector<8x256xf32>,
    %cst_122 = arith.constant 0.000000e+00 : f32
    %206 = vector.broadcast %cst_122 : f32 to vector<8x9xf32>
    %c0_123 = arith.constant 0 : index
    %c256 = arith.constant 256 : index
    %207 = vector.load %arg17[%c0_123, %c256] : memref<16x1058xf32, #tpu.memory_space<vmem>>, vector<8x9xf32>
    tpu.vector_store %arg17[%c0_123, %c256], %206 {strides = array<i32>} : memref<16x1058xf32, #tpu.memory_space<vmem>>, vector<8x9xf32>,
    %c0_124 = arith.constant 0 : index
    %c0_125 = arith.constant 0 : index
    %208 = vector.load %arg17[%c0_124, %c0_125] : memref<16x1058xf32, #tpu.memory_space<vmem>>, vector<8x256xf32>
    %c0_126 = arith.constant 0 : index
    %c1_127 = arith.constant 1 : index
    %209 = vector.load %arg17[%c0_126, %c1_127] : memref<16x1058xf32, #tpu.memory_space<vmem>>, vector<8x256xf32>
    %210 = arith.maximumf %208, %209 : vector<8x256xf32>
    %c0_128 = arith.constant 0 : index
    %c8_129 = arith.constant 8 : index
    %211 = vector.load %arg17[%c0_128, %c8_129] : memref<16x1058xf32, #tpu.memory_space<vmem>>, vector<8x256xf32>
    %c0_130 = arith.constant 0 : index
    %c9_131 = arith.constant 9 : index
    %212 = vector.load %arg17[%c0_130, %c9_131] : memref<16x1058xf32, #tpu.memory_space<vmem>>, vector<8x256xf32>
    %213 = arith.maximumf %211, %212 : vector<8x256xf32>
    %214 = arith.maximumf %210, %213 : vector<8x256xf32>
    %c0_132 = arith.constant 0 : index
    %c0_133 = arith.constant 0 : index
    %215 = vector.load %arg13[%c0_132, %c0_133] : memref<256x64xf32, #tpu.memory_space<vmem>>, vector<256x64xf32>
    %cst_134 = arith.constant dense<0.000000e+00> : vector<8x64xf32>
    %216 = tpu.matmul %214, %215, %cst_134 {dimension_numbers = #tpu.dot_dimension_numbers<[1], [0], [0], [1], [0, 0, 1, 1], [], []>} : vector<8x256xf32>, vector<256x64xf32>, vector<8x64xf32> -> vector<8x64xf32>
    %217 = tpu.iota {dimensions = array<i32: 1>} : vector<1x64xi32>
    %c4_i32 = arith.constant 4 : i32
    %c0_i32_135 = arith.constant 0 : i32
    %218 = arith.cmpi eq, %c4_i32, %c0_i32_135 : i32
    %c1_i32_136 = arith.constant 1 : i32
    %219 = arith.select %218, %c1_i32_136, %c4_i32 : i32
    %220 = vector.broadcast %219 : i32 to vector<1x64xi32>
    %221 = arith.remsi %217, %220 : vector<1x64xi32>
    %c0_i32_137 = arith.constant 0 : i32
    %222 = vector.broadcast %c0_i32_137 : i32 to vector<1x64xi32>
    %223 = arith.cmpi ne, %221, %222 : vector<1x64xi32>
    %c0_i32_138 = arith.constant 0 : i32
    %224 = vector.broadcast %c0_i32_138 : i32 to vector<1x64xi32>
    %225 = arith.cmpi slt, %221, %224 : vector<1x64xi32>
    %c0_i32_139 = arith.constant 0 : i32
    %226 = arith.cmpi slt, %219, %c0_i32_139 : i32
    %227 = vector.broadcast %226 : i1 to vector<1x64xi1>
    %228 = vector.broadcast %227 : vector<1x64xi1> to vector<1x64xi1>
    %229 = arith.xori %225, %228 : vector<1x64xi1>
    %230 = arith.andi %229, %223 : vector<1x64xi1>
    %231 = vector.broadcast %219 : i32 to vector<1x64xi32>
    %232 = arith.addi %221, %231 : vector<1x64xi32>
    %233 = arith.select %230, %232, %221 : vector<1x64xi1>, vector<1x64xi32>
    %c16_i32_140 = arith.constant 16 : i32
    %c0_i32_141 = arith.constant 0 : i32
    %234 = arith.cmpi eq, %c16_i32_140, %c0_i32_141 : i32
    %c1_i32_142 = arith.constant 1 : i32
    %235 = arith.select %234, %c1_i32_142, %c16_i32_140 : i32
    %236 = vector.broadcast %235 : i32 to vector<1x64xi32>
    %237 = arith.remsi %217, %236 : vector<1x64xi32>
    %c0_i32_143 = arith.constant 0 : i32
    %238 = vector.broadcast %c0_i32_143 : i32 to vector<1x64xi32>
    %239 = arith.cmpi ne, %237, %238 : vector<1x64xi32>
    %c0_i32_144 = arith.constant 0 : i32
    %240 = vector.broadcast %c0_i32_144 : i32 to vector<1x64xi32>
    %241 = arith.cmpi slt, %237, %240 : vector<1x64xi32>
    %c0_i32_145 = arith.constant 0 : i32
    %242 = arith.cmpi slt, %235, %c0_i32_145 : i32
    %243 = vector.broadcast %242 : i1 to vector<1x64xi1>
    %244 = vector.broadcast %243 : vector<1x64xi1> to vector<1x64xi1>
    %245 = arith.xori %241, %244 : vector<1x64xi1>
    %246 = arith.andi %245, %239 : vector<1x64xi1>
    %247 = vector.broadcast %235 : i32 to vector<1x64xi32>
    %248 = arith.addi %237, %247 : vector<1x64xi32>
    %249 = arith.select %246, %248, %237 : vector<1x64xi1>, vector<1x64xi32>
    %c0_i32_146 = arith.constant 0 : i32
    %250 = vector.broadcast %c0_i32_146 : i32 to vector<1x64xi32>
    %251 = arith.cmpi ne, %233, %250 : vector<1x64xi32>
    %c3_i32 = arith.constant 3 : i32
    %252 = vector.broadcast %c3_i32 : i32 to vector<1x64xi32>
    %253 = arith.cmpi ne, %233, %252 : vector<1x64xi32>
    %c4_i32_147 = arith.constant 4 : i32
    %254 = vector.broadcast %c4_i32_147 : i32 to vector<1x64xi32>
    %255 = arith.cmpi sge, %249, %254 : vector<1x64xi32>
    %c12_i32 = arith.constant 12 : i32
    %256 = vector.broadcast %c12_i32 : i32 to vector<1x64xi32>
    %257 = arith.cmpi slt, %249, %256 : vector<1x64xi32>
    %258 = arith.andi %255, %251 : vector<1x64xi1>
    %259 = arith.andi %255, %253 : vector<1x64xi1>
    %260 = arith.andi %257, %251 : vector<1x64xi1>
    %261 = arith.andi %257, %253 : vector<1x64xi1>
    %cst_148 = arith.constant 0.000000e+00 : f32
    %262 = vector.broadcast %cst_148 : f32 to vector<8x5xf32>
    %c0_149 = arith.constant 0 : index
    %c0_150 = arith.constant 0 : index
    %263 = vector.load %arg17[%c0_149, %c0_150] : memref<16x1058xf32, #tpu.memory_space<vmem>>, vector<8x5xf32>
    tpu.vector_store %arg17[%c0_149, %c0_150], %262 {strides = array<i32>} : memref<16x1058xf32, #tpu.memory_space<vmem>>, vector<8x5xf32>,
    %c0_151 = arith.constant 0 : index
    %c5_152 = arith.constant 5 : index
    %264 = vector.load %arg17[%c0_151, %c5_152] : memref<16x1058xf32, #tpu.memory_space<vmem>>, vector<8x64xf32>
    tpu.vector_store %arg17[%c0_151, %c5_152], %216 {strides = array<i32>} : memref<16x1058xf32, #tpu.memory_space<vmem>>, vector<8x64xf32>,
    %cst_153 = arith.constant 0.000000e+00 : f32
    %265 = vector.broadcast %cst_153 : f32 to vector<8x5xf32>
    %c0_154 = arith.constant 0 : index
    %c69 = arith.constant 69 : index
    %266 = vector.load %arg17[%c0_154, %c69] : memref<16x1058xf32, #tpu.memory_space<vmem>>, vector<8x5xf32>
    tpu.vector_store %arg17[%c0_154, %c69], %265 {strides = array<i32>} : memref<16x1058xf32, #tpu.memory_space<vmem>>, vector<8x5xf32>,
    %c0_155 = arith.constant 0 : index
    %c0_156 = arith.constant 0 : index
    %267 = vector.load %arg17[%c0_155, %c0_156] : memref<16x1058xf32, #tpu.memory_space<vmem>>, vector<8x64xf32>
    %cst_157 = arith.constant 0.000000e+00 : f32
    %268 = vector.shape_cast %258 : vector<1x64xi1> to vector<1x64xi1>
    %269 = vector.broadcast %268 : vector<1x64xi1> to vector<8x64xi1>
    %270 = vector.broadcast %cst_157 : f32 to vector<8x64xf32>
    %271 = arith.select %269, %267, %270 : vector<8x64xi1>, vector<8x64xf32>
    %c0_158 = arith.constant 0 : index
    %c1_159 = arith.constant 1 : index
    %272 = vector.load %arg17[%c0_158, %c1_159] : memref<16x1058xf32, #tpu.memory_space<vmem>>, vector<8x64xf32>
    %cst_160 = arith.constant 0.000000e+00 : f32
    %273 = vector.shape_cast %255 : vector<1x64xi1> to vector<1x64xi1>
    %274 = vector.broadcast %273 : vector<1x64xi1> to vector<8x64xi1>
    %275 = vector.broadcast %cst_160 : f32 to vector<8x64xf32>
    %276 = arith.select %274, %272, %275 : vector<8x64xi1>, vector<8x64xf32>
    %c0_161 = arith.constant 0 : index
    %c2_162 = arith.constant 2 : index
    %277 = vector.load %arg17[%c0_161, %c2_162] : memref<16x1058xf32, #tpu.memory_space<vmem>>, vector<8x64xf32>
    %cst_163 = arith.constant 0.000000e+00 : f32
    %278 = vector.shape_cast %259 : vector<1x64xi1> to vector<1x64xi1>
    %279 = vector.broadcast %278 : vector<1x64xi1> to vector<8x64xi1>
    %280 = vector.broadcast %cst_163 : f32 to vector<8x64xf32>
    %281 = arith.select %279, %277, %280 : vector<8x64xi1>, vector<8x64xf32>
    %c0_164 = arith.constant 0 : index
    %c4_165 = arith.constant 4 : index
    %282 = vector.load %arg17[%c0_164, %c4_165] : memref<16x1058xf32, #tpu.memory_space<vmem>>, vector<8x64xf32>
    %cst_166 = arith.constant 0.000000e+00 : f32
    %283 = vector.shape_cast %251 : vector<1x64xi1> to vector<1x64xi1>
    %284 = vector.broadcast %283 : vector<1x64xi1> to vector<8x64xi1>
    %285 = vector.broadcast %cst_166 : f32 to vector<8x64xf32>
    %286 = arith.select %284, %282, %285 : vector<8x64xi1>, vector<8x64xf32>
    %c0_167 = arith.constant 0 : index
    %c5_168 = arith.constant 5 : index
    %287 = vector.load %arg17[%c0_167, %c5_168] : memref<16x1058xf32, #tpu.memory_space<vmem>>, vector<8x64xf32>
    %c0_169 = arith.constant 0 : index
    %c6_170 = arith.constant 6 : index
    %288 = vector.load %arg17[%c0_169, %c6_170] : memref<16x1058xf32, #tpu.memory_space<vmem>>, vector<8x64xf32>
    %cst_171 = arith.constant 0.000000e+00 : f32
    %289 = vector.shape_cast %253 : vector<1x64xi1> to vector<1x64xi1>
    %290 = vector.broadcast %289 : vector<1x64xi1> to vector<8x64xi1>
    %291 = vector.broadcast %cst_171 : f32 to vector<8x64xf32>
    %292 = arith.select %290, %288, %291 : vector<8x64xi1>, vector<8x64xf32>
    %c0_172 = arith.constant 0 : index
    %c8_173 = arith.constant 8 : index
    %293 = vector.load %arg17[%c0_172, %c8_173] : memref<16x1058xf32, #tpu.memory_space<vmem>>, vector<8x64xf32>
    %cst_174 = arith.constant 0.000000e+00 : f32
    %294 = vector.shape_cast %260 : vector<1x64xi1> to vector<1x64xi1>
    %295 = vector.broadcast %294 : vector<1x64xi1> to vector<8x64xi1>
    %296 = vector.broadcast %cst_174 : f32 to vector<8x64xf32>
    %297 = arith.select %295, %293, %296 : vector<8x64xi1>, vector<8x64xf32>
    %c0_175 = arith.constant 0 : index
    %c9_176 = arith.constant 9 : index
    %298 = vector.load %arg17[%c0_175, %c9_176] : memref<16x1058xf32, #tpu.memory_space<vmem>>, vector<8x64xf32>
    %cst_177 = arith.constant 0.000000e+00 : f32
    %299 = vector.shape_cast %257 : vector<1x64xi1> to vector<1x64xi1>
    %300 = vector.broadcast %299 : vector<1x64xi1> to vector<8x64xi1>
    %301 = vector.broadcast %cst_177 : f32 to vector<8x64xf32>
    %302 = arith.select %300, %298, %301 : vector<8x64xi1>, vector<8x64xf32>
    %c0_178 = arith.constant 0 : index
    %c10_179 = arith.constant 10 : index
    %303 = vector.load %arg17[%c0_178, %c10_179] : memref<16x1058xf32, #tpu.memory_space<vmem>>, vector<8x64xf32>
    %cst_180 = arith.constant 0.000000e+00 : f32
    %304 = vector.shape_cast %261 : vector<1x64xi1> to vector<1x64xi1>
    %305 = vector.broadcast %304 : vector<1x64xi1> to vector<8x64xi1>
    %306 = vector.broadcast %cst_180 : f32 to vector<8x64xf32>
    %307 = arith.select %305, %303, %306 : vector<8x64xi1>, vector<8x64xf32>
    %308 = tpu.concatenate %271, %276, %281, %286, %287, %292, %297, %302, %307 in 0 : vector<8x64xf32>, vector<8x64xf32>, vector<8x64xf32>, vector<8x64xf32>, vector<8x64xf32>, vector<8x64xf32>, vector<8x64xf32>, vector<8x64xf32>, vector<8x64xf32> -> vector<72x64xf32>
    %c0_181 = arith.constant 0 : index
    %c0_182 = arith.constant 0 : index
    %309 = vector.load %arg6[%c0_181, %c0_182] : memref<16x72xf32, #tpu.memory_space<vmem>>, vector<16x72xf32>
    %cst_183 = arith.constant dense<0.000000e+00> : vector<16x64xf32>
    %310 = tpu.matmul %309, %308, %cst_183 {dimension_numbers = #tpu.dot_dimension_numbers<[1], [0], [0], [1], [0, 0, 1, 1], [], []>} : vector<16x72xf32>, vector<72x64xf32>, vector<16x64xf32> -> vector<16x64xf32>
    %c0_184 = arith.constant 0 : index
    %c0_185 = arith.constant 0 : index
    %311 = vector.load %arg7[%c0_184, %c0_185] : memref<16x1xf32, #tpu.memory_space<vmem>>, vector<16x1xf32>
    %312 = vector.broadcast %311 : vector<16x1xf32> to vector<16x64xf32>
    %313 = arith.addf %310, %312 : vector<16x64xf32>
    %cst_186 = arith.constant 0.000000e+00 : f32
    %314 = vector.broadcast %cst_186 : f32 to vector<16x64xf32>
    %315 = arith.maximumf %313, %314 : vector<16x64xf32>
    %c0_187 = arith.constant 0 : index
    %c0_188 = arith.constant 0 : index
    %316 = vector.load %arg14[%c0_187, %c0_188] : memref<64x256xf32, #tpu.memory_space<vmem>>, vector<64x256xf32>
    %cst_189 = arith.constant dense<0.000000e+00> : vector<16x256xf32>
    %317 = tpu.matmul %315, %316, %cst_189 {dimension_numbers = #tpu.dot_dimension_numbers<[1], [0], [0], [1], [0, 0, 1, 1], [], []>} : vector<16x64xf32>, vector<64x256xf32>, vector<16x256xf32> -> vector<16x256xf32>
    %cst_190 = arith.constant 0.000000e+00 : f32
    %318 = vector.broadcast %cst_190 : f32 to vector<16x9xf32>
    %c0_191 = arith.constant 0 : index
    %c0_192 = arith.constant 0 : index
    %319 = vector.load %arg17[%c0_191, %c0_192] : memref<16x1058xf32, #tpu.memory_space<vmem>>, vector<16x9xf32>
    tpu.vector_store %arg17[%c0_191, %c0_192], %318 {strides = array<i32>} : memref<16x1058xf32, #tpu.memory_space<vmem>>, vector<16x9xf32>,
    %c0_193 = arith.constant 0 : index
    %c9_194 = arith.constant 9 : index
    %320 = vector.load %arg17[%c0_193, %c9_194] : memref<16x1058xf32, #tpu.memory_space<vmem>>, vector<16x256xf32>
    tpu.vector_store %arg17[%c0_193, %c9_194], %317 {strides = array<i32>} : memref<16x1058xf32, #tpu.memory_space<vmem>>, vector<16x256xf32>,
    %cst_195 = arith.constant 0.000000e+00 : f32
    %321 = vector.broadcast %cst_195 : f32 to vector<16x9xf32>
    %c0_196 = arith.constant 0 : index
    %c265_197 = arith.constant 265 : index
    %322 = vector.load %arg17[%c0_196, %c265_197] : memref<16x1058xf32, #tpu.memory_space<vmem>>, vector<16x9xf32>
    tpu.vector_store %arg17[%c0_196, %c265_197], %321 {strides = array<i32>} : memref<16x1058xf32, #tpu.memory_space<vmem>>, vector<16x9xf32>,
    %c0_198 = arith.constant 0 : index
    %c0_199 = arith.constant 0 : index
    %323 = vector.load %arg17[%c0_198, %c0_199] : memref<16x1058xf32, #tpu.memory_space<vmem>>, vector<16x256xf32>
    %cst_200 = arith.constant 0.000000e+00 : f32
    %324 = vector.shape_cast %147 : vector<1x256xi1> to vector<1x256xi1>
    %325 = vector.broadcast %324 : vector<1x256xi1> to vector<16x256xi1>
    %326 = vector.broadcast %cst_200 : f32 to vector<16x256xf32>
    %327 = arith.select %325, %323, %326 : vector<16x256xi1>, vector<16x256xf32>
    %c0_201 = arith.constant 0 : index
    %c1_202 = arith.constant 1 : index
    %328 = vector.load %arg17[%c0_201, %c1_202] : memref<16x1058xf32, #tpu.memory_space<vmem>>, vector<16x256xf32>
    %cst_203 = arith.constant 0.000000e+00 : f32
    %329 = vector.shape_cast %144 : vector<1x256xi1> to vector<1x256xi1>
    %330 = vector.broadcast %329 : vector<1x256xi1> to vector<16x256xi1>
    %331 = vector.broadcast %cst_203 : f32 to vector<16x256xf32>
    %332 = arith.select %330, %328, %331 : vector<16x256xi1>, vector<16x256xf32>
    %c0_204 = arith.constant 0 : index
    %c2_205 = arith.constant 2 : index
    %333 = vector.load %arg17[%c0_204, %c2_205] : memref<16x1058xf32, #tpu.memory_space<vmem>>, vector<16x256xf32>
    %cst_206 = arith.constant 0.000000e+00 : f32
    %334 = vector.shape_cast %148 : vector<1x256xi1> to vector<1x256xi1>
    %335 = vector.broadcast %334 : vector<1x256xi1> to vector<16x256xi1>
    %336 = vector.broadcast %cst_206 : f32 to vector<16x256xf32>
    %337 = arith.select %335, %333, %336 : vector<16x256xi1>, vector<16x256xf32>
    %c0_207 = arith.constant 0 : index
    %c8_208 = arith.constant 8 : index
    %338 = vector.load %arg17[%c0_207, %c8_208] : memref<16x1058xf32, #tpu.memory_space<vmem>>, vector<16x256xf32>
    %cst_209 = arith.constant 0.000000e+00 : f32
    %339 = vector.shape_cast %140 : vector<1x256xi1> to vector<1x256xi1>
    %340 = vector.broadcast %339 : vector<1x256xi1> to vector<16x256xi1>
    %341 = vector.broadcast %cst_209 : f32 to vector<16x256xf32>
    %342 = arith.select %340, %338, %341 : vector<16x256xi1>, vector<16x256xf32>
    %c0_210 = arith.constant 0 : index
    %c9_211 = arith.constant 9 : index
    %343 = vector.load %arg17[%c0_210, %c9_211] : memref<16x1058xf32, #tpu.memory_space<vmem>>, vector<16x256xf32>
    %c0_212 = arith.constant 0 : index
    %c10_213 = arith.constant 10 : index
    %344 = vector.load %arg17[%c0_212, %c10_213] : memref<16x1058xf32, #tpu.memory_space<vmem>>, vector<16x256xf32>
    %cst_214 = arith.constant 0.000000e+00 : f32
    %345 = vector.shape_cast %142 : vector<1x256xi1> to vector<1x256xi1>
    %346 = vector.broadcast %345 : vector<1x256xi1> to vector<16x256xi1>
    %347 = vector.broadcast %cst_214 : f32 to vector<16x256xf32>
    %348 = arith.select %346, %344, %347 : vector<16x256xi1>, vector<16x256xf32>
    %c0_215 = arith.constant 0 : index
    %c16_216 = arith.constant 16 : index
    %349 = vector.load %arg17[%c0_215, %c16_216] : memref<16x1058xf32, #tpu.memory_space<vmem>>, vector<16x256xf32>
    %cst_217 = arith.constant 0.000000e+00 : f32
    %350 = vector.shape_cast %149 : vector<1x256xi1> to vector<1x256xi1>
    %351 = vector.broadcast %350 : vector<1x256xi1> to vector<16x256xi1>
    %352 = vector.broadcast %cst_217 : f32 to vector<16x256xf32>
    %353 = arith.select %351, %349, %352 : vector<16x256xi1>, vector<16x256xf32>
    %c0_218 = arith.constant 0 : index
    %c17_219 = arith.constant 17 : index
    %354 = vector.load %arg17[%c0_218, %c17_219] : memref<16x1058xf32, #tpu.memory_space<vmem>>, vector<16x256xf32>
    %cst_220 = arith.constant 0.000000e+00 : f32
    %355 = vector.shape_cast %146 : vector<1x256xi1> to vector<1x256xi1>
    %356 = vector.broadcast %355 : vector<1x256xi1> to vector<16x256xi1>
    %357 = vector.broadcast %cst_220 : f32 to vector<16x256xf32>
    %358 = arith.select %356, %354, %357 : vector<16x256xi1>, vector<16x256xf32>
    %c0_221 = arith.constant 0 : index
    %c18_222 = arith.constant 18 : index
    %359 = vector.load %arg17[%c0_221, %c18_222] : memref<16x1058xf32, #tpu.memory_space<vmem>>, vector<16x256xf32>
    %cst_223 = arith.constant 0.000000e+00 : f32
    %360 = vector.shape_cast %150 : vector<1x256xi1> to vector<1x256xi1>
    %361 = vector.broadcast %360 : vector<1x256xi1> to vector<16x256xi1>
    %362 = vector.broadcast %cst_223 : f32 to vector<16x256xf32>
    %363 = arith.select %361, %359, %362 : vector<16x256xi1>, vector<16x256xf32>
    %364 = tpu.concatenate %327, %332, %337, %342, %343, %348, %353, %358, %363 in 0 : vector<16x256xf32>, vector<16x256xf32>, vector<16x256xf32>, vector<16x256xf32>, vector<16x256xf32>, vector<16x256xf32>, vector<16x256xf32>, vector<16x256xf32>, vector<16x256xf32> -> vector<144x256xf32>
    %c0_224 = arith.constant 0 : index
    %c0_225 = arith.constant 0 : index
    %365 = vector.load %arg8[%c0_224, %c0_225] : memref<8x144xf32, #tpu.memory_space<vmem>>, vector<8x144xf32>
    %cst_226 = arith.constant dense<0.000000e+00> : vector<8x256xf32>
    %366 = tpu.matmul %365, %364, %cst_226 {dimension_numbers = #tpu.dot_dimension_numbers<[1], [0], [0], [1], [0, 0, 1, 1], [], []>} : vector<8x144xf32>, vector<144x256xf32>, vector<8x256xf32> -> vector<8x256xf32>
    %c0_227 = arith.constant 0 : index
    %c0_228 = arith.constant 0 : index
    %367 = vector.load %arg9[%c0_227, %c0_228] : memref<8x1xf32, #tpu.memory_space<vmem>>, vector<8x1xf32>
    %368 = vector.broadcast %367 : vector<8x1xf32> to vector<8x256xf32>
    %369 = arith.addf %366, %368 : vector<8x256xf32>
    %cst_229 = arith.constant 0.000000e+00 : f32
    %370 = vector.broadcast %cst_229 : f32 to vector<8x256xf32>
    %371 = arith.maximumf %369, %370 : vector<8x256xf32>
    %c0_230 = arith.constant 0 : index
    %c0_231 = arith.constant 0 : index
    %372 = vector.load %arg15[%c0_230, %c0_231] : memref<256x1024xf32, #tpu.memory_space<vmem>>, vector<256x1024xf32>
    %cst_232 = arith.constant dense<0.000000e+00> : vector<8x1024xf32>
    %373 = tpu.matmul %371, %372, %cst_232 {dimension_numbers = #tpu.dot_dimension_numbers<[1], [0], [0], [1], [0, 0, 1, 1], [], []>} : vector<8x256xf32>, vector<256x1024xf32>, vector<8x1024xf32> -> vector<8x1024xf32>
    %cst_233 = arith.constant 0.000000e+00 : f32
    %374 = vector.broadcast %cst_233 : f32 to vector<8x17xf32>
    %c0_234 = arith.constant 0 : index
    %c0_235 = arith.constant 0 : index
    %375 = vector.load %arg17[%c0_234, %c0_235] : memref<16x1058xf32, #tpu.memory_space<vmem>>, vector<8x17xf32>
    tpu.vector_store %arg17[%c0_234, %c0_235], %374 {strides = array<i32>} : memref<16x1058xf32, #tpu.memory_space<vmem>>, vector<8x17xf32>,
    %c0_236 = arith.constant 0 : index
    %c17_237 = arith.constant 17 : index
    %376 = vector.load %arg17[%c0_236, %c17_237] : memref<16x1058xf32, #tpu.memory_space<vmem>>, vector<8x1024xf32>
    tpu.vector_store %arg17[%c0_236, %c17_237], %373 {strides = array<i32>} : memref<16x1058xf32, #tpu.memory_space<vmem>>, vector<8x1024xf32>,
    %cst_238 = arith.constant 0.000000e+00 : f32
    %377 = vector.broadcast %cst_238 : f32 to vector<8x17xf32>
    %c0_239 = arith.constant 0 : index
    %c1041_240 = arith.constant 1041 : index
    %378 = vector.load %arg17[%c0_239, %c1041_240] : memref<16x1058xf32, #tpu.memory_space<vmem>>, vector<8x17xf32>
    tpu.vector_store %arg17[%c0_239, %c1041_240], %377 {strides = array<i32>} : memref<16x1058xf32, #tpu.memory_space<vmem>>, vector<8x17xf32>,
    %c0_241 = arith.constant 0 : index
    %c0_242 = arith.constant 0 : index
    %379 = vector.load %arg17[%c0_241, %c0_242] : memref<16x1058xf32, #tpu.memory_space<vmem>>, vector<8x1024xf32>
    %cst_243 = arith.constant 0.000000e+00 : f32
    %380 = vector.shape_cast %43 : vector<1x1024xi1> to vector<1x1024xi1>
    %381 = vector.broadcast %380 : vector<1x1024xi1> to vector<8x1024xi1>
    %382 = vector.broadcast %cst_243 : f32 to vector<8x1024xf32>
    %383 = arith.select %381, %379, %382 : vector<8x1024xi1>, vector<8x1024xf32>
    %c0_244 = arith.constant 0 : index
    %c1_245 = arith.constant 1 : index
    %384 = vector.load %arg17[%c0_244, %c1_245] : memref<16x1058xf32, #tpu.memory_space<vmem>>, vector<8x1024xf32>
    %cst_246 = arith.constant 0.000000e+00 : f32
    %385 = vector.shape_cast %40 : vector<1x1024xi1> to vector<1x1024xi1>
    %386 = vector.broadcast %385 : vector<1x1024xi1> to vector<8x1024xi1>
    %387 = vector.broadcast %cst_246 : f32 to vector<8x1024xf32>
    %388 = arith.select %386, %384, %387 : vector<8x1024xi1>, vector<8x1024xf32>
    %c0_247 = arith.constant 0 : index
    %c2_248 = arith.constant 2 : index
    %389 = vector.load %arg17[%c0_247, %c2_248] : memref<16x1058xf32, #tpu.memory_space<vmem>>, vector<8x1024xf32>
    %cst_249 = arith.constant 0.000000e+00 : f32
    %390 = vector.shape_cast %44 : vector<1x1024xi1> to vector<1x1024xi1>
    %391 = vector.broadcast %390 : vector<1x1024xi1> to vector<8x1024xi1>
    %392 = vector.broadcast %cst_249 : f32 to vector<8x1024xf32>
    %393 = arith.select %391, %389, %392 : vector<8x1024xi1>, vector<8x1024xf32>
    %c0_250 = arith.constant 0 : index
    %c16_251 = arith.constant 16 : index
    %394 = vector.load %arg17[%c0_250, %c16_251] : memref<16x1058xf32, #tpu.memory_space<vmem>>, vector<8x1024xf32>
    %cst_252 = arith.constant 0.000000e+00 : f32
    %395 = vector.shape_cast %36 : vector<1x1024xi1> to vector<1x1024xi1>
    %396 = vector.broadcast %395 : vector<1x1024xi1> to vector<8x1024xi1>
    %397 = vector.broadcast %cst_252 : f32 to vector<8x1024xf32>
    %398 = arith.select %396, %394, %397 : vector<8x1024xi1>, vector<8x1024xf32>
    %c0_253 = arith.constant 0 : index
    %c17_254 = arith.constant 17 : index
    %399 = vector.load %arg17[%c0_253, %c17_254] : memref<16x1058xf32, #tpu.memory_space<vmem>>, vector<8x1024xf32>
    %c0_255 = arith.constant 0 : index
    %c18_256 = arith.constant 18 : index
    %400 = vector.load %arg17[%c0_255, %c18_256] : memref<16x1058xf32, #tpu.memory_space<vmem>>, vector<8x1024xf32>
    %cst_257 = arith.constant 0.000000e+00 : f32
    %401 = vector.shape_cast %38 : vector<1x1024xi1> to vector<1x1024xi1>
    %402 = vector.broadcast %401 : vector<1x1024xi1> to vector<8x1024xi1>
    %403 = vector.broadcast %cst_257 : f32 to vector<8x1024xf32>
    %404 = arith.select %402, %400, %403 : vector<8x1024xi1>, vector<8x1024xf32>
    %c0_258 = arith.constant 0 : index
    %c32_259 = arith.constant 32 : index
    %405 = vector.load %arg17[%c0_258, %c32_259] : memref<16x1058xf32, #tpu.memory_space<vmem>>, vector<8x1024xf32>
    %cst_260 = arith.constant 0.000000e+00 : f32
    %406 = vector.shape_cast %45 : vector<1x1024xi1> to vector<1x1024xi1>
    %407 = vector.broadcast %406 : vector<1x1024xi1> to vector<8x1024xi1>
    %408 = vector.broadcast %cst_260 : f32 to vector<8x1024xf32>
    %409 = arith.select %407, %405, %408 : vector<8x1024xi1>, vector<8x1024xf32>
    %c0_261 = arith.constant 0 : index
    %c33_262 = arith.constant 33 : index
    %410 = vector.load %arg17[%c0_261, %c33_262] : memref<16x1058xf32, #tpu.memory_space<vmem>>, vector<8x1024xf32>
    %cst_263 = arith.constant 0.000000e+00 : f32
    %411 = vector.shape_cast %42 : vector<1x1024xi1> to vector<1x1024xi1>
    %412 = vector.broadcast %411 : vector<1x1024xi1> to vector<8x1024xi1>
    %413 = vector.broadcast %cst_263 : f32 to vector<8x1024xf32>
    %414 = arith.select %412, %410, %413 : vector<8x1024xi1>, vector<8x1024xf32>
    %c0_264 = arith.constant 0 : index
    %c34_265 = arith.constant 34 : index
    %415 = vector.load %arg17[%c0_264, %c34_265] : memref<16x1058xf32, #tpu.memory_space<vmem>>, vector<8x1024xf32>
    %cst_266 = arith.constant 0.000000e+00 : f32
    %416 = vector.shape_cast %46 : vector<1x1024xi1> to vector<1x1024xi1>
    %417 = vector.broadcast %416 : vector<1x1024xi1> to vector<8x1024xi1>
    %418 = vector.broadcast %cst_266 : f32 to vector<8x1024xf32>
    %419 = arith.select %417, %415, %418 : vector<8x1024xi1>, vector<8x1024xf32>
    %420 = tpu.concatenate %383, %388, %393, %398, %399, %404, %409, %414, %419 in 0 : vector<8x1024xf32>, vector<8x1024xf32>, vector<8x1024xf32>, vector<8x1024xf32>, vector<8x1024xf32>, vector<8x1024xf32>, vector<8x1024xf32>, vector<8x1024xf32>, vector<8x1024xf32> -> vector<72x1024xf32>
    %c0_267 = arith.constant 0 : index
    %c0_268 = arith.constant 0 : index
    %421 = vector.load %arg10[%c0_267, %c0_268] : memref<1x72xf32, #tpu.memory_space<vmem>>, vector<1x72xf32>
    %cst_269 = arith.constant dense<0.000000e+00> : vector<1x1024xf32>
    %422 = tpu.matmul %421, %420, %cst_269 {dimension_numbers = #tpu.dot_dimension_numbers<[1], [0], [0], [1], [0, 0, 1, 1], [], []>} : vector<1x72xf32>, vector<72x1024xf32>, vector<1x1024xf32> -> vector<1x1024xf32>
    %c0_270 = arith.constant 0 : index
    %c0_271 = arith.constant 0 : index
    %423 = vector.load %arg11[%c0_270, %c0_271] : memref<1x1xf32, #tpu.memory_space<vmem>>, vector<1x1xf32>
    %424 = vector.broadcast %423 : vector<1x1xf32> to vector<1x1024xf32>
    %425 = arith.addf %422, %424 : vector<1x1024xf32>
    %426 = arith.negf %425 : vector<1x1024xf32>
    %427 = math.exp %426 : vector<1x1024xf32>
    %cst_272 = arith.constant 1.000000e+00 : f32
    %428 = vector.broadcast %cst_272 : f32 to vector<1x1024xf32>
    %429 = arith.addf %428, %427 : vector<1x1024xf32>
    %430 = arith.divf %428, %429 : vector<1x1024xf32>
    %c0_273 = arith.constant 0 : index
    %c0_274 = arith.constant 0 : index
    %c0_275 = arith.constant 0 : index
    %431 = vector.load %arg16[%c0_273, %c0_274, %c0_275] : memref<1x1x1024xf32, #tpu.memory_space<vmem>>, vector<1x1x1024xf32>
    %432 = vector.shape_cast %431 : vector<1x1x1024xf32> to vector<1x1024xf32>
    %433 = vector.shape_cast %430 : vector<1x1024xf32> to vector<1x1x1024xf32>
    tpu.vector_store %arg16[%c0_273, %c0_274, %c0_275], %433 {strides = array<i32>} : memref<1x1x1024xf32, #tpu.memory_space<vmem>>, vector<1x1x1024xf32>,
    return
  }
  func.func @transform_0(%arg0: i32) -> (i32, i32, i32) {
    %c0_i32 = arith.constant 0 : i32
    %c0_i32_0 = arith.constant 0 : i32
    %c0_i32_1 = arith.constant 0 : i32
    return %arg0, %c0_i32, %c0_i32_0 : i32, i32, i32
  }
  func.func @transform_1(%arg0: i32) -> (i32, i32) {
    %c0_i32 = arith.constant 0 : i32
    %c0_i32_0 = arith.constant 0 : i32
    %c0_i32_1 = arith.constant 0 : i32
    return %c0_i32, %c0_i32_0 : i32, i32
  }
  func.func @transform_2(%arg0: i32) -> (i32, i32) {
    %c0_i32 = arith.constant 0 : i32
    %c0_i32_0 = arith.constant 0 : i32
    %c0_i32_1 = arith.constant 0 : i32
    return %c0_i32, %c0_i32_0 : i32, i32
  }
  func.func @transform_3(%arg0: i32) -> (i32, i32) {
    %c0_i32 = arith.constant 0 : i32
    %c0_i32_0 = arith.constant 0 : i32
    %c0_i32_1 = arith.constant 0 : i32
    return %c0_i32, %c0_i32_0 : i32, i32
  }
  func.func @transform_4(%arg0: i32) -> (i32, i32) {
    %c0_i32 = arith.constant 0 : i32
    %c0_i32_0 = arith.constant 0 : i32
    %c0_i32_1 = arith.constant 0 : i32
    return %c0_i32, %c0_i32_0 : i32, i32
  }
  func.func @transform_5(%arg0: i32) -> (i32, i32) {
    %c0_i32 = arith.constant 0 : i32
    %c0_i32_0 = arith.constant 0 : i32
    %c0_i32_1 = arith.constant 0 : i32
    return %c0_i32, %c0_i32_0 : i32, i32
  }
  func.func @transform_6(%arg0: i32) -> (i32, i32) {
    %c0_i32 = arith.constant 0 : i32
    %c0_i32_0 = arith.constant 0 : i32
    %c0_i32_1 = arith.constant 0 : i32
    return %c0_i32, %c0_i32_0 : i32, i32
  }
  func.func @transform_7(%arg0: i32) -> (i32, i32) {
    %c0_i32 = arith.constant 0 : i32
    %c0_i32_0 = arith.constant 0 : i32
    %c0_i32_1 = arith.constant 0 : i32
    return %c0_i32, %c0_i32_0 : i32, i32
  }
  func.func @transform_8(%arg0: i32) -> (i32, i32) {
    %c0_i32 = arith.constant 0 : i32
    %c0_i32_0 = arith.constant 0 : i32
    %c0_i32_1 = arith.constant 0 : i32
    return %c0_i32, %c0_i32_0 : i32, i32
  }
  func.func @transform_9(%arg0: i32) -> (i32, i32) {
    %c0_i32 = arith.constant 0 : i32
    %c0_i32_0 = arith.constant 0 : i32
    %c0_i32_1 = arith.constant 0 : i32
    return %c0_i32, %c0_i32_0 : i32, i32
  }
  func.func @transform_10(%arg0: i32) -> (i32, i32) {
    %c0_i32 = arith.constant 0 : i32
    %c0_i32_0 = arith.constant 0 : i32
    %c0_i32_1 = arith.constant 0 : i32
    return %c0_i32, %c0_i32_0 : i32, i32
  }
  func.func @transform_11(%arg0: i32) -> (i32, i32) {
    %c0_i32 = arith.constant 0 : i32
    %c0_i32_0 = arith.constant 0 : i32
    %c0_i32_1 = arith.constant 0 : i32
    return %c0_i32, %c0_i32_0 : i32, i32
  }
  func.func @transform_12(%arg0: i32) -> (i32, i32) {
    %c0_i32 = arith.constant 0 : i32
    %c0_i32_0 = arith.constant 0 : i32
    %c0_i32_1 = arith.constant 0 : i32
    return %c0_i32, %c0_i32_0 : i32, i32
  }
  func.func @transform_13(%arg0: i32) -> (i32, i32) {
    %c0_i32 = arith.constant 0 : i32
    %c0_i32_0 = arith.constant 0 : i32
    %c0_i32_1 = arith.constant 0 : i32
    return %c0_i32, %c0_i32_0 : i32, i32
  }
  func.func @transform_14(%arg0: i32) -> (i32, i32) {
    %c0_i32 = arith.constant 0 : i32
    %c0_i32_0 = arith.constant 0 : i32
    %c0_i32_1 = arith.constant 0 : i32
    return %c0_i32, %c0_i32_0 : i32, i32
  }
  func.func @transform_15(%arg0: i32) -> (i32, i32, i32) {
    %c0_i32 = arith.constant 0 : i32
    %c0_i32_0 = arith.constant 0 : i32
    %c0_i32_1 = arith.constant 0 : i32
    return %arg0, %c0_i32, %c0_i32_0 : i32, i32, i32
  }
}

</mosaic_0001>

<bundles_post_ra>
// kernel: forward.1
= control target key start
LH: loop header
LB: loop body
LE: loop exit
PB: predicated region body
PF: predicated region fallthrough
CT: control target
= control target key end

     0   :  { %s9870_s0 = inlined_call_operand.vmem [shape: f32[2,1,1024], index: 0, kind: input, shape index: {}]   ;;  %s9871_s1 = inlined_call_operand.vmem [shape: f32[16,9], index: 1, kind: input, shape index: {}]   ;;  %s9872_s2 = inlined_call_operand.vmem [shape: f32[16,1], index: 2, kind: input, shape index: {}]   ;;  %s9873_s3 = inlined_call_operand.vmem [shape: f32[8,144], index: 3, kind: input, shape index: {}]   ;;  %s9874_s4 = inlined_call_operand.vmem [shape: f32[8,1], index: 4, kind: input, shape index: {}]   ;;  %s9875_s5 = inlined_call_operand.vmem [shape: f32[16,72], index: 5, kind: input, shape index: {}]   ;;  %s9876_s6 = inlined_call_operand.vmem [shape: f32[16,1], index: 6, kind: input, shape index: {}]   ;;  %s9877_s7 = inlined_call_operand.vmem [shape: f32[8,144], index: 7, kind: input, shape index: {}]   ;;  %s9878_s8 = inlined_call_operand.vmem [shape: f32[8,1], index: 8, kind: input, shape index: {}]   ;;  %s9879_s9 = inlined_call_operand.vmem [shape: f32[1,72], index: 9, kind: input, shape index: {}]   ;;  %s9880_s10 = inlined_call_operand.<no memory space> [shape: f32[1,1], index: 10, kind: input, shape index: {}]   ;;  %s9881_s11 = inlined_call_operand.hbm [shape: f32[1024,256], index: 11, kind: input, shape index: {}]   ;;  %s9882_s12 = inlined_call_operand.vmem [shape: f32[256,64], index: 12, kind: input, shape index: {}]   ;;  %s9883_s13 = inlined_call_operand.vmem [shape: f32[64,256], index: 13, kind: input, shape index: {}]   ;;  %s9884_s14 = inlined_call_operand.hbm [shape: f32[256,1024], index: 14, kind: input, shape index: {}]   ;;  %s9885_s15 = inlined_call_operand.vmem [shape: f32[2,1,1024], index: 15, kind: output, shape index: {}]  }
   0x1   :  { %v20_v0 = vstv %s9880_s10 }
   0x2   :  { %21 = vst [vmem:[#allocation4] sm:$0x1] %v20_v0 }
   0x3   :  { %22 = vsyncpa [#allocation6], 0 }
   0x4   :  { %23 = vsyncpa [#allocation8], 0  ;;  %s7381_s20 = smov 0  }
   0x5 LB: > { %10047 = sst [smem:[#allocation11_spill]] %s7269_s20  ;;  %s7271_s21 = smov [#allocation5]   ;;  %s7269_s20 = sphi %s7381_s20, %s29_s20  }
   0x6   : > { %s422_s22 = sshll.u32 %s7271_s21, 4  ;;  %s7387_s23 = sadd.s32 4294967295, %s7269_s20   ;;  %s423_s22 = int_to_ptr.vmem [resolvable:$true] %s422_s22 }
   0x7   : > { %p5579_p0 = scmp.ge.s32.totalorder %s7269_s20, 1  ;;  %p380_p1 = scmp.lt.s32.totalorder %s7269_s20, 3 }
   0x8   : > { %p9886_p3 = scmp.eq.s32.totalorder %s7387_s23, 0  ;;  %s7272_s24 = smov [#allocation7]  }
   0x9   : > { %p7391_p2 = pnand %p5579_p0, %p380_p1  ;;  %s441_s25 = sshll.u32 %s7272_s24, 4  ;;  %s7404_s25 = int_to_ptr.vmem [resolvable:$true] %s441_s25 }
   0xa   : > { %s7199_s29 = scalar_lea.hbm %s9881_s11, 32768 }
   0xb   : > { %s10048_s10 = scalar_select %p7391_p2, 1, 0 }
   0xc   : > { %p6649_p4 = pneg %p7391_p2  ;;  %p7200_p6 = scmp.ne.s32.totalorder %s9881_s11, %s7199_s29 }
   0xd   : > { %p7206_p10 = scmp.lt.u32.totalorder %s7199_s29, %s9881_s11 }
   0xe   : > { %p7400_p5 = pnand %p9886_p3, %p6649_p4 }
  0x10   : > { %p7201_p7 = pneg %p7400_p5 }
  0x12   : > { %p7202_p8 = pnand %p7201_p7, %p7200_p6 }
  0x14   : > { %p7203_p9 = pneg %p7202_p8 }
  0x16   : > { %p7208_p11 = pnand %p7206_p10, %p7203_p9 }
  0x18   : > { %7211 = shalt.err (!%p7208_p11)
}
  0x19   : > { %s7212_s19 = scalar_lea.vmem %s423_s22, 32768  ;;  %p7220_p1 = scmp.lt.s32.totalorder %s423_s22, %s423_s22 }
  0x1a   : > { %p7213_p12 = scmp.ne.s32.totalorder %s423_s22, %s7212_s19  ;;  %p7221_p4 = scmp.lt.s32.totalorder %s7212_s19, %s7212_s19 }
  0x1c   : > { %p7215_p13 = pnand %p7213_p12, %p7201_p7  ;;  %p7222_p3 = por %p7221_p4, %p7220_p1 }
  0x1e   : > { %p7216_p0 = pneg %p7215_p13 }
  0x20   : > { %p7223_p2 = pnand %p7222_p3, %p7216_p0 }
  0x22   : > { %7226 = shalt.err (!%p7223_p2)
}
  0x23   : > { %s7273_s21 = smov 256   ;;  %s7274_s24 = smov 16  }
  0x24   : > { %6652 = dma.hbm_to_vmem [thread:$0]  (!%p7400_p5), %s9881_s11, 32768, %s423_s22, [#allocation6], %s7273_s21, %s7273_s21, %s7274_s24  }
  0x25   : > { %s7227_s16 = scalar_lea.hbm %s9884_s14, 32768 }
  0x26   : > { %p7228_p6 = scmp.ne.s32.totalorder %s9884_s14, %s7227_s16  ;;  %p7234_p8 = scmp.lt.u32.totalorder %s7227_s16, %s9884_s14 }
  0x28   : > { %p7230_p2 = pnand %p7228_p6, %p7201_p7 }
  0x2a   : > { %p7231_p3 = pneg %p7230_p2 }
  0x2c   : > { %p7236_p9 = pnand %p7234_p8, %p7231_p3 }
  0x2e   : > { %7239 = shalt.err (!%p7236_p9)
}
  0x2f   : > { %s7240_s22 = scalar_lea.vmem %s7404_s25, 32768  ;;  %p7248_p13 = scmp.lt.s32.totalorder %s7404_s25, %s7404_s25 }
  0x30   : > { %p7241_p10 = scmp.ne.s32.totalorder %s7404_s25, %s7240_s22  ;;  %p7249_p0 = scmp.lt.s32.totalorder %s7240_s22, %s7240_s22 }
  0x32   : > { %p7243_p11 = pnand %p7241_p10, %p7201_p7  ;;  %p7250_p1 = por %p7249_p0, %p7248_p13 }
  0x34   : > { %p7244_p12 = pneg %p7243_p11 }
  0x36   : > { %p7251_p4 = pnand %p7250_p1, %p7244_p12 }
  0x38   : > { %7254 = shalt.err (!%p7251_p4)
}
  0x39   : > { %s7275_s20 = smov 1024   ;;  %s7276_s21 = smov 64  }
  0x3a   : > { %6655 = dma.hbm_to_vmem [thread:$0]  (!%p7400_p5), %s9884_s14, 32768, %s7404_s25, [#allocation8], %s7275_s20, %s7275_s20, %s7276_s21  }
  0x3b   : > { %p10050_p6 = scmp.ne.s32.totalorder %s10048_s10, 0 }
  0x3d   : > { %464 = sbr.rel (%p10050_p6) target bundleno = 4462 (0x116e), region = 80 }
  0x44   : > { %p10051_p7 = scmp.eq.s32.totalorder %s7387_s23, 0 }
  0x46   : > { %7260 = dma.done.wait (%p10051_p7), [#allocation6], 32768   ;;  %p10052_p2 = pmov %p10051_p7 }
  0x48   : > { %7262 = vsyncadd (%p10052_p2), [#allocation6], 4294934528  ;;  %p10053_p3 = pmov %p10052_p2 }
  0x49   : > { %p10054_p8 = pmov %p10052_p2 }
  0x4a   : > { %7264 = dma.done.wait (%p10053_p3), [#allocation8], 32768  }
  0x4b   : > { %7266 = vsyncadd (%p10054_p8), [#allocation8], 4294934528  ;;  %p514_p9 = scmp.lt.s32.totalorder %s7387_s23, 1  ;;  %vm788_vm0 = vcmask 131072   ;;  %v9945_v1 = vmov 0.0   ;;  %vm9889_vm1 = vcmask 138240   ;;  %v523_v3 = vlaneseq }
  0x4c   : > { %789 = vst.msk [vmem:[#allocation2] sm:$0x1] %vm788_vm0, %v9945_v1  ;;  %1798 = vmatprep.mubr.f32.mxu0 %v9945_v1  ;;  %1881 = vmatprep.mubr.f32.mxu1 %v9945_v1  ;;  %s10020_s29 = smov 17   ;;  %v7279_v6 = vmov 1966171168   ;;  %vm810_vm4 = vcmask 270472  }
  0x4d   : > { %s10480_s23 = smov (!%p514_p9, %s7387_s23), 1  ;;  %2075 = vst.msk [vmem:[#allocation2 + $0x88] sm:$0xff] %vm9889_vm1, %v9945_v1  ;;  %v7479_v4 = vand.u32 127, %v523_v3  ;;  %v7481_v5 = vshrl.u32 %v523_v3, 7  ;;  %v1184_v7 = vunpack.c.l.s4 %v7279_v6  ;;  %vm805_vm2 = vcmp.lt.s32.totalorder %v523_v3, 17  ;;  %s10026_s30 = smov 112  }
  0x4e   : > { %s9983_s10 = sshll.u32 %s10480_s23, 3  ;;  %vm799_vm3 = vcmp.ge.s32.totalorder %v523_v3, 17  ;;  %v10056_v32 = vmov 0  ;;  %v10058_v33 = vmov 0  ;;  %v10060_v39 = vmov 0  ;;  %s7281_s16 = smov 126  }
  0x4f   : > { %s517_s28 = scalar_lea.vmem %s9870_s0, %s9983_s10  ;;  %v7484_v9 = vadd.s32 256, %v7479_v4  ;;  %v7487_v11 = vadd.s32 512, %v7479_v4  ;;  %v1185_v12 = vunpack.c.0.s8 %v1184_v7  ;;  %v7491_v14 = vsub.s32 0, %v7481_v5  ;;  %s10018_s17 = smov 96  }
  0x50   : > { %v522_v2 = vld [vmem:[%s517_s28] sm:$0xff]  ;;  %v7494_v15 = vadd.s32 768, %v7479_v4  ;;  %v822_v16 = vsub.s32 1, %v7481_v5  ;;  %v826_v17 = vsub.s32 2, %v7481_v5  ;;  %v632_v18 = vand.u32 255, %v7479_v4  ;;  %s10022_s18 = smov 110  }
  0x51   : > { %791 = vrot.lane.b32.xlu0 %v522_v2, %s10020_s29  ;;  %10055 = vst [vmem:[#allocation12_spill] sm:$0xff] %v7491_v14  ;;  %v646_v19 = vand.u32 255, %v7484_v9  ;;  %v7502_v20 = vand.u32 15, %v7479_v4  ;;  %v7505_v21 = vadd.s32 128, %v7479_v4  ;;  %v7508_v22 = vadd.s32 384, %v7479_v4  ;;  %s9986_s19 = smov 95  }
  0x52   : > { %v7511_v23 = vadd.s32 640, %v7479_v4  ;;  %v550_v24 = vand.u32 15, %v7484_v9  ;;  %v564_v25 = vand.u32 15, %v7487_v11  ;;  %v660_v26 = vand.u32 255, %v7487_v11  ;;  %s9984_s22 = smov 94   ;;  %s7286_s20 = smov 127  }
  0x53   : > { %v7517_v27 = vadd.s32 896, %v7479_v4  ;;  %v830_v28 = vsub.s32 3, %v7481_v5  ;;  %v834_v29 = vsub.s32 4, %v7481_v5  ;;  %v838_v30 = vsub.s32 5, %v7481_v5  ;;  %s10024_s21 = smov 111   ;;  %s10028_s26 = smov 9  }
  0x54   : > { %v842_v31 = vsub.s32 6, %v7481_v5  ;;  %vm7523_vm5 = vcmp.ge.s32.totalorder %v632_v18, 16  ;;  %vm7527_vm6 = vcmp.ge.s32.totalorder %v646_v19, 16  ;;  %v578_v34 = vand.u32 15, %v7494_v15  ;;  %s7291_s28 = smov 120   ;;  %s7292_s24 = smov 119  }
  0x55   : > { %v10057_v32 = vsel %vm7523_vm5, 4294967295, %v10056_v32  ;;  %v10059_v33 = vsel %vm7527_vm6, 4294967295, %v10058_v33  ;;  %v674_v35 = vand.u32 255, %v7494_v15  ;;  %v543_v36 = vand.u32 15, %v7505_v21  ;;  %s7293_s27 = smov 118   ;;  %s7295_s10 = smov 122  }
  0x56   : > { %v557_v37 = vand.u32 15, %v7508_v22  ;;  %v571_v38 = vand.u32 15, %v7511_v23  ;;  %vm9893_vm7 = vcmp.ne.s32.totalorder %v7502_v20, 0  ;;  %vm7537_vm8 = vcmp.ge.s32.totalorder %v660_v26, 16  ;;  %s10271_s29 = smov 110  }
  0x57   : > { %v10061_v39 = vsel %vm7537_vm8, 4294967295, %v10060_v39  ;;  %v585_v40 = vand.u32 15, %v7517_v27  ;;  %vm7544_vm9 = vcmp.ne.s32.totalorder %v550_v24, 0  ;;  %v10062_v41 = vmov 0  ;;  %vm7570_vm12 = vmand %vm7523_vm5, %vm9893_vm7 }
  0x58   : > { %v10063_v41 = vsel %vm7544_vm9, 4294967295, %v10062_v41  ;;  %vm7550_vm10 = vcmp.ne.s32.totalorder %v564_v25, 0  ;;  %v10064_v42 = vmov 0  ;;  %v7555_v43 = vsub.s32 %v1185_v12, %v7481_v5  ;;  %vm9892_vm15 = vmand %vm7527_vm6, %vm7544_vm9 }
  0x59   : > { %v10065_v42 = vsel %vm7550_vm10, 4294967295, %v10064_v42  ;;  %v846_v48 = vsub.s32 7, %v7481_v5  ;;  %vm7562_vm11 = vcmp.ge.s32.totalorder %v674_v35, 16  ;;  %v10067_v49 = vmov 0 }
  0x5a   : > { %10066 = vst [vmem:[#allocation13_spill] sm:$0xff] %v7555_v43  ;;  %v10068_v49 = vsel %vm7562_vm11, 4294967295, %v10067_v49  ;;  %v10069_v50 = vmov 0  ;;  %vm7576_vm13 = vcmp.ne.s32.totalorder %v578_v34, 0  ;;  %v10071_v51 = vmov 0 }
  0x5b   : > { %v10070_v50 = vsel %vm7570_vm12, 4294967295, %v10069_v50  ;;  %v10072_v51 = vsel %vm7576_vm13, 4294967295, %v10071_v51  ;;  %vm7588_vm14 = vcmp.ne.s32.totalorder %v543_v36, 0  ;;  %v10074_v53 = vmov 0 }
  0x5c   : > { %10073 = vst [vmem:[#allocation14_spill] sm:$0xff] %v10072_v51  ;;  %v10075_v53 = vsel %vm7588_vm14, 4294967295, %v10074_v53  ;;  %vm7598_vm0 = vcmp.ne.s32.totalorder %v557_v37, 0  ;;  %v10076_v54 = vmov 0  ;;  %v10078_v55 = vmov 0 }
  0x5d   : > { %v10077_v54 = vsel %vm7598_vm0, 4294967295, %v10076_v54  ;;  %v10080_v63 = vmov 0  ;;  %vm7853_vm7 = vcmp.ne.s32.totalorder %v543_v36, 15  ;;  %v10088_v36 = vmov 0 }
  0x5e   : > { %v10096_v11 = vmov 0 }
  0xc3   : > { %v792_v8 = vpop.permute.xlu0 %791 }
  0xc4   : > { %v793_v10 = vrot.slane %v792_v8, 7 }
  0xc6   : > { %v795_v13 = vsel %vm9889_vm1, %v793_v10, %v792_v8  ;;  %808 = vst.msk [vmem:[#allocation2 + $0x40] ss:$8 sm:$0x1] %vm805_vm2, %v793_v10  ;;  %vm7604_vm2 = vcmp.ne.s32.totalorder %v571_v38, 0 }
  0xc7   : > { %802 = vst.msk [vmem:[#allocation2] ss:$8 sm:$0xf] %vm799_vm3, %v795_v13  ;;  %803 = vst.msk [vmem:[#allocation2] ss:$8 sm:$0xf0] %vm799_vm3, %v795_v13 }
  0xc8   : > { %811 = vst.msk [vmem:[#allocation2 + $0x40] sm:$0x1] %vm810_vm4, %v9945_v1  ;;  %v10079_v55 = vsel %vm7604_vm2, 4294967295, %v10078_v55  ;;  %vm9891_vm3 = vmand %vm7537_vm8, %vm7550_vm10  ;;  %vm7640_vm4 = vcmp.ne.s32.totalorder %v585_v40, 0 }
  0xc9   : > { %v10081_v63 = vsel %vm7640_vm4, 4294967295, %v10080_v63 }
  0xce   : > { %v812_v44 = vld [vmem:[#allocation2] ss:$8 sm:$0xf] }
  0xcf   : > { %v813_v45 = vld [vmem:[#allocation2] ss:$8 sm:$0xf0] }
  0xd0   : > { %v7557_v46 = vor.u32 %v813_v45, %v812_v44  ;;  %v7559_v47 = vld [vmem:[#allocation2 + $0x40] ss:$8 sm:$0x1] }
  0xd1   : > { %2074 = vst.msk [vmem:[#allocation2 + $0x40] sm:$0xff] %vm9889_vm1, %v9945_v1  ;;  %v7584_v52 = vrot.slane %v7559_v47, %v7491_v14  ;;  %vm9890_vm1 = vmand %vm7562_vm11, %vm7576_vm13  ;;  %vm7888_vm13 = vcmp.ne.s32.totalorder %v578_v34, 15 }
  0xd2   : > { %v7609_v56 = vrot.slane %v7557_v46, %v822_v16  ;;  %v7613_v57 = vrot.slane %v7557_v46, %v7491_v14  ;;  %v7616_v58 = vrot.slane %v7557_v46, %v826_v17  ;;  %v7619_v59 = vrot.slane %v7557_v46, %v830_v28  ;;  %v2314_v14 = vld [vmem:[#allocation5 + $0x60] sm:$0xff] }
  0xd3   : > { %972 = vrot.lane.b32.xlu0 %v7584_v52, %s10026_s30  ;;  %929 = vrot.lane.b32.xlu1 %v7584_v52, %s7281_s16  ;;  %v7630_v60 = vrot.slane %v7557_v46, %v834_v29  ;;  %v7633_v61 = vrot.slane %v7557_v46, %v838_v30  ;;  %v7636_v62 = vrot.slane %v7557_v46, %v842_v31 }
  0xd4   : > { %v7649_v0 = vrot.slane %v7557_v46, %v846_v48  ;;  %v856_v2 = vsel %vm7570_vm12, %v7613_v57, 0.0  ;;  %v857_v3 = vsel %vm7588_vm14, %v7609_v56, 0.0  ;;  %v858_v5 = vsel %vm9892_vm15, %v7616_v58, 0.0 }
  0xd5   : > { %v1179_v6 = vcombine.low %v856_v2, %v857_v3  ;;  %v859_v7 = vsel %vm7598_vm0, %v7619_v59, 0.0  ;;  %v860_v8 = vsel %vm9891_vm3, %v7630_v60, 0.0  ;;  %v861_v10 = vsel %vm7604_vm2, %v7633_v61, 0.0 }
  0xd6   : > { %v1180_v12 = vcombine.low %v858_v5, %v859_v7  ;;  %v863_v13 = vsel %vm7640_vm4, %v7649_v0, 0.0  ;;  %v862_v16 = vsel %vm9890_vm1, %v7636_v62, 0.0  ;;  %v1181_v17 = vcombine.low %v860_v8, %v861_v10 }
  0xd7   : > { %1058 = vrot.lane.b32.xlu0 %v7584_v52, %s10018_s17  ;;  %1015 = vrot.lane.b32.xlu1 %v7584_v52, %s10022_s18  ;;  %v1189_v18 = vrot.slane %v1179_v6, %v7555_v43  ;;  %v1182_v19 = vcombine.low %v862_v16, %v863_v13  ;;  %vm9899_vm1 = vcmp.ne.s32.totalorder %v7502_v20, 15  ;;  %vm9904_vm3 = vcmask 1031168  }
  0xd8   : > { %v1196_v26 = vrot.slane %v1180_v12, %v7555_v43  ;;  %v1203_v28 = vrot.slane %v1181_v17, %v7555_v43  ;;  %vm7847_vm15 = vcmp.ne.s32.totalorder %v550_v24, 15  ;;  %v10084_v12 = vmov 0  ;;  %vm7862_vm12 = vmand %vm7523_vm5, %vm9899_vm1 }
  0xd9   : > { %v1210_v29 = vrot.slane %v1182_v19, %v7555_v43  ;;  %v10085_v12 = vsel %vm7853_vm7, 4294967295, %v10084_v12  ;;  %v10086_v16 = vmov 0  ;;  %vm7874_vm2 = vcmp.ne.s32.totalorder %v557_v37, 15 }
  0xda   : > { %v1211_v30 = vcombine.low %v1189_v18, %v1196_v26  ;;  %v10087_v16 = vsel %vm7862_vm12, 4294967295, %v10086_v16  ;;  %v10089_v36 = vsel %vm7874_vm2, 4294967295, %v10088_v36  ;;  %vm7880_vm1 = vcmp.ne.s32.totalorder %v564_v25, 15 }
  0xdb   : > { %1101 = vrot.lane.b32.xlu0 %v7584_v52, %s9986_s19  ;;  %1144 = vrot.lane.b32.xlu1 %v7584_v52, %s9984_s22  ;;  %v1212_v31 = vcombine.low %v1203_v28, %v1210_v29  ;;  %v10090_v17 = vmov 0  ;;  %v10093_v28 = vmov 0  ;;  %vm7895_vm5 = vcmp.ne.s32.totalorder %v571_v38, 15  ;;  %v1690_v38 = vld [vmem:[%s9872_s2] sm:$0xff]  ;;  %v1691_v29 = vld [vmem:[%s9872_s2 + $0x8] sm:$0xff] }
  0xdc   : > { %v1219_v35 = vrot.slane %v1211_v30, %v7555_v43  ;;  %v10091_v17 = vsel %vm7880_vm1, 4294967295, %v10090_v17  ;;  %v10094_v28 = vsel %vm7888_vm13, 4294967295, %v10093_v28  ;;  %v10097_v11 = vsel %vm7895_vm5, 4294967295, %v10096_v11 }
  0xdd   : > { %v1226_v44 = vrot.slane %v1212_v31, %v7555_v43  ;;  %10092 = vst [vmem:[#allocation15_spill] sm:$0xff] %v10091_v17  ;;  %10095 = vst [vmem:[#allocation16_spill] sm:$0xff] %v10094_v28 }
  0xde   : > { %10098 = vst [vmem:[#allocation17_spill] sm:$0xff] %v10097_v11 }
  0xdf   : > { %872 = vrot.lane.b32.xlu1 %v7609_v56, %s7286_s20  ;;  %870 = vrot.lane.b32.xlu0 %v7613_v57, %s7286_s20  ;;  %v1227_v45 = vcombine.low %v1219_v35, %v1226_v44  ;;  %v10101_v44 = vmov 0 }
  0xe1   : > { %1229 = vst [vmem:[#allocation3] ss:$8 sm:$0xf] %v1227_v45  ;;  %1230 = vst [vmem:[#allocation3] ss:$8 sm:$0xf0] %v1227_v45 }
  0xe2   : > { %v7288_v45 = vmov 0  }
  0xe3   : > { %874 = vrot.lane.b32.xlu1 %v7616_v58, %s7286_s20  ;;  %876 = vrot.lane.b32.xlu0 %v7619_v59, %s7286_s20 }
  0xe4   : > { %6695 = vset.pattern.permute.xlu0 %v7288_v45  ;;  %6696 = vset.pattern.permute.xlu1 %v7288_v45 }
  0xe7   : > { %878 = vrot.lane.b32.xlu1 %v7630_v60, %s7286_s20  ;;  %880 = vrot.lane.b32.xlu0 %v7633_v61, %s7286_s20 }
  0xeb   : > { %882 = vrot.lane.b32.xlu1 %v7636_v62, %s7286_s20  ;;  %884 = vrot.lane.b32.xlu0 %v7649_v0, %s7286_s20 }
  0xef   : > { %913 = vrot.lane.b32.xlu1 %v7613_v57, %s7281_s16  ;;  %915 = vrot.lane.b32.xlu0 %v7609_v56, %s7281_s16 }
  0xf3   : > { %917 = vrot.lane.b32.xlu1 %v7616_v58, %s7281_s16  ;;  %919 = vrot.lane.b32.xlu0 %v7619_v59, %s7281_s16 }
  0xf7   : > { %921 = vrot.lane.b32.xlu1 %v7630_v60, %s7281_s16  ;;  %923 = vrot.lane.b32.xlu0 %v7633_v61, %s7281_s16 }
  0xfb   : > { %925 = vrot.lane.b32.xlu1 %v7636_v62, %s7281_s16  ;;  %927 = vrot.lane.b32.xlu0 %v7649_v0, %s7281_s16 }
  0xff   : > { %958 = vrot.lane.b32.xlu1 %v7609_v56, %s10026_s30  ;;  %956 = vrot.lane.b32.xlu0 %v7613_v57, %s10026_s30 }
 0x103   : > { %962 = vrot.lane.b32.xlu1 %v7619_v59, %s10026_s30  ;;  %960 = vrot.lane.b32.xlu0 %v7616_v58, %s10026_s30 }
 0x107   : > { %966 = vrot.lane.b32.xlu1 %v7633_v61, %s10026_s30  ;;  %964 = vrot.lane.b32.xlu0 %v7630_v60, %s10026_s30 }
 0x10b   : > { %970 = vrot.lane.b32.xlu1 %v7649_v0, %s10026_s30  ;;  %968 = vrot.lane.b32.xlu0 %v7636_v62, %s10026_s30 }
 0x10f   : > { %999 = vrot.lane.b32.xlu1 %v7613_v57, %s10022_s18  ;;  %1001 = vrot.lane.b32.xlu0 %v7609_v56, %s10022_s18 }
 0x113   : > { %1003 = vrot.lane.b32.xlu1 %v7616_v58, %s10022_s18  ;;  %1005 = vrot.lane.b32.xlu0 %v7619_v59, %s10022_s18 }
 0x117   : > { %1007 = vrot.lane.b32.xlu1 %v7630_v60, %s10022_s18  ;;  %1009 = vrot.lane.b32.xlu0 %v7633_v61, %s10022_s18 }
 0x11b   : > { %1011 = vrot.lane.b32.xlu1 %v7636_v62, %s10022_s18  ;;  %1013 = vrot.lane.b32.xlu0 %v7649_v0, %s10022_s18 }
 0x11f   : > { %1044 = vrot.lane.b32.xlu1 %v7609_v56, %s10018_s17  ;;  %1042 = vrot.lane.b32.xlu0 %v7613_v57, %s10018_s17 }
 0x123   : > { %1048 = vrot.lane.b32.xlu1 %v7619_v59, %s10018_s17  ;;  %1046 = vrot.lane.b32.xlu0 %v7616_v58, %s10018_s17 }
 0x127   : > { %1052 = vrot.lane.b32.xlu1 %v7633_v61, %s10018_s17  ;;  %1050 = vrot.lane.b32.xlu0 %v7630_v60, %s10018_s17 }
 0x12b   : > { %1056 = vrot.lane.b32.xlu1 %v7649_v0, %s10018_s17  ;;  %1054 = vrot.lane.b32.xlu0 %v7636_v62, %s10018_s17 }
 0x12f   : > { %1087 = vrot.lane.b32.xlu1 %v7609_v56, %s9986_s19  ;;  %1089 = vrot.lane.b32.xlu0 %v7616_v58, %s9986_s19 }
 0x133   : > { %1091 = vrot.lane.b32.xlu1 %v7619_v59, %s9986_s19  ;;  %1093 = vrot.lane.b32.xlu0 %v7630_v60, %s9986_s19 }
 0x137   : > { %1095 = vrot.lane.b32.xlu1 %v7633_v61, %s9986_s19  ;;  %1097 = vrot.lane.b32.xlu0 %v7636_v62, %s9986_s19 }
 0x13b   : > { %1099 = vrot.lane.b32.xlu1 %v7649_v0, %s9986_s19  ;;  %1130 = vrot.lane.b32.xlu0 %v7609_v56, %s9984_s22 }
 0x13f   : > { %1128 = vrot.lane.b32.xlu1 %v7613_v57, %s9984_s22  ;;  %1134 = vrot.lane.b32.xlu0 %v7619_v59, %s9984_s22 }
 0x143   : > { %1132 = vrot.lane.b32.xlu1 %v7616_v58, %s9984_s22  ;;  %1138 = vrot.lane.b32.xlu0 %v7633_v61, %s9984_s22 }
 0x145   : > { %v7802_v48 = vpop.permute.xlu0 %972  ;;  %v7804_v2 = vpop.permute.xlu1 %929 }
 0x147   : > { %1136 = vrot.lane.b32.xlu1 %v7630_v60, %s9984_s22  ;;  %1142 = vrot.lane.b32.xlu0 %v7649_v0, %s9984_s22 }
 0x149   : > { %v7810_v56 = vpop.permute.xlu0 %1058  ;;  %v7812_v3 = vpop.permute.xlu1 %1015 }
 0x14b   : > { %1140 = vrot.lane.b32.xlu1 %v7636_v62, %s9984_s22  ;;  %886 = vrot.lane.b32.xlu0 %v7584_v52, %s7286_s20  ;;  %s10269_s22 = smov 111  }
 0x14d   : > { %v7818_v58 = vpop.permute.xlu0 %1101  ;;  %v7820_v59 = vpop.permute.xlu1 %1144 }
 0x14f   : > { %1085 = vrot.lane.b32.xlu1 %v7613_v57, %s9986_s19  ;;  %1414 = vrot.lane.b32.xlu0 %v7557_v46, %s10024_s21  ;;  %s10328_s19 = smov 95  }
 0x151   : > { %v7826_v60 = vpop.permute.xlu1 %872  ;;  %v7828_v61 = vpop.permute.xlu0 %870 }
 0x153   : > { %1416 = vrot.lane.b32.xlu1 %v7559_v47, %s10024_s21  ;;  %v10082_v47 = vmov 0  ;;  %1694 = vperm.xlu0 %6695, %v1690_v38  }
 0x154   : > { %v10083_v47 = vsel %vm7847_vm15, 4294967295, %v10082_v47 }
 0x155   : > { %v7832_v62 = vpop.permute.xlu1 %874  ;;  %v7834_v52 = vpop.permute.xlu0 %876 }
 0x157   : > { %1699 = vperm.xlu1 %6696, %v1691_v29  }
 0x159   : > { %v7836_v0 = vpop.permute.xlu1 %878  ;;  %v7838_v5 = vpop.permute.xlu0 %880 }
 0x15d   : > { %v7840_v57 = vpop.permute.xlu1 %882  ;;  %v7842_v6 = vpop.permute.xlu0 %884 }
 0x161   : > { %v914_v46 = vpop.permute.xlu1 %913  ;;  %v916_v7 = vpop.permute.xlu0 %915 }
 0x162   : > { %v932_v9 = vsel %vm9904_vm3, %v914_v46, %v916_v7 }
 0x163   : > { %v948_v25 = vsel %vm7862_vm12, %v932_v9, 0.0  ;;  %vm10100_vm12 = vcmask 1031168  }
 0x165   : > { %v918_v8 = vpop.permute.xlu1 %917  ;;  %v920_v10 = vpop.permute.xlu0 %919 }
 0x166   : > { %v933_v13 = vsel %vm9904_vm3, %v916_v7, %v918_v8  ;;  %v934_v24 = vsel %vm9904_vm3, %v918_v8, %v920_v10 }
 0x167   : > { %v949_v18 = vsel %vm7853_vm7, %v933_v13, 0.0  ;;  %vm10099_vm7 = vmand %vm7527_vm6, %vm7847_vm15 }
 0x168   : > { %v950_v15 = vsel %vm10099_vm7, %v934_v24, 0.0  ;;  %v1300_v30 = vcombine.low %v948_v25, %v949_v18  ;;  %vm7921_vm7 = vcmp.ne.s32.totalorder %v585_v40, 15  ;;  %vm10104_vm6 = vmmov %vm10100_vm12 }
 0x169   : > { %v922_v19 = vpop.permute.xlu1 %921  ;;  %v924_v26 = vpop.permute.xlu0 %923  ;;  %v10102_v44 = vsel %vm7921_vm7, 4294967295, %v10101_v44  ;;  %vm10107_vm15 = vmand %vm7562_vm11, %vm7888_vm13  ;;  %vm10113_vm11 = vnez %v10083_v47 }
 0x16a   : > { %v935_v37 = vsel %vm9904_vm3, %v920_v10, %v922_v19  ;;  %v936_v35 = vsel %vm10100_vm12, %v922_v19, %v924_v26  ;;  %10103 = vst [vmem:[#allocation18_spill] sm:$0xff] %v10102_v44  ;;  %vm10106_vm3 = vmand %vm7537_vm8, %vm7880_vm1  ;;  %vm10114_vm8 = vnez %v10089_v36 }
 0x16b   : > { %v951_v34 = vsel %vm7874_vm2, %v935_v37, 0.0  ;;  %vm10105_vm2 = vmmov %vm10104_vm6  ;;  %v952_v9 = vsel %vm10106_vm3, %v936_v35, 0.0  ;;  %vm10110_vm3 = vnez %v10072_v51  ;;  %v2377_v51 = vld [vmem:[#allocation5 + $0x258] sm:$0xff] }
 0x16c   : > { %v1301_v31 = vcombine.low %v950_v15, %v951_v34 }
 0x16d   : > { %v926_v46 = vpop.permute.xlu1 %925  ;;  %v928_v7 = vpop.permute.xlu0 %927 }
 0x16e   : > { %v1317_v8 = vrot.slane %v1301_v31, %v7555_v43  ;;  %v937_v10 = vsel %vm10100_vm12, %v924_v26, %v926_v46  ;;  %v938_v40 = vsel %vm10104_vm6, %v926_v46, %v928_v7  ;;  %v939_v13 = vsel %vm10105_vm2, %v928_v7, %v7804_v2 }
 0x16f   : > { %v953_v24 = vsel %vm7895_vm5, %v937_v10, 0.0  ;;  %v954_v18 = vsel %vm10107_vm15, %v938_v40, 0.0  ;;  %v955_v19 = vsel %vm7921_vm7, %v939_v13, 0.0  ;;  %v1310_v2 = vrot.slane %v1300_v30, %v7555_v43 }
 0x170   : > { %v1302_v26 = vcombine.low %v952_v9, %v953_v24  ;;  %v1303_v37 = vcombine.low %v954_v18, %v955_v19  ;;  %vm9912_vm6 = vcmask 916480   ;;  %vm10108_vm15 = vcmp.ne.s32.totalorder %v7502_v20, 0 }
 0x171   : > { %v959_v25 = vpop.permute.xlu1 %958  ;;  %v957_v15 = vpop.permute.xlu0 %956  ;;  %v1332_v34 = vcombine.low %v1310_v2, %v1317_v8  ;;  %vm10109_vm2 = vnez %v10079_v55  ;;  %vm9917_vm12 = vcmask 900096  }
 0x172   : > { %v1324_v38 = vrot.slane %v1302_v26, %v7555_v43  ;;  %v1331_v29 = vrot.slane %v1303_v37, %v7555_v43  ;;  %v975_v40 = vsel %vm9912_vm6, %v957_v15, %v959_v25 }
 0x173   : > { %v1340_v46 = vrot.slane %v1332_v34, %v7555_v43  ;;  %v991_v19 = vsel %vm10108_vm15, %v975_v40, 0.0  ;;  %vm10111_vm15 = vnez %v10085_v12 }
 0x174   : > { %v1333_v31 = vcombine.low %v1324_v38, %v1331_v29 }
 0x175   : > { %v963_v35 = vpop.permute.xlu1 %962  ;;  %v961_v45 = vpop.permute.xlu0 %960 }
 0x176   : > { %v1347_v7 = vrot.slane %v1333_v31, %v7555_v43  ;;  %v976_v10 = vsel %vm9912_vm6, %v959_v25, %v961_v45  ;;  %v977_v13 = vsel %vm9912_vm6, %v961_v45, %v963_v35 }
 0x177   : > { %v992_v8 = vsel %vm7588_vm14, %v976_v10, 0.0  ;;  %v993_v2 = vsel %vm7544_vm9, %v977_v13, 0.0 }
 0x178   : > { %v1348_v30 = vcombine.low %v1340_v46, %v1347_v7  ;;  %v1361_v37 = vcombine.low %v991_v19, %v992_v8 }
 0x179   : > { %v967_v9 = vpop.permute.xlu1 %966  ;;  %v965_v24 = vpop.permute.xlu0 %964 }
 0x17a   : > { %1351 = vst [vmem:[#allocation3 + $0x2] ss:$8 sm:$0xf] %v1348_v30  ;;  %1352 = vst [vmem:[#allocation3 + $0x2] ss:$8 sm:$0xf0] %v1348_v30  ;;  %v978_v18 = vsel %vm9912_vm6, %v963_v35, %v965_v24  ;;  %v979_v25 = vsel %vm9912_vm6, %v965_v24, %v967_v9  ;;  %v1371_v40 = vrot.slane %v1361_v37, %v7555_v43 }
 0x17b   : > { %v994_v26 = vsel %vm7598_vm0, %v978_v18, 0.0  ;;  %v995_v46 = vsel %vm7550_vm10, %v979_v25, 0.0 }
 0x17c   : > { %v1362_v15 = vcombine.low %v993_v2, %v994_v26 }
 0x17d   : > { %v971_v34 = vpop.permute.xlu1 %970  ;;  %v969_v38 = vpop.permute.xlu0 %968 }
 0x17e   : > { %v1378_v29 = vrot.slane %v1362_v15, %v7555_v43  ;;  %v982_v31 = vsel %vm9912_vm6, %v971_v34, %v7802_v48  ;;  %v980_v35 = vsel %vm9912_vm6, %v967_v9, %v969_v38  ;;  %v981_v45 = vsel %vm9912_vm6, %v969_v38, %v971_v34 }
 0x17f   : > { %v998_v7 = vsel %vm7640_vm4, %v982_v31, 0.0  ;;  %v996_v10 = vsel %vm10109_vm2, %v980_v35, 0.0  ;;  %v997_v30 = vsel %vm10110_vm3, %v981_v45, 0.0  ;;  %vm10112_vm6 = vcmp.ne.s32.totalorder %v7502_v20, 15 }
 0x180   : > { %v1363_v13 = vcombine.low %v995_v46, %v996_v10  ;;  %v1364_v48 = vcombine.low %v997_v30, %v998_v7  ;;  %v1393_v24 = vcombine.low %v1371_v40, %v1378_v29 }
 0x181   : > { %v1000_v8 = vpop.permute.xlu1 %999  ;;  %v1002_v9 = vpop.permute.xlu0 %1001 }
 0x182   : > { %v1385_v18 = vrot.slane %v1363_v13, %v7555_v43  ;;  %v1392_v19 = vrot.slane %v1364_v48, %v7555_v43  ;;  %v1401_v15 = vrot.slane %v1393_v24, %v7555_v43  ;;  %v1018_v31 = vsel %vm9917_vm12, %v1000_v8, %v1002_v9 }
 0x183   : > { %v1034_v10 = vsel %vm10112_vm6, %v1018_v31, 0.0 }
 0x184   : > { %v1394_v2 = vcombine.low %v1385_v18, %v1392_v19  ;;  %v639_v18 = vand.u32 255, %v7505_v21 }
 0x185   : > { %v1004_v26 = vpop.permute.xlu1 %1003  ;;  %v1006_v25 = vpop.permute.xlu0 %1005 }
 0x186   : > { %v1408_v34 = vrot.slane %v1394_v2, %v7555_v43  ;;  %v1019_v38 = vsel %vm9917_vm12, %v1002_v9, %v1004_v26  ;;  %v1020_v35 = vsel %vm9917_vm12, %v1004_v26, %v1006_v25  ;;  %vm8015_vm6 = vcmp.lt.s32.totalorder %v639_v18, 240 }
 0x187   : > { %v1035_v29 = vsel %vm10111_vm15, %v1019_v38, 0.0  ;;  %v1036_v30 = vsel %vm10113_vm11, %v1020_v35, 0.0 }
 0x188   : > { %v1409_v37 = vcombine.low %v1401_v15, %v1408_v34  ;;  %v1436_v13 = vcombine.low %v1034_v10, %v1035_v29 }
 0x189   : > { %v1008_v45 = vpop.permute.xlu1 %1007  ;;  %v1010_v46 = vpop.permute.xlu0 %1009 }
 0x18a   : > { %1412 = vst [vmem:[#allocation3 + $0x3] ss:$8 sm:$0xf] %v1409_v37  ;;  %1413 = vst [vmem:[#allocation3 + $0x3] ss:$8 sm:$0xf0] %v1409_v37  ;;  %v1021_v7 = vsel %vm9917_vm12, %v1006_v25, %v1008_v45  ;;  %v1022_v8 = vsel %vm9917_vm12, %v1008_v45, %v1010_v46  ;;  %v1446_v31 = vrot.slane %v1436_v13, %v7555_v43 }
 0x18b   : > { %v1037_v40 = vsel %vm10114_vm8, %v1021_v7, 0.0  ;;  %v1038_v15 = vsel %vm7880_vm1, %v1022_v8, 0.0  ;;  %v681_v8 = vand.u32 255, %v7517_v27  ;;  %vm9926_vm1 = vmand %vm8015_vm6, %vm7588_vm14 }
 0x18c   : > { %v1437_v48 = vcombine.low %v1036_v30, %v1037_v40  ;;  %v10115_v40 = vmov 0 }
 0x18d   : > { %v1012_v9 = vpop.permute.xlu1 %1011  ;;  %v1014_v24 = vpop.permute.xlu0 %1013  ;;  %v10116_v40 = vsel %vm8015_vm6, 4294967295, %v10115_v40 }
 0x18e   : > { %v1453_v19 = vrot.slane %v1437_v48, %v7555_v43  ;;  %v1023_v2 = vsel %vm9917_vm12, %v1010_v46, %v1012_v9  ;;  %v1024_v26 = vsel %vm9917_vm12, %v1012_v9, %v1014_v24  ;;  %v1025_v25 = vsel %vm9917_vm12, %v1014_v24, %v7812_v3 }
 0x18f   : > { %v1039_v34 = vsel %vm7895_vm5, %v1023_v2, 0.0  ;;  %v1040_v38 = vsel %vm7888_vm13, %v1024_v26, 0.0  ;;  %v1041_v37 = vsel %vm7921_vm7, %v1025_v25, 0.0  ;;  %v653_v3 = vand.u32 255, %v7508_v22 }
 0x190   : > { %v1438_v35 = vcombine.low %v1038_v15, %v1039_v34  ;;  %v1439_v29 = vcombine.low %v1040_v38, %v1041_v37  ;;  %v1468_v7 = vcombine.low %v1446_v31, %v1453_v19  ;;  %vm9931_vm12 = vcmask 785408  }
 0x191   : > { %v1045_v45 = vpop.permute.xlu1 %1044  ;;  %v1043_v46 = vpop.permute.xlu0 %1042  ;;  %vm8020_vm13 = vcmp.lt.s32.totalorder %v653_v3, 240  ;;  %v10117_v24 = vmov 0  ;;  %v667_v22 = vand.u32 255, %v7511_v23  ;;  %vm8038_vm7 = vcmp.lt.s32.totalorder %v681_v8, 240 }
 0x192   : > { %v1460_v10 = vrot.slane %v1438_v35, %v7555_v43  ;;  %v1467_v30 = vrot.slane %v1439_v29, %v7555_v43  ;;  %v10118_v24 = vsel %vm8020_vm13, 4294967295, %v10117_v24  ;;  %v1476_v19 = vrot.slane %v1468_v7, %v7555_v43  ;;  %vm9929_vm14 = vmand %vm8038_vm7, %vm7640_vm4 }
 0x193   : > { %v1061_v26 = vsel %vm9931_vm12, %v1043_v46, %v1045_v45  ;;  %v10119_v23 = vmov 0  ;;  %vm8047_vm11 = vcmp.lt.s32.totalorder %v667_v22, 240  ;;  %v10122_v37 = vmov 0 }
 0x194   : > { %v1469_v48 = vcombine.low %v1460_v10, %v1467_v30  ;;  %v10120_v23 = vsel %vm8038_vm7, 4294967295, %v10119_v23  ;;  %v10123_v37 = vsel %vm8047_vm11, 4294967295, %v10122_v37  ;;  %vm10125_vm5 = vcmp.ne.s32.totalorder %v7502_v20, 0 }
 0x195   : > { %v1049_v13 = vpop.permute.xlu1 %1048  ;;  %v1047_v9 = vpop.permute.xlu0 %1046  ;;  %10121 = vst [vmem:[#allocation19_spill] sm:$0xff] %v10120_v23  ;;  %10124 = vst [vmem:[#allocation20_spill] sm:$0xff] %v10123_v37  ;;  %v1077_v35 = vsel %vm10125_vm5, %v1061_v26, 0.0  ;;  %vm10130_vm4 = vnez %v10068_v49 }
 0x196   : > { %v1483_v2 = vrot.slane %v1469_v48, %v7555_v43  ;;  %v1062_v27 = vsel %vm9931_vm12, %v1045_v45, %v1047_v9  ;;  %v1063_v25 = vsel %vm9931_vm12, %v1047_v9, %v1049_v13  ;;  %vm9930_vm5 = vmand %vm8047_vm11, %vm10109_vm2 }
 0x197   : > { %v1078_v15 = vsel %vm9926_vm1, %v1062_v27, 0.0  ;;  %v1079_v29 = vsel %vm7544_vm9, %v1063_v25, 0.0  ;;  %vm10126_vm1 = vmand %vm8020_vm13, %vm7598_vm0 }
 0x198   : > { %v1484_v18 = vcombine.low %v1476_v19, %v1483_v2  ;;  %v1497_v46 = vcombine.low %v1077_v35, %v1078_v15  ;;  %vm10136_vm2 = vmand %vm8020_vm13, %vm10114_vm8 }
 0x199   : > { %v1053_v34 = vpop.permute.xlu1 %1052  ;;  %v1051_v38 = vpop.permute.xlu0 %1050 }
 0x19a   : > { %1487 = vst [vmem:[#allocation3 + $0x5] ss:$8 sm:$0xf] %v1484_v18  ;;  %1488 = vst [vmem:[#allocation3 + $0x5] ss:$8 sm:$0xf0] %v1484_v18  ;;  %v1064_v31 = vsel %vm9931_vm12, %v1049_v13, %v1051_v38  ;;  %v1065_v3 = vsel %vm9931_vm12, %v1051_v38, %v1053_v34  ;;  %v1507_v27 = vrot.slane %v1497_v46, %v7555_v43 }
 0x19b   : > { %v1080_v45 = vsel %vm10126_vm1, %v1064_v31, 0.0  ;;  %v1081_v22 = vsel %vm7550_vm10, %v1065_v3, 0.0  ;;  %vm9937_vm1 = vcmask 1039360   ;;  %vm10129_vm10 = vnez %v10061_v39 }
 0x19c   : > { %v1498_v7 = vcombine.low %v1079_v29, %v1080_v45 }
 0x19d   : > { %v1057_v10 = vpop.permute.xlu1 %1056  ;;  %v1055_v30 = vpop.permute.xlu0 %1054 }
 0x19e   : > { %v1514_v48 = vrot.slane %v1498_v7, %v7555_v43  ;;  %v1068_v8 = vsel %vm9931_vm12, %v1057_v10, %v7810_v56  ;;  %v1066_v13 = vsel %vm9931_vm12, %v1053_v34, %v1055_v30  ;;  %v1067_v9 = vsel %vm9931_vm12, %v1055_v30, %v1057_v10 }
 0x19f   : > { %v1084_v19 = vsel %vm9929_vm14, %v1068_v8, 0.0  ;;  %v1082_v2 = vsel %vm9930_vm5, %v1066_v13, 0.0  ;;  %v1083_v56 = vsel %vm10110_vm3, %v1067_v9, 0.0  ;;  %v892_v8 = vsel %vm9937_vm1, %v7834_v52, %v7836_v0 }
 0x1a0   : > { %v1499_v18 = vcombine.low %v1081_v22, %v1082_v2  ;;  %v1500_v26 = vcombine.low %v1083_v56, %v1084_v19  ;;  %v1529_v34 = vcombine.low %v1507_v27, %v1514_v48  ;;  %v891_v48 = vsel %vm9937_vm1, %v7832_v62, %v7834_v52 }
 0x1a1   : > { %v8090_v25 = vpop.permute.xlu1 %1087  ;;  %v8092_v15 = vpop.permute.xlu0 %1089  ;;  %v889_v13 = vsel %vm9937_vm1, %v7828_v61, %v7826_v60  ;;  %v890_v19 = vsel %vm9937_vm1, %v7826_v60, %v7832_v62  ;;  %vm10127_vm14 = vnez %v10059_v33  ;;  %vm10128_vm5 = vnez %v10057_v32 }
 0x1a2   : > { %v1521_v38 = vrot.slane %v1499_v18, %v7555_v43  ;;  %v1528_v31 = vrot.slane %v1500_v26, %v7555_v43  ;;  %v1537_v3 = vrot.slane %v1529_v34, %v7555_v43  ;;  %v907_v2 = vsel %vm10127_vm14, %v891_v48, 0.0 }
 0x1a3   : > { %v1240_v56 = vcombine.low %v907_v2, %v892_v8  ;;  %v905_v27 = vsel %vm10128_vm5, %v889_v13, 0.0  ;;  %v893_v61 = vsel %vm9937_vm1, %v7836_v0, %v7838_v5  ;;  %vm9942_vm12 = vcmask 777216  }
 0x1a4   : > { %v1530_v35 = vcombine.low %v1521_v38, %v1528_v31  ;;  %v1239_v18 = vcombine.low %v905_v27, %v890_v19  ;;  %v894_v60 = vsel %vm9937_vm1, %v7838_v5, %v7840_v57  ;;  %v895_v62 = vsel %vm9937_vm1, %v7840_v57, %v7842_v6 }
 0x1a5   : > { %v1092_v29 = vpop.permute.xlu1 %1091  ;;  %v1094_v45 = vpop.permute.xlu0 %1093  ;;  %v1256_v34 = vrot.slane %v1240_v56, %v7555_v43  ;;  %vm9938_vm3 = vcmask 769024   ;;  %v909_v5 = vsel %vm10129_vm10, %v893_v61, 0.0  ;;  %v911_v13 = vsel %vm10130_vm4, %v895_v62, 0.0 }
 0x1a6   : > { %v1544_v7 = vrot.slane %v1530_v35, %v7555_v43  ;;  %v1249_v38 = vrot.slane %v1239_v18, %v7555_v43  ;;  %v1107_v19 = vsel %vm9942_vm12, %v1092_v29, %v1094_v45  ;;  %vm10132_vm1 = vcmask 769024  }
 0x1a7   : > { %vm10133_vm4 = vmmov %vm10132_vm1  ;;  %vm10134_vm10 = vcmp.ne.s32.totalorder %v7502_v20, 15  ;;  %vm10004_vm14 = vcmask 982016  }
 0x1a8   : > { %v1545_v10 = vcombine.low %v1537_v3, %v1544_v7  ;;  %v8131_v7 = vcombine.low %v1249_v38, %v1256_v34 }
 0x1a9   : > { %v1096_v46 = vpop.permute.xlu1 %1095  ;;  %v1098_v30 = vpop.permute.xlu0 %1097 }
 0x1aa   : > { %1548 = vst [vmem:[#allocation3 + $0x6] ss:$8 sm:$0xf] %v1545_v10  ;;  %1549 = vst [vmem:[#allocation3 + $0x6] ss:$8 sm:$0xf0] %v1545_v10  ;;  %v1109_v3 = vsel %vm9942_vm12, %v1096_v46, %v1098_v30  ;;  %v1241_v10 = vcombine.low %v909_v5, %v894_v60  ;;  %v1108_v2 = vsel %vm9942_vm12, %v1094_v45, %v1096_v46 }
 0x1ab   : > { %v1105_v46 = vsel %vm9942_vm12, %v8090_v25, %v8092_v15 }
 0x1ad   : > { %v1100_v9 = vpop.permute.xlu1 %1099  ;;  %v1131_v22 = vpop.permute.xlu0 %1130 }
 0x1ae   : > { %v1111_v57 = vsel %vm9942_vm12, %v1100_v9, %v7818_v58  ;;  %v1125_v58 = vsel %vm8047_vm11, %v1109_v3, 0.0  ;;  %v1110_v18 = vsel %vm9942_vm12, %v1098_v30, %v1100_v9  ;;  %v1106_v9 = vsel %vm9942_vm12, %v8092_v15, %v1092_v29  ;;  %vm10141_vm12 = vmmov %vm10133_vm4 }
 0x1af   : > { %v1560_v3 = vcombine.low %v1108_v2, %v1125_v58 }
 0x1b1   : > { %v1129_v26 = vpop.permute.xlu1 %1128  ;;  %v1135_v52 = vpop.permute.xlu0 %1134 }
 0x1b2   : > { %v1147_v48 = vsel %vm9938_vm3, %v1129_v26, %v1131_v22  ;;  %v1127_v26 = vsel %vm8038_vm7, %v1111_v57, 0.0 }
 0x1b3   : > { %v1163_v61 = vsel %vm10134_vm10, %v1147_v48, 0.0  ;;  %vm10138_vm10 = vmmov %vm10133_vm4 }
 0x1b5   : > { %v1133_v31 = vpop.permute.xlu1 %1132  ;;  %v1139_v35 = vpop.permute.xlu0 %1138 }
 0x1b6   : > { %v1148_v0 = vsel %vm9938_vm3, %v1131_v22, %v1133_v31  ;;  %v1149_v8 = vsel %vm9938_vm3, %v1133_v31, %v1135_v52  ;;  %vm10131_vm3 = vmand %vm8015_vm6, %vm10111_vm15  ;;  %v1123_v31 = vsel %vm8020_vm13, %v1107_v19, 0.0  ;;  %vm10146_vm13 = vnez %v10094_v28 }
 0x1b7   : > { %v1164_v22 = vsel %vm10131_vm3, %v1148_v0, 0.0  ;;  %vm10135_vm3 = vnez %v10083_v47  ;;  %v1561_v0 = vcombine.low %v1110_v18, %v1127_v26  ;;  %v1559_v18 = vcombine.low %v1106_v9, %v1123_v31 }
 0x1b8   : > { %v1165_v38 = vsel %vm10135_vm3, %v1149_v8, 0.0  ;;  %vm10139_vm3 = vnez %v10097_v11  ;;  %v1279_v31 = vrot.slane %v8131_v7, %v7555_v43  ;;  %v2375_v11 = vld [vmem:[#allocation5 + $0x248] sm:$0xff] }
 0x1b9   : > { %v1137_v56 = vpop.permute.xlu1 %1136  ;;  %v1143_v27 = vpop.permute.xlu0 %1142  ;;  %v1589_v26 = vrot.slane %v1561_v0, %v7555_v43 }
 0x1ba   : > { %v1150_v34 = vsel %vm10132_vm1, %v1135_v52, %v1137_v56  ;;  %v1151_v45 = vsel %vm10133_vm4, %v1137_v56, %v1139_v35  ;;  %vm10137_vm1 = vnez %v10102_v44  ;;  %v1619_v52 = vcombine.low %v1163_v61, %v1164_v22  ;;  %v2370_v44 = vld [vmem:[#allocation5 + $0x220] sm:$0xff] }
 0x1bb   : > { %v1166_v30 = vsel %vm10136_vm2, %v1150_v34, 0.0  ;;  %v1154_v62 = vsel %vm10138_vm10, %v1143_v27, %v7820_v59  ;;  %vm10140_vm2 = vnez %v10091_v17  ;;  %vm10142_vm10 = vmmov %vm10133_vm4  ;;  %vm10143_vm4 = vcmask 1039360  }
 0x1bc   : > { %v1620_v60 = vcombine.low %v1165_v38, %v1166_v30  ;;  %v1167_v5 = vsel %vm10140_vm2, %v1151_v45, 0.0  ;;  %vm10144_vm9 = vmand %vm8038_vm7, %vm10137_vm1  ;;  %v1263_v22 = vrot.slane %v1241_v10, %v7555_v43  ;;  %v1121_v61 = vsel %vm8015_vm6, %v1105_v46, 0.0 }
 0x1bd   : > { %v1141_v57 = vpop.permute.xlu1 %1140  ;;  %v887_v15 = vpop.permute.xlu0 %886  ;;  %v1170_v19 = vsel %vm10144_vm9, %v1154_v62, 0.0  ;;  %vm10145_vm2 = vmand %vm8047_vm11, %vm10139_vm3  ;;  %vm10147_vm9 = vcmask 777216   ;;  %v1575_v46 = vrot.slane %v1559_v18, %v7555_v43  ;;  %vm10195_vm7 = vcmask 1047624  }
 0x1be   : > { %v1636_v29 = vrot.slane %v1620_v60, %v7555_v43  ;;  %v1152_v48 = vsel %vm10141_vm12, %v1139_v35, %v1141_v57  ;;  %v1153_v59 = vsel %vm10142_vm10, %v1141_v57, %v1143_v27  ;;  %v896_v8 = vsel %vm10143_vm4, %v7842_v6, %v887_v15 }
 0x1bf   : > { %v1168_v2 = vsel %vm10145_vm2, %v1152_v48, 0.0  ;;  %v1169_v35 = vsel %vm10146_vm13, %v1153_v59, 0.0  ;;  %v1242_v58 = vcombine.low %v911_v13, %v896_v8  ;;  %v1629_v6 = vrot.slane %v1619_v52, %v7555_v43 }
 0x1c0   : > { %v1621_v56 = vcombine.low %v1167_v5, %v1168_v2  ;;  %v1622_v27 = vcombine.low %v1169_v35, %v1170_v19  ;;  %v1582_v52 = vrot.slane %v1560_v3, %v7555_v43  ;;  %vm1420_vm12 = vcmask 1046528  }
 0x1c1   : > { %v1270_v34 = vrot.slane %v1242_v58, %v7555_v43  ;;  %v1086_v45 = vpop.permute.xlu1 %1085  ;;  %v1651_v38 = vcombine.low %v1629_v6, %v1636_v29  ;;  %v1415_v62 = vpop.permute.xlu0 %1414  ;;  %vm9976_vm4 = vcmask 908288   ;;  %vm1709_vm2 = vcmask 1040384  }
 0x1c2   : > { %v1643_v30 = vrot.slane %v1621_v56, %v7555_v43  ;;  %v1650_v13 = vrot.slane %v1622_v27, %v7555_v43  ;;  %v1104_v10 = vsel %vm10147_vm9, %v1086_v45, %v8090_v25  ;;  %v1591_v5 = vcombine.low %v1582_v52, %v1589_v26 }
 0x1c3   : > { %v1272_v60 = vcombine.low %v1263_v22, %v1270_v34  ;;  %v1558_v9 = vcombine.low %v1104_v10, %v1121_v61  ;;  %v1659_v25 = vrot.slane %v1651_v38, %v7555_v43  ;;  %v1418_v48 = vrot.slane %v1415_v62, 1 }
 0x1c4   : > { %v1652_v0 = vcombine.low %v1643_v30, %v1650_v13  ;;  %v1605_v35 = vrot.slane %v1591_v5, %v7555_v43  ;;  %vm9954_vm10 = vmmov 1   ;;  %v1689_v5 = vld [vmem:[%s9871_s1 + $0x8] sm:$0xff]  ;;  %vm10202_vm13 = vcmask 146504  }
 0x1c5   : > { %v1286_v57 = vrot.slane %v1272_v60, %v7555_v43  ;;  %v1568_v15 = vrot.slane %v1558_v9, %v7555_v43  ;;  %v1417_v29 = vpop.permute.xlu1 %1416  ;;  %vm8226_vm9 = vmpackc.low %vm1709_vm2, %vm9954_vm10  ;;  %vm10150_vm2 = vcmask 1039360  }
 0x1c6   : > { %v1666_v3 = vrot.slane %v1652_v0, %v7555_v43  ;;  %v1419_v59 = vrot.slane %v1417_v29, 1  ;;  %vm10152_vm10 = vmmov %vm10150_vm2 }
 0x1c7   : > { %v1287_v8 = vcombine.low %v1279_v31, %v1286_v57  ;;  %v1590_v19 = vcombine.low %v1568_v15, %v1575_v46  ;;  %v1688_v46 = vld [vmem:[%s9871_s1] sm:$0xff] }
 0x1c8   : > { %v1667_v7 = vcombine.low %v1659_v25, %v1666_v3  ;;  %v1421_v2 = vsel %vm1420_vm12, %v1418_v48, %v1419_v59  ;;  %vm9989_vm12 = vcmask 72704  }
 0x1c9   : > { %1290 = vst [vmem:[#allocation3 + $0x1] ss:$8 sm:$0xf] %v1287_v8  ;;  %1291 = vst [vmem:[#allocation3 + $0x1] ss:$8 sm:$0xf0] %v1287_v8  ;;  %v1598_v58 = vrot.slane %v1590_v19, %v7555_v43  ;;  %v1423_v22 = vsel %vm9976_vm4, %v1415_v62, %v1421_v2 }
 0x1ca   : > { %1670 = vst [vmem:[#allocation3 + $0x40] ss:$8 sm:$0xf] %v1667_v7  ;;  %1671 = vst [vmem:[#allocation3 + $0x40] ss:$8 sm:$0xf0] %v1667_v7 }
 0x1cb   : > { %1426 = vst [vmem:[#allocation3 + $0x4] ss:$8 sm:$0xf] %v1423_v22  ;;  %1427 = vst [vmem:[#allocation3 + $0x4] ss:$8 sm:$0xf0] %v1423_v22  ;;  %v1606_v6 = vcombine.low %v1598_v58, %v1605_v35 }
 0x1cc   : > { %v2317_v43 = vld [vmem:[#allocation5 + $0x78] sm:$0xff] }
 0x1cd   : > { %1609 = vst [vmem:[#allocation3 + $0x7] ss:$8 sm:$0xf] %v1606_v6  ;;  %1610 = vst [vmem:[#allocation3 + $0x7] ss:$8 sm:$0xf0] %v1606_v6 }
 0x1d1   : > { %v1681_v27 = vld [vmem:[#allocation3 + $0x48] sm:$0x1]  ;;  %v1683_v18 = vld [vmem:[#allocation3 + $0x58] sm:$0x1]  ;;  %v1680_v26 = vld [vmem:[#allocation3 + $0x40] sm:$0x1] }
 0x1d2   : > { %v1682_v52 = vld [vmem:[#allocation3 + $0x50] sm:$0x1]  ;;  %v1687_v62 = vld [vmem:[#allocation3 + $0x78] sm:$0x1]  ;;  %v1685_v25 = vld [vmem:[#allocation3 + $0x68] sm:$0x1]  ;;  %v8270_v19 = vpop.permute.xlu0 %1694 }
 0x1d3   : > { %v1686_v15 = vld [vmem:[#allocation3 + $0x70] sm:$0x1]  ;;  %v1684_v59 = vld [vmem:[#allocation3 + $0x60] sm:$0x1] }
 0x1d4   : > { %v1673_v34 = vld [vmem:[#allocation3 + $0x8] sm:$0xff]  ;;  %v1675_v45 = vld [vmem:[#allocation3 + $0x18] sm:$0xff]  ;;  %v1672_v61 = vld [vmem:[#allocation3] sm:$0xff] }
 0x1d5   : > { %v5819_v38 = vpack.c.bf16 %v1681_v27, %v1673_v34  ;;  %v5825_v30 = vpack.c.bf16 %v1683_v18, %v1675_v45  ;;  %v5822_v13 = vpack.c.bf16 %v1680_v26, %v1672_v61  ;;  %v1674_v10 = vld [vmem:[#allocation3 + $0x10] sm:$0xff]  ;;  %v1679_v60 = vld [vmem:[#allocation3 + $0x38] sm:$0xff]  ;;  %v1677_v57 = vld [vmem:[#allocation3 + $0x28] sm:$0xff] }
 0x1d6   : > { %v5828_v9 = vpack.c.bf16 %v1682_v52, %v1674_v10  ;;  %v5837_v31 = vpack.c.bf16 %v1687_v62, %v1679_v60  ;;  %v1678_v0 = vld [vmem:[#allocation3 + $0x30] sm:$0xff]  ;;  %v5831_v3 = vpack.c.bf16 %v1685_v25, %v1677_v57  ;;  %v1676_v48 = vld [vmem:[#allocation3 + $0x20] sm:$0xff]  ;;  %v1700_v7 = vpop.permute.xlu1 %1699 }
 0x1d7   : > { %5821 = vmatprep.subr.msk.bf16.mxu0 %vm8226_vm9, %v5819_v38  ;;  %6627 = vmatprep.subr.msk.bf16.mxu1 %vm8226_vm9, %v5825_v30  ;;  %v5840_v29 = vpack.c.bf16 %v1686_v15, %v1678_v0  ;;  %v5834_v8 = vpack.c.bf16 %v1684_v59, %v1676_v48 }
 0x1d8   : > { %5824 = vmatpush1.bf16.msk.msra.mxu0 %vm8226_vm9, %v5822_v13  ;;  %6628 = vmatpush1.bf16.msk.msra.mxu1 %vm8226_vm9, %v5828_v9 }
 0x1d9   : > { %5827 = vmatprep.subr.msk.bf16.mxu0 %vm8226_vm9, %v5825_v30  ;;  %5839 = vmatprep.subr.msk.bf16.mxu1 %vm8226_vm9, %v5837_v31 }
 0x1db   : > { %5590 = vmatmul.mubr.msk.f32.vlgmr.msra.gmra.mrb[0].mxu0 %vm9989_vm12, %v1688_v46  ;;  %5595 = vmatmul.mubr.msk.f32.vlgmr.msra.gmra.mrb[0].mxu1 %vm9989_vm12, %v1689_v5 }
 0x1dc   : > { %5830 = vmatpush1.bf16.msk.msra.mxu0 %vm8226_vm9, %v5828_v9  ;;  %5842 = vmatpush1.bf16.msk.msra.mxu1 %vm8226_vm9, %v5840_v29 }
 0x1dd   : > { %5833 = vmatprep.subr.msk.bf16.mxu0 %vm8226_vm9, %v5831_v3  ;;  %1804 = vmatprep.mubr.f32.mxu0 %v9945_v1  ;;  %v2308_v3 = vld [vmem:[#allocation5 + $0x30] sm:$0xff] }
 0x1de   : > { %2029 = vmatprep.mubr.f32.mxu1 %v9945_v1 }
 0x1df   : > { %5591 = vmatmul.mubr.msk.f32.gmra.mrb[2].mxu0 %vm9989_vm12, %v1689_v5  ;;  %5602 = vmatmul.mubr.msk.f32.vlgmr.msra.gmra.mrb[2].mxu1 %vm9989_vm12, %v1688_v46 }
 0x1e0   : > { %1875 = vmatprep.mubr.f32.mxu0 %v9945_v1  ;;  %2035 = vmatprep.mubr.f32.mxu1 %v9945_v1 }
 0x1e3   : > { %5594 = vmatmul.mubr.msk.f32.vlgmr.msra.gmra.mrb[4].mxu0 %vm9989_vm12, %v1688_v46  ;;  %5603 = vmatmul.mubr.msk.f32.gmra.mrb[4].mxu1 %vm9989_vm12, %v1689_v5 }
 0x1e4   : > { %5836 = vmatpush1.bf16.msk.msra.mxu0 %vm8226_vm9, %v5834_v8  ;;  %1952 = vmatprep.mubr.f32.mxu0 %v9945_v1  ;;  %v2306_v8 = vld [vmem:[#allocation5 + $0x20] sm:$0xff]  ;;  %vm10151_vm9 = vmmov %vm10150_vm2 }
 0x1e7   : > { %5598 = vmatmul.mubr.msk.f32.vlgmr.msra.gmra.mrb[6].mxu0 %vm9989_vm12, %v1688_v46 }
 0x1e8   : > { %1958 = vmatprep.mubr.f32.mxu0 %v9945_v1 }
 0x1eb   : > { %5599 = vmatmul.mubr.msk.f32.gmra.mrb[8].mxu0 %vm9989_vm12, %v1689_v5 }
 0x2ae   : > { %v1800_v2 = vpop.f32.mrb[0].mxu0  ;;  %v1883_v35 = vpop.f32.mrb[0].mxu1 }
 0x2af   : > { %v1801_v58 = vadd.f32 %v1800_v2, %v8270_v19  ;;  %v1802_v22 = vpop.f32.mrb[1].mxu0  ;;  %v1884_v6 = vadd.f32 %v1883_v35, %v1700_v7  ;;  %v1885_v27 = vpop.f32.mrb[1].mxu1 }
 0x2b0   : > { %v8273_v56 = vadd.f32 %v1885_v27, %v1700_v7  ;;  %v8289_v10 = vadd.f32 %v1802_v22, %v8270_v19 }
 0x2b1   : > { %v8275_v18 = vmax.f32 %v1801_v58, 0.0  ;;  %v8277_v26 = vmax.f32 %v1884_v6, 0.0 }
 0x2b2   : > { %v1806_v34 = vpop.f32.mrb[2].mxu0  ;;  %v9948_v45 = vmax.f32 %v8273_v56, 0.0  ;;  %v8280_v61 = vpop.f32.mrb[2].mxu1  ;;  %v9950_v29 = vmax.f32 %v8289_v10, 0.0 }
 0x2b3   : > { %2058 = vst [vmem:[#allocation2] sm:$0xff] %v8275_v18  ;;  %v1807_v38 = vadd.f32 %v1806_v34, %v1700_v7  ;;  %2068 = vst [vmem:[#allocation2 + $0x58] sm:$0xff] %v8277_v26  ;;  %v1808_v30 = vpop.f32.mrb[3].mxu0  ;;  %v8284_v13 = vpop.f32.mrb[3].mxu1 }
 0x2b4   : > { %2930 = vst.msk [vmem:[#allocation2] sm:$0xff] %vm9989_vm12, %v9945_v1  ;;  %v8294_v62 = vadd.f32 %v1808_v30, %v1700_v7 }
 0x2b5   : > { %v8291_v52 = vmax.f32 %v1807_v38, 0.0 }
 0x2b6   : > { %v1877_v60 = vpop.f32.mrb[4].mxu0  ;;  %v2037_v9 = vpop.f32.mrb[4].mxu1  ;;  %v9949_v2 = vmax.f32 %v8294_v62, 0.0 }
 0x2b7   : > { %2066 = vst [vmem:[#allocation2 + $0x48] sm:$0xff] %v8291_v52  ;;  %v1878_v31 = vadd.f32 %v1877_v60, %v8270_v19  ;;  %v1879_v0 = vpop.f32.mrb[5].mxu0  ;;  %v8297_v46 = vadd.f32 %v2037_v9, %v1700_v7  ;;  %v2039_v5 = vpop.f32.mrb[5].mxu1  ;;  %v6712_v60 = vpack.i.bf16 %v8291_v52, %v9948_v45  ;;  %v2311_v45 = vld [vmem:[#allocation5 + $0x48] sm:$0xff]  ;;  %v2313_v9 = vld [vmem:[#allocation5 + $0x58] sm:$0xff] }
 0x2b8   : > { %v8300_v57 = vadd.f32 %v1879_v0, %v8270_v19  ;;  %v8302_v15 = vadd.f32 %v2039_v5, %v1700_v7  ;;  %2931 = vst.msk [vmem:[#allocation2 + $0x48] sm:$0xff] %vm9989_vm12, %v9945_v1  ;;  %v6707_v38 = vpack.i.bf16 %v8277_v26, %v9949_v2  ;;  %v2303_v0 = vld [vmem:[#allocation5 + $0x8] sm:$0xff]  ;;  %v2305_v5 = vld [vmem:[#allocation5 + $0x18] sm:$0xff]  ;;  %v2310_v2 = vld [vmem:[#allocation5 + $0x40] sm:$0xff] }
 0x2b9   : > { %v8307_v25 = vmax.f32 %v1878_v31, 0.0  ;;  %v2307_v1 = vld [vmem:[#allocation5 + $0x28] sm:$0xff]  ;;  %v5851_v31 = vpack.c.bf16 %v2313_v9, %v2311_v45  ;;  %v2325_v45 = vld [vmem:[#allocation5 + $0xb8] sm:$0xff] }
 0x2ba   : > { %v9947_v48 = vmax.f32 %v8300_v57, 0.0  ;;  %v8311_v59 = vpop.f32.mrb[6].mxu0 }
 0x2bb   : > { %2060 = vst [vmem:[#allocation2 + $0x10] sm:$0xff] %v8307_v25  ;;  %v8316_v35 = vpop.f32.mrb[7].mxu0  ;;  %v6697_v58 = vpack.i.bf16 %v8307_v25, %v9950_v29  ;;  %v2315_v29 = vld [vmem:[#allocation5 + $0x68] sm:$0xff] }
 0x2bc   : > { %v6702_v22 = vpack.i.bf16 %v8275_v18, %v9947_v48 }
 0x2bd   : > { %6698 = vrot.lane.b32.xlu1 %v6697_v58, %s7286_s20  ;;  %v2302_v58 = vld [vmem:[#allocation5] sm:$0xff] }
 0x2be   : > { %v1960_v6 = vpop.f32.mrb[8].mxu0  ;;  %6703 = vrot.lane.b32.xlu0 %v6702_v22, %s7286_s20  ;;  %v5843_v22 = vpack.c.bf16 %v2305_v5, %v2303_v0  ;;  %v5855_v5 = vpack.c.bf16 %v2317_v43, %v2315_v29  ;;  %v2329_v43 = vld [vmem:[#allocation5 + $0xd8] sm:$0xff] }
 0x2bf   : > { %v8326_v27 = vadd.f32 %v1960_v6, %v1700_v7  ;;  %v1962_v34 = vpop.f32.mrb[9].mxu0  ;;  %v2304_v6 = vld [vmem:[#allocation5 + $0x10] sm:$0xff] }
 0x2c0   : > { %v8331_v30 = vadd.f32 %v1962_v34, %v1700_v7  ;;  %v2309_v7 = vld [vmem:[#allocation5 + $0x38] sm:$0xff]  ;;  %v5845_v34 = vpack.c.bf16 %v2304_v6, %v2302_v58  ;;  %5844 = vmatprep.subr.bf16.mxu0 %v5843_v22  ;;  %v2316_v58 = vld [vmem:[#allocation5 + $0x70] sm:$0xff] }
 0x2c1   : > { %6708 = vrot.lane.b32.xlu1 %v6707_v38, %s7286_s20  ;;  %v5847_v48 = vpack.c.bf16 %v2309_v7, %v2307_v1  ;;  %v5849_v38 = vpack.c.bf16 %v2308_v3, %v2306_v8  ;;  %v2319_v1 = vld [vmem:[#allocation5 + $0x88] sm:$0xff]  ;;  %v2321_v6 = vld [vmem:[#allocation5 + $0x98] sm:$0xff]  ;;  %v5857_v7 = vpack.c.bf16 %v2316_v58, %v2314_v14  ;;  %v2320_v3 = vld [vmem:[#allocation5 + $0x90] sm:$0xff] }
 0x2c2   : > { %6713 = vrot.lane.b32.xlu0 %v6712_v60, %s7286_s20  ;;  %5846 = vmatpush1.bf16.msra.mxu0 %v5845_v34  ;;  %v2312_v60 = vld [vmem:[#allocation5 + $0x50] sm:$0xff]  ;;  %v5859_v22 = vpack.c.bf16 %v2321_v6, %v2319_v1  ;;  %v2318_v34 = vld [vmem:[#allocation5 + $0x80] sm:$0xff]  ;;  %v2333_v58 = vld [vmem:[#allocation5 + $0xf8] sm:$0xff] }
 0x2c3   : > { %5848 = vmatprep.subr.bf16.mxu0 %v5847_v48  ;;  %v5853_v0 = vpack.c.bf16 %v2312_v60, %v2310_v2  ;;  %v2323_v48 = vld [vmem:[#allocation5 + $0xa8] sm:$0xff]  ;;  %v5861_v8 = vpack.c.bf16 %v2320_v3, %v2318_v34  ;;  %v2324_v2 = vld [vmem:[#allocation5 + $0xb0] sm:$0xff]  ;;  %v2337_v3 = vld [vmem:[#allocation5 + $0x118] sm:$0xff] }
 0x2c4   : > { %v5863_v9 = vpack.c.bf16 %v2325_v45, %v2323_v48  ;;  %v2328_v14 = vld [vmem:[#allocation5 + $0xd0] sm:$0xff] }
 0x2c5   : > { %v2332_v34 = vld [vmem:[#allocation5 + $0xf0] sm:$0xff] }
 0x2c6   : > { %5850 = vmatpush1.bf16.msra.mxu0 %v5849_v38  ;;  %v2322_v38 = vld [vmem:[#allocation5 + $0xa0] sm:$0xff] }
 0x2c7   : > { %5852 = vmatprep.subr.bf16.mxu0 %v5851_v31  ;;  %v2327_v31 = vld [vmem:[#allocation5 + $0xc8] sm:$0xff]  ;;  %v5865_v29 = vpack.c.bf16 %v2324_v2, %v2322_v38  ;;  %v2336_v38 = vld [vmem:[#allocation5 + $0x110] sm:$0xff]  ;;  %v2341_v2 = vld [vmem:[#allocation5 + $0x138] sm:$0xff] }
 0x2c8   : > { %v5867_v60 = vpack.c.bf16 %v2329_v43, %v2327_v31 }
 0x2ca   : > { %5854 = vmatpush1.bf16.msra.mxu0 %v5853_v0  ;;  %v2326_v0 = vld [vmem:[#allocation5 + $0xc0] sm:$0xff] }
 0x2cb   : > { %5856 = vmatprep.subr.bf16.mxu0 %v5855_v5  ;;  %v2331_v5 = vld [vmem:[#allocation5 + $0xe8] sm:$0xff]  ;;  %v5869_v1 = vpack.c.bf16 %v2328_v14, %v2326_v0  ;;  %v2340_v0 = vld [vmem:[#allocation5 + $0x130] sm:$0xff]  ;;  %v2345_v14 = vld [vmem:[#allocation5 + $0x158] sm:$0xff] }
 0x2cc   : > { %v5871_v6 = vpack.c.bf16 %v2333_v58, %v2331_v5 }
 0x2ce   : > { %5858 = vmatpush1.bf16.msra.mxu0 %v5857_v7  ;;  %v2330_v7 = vld [vmem:[#allocation5 + $0xe0] sm:$0xff] }
 0x2cf   : > { %5860 = vmatprep.subr.bf16.mxu0 %v5859_v22  ;;  %v2335_v22 = vld [vmem:[#allocation5 + $0x108] sm:$0xff]  ;;  %v5873_v48 = vpack.c.bf16 %v2332_v34, %v2330_v7  ;;  %v2344_v7 = vld [vmem:[#allocation5 + $0x150] sm:$0xff]  ;;  %v2349_v34 = vld [vmem:[#allocation5 + $0x178] sm:$0xff] }
 0x2d0   : > { %v5875_v45 = vpack.c.bf16 %v2337_v3, %v2335_v22 }
 0x2d2   : > { %5862 = vmatpush1.bf16.msra.mxu0 %v5861_v8  ;;  %v2334_v8 = vld [vmem:[#allocation5 + $0x100] sm:$0xff] }
 0x2d3   : > { %5864 = vmatprep.subr.bf16.mxu0 %v5863_v9  ;;  %v2339_v9 = vld [vmem:[#allocation5 + $0x128] sm:$0xff]  ;;  %v5877_v31 = vpack.c.bf16 %v2336_v38, %v2334_v8  ;;  %v2348_v8 = vld [vmem:[#allocation5 + $0x170] sm:$0xff]  ;;  %v2353_v38 = vld [vmem:[#allocation5 + $0x198] sm:$0xff] }
 0x2d4   : > { %v5879_v43 = vpack.c.bf16 %v2341_v2, %v2339_v9 }
 0x2d6   : > { %5866 = vmatpush1.bf16.msra.mxu0 %v5865_v29  ;;  %v2338_v29 = vld [vmem:[#allocation5 + $0x120] sm:$0xff] }
 0x2d7   : > { %5868 = vmatprep.subr.bf16.mxu0 %v5867_v60  ;;  %v2343_v60 = vld [vmem:[#allocation5 + $0x148] sm:$0xff]  ;;  %v5881_v5 = vpack.c.bf16 %v2340_v0, %v2338_v29  ;;  %v2352_v29 = vld [vmem:[#allocation5 + $0x190] sm:$0xff]  ;;  %v2357_v0 = vld [vmem:[#allocation5 + $0x1b8] sm:$0xff] }
 0x2d8   : > { %v5883_v58 = vpack.c.bf16 %v2345_v14, %v2343_v60 }
 0x2da   : > { %5870 = vmatpush1.bf16.msra.mxu0 %v5869_v1  ;;  %v2342_v1 = vld [vmem:[#allocation5 + $0x140] sm:$0xff] }
 0x2db   : > { %5872 = vmatprep.subr.bf16.mxu0 %v5871_v6  ;;  %v2347_v6 = vld [vmem:[#allocation5 + $0x168] sm:$0xff]  ;;  %v5885_v22 = vpack.c.bf16 %v2344_v7, %v2342_v1  ;;  %v2356_v1 = vld [vmem:[#allocation5 + $0x1b0] sm:$0xff] }
 0x2dc   : > { %v5887_v3 = vpack.c.bf16 %v2349_v34, %v2347_v6  ;;  %v2359_v7 = vld [vmem:[#allocation5 + $0x1c8] sm:$0xff]  ;;  %v2361_v6 = vld [vmem:[#allocation5 + $0x1d8] sm:$0xff]  ;;  %v2358_v34 = vld [vmem:[#allocation5 + $0x1c0] sm:$0xff] }
 0x2de   : > { %5874 = vmatpush1.bf16.msra.mxu0 %v5873_v48  ;;  %v2346_v48 = vld [vmem:[#allocation5 + $0x160] sm:$0xff] }
 0x2df   : > { %5876 = vmatprep.subr.bf16.mxu0 %v5875_v45  ;;  %v2351_v45 = vld [vmem:[#allocation5 + $0x188] sm:$0xff]  ;;  %v5889_v9 = vpack.c.bf16 %v2348_v8, %v2346_v48 }
 0x2e0   : > { %v5891_v2 = vpack.c.bf16 %v2353_v38, %v2351_v45  ;;  %v2363_v8 = vld [vmem:[#allocation5 + $0x1e8] sm:$0xff]  ;;  %v2365_v45 = vld [vmem:[#allocation5 + $0x1f8] sm:$0xff] }
 0x2e1   : > { %v5903_v38 = vpack.c.bf16 %v2365_v45, %v2363_v8 }
 0x2e2   : > { %5878 = vmatpush1.bf16.msra.mxu0 %v5877_v31  ;;  %v2350_v31 = vld [vmem:[#allocation5 + $0x180] sm:$0xff] }
 0x2e3   : > { %5880 = vmatprep.subr.bf16.mxu0 %v5879_v43  ;;  %v2355_v43 = vld [vmem:[#allocation5 + $0x1a8] sm:$0xff]  ;;  %v5893_v60 = vpack.c.bf16 %v2352_v29, %v2350_v31 }
 0x2e4   : > { %v5895_v14 = vpack.c.bf16 %v2357_v0, %v2355_v43 }
 0x2e6   : > { %5882 = vmatpush1.bf16.msra.mxu0 %v5881_v5  ;;  %v2354_v5 = vld [vmem:[#allocation5 + $0x1a0] sm:$0xff] }
 0x2e7   : > { %5884 = vmatprep.subr.bf16.mxu0 %v5883_v58  ;;  %v5897_v58 = vpack.c.bf16 %v2356_v1, %v2354_v5  ;;  %v8346_v1 = vadd.f32 %v8311_v59, %v8270_v19 }
 0x2ea   : > { %5886 = vmatpush1.bf16.msra.mxu0 %v5885_v22  ;;  %v5899_v22 = vpack.c.bf16 %v2361_v6, %v2359_v7 }
 0x2eb   : > { %5888 = vmatprep.subr.bf16.mxu0 %v5887_v3  ;;  %v2360_v3 = vld [vmem:[#allocation5 + $0x1d0] sm:$0xff] }
 0x2ec   : > { %v5901_v48 = vpack.c.bf16 %v2360_v3, %v2358_v34  ;;  %v10153_v3 = vmax.f32 %v8289_v10, 0.0 }
 0x2ee   : > { %5890 = vmatpush1.bf16.msra.mxu0 %v5889_v9  ;;  %v2362_v9 = vld [vmem:[#allocation5 + $0x1e0] sm:$0xff] }
 0x2ef   : > { %5892 = vmatprep.subr.bf16.mxu0 %v5891_v2  ;;  %v2364_v2 = vld [vmem:[#allocation5 + $0x1f0] sm:$0xff] }
 0x2f0   : > { %v5905_v31 = vpack.c.bf16 %v2364_v2, %v2362_v9  ;;  %v9959_v2 = vmax.f32 %v8346_v1, 0.0 }
 0x2f2   : > { %5894 = vmatpush1.bf16.msra.mxu0 %v5893_v60 }
 0x2f3   : > { %5896 = vmatprep.subr.bf16.mxu0 %v5895_v14 }
 0x2f6   : > { %5898 = vmatpush1.bf16.msra.mxu0 %v5897_v58  ;;  %v8350_v58 = vadd.f32 %v8316_v35, %v8270_v19 }
 0x2f7   : > { %5900 = vmatprep.subr.bf16.mxu0 %v5899_v22 }
 0x2fa   : > { %5902 = vmatpush1.bf16.msra.mxu0 %v5901_v48 }
 0x2fb   : > { %5904 = vmatprep.subr.bf16.mxu0 %v5903_v38 }
 0x2fe   : > { %5906 = vmatpush1.bf16.msra.mxu0 %v5905_v31  ;;  %v9958_v31 = vmax.f32 %v8350_v58, 0.0 }
 0x32f   : > { %v6699_v29 = vpop.permute.xlu1 %6698 }
 0x330   : > { %v6701_v43 = vunpack.i.h.bf16 %v6699_v29  ;;  %v6700_v0 = vunpack.i.l.bf16 %v6699_v29  ;;  %v8340_v60 = vpop.permute.xlu0 %6703 }
 0x331   : > { %v6706_v14 = vunpack.i.h.bf16 %v8340_v60  ;;  %v9961_v5 = vunpack.i.l.bf16 %v8340_v60 }
 0x332   : > { %v2149_v7 = vsel %vm10150_vm2, %v6700_v0, %v6701_v43 }
 0x333   : > { %v6709_v6 = vpop.permute.xlu1 %6708  ;;  %v2148_v34 = vsel %vm10151_vm9, %v6706_v14, %v6700_v0  ;;  %v2150_v22 = vsel %vm10152_vm10, %v6701_v43, %v9961_v5  ;;  %v2181_v48 = vmax.f32 %v10153_v3, %v2149_v7  ;;  %vm10154_vm10 = vmmov %vm10150_vm2  ;;  %v8384_v14 = vadd.f32 %v8280_v61, %v8270_v19 }
 0x334   : > { %v6711_v8 = vunpack.i.h.bf16 %v6709_v6  ;;  %v6710_v45 = vunpack.i.l.bf16 %v6709_v6  ;;  %v8359_v59 = vpop.permute.xlu0 %6713  ;;  %v2180_v38 = vmax.f32 %v8275_v18, %v2148_v34  ;;  %v8363_v35 = vmax.f32 %v8307_v25, %v2150_v22 }
 0x335   : > { %v9960_v9 = vunpack.i.l.bf16 %v8359_v59  ;;  %v10155_v18 = vmax.f32 %v8294_v62, 0.0  ;;  %v8388_v7 = vadd.f32 %v8284_v13, %v8270_v19  ;;  %v6722_v62 = vpack.i.bf16 %v9958_v31, %v9959_v2 }
 0x336   : > { %2218 = vrot.lane.b32.xlu0 %v2180_v38, %s10026_s30  ;;  %v6717_v10 = vpack.i.bf16 %v8363_v35, %v2181_v48  ;;  %v2157_v29 = vsel %vm10154_vm10, %v6710_v45, %v6711_v8  ;;  %v10156_v34 = vmax.f32 %v8326_v27, 0.0  ;;  %v10157_v19 = vmax.f32 %v8331_v30, 0.0 }
 0x337   : > { %v2158_v43 = vsel %vm10150_vm2, %v6711_v8, %v9960_v9  ;;  %v8376_v25 = vmax.f32 %v10155_v18, %v2157_v29  ;;  %v9956_v61 = vmax.f32 %v8388_v7, 0.0  ;;  %v10158_v3 = vmax.f32 %v8297_v46, 0.0  ;;  %v8415_v29 = vld [vmem:[#allocation2 + $0x40] sm:$0xff]  ;;  %v2369_v18 = vld [vmem:[#allocation5 + $0x218] sm:$0xff] }
 0x338   : > { %6718 = vrot.lane.b32.xlu1 %v6717_v10, %s10026_s30  ;;  %v8380_v0 = vmax.f32 %v8277_v26, %v2158_v43  ;;  %v9957_v26 = vmax.f32 %v8384_v14, 0.0  ;;  %v6732_v13 = vpack.i.bf16 %v10157_v19, %v10156_v34  ;;  %v10159_v8 = vmax.f32 %v8302_v15, 0.0  ;;  %v2367_v43 = vld [vmem:[#allocation5 + $0x208] sm:$0xff] }
 0x339   : > { %vm10160_vm9 = vcmask 916480  }
 0x33a   : > { %v6727_v6 = vpack.i.bf16 %v8380_v0, %v8376_v25  ;;  %v6742_v22 = vpack.i.bf16 %v9956_v61, %v9957_v26  ;;  %v6747_v10 = vpack.i.bf16 %v10159_v8, %v10158_v3  ;;  %v2366_v3 = vld [vmem:[#allocation5 + $0x200] sm:$0xff]  ;;  %v2368_v8 = vld [vmem:[#allocation5 + $0x210] sm:$0xff]  ;;  %v2373_v61 = vld [vmem:[#allocation5 + $0x238] sm:$0xff] }
 0x33b   : > { %vm10161_vm10 = vmmov %vm10160_vm9  ;;  %v5909_v5 = vpack.c.bf16 %v2368_v8, %v2366_v3 }
 0x33c   : > { %6728 = vrot.lane.b32.xlu0 %v6727_v6, %s10026_s30  ;;  %6723 = vrot.lane.b32.xlu1 %v6722_v62, %s7286_s20  ;;  %v5907_v6 = vpack.c.bf16 %v2369_v18, %v2367_v43  ;;  %v6716_v62 = vunpack.i.h.bf16 %v8359_v59 }
 0x33e   : > { %5908 = vmatprep.subr.bf16.mxu0 %v5907_v6  ;;  %v2156_v9 = vsel %vm10150_vm2, %v6716_v62, %v6710_v45  ;;  %v10162_v45 = vunpack.i.l.bf16 %v8340_v60  ;;  %v10164_v62 = vmax.f32 %v8300_v57, 0.0  ;;  %v2376_v60 = vld [vmem:[#allocation5 + $0x250] sm:$0xff] }
 0x340   : > { %6733 = vrot.lane.b32.xlu0 %v6732_v13, %s7286_s20 }
 0x344   : > { %6743 = vrot.lane.b32.xlu0 %v6742_v22, %s7286_s20 }
 0x348   : > { %6748 = vrot.lane.b32.xlu0 %v6747_v10, %s7286_s20  ;;  %v2371_v10 = vld [vmem:[#allocation5 + $0x228] sm:$0xff] }
 0x349   : > { %v5911_v17 = vpack.c.bf16 %v2373_v61, %v2371_v10 }
 0x34c   : > { %2128 = vrot.lane.b32.xlu0 %v8415_v29, %s7286_s20 }
 0x3a8   : > { %v2219_v34 = vpop.permute.xlu0 %2218 }
 0x3aa   : > { %v8420_v19 = vpop.permute.xlu1 %6718 }
 0x3ab   : > { %v6721_v13 = vunpack.i.h.bf16 %v8420_v19  ;;  %v6720_v22 = vunpack.i.l.bf16 %v8420_v19 }
 0x3ad   : > { %v2254_v26 = vsel %vm10160_vm9, %v2219_v34, %v6720_v22  ;;  %v2255_v43 = vsel %vm10161_vm10, %v6720_v22, %v6721_v13  ;;  %v2372_v34 = vld [vmem:[#allocation5 + $0x230] sm:$0xff]  ;;  %vm10163_vm10 = vmmov %vm10150_vm2 }
 0x3ae   : > { %v2286_v18 = vmax.f32 %v2180_v38, %v2254_v26  ;;  %v8428_v6 = vpop.permute.xlu0 %6728  ;;  %v6724_v31 = vpop.permute.xlu1 %6723  ;;  %v2287_v2 = vmax.f32 %v2181_v48, %v2255_v43  ;;  %v5913_v3 = vpack.c.bf16 %v2372_v34, %v2370_v44  ;;  %v5915_v43 = vpack.c.bf16 %v2377_v51, %v2375_v11  ;;  %v2378_v34 = vld [vmem:[#allocation5 + $0x260] sm:$0xff] }
 0x3af   : > { %v6731_v23 = vunpack.i.h.bf16 %v8428_v6  ;;  %v6730_v37 = vunpack.i.l.bf16 %v8428_v6  ;;  %v6725_v28 = vunpack.i.l.bf16 %v6724_v31  ;;  %v6726_v22 = vunpack.i.h.bf16 %v6724_v31 }
 0x3b0   : > { %2622 = vmatprep.mubr.f32.mxu0 %v2287_v2  ;;  %v8447_v31 = vmax.f32 %v8291_v52, %v2156_v9 }
 0x3b1   : > { %2623 = vmatmul.mubr.f32.vlgmr.msra.gmra.mrb[10].mxu0 %v2286_v18  ;;  %v2263_v48 = vsel %vm10160_vm9, %v6730_v37, %v6731_v23  ;;  %v2151_v38 = vsel %vm10163_vm10, %v10162_v45, %v6725_v28  ;;  %v2374_v18 = vld [vmem:[#allocation5 + $0x240] sm:$0xff]  ;;  %v2152_v57 = vsel %vm10150_vm2, %v6725_v28, %v6726_v22  ;;  %vm10166_vm9 = vmmov %vm10150_vm2 }
 0x3b2   : > { %v6734_v26 = vpop.permute.xlu0 %6733  ;;  %v2295_v61 = vmax.f32 %v8376_v25, %v2263_v48  ;;  %v8444_v2 = vmax.f32 %v10164_v62, %v2151_v38  ;;  %5910 = vmatpush1.bf16.msra.mxu0 %v5909_v5  ;;  %v2379_v25 = vld [vmem:[#allocation5 + $0x268] sm:$0xff]  ;;  %v2381_v48 = vld [vmem:[#allocation5 + $0x278] sm:$0xff]  ;;  %v10165_v38 = vunpack.i.l.bf16 %v8359_v59  ;;  %vm10167_vm10 = vmmov %vm10150_vm2  ;;  %v5917_v51 = vpack.c.bf16 %v2376_v60, %v2374_v18 }
 0x3b3   : > { %v6736_v8 = vunpack.i.h.bf16 %v6734_v26  ;;  %v6735_v10 = vunpack.i.l.bf16 %v6734_v26  ;;  %5912 = vmatprep.subr.bf16.mxu0 %v5911_v17  ;;  %v5919_v9 = vpack.c.bf16 %v2381_v48, %v2379_v25  ;;  %v2380_v26 = vld [vmem:[#allocation5 + $0x270] sm:$0xff]  ;;  %v10169_v59 = vmax.f32 %v8273_v56, 0.0  ;;  %v2385_v18 = vld [vmem:[#allocation5 + $0x298] sm:$0xff] }
 0x3b4   : > { %2628 = vmatprep.mubr.f32.mxu0 %v2295_v61  ;;  %v6737_v45 = vpack.i.bf16 %v8444_v2, %v8447_v31  ;;  %v10168_v61 = vmax.f32 %v8346_v1, 0.0  ;;  %v5921_v1 = vpack.c.bf16 %v2380_v26, %v2378_v34  ;;  %v2387_v34 = vld [vmem:[#allocation5 + $0x2a8] sm:$0xff]  ;;  %v2389_v26 = vld [vmem:[#allocation5 + $0x2b8] sm:$0xff] }
 0x3b5   : > { %v2159_v52 = vsel %vm10166_vm9, %v10165_v38, %v6735_v10  ;;  %v2160_v44 = vsel %vm10167_vm10, %v6735_v10, %v6736_v8  ;;  %v10170_v10 = vmax.f32 %v8326_v27, 0.0  ;;  %vm10171_vm9 = vmmov %vm10150_vm2 }
 0x3b6   : > { %v6744_v5 = vpop.permute.xlu0 %6743  ;;  %6738 = vrot.lane.b32.xlu1 %v6737_v45, %s10026_s30  ;;  %5914 = vmatpush1.bf16.msra.mxu0 %v5913_v3  ;;  %v8459_v28 = vmax.f32 %v10168_v61, %v2152_v57  ;;  %v8463_v62 = vmax.f32 %v10169_v59, %v2159_v52  ;;  %v2383_v3 = vld [vmem:[#allocation5 + $0x288] sm:$0xff]  ;;  %v10173_v52 = vmax.f32 %v8384_v14, 0.0  ;;  %vm10174_vm10 = vmmov %vm10150_vm2  ;;  %v10176_v14 = vmax.f32 %v8297_v46, 0.0  ;;  %v8507_v46 = vld [vmem:[#allocation2 + $0x88] sm:$0xff] }
 0x3b7   : > { %v6746_v17 = vunpack.i.h.bf16 %v6744_v5  ;;  %v6745_v11 = vunpack.i.l.bf16 %v6744_v5  ;;  %5916 = vmatprep.subr.bf16.mxu0 %v5915_v43  ;;  %v8467_v38 = vmax.f32 %v10170_v10, %v2160_v44  ;;  %v5923_v27 = vpack.c.bf16 %v2385_v18, %v2383_v3  ;;  %v2382_v5 = vld [vmem:[#allocation5 + $0x280] sm:$0xff] }
 0x3b9   : > { %v2153_v60 = vsel %vm10150_vm2, %v6726_v22, %v6745_v11  ;;  %v2154_v43 = vsel %vm10171_vm9, %v6745_v11, %v6746_v17  ;;  %v6752_v48 = vpack.i.bf16 %v8467_v38, %v8463_v62  ;;  %v10172_v22 = vmax.f32 %v8350_v58, 0.0  ;;  %vm10177_vm9 = vmmov %vm10150_vm2 }
 0x3ba   : > { %v8471_v45 = vpop.permute.xlu0 %6748  ;;  %2226 = vrot.lane.b32.xlu1 %v8459_v28, %s10026_s30  ;;  %5918 = vmatpush1.bf16.msra.mxu0 %v5917_v51  ;;  %v8485_v44 = vmax.f32 %v10173_v52, %v2154_v43  ;;  %v2384_v51 = vld [vmem:[#allocation5 + $0x290] sm:$0xff]  ;;  %v10175_v58 = vmax.f32 %v8331_v30, 0.0  ;;  %v2386_v43 = vld [vmem:[#allocation5 + $0x2a0] sm:$0xff] }
 0x3bb   : > { %v6751_v56 = vunpack.i.h.bf16 %v8471_v45  ;;  %v6750_v25 = vunpack.i.l.bf16 %v8471_v45  ;;  %5920 = vmatprep.subr.bf16.mxu0 %v5919_v9  ;;  %v8481_v57 = vmax.f32 %v10172_v22, %v2153_v60  ;;  %v5927_v60 = vpack.c.bf16 %v2389_v26, %v2387_v34  ;;  %v2393_v22 = vld [vmem:[#allocation5 + $0x2d8] sm:$0xff]  ;;  %v2451_v45 = vld [vmem:[#allocation5 + $0x4a8] sm:$0xff] }
 0x3bc   : > { %v2397_v34 = vld [vmem:[#allocation5 + $0x2f8] sm:$0xff] }
 0x3bd   : > { %v2161_v11 = vsel %vm10174_vm10, %v6736_v8, %v6750_v25  ;;  %v2162_v9 = vsel %vm10150_vm2, %v6750_v25, %v6751_v56  ;;  %v5925_v8 = vpack.c.bf16 %v2384_v51, %v2382_v5  ;;  %v6757_v18 = vpack.i.bf16 %v8485_v44, %v8481_v57  ;;  %v2388_v25 = vld [vmem:[#allocation5 + $0x2b0] sm:$0xff] }
 0x3be   : > { %v2129_v61 = vpop.permute.xlu0 %2128  ;;  %6753 = vrot.lane.b32.xlu1 %v6752_v48, %s10026_s30  ;;  %v8494_v59 = vmax.f32 %v10175_v58, %v2161_v11  ;;  %v8498_v10 = vmax.f32 %v10176_v14, %v2162_v9  ;;  %5922 = vmatpush1.bf16.msra.mxu0 %v5921_v1  ;;  %v2391_v48 = vld [vmem:[#allocation5 + $0x2c8] sm:$0xff]  ;;  %v5929_v1 = vpack.c.bf16 %v2388_v25, %v2386_v43  ;;  %v2390_v11 = vld [vmem:[#allocation5 + $0x2c0] sm:$0xff]  ;;  %v2400_v43 = vld [vmem:[#allocation5 + $0x310] sm:$0xff]  ;;  %vm10179_vm10 = vcmask 916480  }
 0x3bf   : > { %5924 = vmatprep.subr.bf16.mxu0 %v5923_v27  ;;  %v2155_v30 = vsel %vm10177_vm9, %v6746_v17, %v2129_v61  ;;  %v10178_v27 = vmax.f32 %v8388_v7, 0.0  ;;  %v2198_v5 = vmax.f32 %v8415_v29, %v2129_v61  ;;  %v5931_v51 = vpack.c.bf16 %v2393_v22, %v2391_v48  ;;  %v2392_v17 = vld [vmem:[#allocation5 + $0x2d0] sm:$0xff]  ;;  %v2395_v9 = vld [vmem:[#allocation5 + $0x2e8] sm:$0xff]  ;;  %v2394_v7 = vld [vmem:[#allocation5 + $0x2e0] sm:$0xff] }
 0x3c0   : > { %v6762_v3 = vpack.i.bf16 %v8498_v10, %v8494_v59  ;;  %v5933_v26 = vpack.c.bf16 %v2392_v17, %v2390_v11  ;;  %v5935_v14 = vpack.c.bf16 %v2397_v34, %v2395_v9  ;;  %v2403_v25 = vld [vmem:[#allocation5 + $0x328] sm:$0xff]  ;;  %v2406_v9 = vld [vmem:[#allocation5 + $0x340] sm:$0xff]  ;;  %v2408_v34 = vld [vmem:[#allocation5 + $0x350] sm:$0xff] }
 0x3c1   : > { %v8511_v52 = vmax.f32 %v10178_v27, %v2155_v30  ;;  %v2405_v30 = vld [vmem:[#allocation5 + $0x338] sm:$0xff]  ;;  %v2404_v27 = vld [vmem:[#allocation5 + $0x330] sm:$0xff]  ;;  %vm10180_vm2 = vmmov %vm10179_vm10 }
 0x3c2   : > { %6763 = vrot.lane.b32.xlu0 %v6762_v3, %s10026_s30  ;;  %6758 = vrot.lane.b32.xlu1 %v6757_v18, %s10026_s30  ;;  %v2399_v3 = vld [vmem:[#allocation5 + $0x308] sm:$0xff]  ;;  %v2401_v18 = vld [vmem:[#allocation5 + $0x318] sm:$0xff]  ;;  %v5943_v22 = vpack.c.bf16 %v2405_v30, %v2403_v25  ;;  %v2416_v25 = vld [vmem:[#allocation5 + $0x390] sm:$0xff] }
 0x3c3   : > { %5926 = vmatpush1.bf16.msra.mxu0 %v5925_v8  ;;  %v6767_v58 = vpack.i.bf16 %v2198_v5, %v8511_v52  ;;  %v2396_v8 = vld [vmem:[#allocation5 + $0x2f0] sm:$0xff]  ;;  %v5939_v61 = vpack.c.bf16 %v2401_v18, %v2399_v3  ;;  %v2407_v5 = vld [vmem:[#allocation5 + $0x348] sm:$0xff]  ;;  %vm10181_vm9 = vmmov %vm10180_vm2 }
 0x3c4   : > { %5928 = vmatprep.subr.bf16.mxu0 %v5927_v60  ;;  %v5937_v29 = vpack.c.bf16 %v2396_v8, %v2394_v7  ;;  %v2398_v60 = vld [vmem:[#allocation5 + $0x300] sm:$0xff]  ;;  %v2412_v3 = vld [vmem:[#allocation5 + $0x370] sm:$0xff]  ;;  %v2415_v18 = vld [vmem:[#allocation5 + $0x388] sm:$0xff] }
 0x3c5   : > { %v5941_v48 = vpack.c.bf16 %v2400_v43, %v2398_v60  ;;  %v2410_v8 = vld [vmem:[#allocation5 + $0x360] sm:$0xff]  ;;  %v2419_v30 = vld [vmem:[#allocation5 + $0x3a8] sm:$0xff] }
 0x3c6   : > { %2146 = vrot.lane.b32.xlu1 %v8507_v46, %s7286_s20  ;;  %v2414_v43 = vld [vmem:[#allocation5 + $0x380] sm:$0xff] }
 0x3c7   : > { %5930 = vmatpush1.bf16.msra.mxu0 %v5929_v1  ;;  %v2402_v1 = vld [vmem:[#allocation5 + $0x320] sm:$0xff] }
 0x3c8   : > { %5932 = vmatprep.subr.bf16.mxu0 %v5931_v51  ;;  %v2409_v51 = vld [vmem:[#allocation5 + $0x358] sm:$0xff]  ;;  %v5945_v11 = vpack.c.bf16 %v2404_v27, %v2402_v1  ;;  %v2418_v27 = vld [vmem:[#allocation5 + $0x3a0] sm:$0xff] }
 0x3c9   : > { %v5947_v17 = vpack.c.bf16 %v2409_v51, %v2407_v5  ;;  %v2420_v5 = vld [vmem:[#allocation5 + $0x3b0] sm:$0xff]  ;;  %v2423_v51 = vld [vmem:[#allocation5 + $0x3c8] sm:$0xff] }
 0x3ca   : > { %6768 = vrot.lane.b32.xlu1 %v6767_v58, %s10026_s30  ;;  %v2413_v58 = vld [vmem:[#allocation5 + $0x378] sm:$0xff] }
 0x3cb   : > { %5934 = vmatpush1.bf16.msra.mxu0 %v5933_v26  ;;  %v2411_v26 = vld [vmem:[#allocation5 + $0x368] sm:$0xff] }
 0x3cc   : > { %5936 = vmatprep.subr.bf16.mxu0 %v5935_v14  ;;  %v5949_v14 = vpack.c.bf16 %v2408_v34, %v2406_v9  ;;  %v5951_v7 = vpack.c.bf16 %v2413_v58, %v2411_v26  ;;  %v2422_v34 = vld [vmem:[#allocation5 + $0x3c0] sm:$0xff]  ;;  %v2424_v26 = vld [vmem:[#allocation5 + $0x3d0] sm:$0xff]  ;;  %v2427_v58 = vld [vmem:[#allocation5 + $0x3e8] sm:$0xff] }
 0x3cf   : > { %5938 = vmatpush1.bf16.msra.mxu0 %v5937_v29  ;;  %v2417_v29 = vld [vmem:[#allocation5 + $0x398] sm:$0xff] }
 0x3d0   : > { %5940 = vmatprep.subr.bf16.mxu0 %v5939_v61  ;;  %v5953_v61 = vpack.c.bf16 %v2412_v3, %v2410_v8  ;;  %v5955_v60 = vpack.c.bf16 %v2417_v29, %v2415_v18  ;;  %v2426_v3 = vld [vmem:[#allocation5 + $0x3e0] sm:$0xff]  ;;  %v2428_v18 = vld [vmem:[#allocation5 + $0x3f0] sm:$0xff]  ;;  %v2431_v29 = vld [vmem:[#allocation5 + $0x408] sm:$0xff] }
 0x3d3   : > { %5942 = vmatpush1.bf16.msra.mxu0 %v5941_v48  ;;  %v2421_v48 = vld [vmem:[#allocation5 + $0x3b8] sm:$0xff] }
 0x3d4   : > { %5944 = vmatprep.subr.bf16.mxu0 %v5943_v22  ;;  %v5957_v22 = vpack.c.bf16 %v2416_v25, %v2414_v43  ;;  %v5959_v1 = vpack.c.bf16 %v2421_v48, %v2419_v30 }
 0x3d7   : > { %5946 = vmatpush1.bf16.msra.mxu0 %v5945_v11  ;;  %v2425_v11 = vld [vmem:[#allocation5 + $0x3d8] sm:$0xff] }
 0x3d8   : > { %5948 = vmatprep.subr.bf16.mxu0 %v5947_v17  ;;  %v5961_v17 = vpack.c.bf16 %v2420_v5, %v2418_v27  ;;  %v5963_v9 = vpack.c.bf16 %v2425_v11, %v2423_v51  ;;  %v2430_v5 = vld [vmem:[#allocation5 + $0x400] sm:$0xff]  ;;  %v2432_v51 = vld [vmem:[#allocation5 + $0x410] sm:$0xff] }
 0x3db   : > { %5950 = vmatpush1.bf16.msra.mxu0 %v5949_v14  ;;  %v2429_v14 = vld [vmem:[#allocation5 + $0x3f8] sm:$0xff] }
 0x3dc   : > { %5952 = vmatprep.subr.bf16.mxu0 %v5951_v7  ;;  %v5965_v7 = vpack.c.bf16 %v2424_v26, %v2422_v34  ;;  %v5967_v8 = vpack.c.bf16 %v2429_v14, %v2427_v58  ;;  %v2437_v34 = vld [vmem:[#allocation5 + $0x438] sm:$0xff]  ;;  %v5973_v58 = vpack.c.bf16 %v2432_v51, %v2430_v5  ;;  %v2443_v5 = vld [vmem:[#allocation5 + $0x468] sm:$0xff] }
 0x3dd   : > { %v2445_v51 = vld [vmem:[#allocation5 + $0x478] sm:$0xff] }
 0x3df   : > { %5954 = vmatpush1.bf16.msra.mxu0 %v5953_v61  ;;  %v2433_v61 = vld [vmem:[#allocation5 + $0x418] sm:$0xff] }
 0x3e0   : > { %5956 = vmatprep.subr.bf16.mxu0 %v5955_v60  ;;  %v5969_v60 = vpack.c.bf16 %v2428_v18, %v2426_v3  ;;  %v5971_v43 = vpack.c.bf16 %v2433_v61, %v2431_v29  ;;  %v2439_v3 = vld [vmem:[#allocation5 + $0x448] sm:$0xff]  ;;  %v2441_v18 = vld [vmem:[#allocation5 + $0x458] sm:$0xff] }
 0x3e3   : > { %5958 = vmatpush1.bf16.msra.mxu0 %v5957_v22 }
 0x3e4   : > { %5960 = vmatprep.subr.bf16.mxu0 %v5959_v1 }
 0x3e7   : > { %5962 = vmatpush1.bf16.msra.mxu0 %v5961_v17 }
 0x3e8   : > { %5964 = vmatprep.subr.bf16.mxu0 %v5963_v9  ;;  %v2435_v9 = vld [vmem:[#allocation5 + $0x428] sm:$0xff] }
 0x3eb   : > { %5966 = vmatpush1.bf16.msra.mxu0 %v5965_v7  ;;  %v2434_v7 = vld [vmem:[#allocation5 + $0x420] sm:$0xff] }
 0x3ec   : > { %5968 = vmatprep.subr.bf16.mxu0 %v5967_v8  ;;  %v2436_v8 = vld [vmem:[#allocation5 + $0x430] sm:$0xff] }
 0x3ed   : > { %v5977_v29 = vpack.c.bf16 %v2436_v8, %v2434_v7 }
 0x3ef   : > { %5970 = vmatpush1.bf16.msra.mxu0 %v5969_v60 }
 0x3f0   : > { %5972 = vmatprep.subr.bf16.mxu0 %v5971_v43 }
 0x428   : > { %v6739_v25 = vpop.permute.xlu1 %6738 }
 0x429   : > { %v6741_v30 = vunpack.i.h.bf16 %v6739_v25  ;;  %v6740_v48 = vunpack.i.l.bf16 %v6739_v25  ;;  %v5979_v25 = vpack.c.bf16 %v2441_v18, %v2439_v3  ;;  %v2446_v3 = vld [vmem:[#allocation5 + $0x480] sm:$0xff]  ;;  %v2448_v18 = vld [vmem:[#allocation5 + $0x490] sm:$0xff] }
 0x42b   : > { %v2262_v22 = vsel %vm10179_vm10, %v6740_v48, %v6730_v37  ;;  %v2256_v11 = vsel %vm10180_vm2, %v6721_v13, %v6741_v30  ;;  %vm10182_vm10 = vmmov %vm10180_vm2  ;;  %v2440_v48 = vld [vmem:[#allocation5 + $0x450] sm:$0xff] }
 0x42c   : > { %v8521_v1 = vpop.permute.xlu1 %2226  ;;  %v2294_v27 = vmax.f32 %v8447_v31, %v2262_v22  ;;  %v2288_v37 = vmax.f32 %v8363_v35, %v2256_v11  ;;  %v5975_v31 = vpack.c.bf16 %v2437_v34, %v2435_v9  ;;  %v5983_v11 = vpack.c.bf16 %v2445_v51, %v2443_v5  ;;  %v2444_v9 = vld [vmem:[#allocation5 + $0x470] sm:$0xff]  ;;  %v2459_v5 = vld [vmem:[#allocation5 + $0x4e8] sm:$0xff]  ;;  %v2461_v51 = vld [vmem:[#allocation5 + $0x4f8] sm:$0xff] }
 0x42d   : > { %v2257_v17 = vsel %vm10181_vm9, %v6741_v30, %v8521_v1  ;;  %v2438_v30 = vld [vmem:[#allocation5 + $0x440] sm:$0xff]  ;;  %vm10183_vm9 = vmmov %vm10180_vm2 }
 0x42e   : > { %2629 = vmatmul.mubr.f32.gmra.mrb[12].mxu0 %v2294_v27  ;;  %v2289_v26 = vmax.f32 %v8444_v2, %v2257_v17  ;;  %v5981_v6 = vpack.c.bf16 %v2440_v48, %v2438_v30  ;;  %v2442_v17 = vld [vmem:[#allocation5 + $0x460] sm:$0xff]  ;;  %v2456_v48 = vld [vmem:[#allocation5 + $0x4d0] sm:$0xff] }
 0x42f   : > { %v5985_v8 = vpack.c.bf16 %v2444_v9, %v2442_v17  ;;  %v2454_v30 = vld [vmem:[#allocation5 + $0x4c0] sm:$0xff]  ;;  %v2465_v17 = vld [vmem:[#allocation5 + $0x518] sm:$0xff] }
 0x430   : > { %v8531_v14 = vpop.permute.xlu1 %6753  ;;  %2699 = vmatprep.mubr.f32.mxu0 %v2289_v26 }
 0x431   : > { %v6756_v19 = vunpack.i.h.bf16 %v8531_v14  ;;  %v6755_v13 = vunpack.i.l.bf16 %v8531_v14 }
 0x432   : > { %2700 = vmatmul.mubr.f32.vlgmr.msra.gmra.mrb[10].mxu0 %v2288_v37  ;;  %v2449_v37 = vld [vmem:[#allocation5 + $0x498] sm:$0xff] }
 0x433   : > { %5974 = vmatpush1.bf16.msra.mxu0 %v5973_v58  ;;  %v2265_v2 = vsel %vm10182_vm10, %v6755_v13, %v6756_v19  ;;  %v2264_v35 = vsel %vm10180_vm2, %v6731_v23, %v6755_v13  ;;  %vm10184_vm10 = vcmask 1039360   ;;  %v2447_v58 = vld [vmem:[#allocation5 + $0x488] sm:$0xff] }
 0x434   : > { %v8541_v61 = vpop.permute.xlu1 %6758  ;;  %5976 = vmatprep.subr.bf16.mxu0 %v5975_v31  ;;  %v2297_v60 = vmax.f32 %v8463_v62, %v2265_v2  ;;  %v2296_v43 = vmax.f32 %v8380_v0, %v2264_v35  ;;  %v10185_v31 = vmax.f32 %v8302_v15, 0.0  ;;  %v5987_v13 = vpack.c.bf16 %v2449_v37, %v2447_v58  ;;  %v2453_v2 = vld [vmem:[#allocation5 + $0x4b8] sm:$0xff]  ;;  %v2450_v15 = vld [vmem:[#allocation5 + $0x4a0] sm:$0xff]  ;;  %v2455_v35 = vld [vmem:[#allocation5 + $0x4c8] sm:$0xff] }
 0x435   : > { %v6761_v22 = vunpack.i.h.bf16 %v8541_v61  ;;  %v6760_v27 = vunpack.i.l.bf16 %v8541_v61  ;;  %v2464_v58 = vld [vmem:[#allocation5 + $0x510] sm:$0xff]  ;;  %v2467_v37 = vld [vmem:[#allocation5 + $0x528] sm:$0xff] }
 0x436   : > { %2705 = vmatprep.mubr.f32.mxu0 %v2297_v60  ;;  %v2457_v60 = vld [vmem:[#allocation5 + $0x4d8] sm:$0xff] }
 0x437   : > { %5978 = vmatpush1.bf16.msra.mxu0 %v5977_v29  ;;  %v2259_v23 = vsel %vm10183_vm9, %v6760_v27, %v6761_v22  ;;  %v2452_v29 = vld [vmem:[#allocation5 + $0x4b0] sm:$0xff]  ;;  %vm10186_vm9 = vmmov %vm10180_vm2 }
 0x438   : > { %2706 = vmatmul.mubr.f32.gmra.mrb[12].mxu0 %v2296_v43  ;;  %v2147_v0 = vpop.permute.xlu1 %2146  ;;  %5980 = vmatprep.subr.bf16.mxu0 %v5979_v25  ;;  %v2291_v62 = vmax.f32 %v8481_v57, %v2259_v23  ;;  %v5993_v43 = vpack.c.bf16 %v2452_v29, %v2450_v15  ;;  %v5995_v25 = vpack.c.bf16 %v2457_v60, %v2455_v35  ;;  %v2472_v15 = vld [vmem:[#allocation5 + $0x550] sm:$0xff]  ;;  %v2475_v29 = vld [vmem:[#allocation5 + $0x568] sm:$0xff]  ;;  %v2477_v35 = vld [vmem:[#allocation5 + $0x578] sm:$0xff] }
 0x439   : > { %v2163_v34 = vsel %vm10184_vm10, %v6751_v56, %v2147_v0  ;;  %v2199_v26 = vmax.f32 %v8507_v46, %v2147_v0  ;;  %v5989_v56 = vpack.c.bf16 %v2448_v18, %v2446_v3  ;;  %v5991_v46 = vpack.c.bf16 %v2453_v2, %v2451_v45  ;;  %v2458_v0 = vld [vmem:[#allocation5 + $0x4e0] sm:$0xff]  ;;  %v2468_v3 = vld [vmem:[#allocation5 + $0x530] sm:$0xff]  ;;  %v2471_v18 = vld [vmem:[#allocation5 + $0x548] sm:$0xff] }
 0x43a   : > { %v8559_v7 = vmax.f32 %v10185_v31, %v2163_v34  ;;  %2776 = vmatprep.mubr.f32.mxu0 %v2291_v62  ;;  %v5999_v23 = vpack.c.bf16 %v2461_v51, %v2459_v5  ;;  %v2460_v62 = vld [vmem:[#allocation5 + $0x4f0] sm:$0xff]  ;;  %v2469_v31 = vld [vmem:[#allocation5 + $0x538] sm:$0xff]  ;;  %vm10187_vm10 = vmmov %vm10180_vm2 }
 0x43b   : > { %5982 = vmatpush1.bf16.msra.mxu0 %v5981_v6  ;;  %v5997_v6 = vpack.c.bf16 %v2456_v48, %v2454_v30  ;;  %v6001_v9 = vpack.c.bf16 %v2460_v62, %v2458_v0  ;;  %v2473_v45 = vld [vmem:[#allocation5 + $0x558] sm:$0xff]  ;;  %v2476_v30 = vld [vmem:[#allocation5 + $0x570] sm:$0xff]  ;;  %v2479_v48 = vld [vmem:[#allocation5 + $0x588] sm:$0xff] }
 0x43c   : > { %5984 = vmatprep.subr.bf16.mxu0 %v5983_v11  ;;  %v6772_v57 = vpack.i.bf16 %v2199_v26, %v8559_v7  ;;  %v2463_v11 = vld [vmem:[#allocation5 + $0x508] sm:$0xff]  ;;  %v2462_v26 = vld [vmem:[#allocation5 + $0x500] sm:$0xff]  ;;  %v2481_v5 = vld [vmem:[#allocation5 + $0x598] sm:$0xff] }
 0x43d   : > { %v6003_v34 = vpack.c.bf16 %v2465_v17, %v2463_v11  ;;  %v2480_v0 = vld [vmem:[#allocation5 + $0x590] sm:$0xff]  ;;  %v2483_v62 = vld [vmem:[#allocation5 + $0x5a8] sm:$0xff]  ;;  %v2485_v11 = vld [vmem:[#allocation5 + $0x5b8] sm:$0xff] }
 0x43e   : > { %6773 = vrot.lane.b32.xlu0 %v6772_v57, %s10026_s30  ;;  %v6007_v57 = vpack.c.bf16 %v2469_v31, %v2467_v37  ;;  %v2489_v37 = vld [vmem:[#allocation5 + $0x5d8] sm:$0xff] }
 0x43f   : > { %5986 = vmatpush1.bf16.msra.mxu0 %v5985_v8  ;;  %v6005_v8 = vpack.c.bf16 %v2464_v58, %v2462_v26  ;;  %v2484_v26 = vld [vmem:[#allocation5 + $0x5b0] sm:$0xff]  ;;  %v2487_v58 = vld [vmem:[#allocation5 + $0x5c8] sm:$0xff] }
 0x440   : > { %5988 = vmatprep.subr.bf16.mxu0 %v5987_v13  ;;  %v2466_v13 = vld [vmem:[#allocation5 + $0x520] sm:$0xff] }
 0x441   : > { %v6009_v2 = vpack.c.bf16 %v2468_v3, %v2466_v13  ;;  %v2488_v13 = vld [vmem:[#allocation5 + $0x5d0] sm:$0xff]  ;;  %v2491_v3 = vld [vmem:[#allocation5 + $0x5e8] sm:$0xff] }
 0x443   : > { %5990 = vmatpush1.bf16.msra.mxu0 %v5989_v56  ;;  %v6011_v56 = vpack.c.bf16 %v2473_v45, %v2471_v18  ;;  %v2493_v18 = vld [vmem:[#allocation5 + $0x5f8] sm:$0xff]  ;;  %v8563_v45 = vpop.permute.xlu0 %6763 }
 0x444   : > { %5992 = vmatprep.subr.bf16.mxu0 %v5991_v46  ;;  %v2470_v46 = vld [vmem:[#allocation5 + $0x540] sm:$0xff] }
 0x445   : > { %v6013_v60 = vpack.c.bf16 %v2472_v15, %v2470_v46  ;;  %v2490_v46 = vld [vmem:[#allocation5 + $0x5e0] sm:$0xff]  ;;  %v2492_v15 = vld [vmem:[#allocation5 + $0x5f0] sm:$0xff] }
 0x447   : > { %5994 = vmatpush1.bf16.msra.mxu0 %v5993_v43  ;;  %v6015_v43 = vpack.c.bf16 %v2477_v35, %v2475_v29  ;;  %v2495_v29 = vld [vmem:[#allocation5 + $0x608] sm:$0xff]  ;;  %v2497_v35 = vld [vmem:[#allocation5 + $0x618] sm:$0xff] }
 0x448   : > { %5996 = vmatprep.subr.bf16.mxu0 %v5995_v25  ;;  %v2474_v25 = vld [vmem:[#allocation5 + $0x560] sm:$0xff] }
 0x449   : > { %v6017_v51 = vpack.c.bf16 %v2476_v30, %v2474_v25  ;;  %v8567_v25 = vpop.permute.xlu1 %6768  ;;  %v6033_v30 = vpack.c.bf16 %v2492_v15, %v2490_v46  ;;  %v2506_v15 = vld [vmem:[#allocation5 + $0x660] sm:$0xff] }
 0x44b   : > { %5998 = vmatpush1.bf16.msra.mxu0 %v5997_v6  ;;  %v6019_v6 = vpack.c.bf16 %v2481_v5, %v2479_v48  ;;  %v6035_v48 = vpack.c.bf16 %v2497_v35, %v2495_v29  ;;  %v2494_v5 = vld [vmem:[#allocation5 + $0x600] sm:$0xff]  ;;  %v2508_v29 = vld [vmem:[#allocation5 + $0x670] sm:$0xff]  ;;  %v2511_v35 = vld [vmem:[#allocation5 + $0x688] sm:$0xff] }
 0x44c   : > { %6000 = vmatprep.subr.bf16.mxu0 %v5999_v23  ;;  %v2478_v23 = vld [vmem:[#allocation5 + $0x580] sm:$0xff] }
 0x44d   : > { %v6021_v17 = vpack.c.bf16 %v2480_v0, %v2478_v23  ;;  %v2499_v23 = vld [vmem:[#allocation5 + $0x628] sm:$0xff]  ;;  %v2501_v0 = vld [vmem:[#allocation5 + $0x638] sm:$0xff] }
 0x44f   : > { %6002 = vmatpush1.bf16.msra.mxu0 %v6001_v9  ;;  %v6023_v9 = vpack.c.bf16 %v2485_v11, %v2483_v62  ;;  %v6771_v62 = vunpack.i.h.bf16 %v8567_v25  ;;  %v6770_v11 = vunpack.i.l.bf16 %v8567_v25 }
 0x450   : > { %6004 = vmatprep.subr.bf16.mxu0 %v6003_v34  ;;  %v2482_v34 = vld [vmem:[#allocation5 + $0x5a0] sm:$0xff] }
 0x451   : > { %v6025_v31 = vpack.c.bf16 %v2484_v26, %v2482_v34  ;;  %v6039_v26 = vpack.c.bf16 %v2501_v0, %v2499_v23  ;;  %v2514_v0 = vld [vmem:[#allocation5 + $0x6a0] sm:$0xff] }
 0x453   : > { %6006 = vmatpush1.bf16.msra.mxu0 %v6005_v8  ;;  %v6027_v8 = vpack.c.bf16 %v2489_v37, %v2487_v58  ;;  %v2498_v58 = vld [vmem:[#allocation5 + $0x620] sm:$0xff]  ;;  %v2500_v37 = vld [vmem:[#allocation5 + $0x630] sm:$0xff] }
 0x454   : > { %6008 = vmatprep.subr.bf16.mxu0 %v6007_v57  ;;  %v2486_v57 = vld [vmem:[#allocation5 + $0x5c0] sm:$0xff] }
 0x457   : > { %6010 = vmatpush1.bf16.msra.mxu0 %v6009_v2  ;;  %v6029_v2 = vpack.c.bf16 %v2488_v13, %v2486_v57  ;;  %v2261_v57 = vsel %vm10180_vm2, %v6770_v11, %v6771_v62  ;;  %v2516_v62 = vld [vmem:[#allocation5 + $0x6b0] sm:$0xff] }
 0x458   : > { %6012 = vmatprep.subr.bf16.mxu0 %v6011_v56  ;;  %v6031_v56 = vpack.c.bf16 %v2493_v18, %v2491_v3  ;;  %v2502_v18 = vld [vmem:[#allocation5 + $0x640] sm:$0xff]  ;;  %v2293_v14 = vmax.f32 %v8511_v52, %v2261_v57  ;;  %v2517_v52 = vld [vmem:[#allocation5 + $0x6b8] sm:$0xff] }
 0x459   : > { %v2522_v57 = vld [vmem:[#allocation5 + $0x6e0] sm:$0xff] }
 0x45b   : > { %6014 = vmatpush1.bf16.msra.mxu0 %v6013_v60  ;;  %v6766_v60 = vunpack.i.h.bf16 %v8563_v45 }
 0x45c   : > { %6016 = vmatprep.subr.bf16.mxu0 %v6015_v43  ;;  %v6765_v43 = vunpack.i.l.bf16 %v8563_v45  ;;  %v2877_v45 = vand.u32 7, %v7505_v21 }
 0x45f   : > { %6018 = vmatpush1.bf16.msra.mxu0 %v6017_v51  ;;  %v2496_v51 = vld [vmem:[#allocation5 + $0x610] sm:$0xff] }
 0x460   : > { %6020 = vmatprep.subr.bf16.mxu0 %v6019_v6  ;;  %v2258_v6 = vsel %vm10180_vm2, %v8521_v1, %v6760_v27  ;;  %v2266_v27 = vsel %vm10187_vm10, %v6756_v19, %v6765_v43  ;;  %v2509_v19 = vld [vmem:[#allocation5 + $0x678] sm:$0xff]  ;;  %vm10189_vm10 = vmmov %vm10180_vm2 }
 0x461   : > { %v2290_v34 = vmax.f32 %v8459_v28, %v2258_v6  ;;  %v6041_v28 = vpack.c.bf16 %v2500_v37, %v2498_v58  ;;  %v2298_v13 = vmax.f32 %v8467_v38, %v2266_v27  ;;  %v6049_v38 = vpack.c.bf16 %v2508_v29, %v2506_v15  ;;  %v2518_v58 = vld [vmem:[#allocation5 + $0x6c0] sm:$0xff]  ;;  %v2520_v37 = vld [vmem:[#allocation5 + $0x6d0] sm:$0xff]  ;;  %v2525_v27 = vld [vmem:[#allocation5 + $0x6f8] sm:$0xff] }
 0x462   : > { %v2530_v29 = vld [vmem:[#allocation5 + $0x720] sm:$0xff] }
 0x463   : > { %6022 = vmatpush1.bf16.msra.mxu0 %v6021_v17  ;;  %v2267_v17 = vsel %vm10186_vm9, %v6765_v43, %v6766_v60  ;;  %v2513_v43 = vld [vmem:[#allocation5 + $0x698] sm:$0xff]  ;;  %vm10188_vm9 = vmmov %vm10180_vm2 }
 0x464   : > { %6024 = vmatprep.subr.bf16.mxu0 %v6023_v9  ;;  %v6037_v9 = vpack.c.bf16 %v2496_v51, %v2494_v5  ;;  %v2299_v1 = vmax.f32 %v8494_v59, %v2267_v17  ;;  %v2504_v59 = vld [vmem:[#allocation5 + $0x650] sm:$0xff]  ;;  %v2515_v51 = vld [vmem:[#allocation5 + $0x6a8] sm:$0xff] }
 0x465   : > { %v2512_v5 = vld [vmem:[#allocation5 + $0x690] sm:$0xff]  ;;  %v6055_v23 = vpack.c.bf16 %v2517_v52, %v2515_v51  ;;  %v2519_v17 = vld [vmem:[#allocation5 + $0x6c8] sm:$0xff] }
 0x466   : > { %v2536_v51 = vld [vmem:[#allocation5 + $0x750] sm:$0xff]  ;;  %v2539_v52 = vld [vmem:[#allocation5 + $0x768] sm:$0xff] }
 0x467   : > { %6026 = vmatpush1.bf16.msra.mxu0 %v6025_v31  ;;  %v2503_v31 = vld [vmem:[#allocation5 + $0x648] sm:$0xff] }
 0x468   : > { %6028 = vmatprep.subr.bf16.mxu0 %v6027_v8  ;;  %v2505_v8 = vld [vmem:[#allocation5 + $0x658] sm:$0xff] }
 0x469   : > { %v6043_v3 = vpack.c.bf16 %v2505_v8, %v2503_v31  ;;  %v6061_v31 = vpack.c.bf16 %v2520_v37, %v2518_v58  ;;  %v2542_v37 = vld [vmem:[#allocation5 + $0x780] sm:$0xff] }
 0x46b   : > { %6030 = vmatpush1.bf16.msra.mxu0 %v6029_v2  ;;  %v2507_v2 = vld [vmem:[#allocation5 + $0x668] sm:$0xff] }
 0x46c   : > { %6032 = vmatprep.subr.bf16.mxu0 %v6031_v56  ;;  %v6045_v56 = vpack.c.bf16 %v2504_v59, %v2502_v18  ;;  %v6047_v46 = vpack.c.bf16 %v2509_v19, %v2507_v2  ;;  %v2528_v2 = vld [vmem:[#allocation5 + $0x710] sm:$0xff]  ;;  %v2531_v19 = vld [vmem:[#allocation5 + $0x728] sm:$0xff] }
 0x46f   : > { %6034 = vmatpush1.bf16.msra.mxu0 %v6033_v30  ;;  %v6051_v30 = vpack.c.bf16 %v2513_v43, %v2511_v35  ;;  %v2532_v35 = vld [vmem:[#allocation5 + $0x730] sm:$0xff]  ;;  %v2535_v43 = vld [vmem:[#allocation5 + $0x748] sm:$0xff] }
 0x470   : > { %6036 = vmatprep.subr.bf16.mxu0 %v6035_v48  ;;  %v2510_v48 = vld [vmem:[#allocation5 + $0x680] sm:$0xff] }
 0x471   : > { %v6053_v6 = vpack.c.bf16 %v2512_v5, %v2510_v48  ;;  %v2534_v5 = vld [vmem:[#allocation5 + $0x740] sm:$0xff] }
 0x472   : > { %2777 = vmatmul.mubr.f32.vlgmr.msra.gmra.mrb[10].mxu0 %v2290_v34  ;;  %v6057_v34 = vpack.c.bf16 %v2516_v62, %v2514_v0  ;;  %v2538_v62 = vld [vmem:[#allocation5 + $0x760] sm:$0xff] }
 0x473   : > { %2782 = vmatprep.mubr.f32.mxu0 %v2299_v1  ;;  %6038 = vmatpush1.bf16.msra.mxu0 %v6037_v9  ;;  %v2521_v9 = vld [vmem:[#allocation5 + $0x6d8] sm:$0xff]  ;;  %v2523_v1 = vld [vmem:[#allocation5 + $0x6e8] sm:$0xff] }
 0x474   : > { %6040 = vmatprep.subr.bf16.mxu0 %v6039_v26  ;;  %v6059_v26 = vpack.c.bf16 %v2521_v9, %v2519_v17  ;;  %v6063_v8 = vpack.c.bf16 %v2525_v27, %v2523_v1  ;;  %v2540_v17 = vld [vmem:[#allocation5 + $0x770] sm:$0xff]  ;;  %v2543_v9 = vld [vmem:[#allocation5 + $0x788] sm:$0xff] }
 0x475   : > { %v2544_v1 = vld [vmem:[#allocation5 + $0x790] sm:$0xff]  ;;  %v2547_v27 = vld [vmem:[#allocation5 + $0x7a8] sm:$0xff] }
 0x476   : > { %2783 = vmatmul.mubr.f32.gmra.mrb[12].mxu0 %v2298_v13  ;;  %v2527_v13 = vld [vmem:[#allocation5 + $0x708] sm:$0xff] }
 0x477   : > { %6042 = vmatpush1.bf16.msra.mxu0 %v6041_v28  ;;  %2853 = vmatprep.mubr.f32.mxu0 %v2293_v14  ;;  %v2524_v28 = vld [vmem:[#allocation5 + $0x6f0] sm:$0xff]  ;;  %v2526_v14 = vld [vmem:[#allocation5 + $0x700] sm:$0xff] }
 0x478   : > { %6044 = vmatprep.subr.bf16.mxu0 %v6043_v3  ;;  %v2529_v3 = vld [vmem:[#allocation5 + $0x718] sm:$0xff]  ;;  %v6065_v18 = vpack.c.bf16 %v2524_v28, %v2522_v57  ;;  %v2546_v28 = vld [vmem:[#allocation5 + $0x7a0] sm:$0xff] }
 0x479   : > { %v6067_v59 = vpack.c.bf16 %v2529_v3, %v2527_v13  ;;  %v2548_v13 = vld [vmem:[#allocation5 + $0x7b0] sm:$0xff]  ;;  %v2551_v3 = vld [vmem:[#allocation5 + $0x7c8] sm:$0xff] }
 0x47b   : > { %6046 = vmatpush1.bf16.msra.mxu0 %v6045_v56  ;;  %v2533_v56 = vld [vmem:[#allocation5 + $0x738] sm:$0xff] }
 0x47c   : > { %6048 = vmatprep.subr.bf16.mxu0 %v6047_v46  ;;  %v6069_v46 = vpack.c.bf16 %v2528_v2, %v2526_v14  ;;  %v6071_v15 = vpack.c.bf16 %v2533_v56, %v2531_v19  ;;  %v2550_v2 = vld [vmem:[#allocation5 + $0x7c0] sm:$0xff]  ;;  %v2552_v19 = vld [vmem:[#allocation5 + $0x7d0] sm:$0xff]  ;;  %v2555_v56 = vld [vmem:[#allocation5 + $0x7e8] sm:$0xff] }
 0x47f   : > { %6050 = vmatpush1.bf16.msra.mxu0 %v6049_v38  ;;  %v2537_v38 = vld [vmem:[#allocation5 + $0x758] sm:$0xff] }
 0x480   : > { %6052 = vmatprep.subr.bf16.mxu0 %v6051_v30  ;;  %v6073_v30 = vpack.c.bf16 %v2532_v35, %v2530_v29  ;;  %v6075_v48 = vpack.c.bf16 %v2537_v38, %v2535_v43  ;;  %v2554_v35 = vld [vmem:[#allocation5 + $0x7e0] sm:$0xff]  ;;  %v2556_v43 = vld [vmem:[#allocation5 + $0x7f0] sm:$0xff] }
 0x481   : > { %v6097_v38 = vpack.c.bf16 %v2556_v43, %v2554_v35 }
 0x483   : > { %6054 = vmatpush1.bf16.msra.mxu0 %v6053_v6  ;;  %v2541_v6 = vld [vmem:[#allocation5 + $0x778] sm:$0xff] }
 0x484   : > { %6056 = vmatprep.subr.bf16.mxu0 %v6055_v23  ;;  %v6077_v23 = vpack.c.bf16 %v2536_v51, %v2534_v5  ;;  %v6079_v0 = vpack.c.bf16 %v2541_v6, %v2539_v52 }
 0x487   : > { %6058 = vmatpush1.bf16.msra.mxu0 %v6057_v34  ;;  %v2545_v34 = vld [vmem:[#allocation5 + $0x798] sm:$0xff] }
 0x488   : > { %6060 = vmatprep.subr.bf16.mxu0 %v6059_v26  ;;  %v6081_v26 = vpack.c.bf16 %v2540_v17, %v2538_v62  ;;  %v6083_v58 = vpack.c.bf16 %v2545_v34, %v2543_v9  ;;  %v10190_v62 = vmov 0  ;;  %v10192_v17 = vmov 0 }
 0x489   : > { %v10194_v9 = vmov 0.0   ;;  %v2870_v34 = vand.u32 7, %v7479_v4 }
 0x48b   : > { %6062 = vmatpush1.bf16.msra.mxu0 %v6061_v31  ;;  %v2549_v31 = vld [vmem:[#allocation5 + $0x7b8] sm:$0xff]  ;;  %vm8638_vm11 = vcmp.ne.s32.totalorder %v2870_v34, 0 }
 0x48c   : > { %6064 = vmatprep.subr.bf16.mxu0 %v6063_v8  ;;  %v6085_v8 = vpack.c.bf16 %v2544_v1, %v2542_v37  ;;  %v6087_v57 = vpack.c.bf16 %v2549_v31, %v2547_v27 }
 0x48f   : > { %6066 = vmatpush1.bf16.msra.mxu0 %v6065_v18  ;;  %v2553_v18 = vld [vmem:[#allocation5 + $0x7d8] sm:$0xff] }
 0x490   : > { %6068 = vmatprep.subr.bf16.mxu0 %v6067_v59  ;;  %v6089_v59 = vpack.c.bf16 %v2548_v13, %v2546_v28  ;;  %v6091_v14 = vpack.c.bf16 %v2553_v18, %v2551_v3 }
 0x493   : > { %6070 = vmatpush1.bf16.msra.mxu0 %v6069_v46  ;;  %v2557_v46 = vld [vmem:[#allocation5 + $0x7f8] sm:$0xff] }
 0x494   : > { %6072 = vmatprep.subr.bf16.mxu0 %v6071_v15  ;;  %v6093_v15 = vpack.c.bf16 %v2552_v19, %v2550_v2  ;;  %v6095_v29 = vpack.c.bf16 %v2557_v46, %v2555_v56 }
 0x497   : > { %6074 = vmatpush1.bf16.msra.mxu0 %v6073_v30  ;;  %v2260_v30 = vsel %vm10188_vm9, %v6761_v22, %v6770_v11  ;;  %vm9977_vm9 = vcmask 1047624  }
 0x498   : > { %6076 = vmatprep.subr.bf16.mxu0 %v6075_v48  ;;  %v2292_v48 = vmax.f32 %v8485_v44, %v2260_v30 }
 0x49b   : > { %6078 = vmatpush1.bf16.msra.mxu0 %v6077_v23 }
 0x49c   : > { %6080 = vmatprep.subr.bf16.mxu0 %v6079_v0 }
 0x49f   : > { %6082 = vmatpush1.bf16.msra.mxu0 %v6081_v26  ;;  %v2894_v26 = vand.u32 63, %v7479_v4 }
 0x4a0   : > { %6084 = vmatprep.subr.bf16.mxu0 %v6083_v58 }
 0x4a3   : > { %6086 = vmatpush1.bf16.msra.mxu0 %v6085_v8 }
 0x4a4   : > { %6088 = vmatprep.subr.bf16.mxu0 %v6087_v57  ;;  %v10200_v57 = vmov 0 }
 0x4a7   : > { %6090 = vmatpush1.bf16.msra.mxu0 %v6089_v59 }
 0x4a8   : > { %6092 = vmatprep.subr.bf16.mxu0 %v6091_v14  ;;  %v3939_v14 = vld [vmem:[%s9877_s7 + $0x8] sm:$0xff] }
 0x4ab   : > { %6094 = vmatpush1.bf16.msra.mxu0 %v6093_v15  ;;  %v3202_v15 = vld [vmem:[%s9873_s3 + $0x8] sm:$0xff] }
 0x4ac   : > { %6096 = vmatprep.subr.bf16.mxu0 %v6095_v29  ;;  %v3203_v29 = vld [vmem:[%s9874_s4] sm:$0xff] }
 0x4af   : > { %6098 = vmatpush1.bf16.msra.mxu0 %v6097_v38 }
 0x4b0   : > { %v6774_v5 = vpop.permute.xlu0 %6773 }
 0x4b1   : > { %v6776_v51 = vunpack.i.h.bf16 %v6774_v5  ;;  %v6775_v52 = vunpack.i.l.bf16 %v6774_v5 }
 0x4b2   : > { %2854 = vmatmul.mubr.f32.vlgmr.msra.gmra.mrb[10].mxu0 %v2292_v48 }
 0x4b3   : > { %v2269_v6 = vsel %vm10189_vm10, %v6775_v52, %v6776_v51  ;;  %v2268_v23 = vsel %vm10180_vm2, %v6766_v60, %v6775_v52  ;;  %vm9980_vm10 = vcmask 146504   ;;  %vm8609_vm2 = vcmp.ne.s32.totalorder %v2877_v45, 0 }
 0x4b4   : > { %v2301_v0 = vmax.f32 %v8559_v7, %v2269_v6  ;;  %v2300_v25 = vmax.f32 %v8498_v10, %v2268_v23  ;;  %v2901_v7 = vand.u32 63, %v7505_v21  ;;  %v10191_v62 = vsel %vm8609_vm2, 4294967295, %v10190_v62 }
 0x4b6   : > { %2859 = vmatprep.mubr.f32.mxu0 %v2301_v0  ;;  %vm8615_vm4 = vcmp.ge.s32.totalorder %v2901_v7, 8 }
 0x4b7   : > { %2860 = vmatmul.mubr.f32.gmra.mrb[12].mxu0 %v2300_v25  ;;  %v10193_v17 = vsel %vm8615_vm4, 4294967295, %v10192_v17  ;;  %vm9994_vm8 = vmpackc.low %vm8615_vm4, %vm8615_vm4 }
 0x585   : > { %v2855_v61 = vpop.f32.mrb[10].mxu0 }
 0x586   : > { %2936 = vrot.lane.b32.xlu1 %v2855_v61, %s10028_s26  ;;  %v2857_v44 = vpop.f32.mrb[11].mxu0 }
 0x587   : > { %2938 = vrot.lane.b32.xlu0 %v2857_v44, %s10028_s26 }
 0x58a   : > { %v2861_v22 = vpop.f32.mrb[12].mxu0 }
 0x58b   : > { %2940 = vrot.lane.b32.xlu1 %v2861_v22, %s10028_s26  ;;  %v2863_v11 = vpop.f32.mrb[13].mxu0 }
 0x58c   : > { %2942 = vrot.lane.b32.xlu0 %v2863_v11, %s10028_s26  ;;  %s7297_s26 = smov 123  }
 0x5f8   : > { %v2937_v10 = vpop.permute.xlu1 %2936 }
 0x5f9   : > { %2953 = vst.msk [vmem:[#allocation2] sm:$0xff] %vm9977_vm9, %v2937_v10  ;;  %v2939_v60 = vpop.permute.xlu0 %2938  ;;  %vm2923_vm9 = vmand %vm8615_vm4, %vm8609_vm2 }
 0x5fa   : > { %2955 = vst.msk [vmem:[#allocation2 + $0x10] sm:$0xff] %vm9989_vm12, %v2939_v60  ;;  %v2944_v1 = vsel %vm9989_vm12, %v2937_v10, %v2939_v60 }
 0x5fb   : > { %2960 = vst.msk [vmem:[#allocation2 + $0x10] sm:$0xff] %vm9980_vm10, %v10194_v9  ;;  %vm8632_vm10 = vmpackc.low %vm2923_vm9, %vm2923_vm9 }
 0x5fd   : > { %v2941_v58 = vpop.permute.xlu1 %2940 }
 0x5fe   : > { %2956 = vst.msk [vmem:[#allocation2 + $0x48] sm:$0xff] %vm10195_vm7, %v2941_v58  ;;  %v2943_v37 = vpop.permute.xlu0 %2942  ;;  %vm8644_vm7 = vcmp.ge.s32.totalorder %v2894_v26, 8 }
 0x5ff   : > { %v2945_v27 = vsel %vm9989_vm12, %v2941_v58, %v2943_v37  ;;  %2958 = vst.msk [vmem:[#allocation2 + $0x58] sm:$0xff] %vm9989_vm12, %v2943_v37  ;;  %v10201_v57 = vsel %vm8644_vm7, 4294967295, %v10200_v57  ;;  %vm2922_vm9 = vmand %vm8644_vm7, %vm8638_vm11 }
 0x600   : > { %2961 = vst.msk [vmem:[#allocation2 + $0x58] sm:$0xff] %vm10202_vm13, %v10194_v9  ;;  %v6099_v28 = vpack.c.bf16 %v2945_v27, %v2944_v1  ;;  %v2962_v18 = vld [vmem:[#allocation2] sm:$0xff]  ;;  %vm8660_vm13 = vmpackc.low %vm2922_vm9, %vm2922_vm9  ;;  %vm9988_vm9 = vcmask 130048  }
 0x601   : > { %5636 = vmatprep.mubr.msk.f32.mxu1 %vm9988_vm9, %v3202_v15  ;;  %vm10205_vm9 = vcmask 1039360  }
 0x602   : > { %v2974_v13 = vld [vmem:[#allocation2 + $0x10] sm:$0xff]  ;;  %6101 = vmatprep.subr.msk.bf16.mxu1 %vm8632_vm10, %v6099_v28  ;;  %vm10207_vm1 = vmmov %vm10205_vm9 }
 0x603   : > { %3288 = vst.msk [vmem:[#allocation2 + $0x10] sm:$0xff] %vm9989_vm12, %v10194_v9  ;;  %v6777_v3 = vpack.i.bf16 %v2974_v13, %v2944_v1  ;;  %vm10208_vm3 = vmmov %vm10207_vm1 }
 0x605   : > { %v2964_v59 = vld [vmem:[#allocation2 + $0x48] sm:$0xff]  ;;  %6778 = vrot.lane.b32.xlu1 %v6777_v3, %s7286_s20  ;;  %6783 = vrot.lane.b32.xlu0 %v6777_v3, %s7281_s16 }
 0x606   : > { %3705 = vst.msk [vmem:[#allocation2 + $0x48] sm:$0xff] %vm9989_vm12, %v10194_v9  ;;  %v6102_v2 = vpack.c.bf16 %v2964_v59, %v2962_v18  ;;  %v6802_v19 = vpack.i.bf16 %v2964_v59, %v2962_v18  ;;  %vm10206_vm12 = vmmov %vm10205_vm9 }
 0x607   : > { %v2975_v56 = vld [vmem:[#allocation2 + $0x58] sm:$0xff] }
 0x608   : > { %6104 = vmatpush1.bf16.msk.msra.mxu1 %vm8660_vm13, %v6102_v2  ;;  %v6812_v46 = vpack.i.bf16 %v2975_v56, %v2945_v27 }
 0x609   : > { %6788 = vrot.lane.b32.xlu1 %v6777_v3, %s7291_s28  ;;  %6793 = vrot.lane.b32.xlu0 %v6777_v3, %s7292_s24 }
 0x60d   : > { %6803 = vrot.lane.b32.xlu0 %v6802_v19, %s7281_s16  ;;  %6798 = vrot.lane.b32.xlu1 %v6802_v19, %s7286_s20 }
 0x611   : > { %6813 = vrot.lane.b32.xlu0 %v6812_v46, %s7286_s20  ;;  %6808 = vrot.lane.b32.xlu1 %v6802_v19, %s7291_s28 }
 0x615   : > { %6818 = vrot.lane.b32.xlu0 %v6802_v19, %s7292_s24  ;;  %6823 = vrot.lane.b32.xlu1 %v6777_v3, %s7293_s27 }
 0x619   : > { %6838 = vrot.lane.b32.xlu0 %v6812_v46, %s7291_s28  ;;  %6828 = vrot.lane.b32.xlu1 %v6812_v46, %s7281_s16 }
 0x61d   : > { %6843 = vrot.lane.b32.xlu0 %v6777_v3, %s10026_s30  ;;  %6833 = vrot.lane.b32.xlu1 %v6802_v19, %s7293_s27 }
 0x621   : > { %6853 = vrot.lane.b32.xlu0 %v6812_v46, %s7293_s27  ;;  %6848 = vrot.lane.b32.xlu1 %v6812_v46, %s7292_s24 }
 0x625   : > { %6858 = vrot.lane.b32.xlu0 %v6802_v19, %s10026_s30  ;;  %6863 = vrot.lane.b32.xlu1 %v6777_v3, %s10024_s21 }
 0x629   : > { %6878 = vrot.lane.b32.xlu0 %v6812_v46, %s10024_s21  ;;  %6868 = vrot.lane.b32.xlu1 %v6812_v46, %s10026_s30  ;;  %s10258_s30 = smov 9  }
 0x62d   : > { %6883 = vrot.lane.b32.xlu0 %v6777_v3, %s10022_s18  ;;  %6873 = vrot.lane.b32.xlu1 %v6802_v19, %s10024_s21  ;;  %s7296_s21 = smov 124  }
 0x631   : > { %6893 = vrot.lane.b32.xlu0 %v6802_v19, %s10022_s18  ;;  %6888 = vrot.lane.b32.xlu1 %v6812_v46, %s10022_s18  ;;  %s7294_s18 = smov 5  }
 0x635   : > { %3206 = vperm.xlu1 %6696, %v3203_v29  }
 0x677   : > { %v6779_v35 = vpop.permute.xlu1 %6778  ;;  %v6784_v43 = vpop.permute.xlu0 %6783 }
 0x678   : > { %v6781_v51 = vunpack.i.h.bf16 %v6779_v35  ;;  %v6780_v52 = vunpack.i.l.bf16 %v6779_v35  ;;  %v6786_v13 = vunpack.i.h.bf16 %v6784_v43  ;;  %v6785_v3 = vunpack.i.l.bf16 %v6784_v43 }
 0x67a   : > { %v2999_v22 = vsel %vm10205_vm9, %v6780_v52, %v6781_v51  ;;  %vm9993_vm9 = vmpackc.low %vm8644_vm7, %vm8644_vm7 }
 0x67b   : > { %v8697_v38 = vpop.permute.xlu1 %6788  ;;  %v8699_v30 = vpop.permute.xlu0 %6793 }
 0x67c   : > { %v6790_v2 = vunpack.i.l.bf16 %v8697_v38 }
 0x67f   : > { %v6804_v48 = vpop.permute.xlu0 %6803  ;;  %v6799_v5 = vpop.permute.xlu1 %6798 }
 0x680   : > { %v6800_v6 = vunpack.i.l.bf16 %v6799_v5  ;;  %v6801_v25 = vunpack.i.h.bf16 %v6799_v5  ;;  %v6805_v18 = vunpack.i.l.bf16 %v6804_v48  ;;  %v6806_v19 = vunpack.i.h.bf16 %v6804_v48 }
 0x682   : > { %v2998_v11 = vsel %vm10206_vm12, %v6800_v6, %v6780_v52  ;;  %vm8717_vm12 = vcmp.ne.s32.totalorder %v2877_v45, 7  ;;  %v6791_v45 = vunpack.i.h.bf16 %v8697_v38 }
 0x683   : > { %v6814_v23 = vpop.permute.xlu0 %6813  ;;  %v6809_v0 = vpop.permute.xlu1 %6808 }
 0x684   : > { %v6816_v61 = vunpack.i.h.bf16 %v6814_v23  ;;  %v6815_v44 = vunpack.i.l.bf16 %v6814_v23  ;;  %v6811_v48 = vunpack.i.h.bf16 %v6809_v0  ;;  %v6810_v5 = vunpack.i.l.bf16 %v6809_v0 }
 0x685   : > { %v10217_v23 = vmov 0  ;;  %v3056_v0 = vsel %vm10004_vm14, %v6790_v2, %v6791_v45 }
 0x686   : > { %v3000_v10 = vsel %vm10207_vm1, %v6801_v25, %v6815_v44  ;;  %v3001_v60 = vsel %vm10208_vm3, %v6815_v44, %v6816_v61  ;;  %vm8728_vm3 = vcmp.ne.s32.totalorder %v2870_v34, 7  ;;  %vm2925_vm1 = vmand %vm8615_vm4, %vm8717_vm12 }
 0x687   : > { %v6108_v58 = vpack.c.bf16 %v3000_v10, %v2998_v11  ;;  %v8708_v37 = vpop.permute.xlu0 %6818  ;;  %v8710_v1 = vpop.permute.xlu1 %6823  ;;  %v6105_v27 = vpack.c.bf16 %v3001_v60, %v2999_v22  ;;  %vm8752_vm5 = vmpackc.low %vm2925_vm1, %vm2925_vm1  ;;  %v10219_v11 = vmov 0  ;;  %v6796_v60 = vunpack.i.h.bf16 %v8699_v30 }
 0x688   : > { %v10218_v23 = vsel %vm8752_vm5, 4294967295, %v10217_v23  ;;  %v6826_v45 = vunpack.i.h.bf16 %v8710_v1  ;;  %vm10007_vm1 = vmpackc.low %vm8717_vm12, %vm8717_vm12 }
 0x689   : > { %6107 = vmatprep.subr.msk.bf16.mxu1 %vm9994_vm8, %v6105_v27  ;;  %vm10213_vm8 = vcmask 1031168   ;;  %v6820_v27 = vunpack.i.l.bf16 %v8708_v37 }
 0x68a   : > { %6110 = vmatpush1.bf16.msk.msra.mxu1 %vm9993_vm9, %v6108_v58  ;;  %vm2924_vm9 = vmand %vm8644_vm7, %vm8728_vm3  ;;  %v3027_v43 = vsel %vm10213_vm8, %v6785_v3, %v6786_v13  ;;  %v6795_v58 = vunpack.i.l.bf16 %v8699_v30 }
 0x68b   : > { %v6839_v56 = vpop.permute.xlu0 %6838  ;;  %v6829_v46 = vpop.permute.xlu1 %6828  ;;  %vm10214_vm0 = vmmov %vm10213_vm8 }
 0x68c   : > { %v6841_v34 = vunpack.i.h.bf16 %v6839_v56  ;;  %v6840_v15 = vunpack.i.l.bf16 %v6839_v56  ;;  %v6831_v29 = vunpack.i.h.bf16 %v6829_v46  ;;  %v6830_v35 = vunpack.i.l.bf16 %v6829_v46  ;;  %vm10215_vm6 = vmmov %vm10214_vm0 }
 0x68d   : > { %v3026_v38 = vsel %vm10214_vm0, %v6805_v18, %v6785_v3  ;;  %vm10216_vm15 = vmmov %vm10214_vm0  ;;  %v3055_v3 = vsel %vm10004_vm14, %v6810_v5, %v6790_v2  ;;  %v6821_v18 = vunpack.i.h.bf16 %v8708_v37 }
 0x68e   : > { %v3058_v51 = vsel %vm10004_vm14, %v6840_v15, %v6841_v34  ;;  %v3028_v52 = vsel %vm10215_vm6, %v6806_v19, %v6830_v35  ;;  %v3029_v6 = vsel %vm10216_vm15, %v6830_v35, %v6831_v29  ;;  %vm8758_vm8 = vmpackc.low %vm2924_vm9, %vm2924_vm9  ;;  %v3057_v10 = vsel %vm10004_vm14, %v6811_v48, %v6840_v15 }
 0x68f   : > { %v6114_v25 = vpack.c.bf16 %v3028_v52, %v3026_v38  ;;  %v8756_v61 = vpop.permute.xlu0 %6843  ;;  %v6834_v44 = vpop.permute.xlu1 %6833  ;;  %v6111_v22 = vpack.c.bf16 %v3029_v6, %v3027_v43  ;;  %v10220_v11 = vsel %vm8758_vm8, 4294967295, %v10219_v11  ;;  %vm10000_vm0 = vmpackc.low %vm8609_vm2, %vm8609_vm2  ;;  %v6117_v13 = vpack.c.bf16 %v3058_v51, %v3056_v0 }
 0x690   : > { %vm10002_vm15 = vcmask 973824   ;;  %v6825_v19 = vunpack.i.l.bf16 %v8710_v1  ;;  %v6120_v56 = vpack.c.bf16 %v3057_v10, %v3055_v3  ;;  %vm10001_vm6 = vmpackc.low %vm8638_vm11, %vm8638_vm11  ;;  %vm10003_vm9 = vcmask 965632  }
 0x691   : > { %6113 = vmatprep.subr.msk.bf16.mxu1 %vm8752_vm5, %v6111_v22  ;;  %v3193_v29 = vsel %vm10002_vm15, %v6820_v27, %v6795_v58  ;;  %v6836_v1 = vunpack.i.h.bf16 %v6834_v44  ;;  %v3194_v35 = vsel %vm10002_vm15, %v6795_v58, %v6796_v60  ;;  %v6835_v43 = vunpack.i.l.bf16 %v6834_v44 }
 0x692   : > { %6116 = vmatpush1.bf16.msk.msra.mxu1 %vm8758_vm8, %v6114_v25  ;;  %v3085_v22 = vsel %vm10003_vm9, %v6825_v19, %v6826_v45  ;;  %v10221_v0 = vmov 0  ;;  %v6846_v10 = vunpack.i.h.bf16 %v8756_v61  ;;  %v6845_v60 = vunpack.i.l.bf16 %v8756_v61 }
 0x693   : > { %v6854_v30 = vpop.permute.xlu0 %6853  ;;  %v6849_v46 = vpop.permute.xlu1 %6848  ;;  %6119 = vmatprep.subr.msk.bf16.mxu1 %vm10000_vm0, %v6117_v13  ;;  %vm8803_vm0 = vcmp.lt.s32.totalorder %v2901_v7, 56  ;;  %v3084_v13 = vsel %vm10003_vm9, %v6835_v43, %v6825_v19  ;;  %vm10227_vm5 = vcmask 908288  }
 0x694   : > { %v6856_v2 = vunpack.i.h.bf16 %v6854_v30  ;;  %v6855_v34 = vunpack.i.l.bf16 %v6854_v30  ;;  %v6851_v37 = vunpack.i.h.bf16 %v6849_v46  ;;  %v6850_v15 = vunpack.i.l.bf16 %v6849_v46 }
 0x695   : > { %v10222_v0 = vsel %vm8803_vm0, 4294967295, %v10221_v0 }
 0x696   : > { %v3087_v38 = vsel %vm10003_vm9, %v6855_v34, %v6856_v2  ;;  %v3195_v48 = vsel %vm10002_vm15, %v6821_v18, %v6850_v15  ;;  %6122 = vmatpush1.bf16.msk.msra.mxu1 %vm10001_vm6, %v6120_v56  ;;  %v3196_v5 = vsel %vm10002_vm15, %v6850_v15, %v6851_v37  ;;  %v3086_v44 = vsel %vm10003_vm9, %v6836_v1, %v6855_v34  ;;  %vm2927_vm9 = vmand %vm8803_vm0, %vm8609_vm2 }
 0x697   : > { %v6859_v51 = vpop.permute.xlu0 %6858  ;;  %v6864_v52 = vpop.permute.xlu1 %6863  ;;  %v6123_v6 = vpack.c.bf16 %v3196_v5, %v3194_v35  ;;  %v6125_v25 = vpack.c.bf16 %v3195_v48, %v3193_v29  ;;  %v6127_v58 = vpack.c.bf16 %v3087_v38, %v3085_v22  ;;  %vm8811_vm6 = vcmp.lt.s32.totalorder %v2894_v26, 56  ;;  %vm10230_vm2 = vmpackc.low %vm8728_vm3, %vm8728_vm3 }
 0x698   : > { %v6860_v3 = vunpack.i.l.bf16 %v6859_v51  ;;  %v6130_v21 = vpack.c.bf16 %v3086_v44, %v3084_v13  ;;  %v6861_v7 = vunpack.i.h.bf16 %v6859_v51  ;;  %v6866_v18 = vunpack.i.h.bf16 %v6864_v52  ;;  %vm2926_vm14 = vmand %vm8811_vm6, %vm8638_vm11 }
 0x699   : > { %6124 = vmatprep.subr.bf16.mxu1 %v6123_v6  ;;  %v6865_v61 = vunpack.i.l.bf16 %v6864_v52  ;;  %vm10225_vm15 = vcmask 916480   ;;  %vm8842_vm4 = vmpackc.low %vm2927_vm9, %vm2927_vm9  ;;  %v10233_v5 = vmov 0 }
 0x69a   : > { %6126 = vmatpush1.bf16.msra.mxu1 %v6125_v25  ;;  %v3113_v2 = vsel %vm10225_vm15, %v6845_v60, %v6846_v10  ;;  %vm10226_vm8 = vmmov %vm10225_vm15 }
 0x69b   : > { %v6879_v45 = vpop.permute.xlu0 %6878  ;;  %v6869_v56 = vpop.permute.xlu1 %6868  ;;  %6129 = vmatprep.subr.msk.bf16.mxu1 %vm10007_vm1, %v6127_v58  ;;  %v3112_v34 = vsel %vm10226_vm8, %v6860_v3, %v6845_v60  ;;  %vm10228_vm1 = vmmov %vm10226_vm8  ;;  %v3141_v51 = vsel %vm10227_vm5, %v6865_v61, %v6866_v18 }
 0x69c   : > { %v6881_v26 = vunpack.i.h.bf16 %v6879_v45  ;;  %v6880_v19 = vunpack.i.l.bf16 %v6879_v45  ;;  %v6871_v30 = vunpack.i.h.bf16 %v6869_v56  ;;  %v6870_v46 = vunpack.i.l.bf16 %v6869_v56  ;;  %vm10229_vm7 = vmmov %vm10228_vm1 }
 0x69d   : > { %vm8846_vm8 = vmpackc.low %vm2926_vm14, %vm2926_vm14 }
 0x69e   : > { %v3143_v37 = vsel %vm10227_vm5, %v6880_v19, %v6881_v26  ;;  %v3114_v15 = vsel %vm10228_vm1, %v6861_v7, %v6870_v46  ;;  %v3115_v29 = vsel %vm10229_vm7, %v6870_v46, %v6871_v30  ;;  %6132 = vmatpush1.bf16.msk.msra.mxu1 %vm10230_vm2, %v6130_v21  ;;  %v10234_v5 = vsel %vm8846_vm8, 4294967295, %v10233_v5  ;;  %vm10014_vm2 = vmpackc.low %vm8803_vm0, %vm8803_vm0 }
 0x69f   : > { %v6136_v35 = vpack.c.bf16 %v3114_v15, %v3112_v34  ;;  %v6884_v43 = vpop.permute.xlu0 %6883  ;;  %v6874_v38 = vpop.permute.xlu1 %6873  ;;  %v6133_v48 = vpack.c.bf16 %v3115_v29, %v3113_v2  ;;  %v6139_v25 = vpack.c.bf16 %v3143_v37, %v3141_v51  ;;  %vm10235_vm7 = vmmov %vm10227_vm5  ;;  %v10241_v30 = vmov 0  ;;  %v3201_v37 = vld [vmem:[%s9873_s3] sm:$0xff] }
 0x6a0   : > { %v6876_v52 = vunpack.i.h.bf16 %v6874_v38  ;;  %v6875_v6 = vunpack.i.l.bf16 %v6874_v38  ;;  %v6886_v22 = vunpack.i.h.bf16 %v6884_v43  ;;  %v6885_v44 = vunpack.i.l.bf16 %v6884_v43  ;;  %vm10236_vm14 = vmmov %vm10227_vm5  ;;  %v8900_v38 = vld [vmem:[#allocation2 + $0x10] sm:$0xff]  ;;  %v3340_v51 = vld [vmem:[%s9882_s12 + $0x80] sm:$0xff] }
 0x6a1   : > { %6135 = vmatprep.subr.msk.bf16.mxu1 %vm8842_vm4, %v6133_v48  ;;  %vm10030_vm15 = vmpackc.low %vm8811_vm6, %vm8811_vm6  ;;  %vm10237_vm5 = vcmask 900096   ;;  %v10243_v34 = vmov 0 }
 0x6a2   : > { %v3142_v10 = vsel %vm10235_vm7, %v6876_v52, %v6880_v19  ;;  %v3140_v60 = vsel %vm10236_vm14, %v6875_v6, %v6865_v61  ;;  %6138 = vmatpush1.bf16.msk.msra.mxu1 %vm8846_vm8, %v6136_v35  ;;  %vm2929_vm9 = vmand %vm8803_vm0, %vm8717_vm12  ;;  %v3169_v45 = vsel %vm10237_vm5, %v6885_v44, %v6886_v22  ;;  %v3341_v52 = vld [vmem:[%s9882_s12 + $0x88] sm:$0xff]  ;;  %v3324_v6 = vld [vmem:[%s9882_s12] sm:$0xff] }
 0x6a3   : > { %v6142_v58 = vpack.c.bf16 %v3142_v10, %v3140_v60  ;;  %v6894_v13 = vpop.permute.xlu0 %6893  ;;  %v6889_v3 = vpop.permute.xlu1 %6888  ;;  %6141 = vmatprep.subr.msk.bf16.mxu1 %vm10014_vm2, %v6139_v25  ;;  %vm2928_vm1 = vmand %vm8811_vm6, %vm8728_vm3  ;;  %v6151_v22 = vpack.c.bf16 %v3341_v52, %v3340_v51  ;;  %v3342_v10 = vld [vmem:[%s9882_s12 + $0x90] sm:$0xff]  ;;  %v3343_v60 = vld [vmem:[%s9882_s12 + $0x98] sm:$0xff] }
 0x6a4   : > { %v6896_v21 = vunpack.i.h.bf16 %v6894_v13  ;;  %v6895_v7 = vunpack.i.l.bf16 %v6894_v13  ;;  %v6891_v18 = vunpack.i.h.bf16 %v6889_v3  ;;  %v6890_v61 = vunpack.i.l.bf16 %v6889_v3  ;;  %vm10238_vm7 = vmmov %vm10237_vm5  ;;  %v3348_v51 = vld [vmem:[%s9882_s12 + $0xc0] sm:$0xff]  ;;  %v3349_v52 = vld [vmem:[%s9882_s12 + $0xc8] sm:$0xff] }
 0x6a5   : > { %vm10239_vm14 = vmmov %vm10237_vm5  ;;  %v6155_v3 = vpack.c.bf16 %v3343_v60, %v3342_v10  ;;  %v3333_v10 = vld [vmem:[%s9882_s12 + $0x48] sm:$0xff]  ;;  %v3350_v60 = vld [vmem:[%s9882_s12 + $0xd0] sm:$0xff] }
 0x6a6   : > { %v3168_v56 = vsel %vm10238_vm7, %v6895_v7, %v6885_v44  ;;  %v3170_v26 = vsel %vm10239_vm14, %v6896_v21, %v6890_v61  ;;  %vm10240_vm2 = vmmov %vm10237_vm5  ;;  %6144 = vmatpush1.bf16.msk.msra.mxu1 %vm10030_vm15, %v6142_v58  ;;  %v3325_v44 = vld [vmem:[%s9882_s12 + $0x8] sm:$0xff]  ;;  %v3326_v21 = vld [vmem:[%s9882_s12 + $0x10] sm:$0xff]  ;;  %vm3446_vm7 = vcmask 39936   ;;  %vm3452_vm14 = vcmask 564264  }
 0x6a7   : > { %v3171_v19 = vsel %vm10240_vm2, %v6890_v61, %v6891_v18  ;;  %vm8885_vm0 = vmpackc.low %vm2929_vm9, %vm2929_vm9  ;;  %v6148_v46 = vpack.c.bf16 %v3170_v26, %v3168_v56  ;;  %v6153_v13 = vpack.c.bf16 %v3325_v44, %v3324_v6  ;;  %v3327_v7 = vld [vmem:[%s9882_s12 + $0x18] sm:$0xff]  ;;  %v3344_v18 = vld [vmem:[%s9882_s12 + $0xa0] sm:$0xff]  ;;  %vm10245_vm2 = vcmask 1039360  }
 0x6a8   : > { %v10242_v30 = vsel %vm8885_vm0, 4294967295, %v10241_v30  ;;  %v6145_v2 = vpack.c.bf16 %v3171_v19, %v3169_v45  ;;  %vm8889_vm8 = vmpackc.low %vm2928_vm1, %vm2928_vm1  ;;  %v3345_v61 = vld [vmem:[%s9882_s12 + $0xa8] sm:$0xff]  ;;  %v6157_v56 = vpack.c.bf16 %v3327_v7, %v3326_v21  ;;  %v3328_v19 = vld [vmem:[%s9882_s12 + $0x20] sm:$0xff]  ;;  %vm10247_vm1 = vcmask 982016  }
 0x6a9   : > { %v10244_v34 = vsel %vm8889_vm8, 4294967295, %v10243_v34  ;;  %v6159_v26 = vpack.c.bf16 %v3345_v61, %v3344_v18  ;;  %v3332_v44 = vld [vmem:[%s9882_s12 + $0x40] sm:$0xff]  ;;  %v3334_v7 = vld [vmem:[%s9882_s12 + $0x50] sm:$0xff]  ;;  %v3335_v18 = vld [vmem:[%s9882_s12 + $0x58] sm:$0xff] }
 0x6aa   : > { %6147 = vmatprep.subr.msk.bf16.mxu1 %vm8885_vm0, %v6145_v2  ;;  %v3346_v2 = vld [vmem:[%s9882_s12 + $0xb0] sm:$0xff]  ;;  %v6173_v61 = vpack.c.bf16 %v3335_v18, %v3334_v7  ;;  %vm10246_vm9 = vmmov %vm10245_vm2  ;;  %vm10254_vm0 = vmmov 1  }
 0x6ab   : > { %6150 = vmatpush1.bf16.msk.msra.mxu1 %vm8889_vm8, %v6148_v46  ;;  %v3329_v46 = vld [vmem:[%s9882_s12 + $0x28] sm:$0xff]  ;;  %vm10248_vm5 = vmmov %vm10247_vm1  ;;  %vm3441_vm8 = vcmp.lt.s32.totalorder %v7502_v20, 12 }
 0x6ac   : > { %6152 = vmatprep.subr.bf16.mxu1 %v6151_v22  ;;  %v6167_v22 = vpack.c.bf16 %v3349_v52, %v3348_v51 }
 0x6ae   : > { %3278 = vmatmul.mubr.f32.vlgmr.msra.gmra.mrb[6].mxu1 %v3201_v37  ;;  %v3347_v37 = vld [vmem:[%s9882_s12 + $0xb8] sm:$0xff] }
 0x6af   : > { %6154 = vmatpush3.bf16.msra.mxu1 %v6153_v13  ;;  %v3351_v13 = vld [vmem:[%s9882_s12 + $0xd8] sm:$0xff] }
 0x6b0   : > { %6156 = vmatprep.subr.bf16.mxu1 %v6155_v3  ;;  %v6169_v3 = vpack.c.bf16 %v3333_v10, %v3332_v44  ;;  %v6171_v21 = vpack.c.bf16 %v3351_v13, %v3350_v60 }
 0x6b3   : > { %6158 = vmatpush3.bf16.msra.mxu1 %v6157_v56  ;;  %v3353_v56 = vld [vmem:[%s9882_s12 + $0xe8] sm:$0xff] }
 0x6b4   : > { %v3207_v15 = vpop.permute.xlu1 %3206  ;;  %6160 = vmatprep.subr.bf16.mxu1 %v6159_v26 }
 0x781   : > { %v3279_v29 = vpop.f32.mrb[6].mxu1 }
 0x782   : > { %v3280_v35 = vadd.f32 %v3279_v29, %v3207_v15  ;;  %v3281_v43 = vpop.f32.mrb[7].mxu1  ;;  %v6163_v29 = vpack.c.bf16 %v3347_v37, %v3346_v2  ;;  %v3354_v37 = vld [vmem:[%s9882_s12 + $0xf0] sm:$0xff] }
 0x783   : > { %v8902_v48 = vadd.f32 %v3281_v43, %v3207_v15  ;;  %v6161_v15 = vpack.c.bf16 %v3329_v46, %v3328_v19  ;;  %v3331_v43 = vld [vmem:[%s9882_s12 + $0x38] sm:$0xff]  ;;  %v3336_v19 = vld [vmem:[%s9882_s12 + $0x60] sm:$0xff]  ;;  %v3337_v46 = vld [vmem:[%s9882_s12 + $0x68] sm:$0xff] }
 0x784   : > { %v8913_v25 = vmax.f32 %v3280_v35, 0.0  ;;  %v3330_v35 = vld [vmem:[%s9882_s12 + $0x30] sm:$0xff]  ;;  %v6177_v2 = vpack.c.bf16 %v3337_v46, %v3336_v19 }
 0x785   : > { %v3285_v58 = vmax.f32 %v8902_v48, 0.0  ;;  %6162 = vmatpush3.bf16.msra.mxu1 %v6161_v15  ;;  %v6165_v6 = vpack.c.bf16 %v3331_v43, %v3330_v35  ;;  %v3355_v15 = vld [vmem:[%s9882_s12 + $0xf8] sm:$0xff]  ;;  %v3338_v35 = vld [vmem:[%s9882_s12 + $0x70] sm:$0xff] }
 0x786   : > { %3286 = vst [vmem:[#allocation2] sm:$0xff] %v8913_v25  ;;  %3295 = vrot.lane.b32.xlu1 %v8913_v25, %s7286_s20  ;;  %6164 = vmatprep.subr.bf16.mxu1 %v6163_v29  ;;  %v6179_v29 = vpack.c.bf16 %v3355_v15, %v3354_v37  ;;  %v3339_v43 = vld [vmem:[%s9882_s12 + $0x78] sm:$0xff]  ;;  %v3506_v15 = vld [vmem:[%s9875_s5] sm:$0xff] }
 0x787   : > { %v6897_v45 = vpack.i.bf16 %v8900_v38, %v3285_v58  ;;  %v6181_v51 = vpack.c.bf16 %v3339_v43, %v3338_v35  ;;  %3447 = vst.msk [vmem:[#allocation2] sm:$0xff] %vm3446_vm7, %v10194_v9  ;;  %v3508_v35 = vld [vmem:[%s9876_s6] sm:$0xff]  ;;  %v3430_v43 = vand.u32 3, %v7479_v4  ;;  %vm3440_vm7 = vcmp.ge.s32.totalorder %v7502_v20, 4 }
 0x789   : > { %6898 = vrot.lane.b32.xlu0 %v6897_v45, %s7286_s20  ;;  %6166 = vmatpush3.bf16.msra.mxu1 %v6165_v6  ;;  %v3352_v45 = vld [vmem:[%s9882_s12 + $0xe0] sm:$0xff] }
 0x78a   : > { %6168 = vmatprep.subr.bf16.mxu1 %v6167_v22  ;;  %v6175_v26 = vpack.c.bf16 %v3353_v56, %v3352_v45 }
 0x78d   : > { %6170 = vmatpush3.bf16.msra.mxu1 %v6169_v3 }
 0x78e   : > { %6172 = vmatprep.subr.bf16.mxu1 %v6171_v21 }
 0x791   : > { %6174 = vmatpush3.bf16.msra.mxu1 %v6173_v61 }
 0x792   : > { %6176 = vmatprep.subr.bf16.mxu1 %v6175_v26 }
 0x795   : > { %6178 = vmatpush3.bf16.msra.mxu1 %v6177_v2 }
 0x796   : > { %6180 = vmatprep.subr.bf16.mxu1 %v6179_v29  ;;  %v3509_v29 = vld [vmem:[%s9876_s6 + $0x8] sm:$0xff] }
 0x799   : > { %6182 = vmatpush3.bf16.msra.mxu1 %v6181_v51 }
 0x7f8   : > { %v3296_v44 = vpop.permute.xlu1 %3295 }
 0x7fb   : > { %v6899_v52 = vpop.permute.xlu0 %6898 }
 0x7fc   : > { %v6901_v6 = vunpack.i.h.bf16 %v6899_v52  ;;  %v6900_v22 = vunpack.i.l.bf16 %v6899_v52 }
 0x7fe   : > { %v3308_v10 = vmax.f32 %v8900_v38, %v6901_v6  ;;  %v3302_v60 = vsel %vm10245_vm2, %v6900_v22, %v6901_v6  ;;  %v3301_v13 = vsel %vm10246_vm9, %v3296_v44, %v6900_v22  ;;  %vm3454_vm2 = vcmask 605736  }
 0x7ff   : > { %v3306_v3 = vmax.f32 %v3285_v58, %v3302_v60  ;;  %v3305_v21 = vmax.f32 %v8913_v25, %v3301_v13  ;;  %vm10249_vm9 = vcmask 72704  }
 0x801   : > { %v6902_v7 = vpack.i.bf16 %v3308_v10, %v3306_v3  ;;  %3312 = vrot.lane.b32.xlu1 %v3305_v21, %s7291_s28 }
 0x803   : > { %6903 = vrot.lane.b32.xlu0 %v6902_v7, %s7291_s28 }
 0x873   : > { %v3313_v56 = vpop.permute.xlu1 %3312 }
 0x875   : > { %v6904_v18 = vpop.permute.xlu0 %6903 }
 0x876   : > { %v6906_v61 = vunpack.i.h.bf16 %v6904_v18  ;;  %v6905_v45 = vunpack.i.l.bf16 %v6904_v18 }
 0x878   : > { %v3318_v38 = vsel %vm10247_vm1, %v3313_v56, %v6905_v45  ;;  %v3319_v26 = vsel %vm10248_vm5, %v6905_v45, %v6906_v61  ;;  %vm10031_vm1 = vcmask 588800   ;;  %vm9040_vm5 = vcmp.ne.s32.totalorder %v3430_v43, 0  ;;  %v3605_v56 = vld [vmem:[%s9883_s13 + $0x8] sm:$0xff] }
 0x879   : > { %v3322_v19 = vmax.f32 %v3305_v21, %v3318_v38  ;;  %v3323_v46 = vmax.f32 %v3306_v3, %v3319_v26  ;;  %v3607_v38 = vld [vmem:[%s9883_s13 + $0x18] sm:$0xff]  ;;  %v3604_v26 = vld [vmem:[%s9883_s13] sm:$0xff] }
 0x87b   : > { %3420 = vmatprep.mubr.f32.mxu1 %v3323_v46  ;;  %v3609_v46 = vld [vmem:[%s9883_s13 + $0x28] sm:$0xff] }
 0x87c   : > { %3421 = vmatmul.mubr.f32.vlgmr.msra.gmra.mrb[8].mxu1 %v3322_v19  ;;  %v3606_v19 = vld [vmem:[%s9883_s13 + $0x10] sm:$0xff] }
 0x87d   : > { %5816 = vmatprep.mubr.msk.f32.mxu1 %vm10031_vm1, %v3506_v15  ;;  %v3608_v15 = vld [vmem:[%s9883_s13 + $0x20] sm:$0xff] }
 0x94f   : > { %v5784_v48 = vpop.f32.mrb[8].mxu1 }
 0x950   : > { %v5785_v25 = vpop.f32.mrb[9].mxu1 }
 0x951   : > { %v5786_v58 = vadd.f32 %v5785_v25, %v5784_v48  ;;  %v3611_v48 = vld [vmem:[%s9883_s13 + $0x38] sm:$0xff]  ;;  %v6207_v25 = vpack.c.bf16 %v3607_v38, %v3605_v56 }
 0x953   : > { %3449 = vrot.lane.b32.xlu0 %v5786_v58, %s7294_s18  ;;  %v3507_v58 = vld [vmem:[%s9875_s5 + $0x8] sm:$0xff] }
 0x9c5   : > { %v3450_v2 = vpop.permute.xlu0 %3449 }
 0x9c6   : > { %3453 = vst.msk [vmem:[#allocation2] sm:$0xff] %vm3452_vm14, %v3450_v2  ;;  %vm3442_vm14 = vmand %vm3440_vm7, %vm9040_vm5  ;;  %v6209_v2 = vpack.c.bf16 %v3606_v19, %v3604_v26 }
 0x9c7   : > { %3455 = vst.msk [vmem:[#allocation2] sm:$0xff] %vm3454_vm2, %v10194_v9  ;;  %vm9047_vm2 = vcmp.ne.s32.totalorder %v3430_v43, 3  ;;  %v3615_v43 = vld [vmem:[%s9883_s13 + $0x58] sm:$0xff] }
 0x9c8   : > { %vm3443_vm15 = vmand %vm3440_vm7, %vm9047_vm2 }
 0x9c9   : > { %vm6190_vm1 = vmpackc.low %vm9040_vm5, %vm3443_vm15 }
 0x9ce   : > { %v3456_v37 = vld [vmem:[#allocation2] sm:$0xff] }
 0x9cf   : > { %3469 = vrot.lane.b32.xlu0 %v3456_v37, %s7281_s16  ;;  %3704 = vst.msk [vmem:[#allocation2] sm:$0xff] %vm10249_vm9, %v10194_v9  ;;  %3463 = vrot.lane.b32.xlu1 %v3456_v37, %s7286_s20  ;;  %vm6184_vm9 = vmpackc.low %vm3440_vm7, %vm3442_vm14 }
 0x9d0   : > { %vm6196_vm14 = vmpackc.low %vm9047_vm2, %vm10254_vm0 }
 0x9d1   : > { %vm3444_vm7 = vmand %vm3441_vm8, %vm9040_vm5  ;;  %vm10259_vm5 = vcmask 1047624  }
 0x9d2   : > { %vm6202_vm15 = vmpackc.low %vm3441_vm8, %vm3444_vm7 }
 0x9d3   : > { %3481 = vrot.lane.b32.xlu0 %v3456_v37, %s7295_s10  ;;  %3475 = vrot.lane.b32.xlu1 %v3456_v37, %s7296_s21  ;;  %vm10262_vm7 = vmmov %vm10259_vm5  ;;  %s10321_s10 = smov 17   ;;  %s10327_s21 = smov 96  }
 0x9d7   : > { %3487 = vrot.lane.b32.xlu0 %v3456_v37, %s7291_s28  ;;  %3503 = vrot.lane.b32.xlu1 %v3456_v37, %s7297_s26  ;;  %s10268_s26 = smov 112  }
 0x9db   : > { %3499 = vrot.lane.b32.xlu0 %v3456_v37, %s7293_s27  ;;  %3493 = vrot.lane.b32.xlu1 %v3456_v37, %s7292_s24 }
 0x9df   : > { %3517 = vperm.xlu0 %6695, %v3509_v29   ;;  %3512 = vperm.xlu1 %6696, %v3508_v35   ;;  %v3610_v29 = vld [vmem:[%s9883_s13 + $0x30] sm:$0xff]  ;;  %v3613_v35 = vld [vmem:[%s9883_s13 + $0x48] sm:$0xff] }
 0x9e0   : > { %v6213_v51 = vpack.c.bf16 %v3610_v29, %v3608_v15  ;;  %v6215_v52 = vpack.c.bf16 %v3615_v43, %v3613_v35 }
 0xa41   : > { %v3464_v6 = vpop.permute.xlu1 %3463  ;;  %v3470_v22 = vpop.permute.xlu0 %3469 }
 0xa42   : > { %v6183_v44 = vpack.c.bf16 %v3464_v6, %v3456_v37  ;;  %v6211_v37 = vpack.c.bf16 %v3611_v48, %v3609_v46  ;;  %v3612_v6 = vld [vmem:[%s9883_s13 + $0x40] sm:$0xff] }
 0xa44   : > { %6185 = vmatprep.subr.msk.bf16.mxu1 %vm6184_vm9, %v6183_v44 }
 0xa45   : > { %6188 = vmatpush3.bf16.msk.msra.mxu1 %vm6184_vm9, %v6183_v44  ;;  %v3476_v4 = vpop.permute.xlu1 %3475  ;;  %v3482_v10 = vpop.permute.xlu0 %3481  ;;  %vm9063_vm9 = vmand %vm3441_vm8, %vm9047_vm2  ;;  %vm10257_vm8 = vcmask 588800   ;;  %vm10260_vm2 = vcmask 72704  }
 0xa46   : > { %v6189_v60 = vpack.c.bf16 %v3476_v4, %v3470_v22  ;;  %v3614_v22 = vld [vmem:[%s9883_s13 + $0x50] sm:$0xff]  ;;  %v3617_v4 = vld [vmem:[%s9883_s13 + $0x68] sm:$0xff] }
 0xa47   : > { %v6217_v44 = vpack.c.bf16 %v3614_v22, %v3612_v6 }
 0xa48   : > { %6191 = vmatprep.subr.msk.bf16.mxu1 %vm6190_vm1, %v6189_v60 }
 0xa49   : > { %6194 = vmatpush3.bf16.msk.msra.mxu1 %vm6190_vm1, %v6189_v60  ;;  %v3504_v13 = vpop.permute.xlu1 %3503  ;;  %v3488_v21 = vpop.permute.xlu0 %3487  ;;  %vm3620_vm1 = vcmask 523264  }
 0xa4a   : > { %v6195_v3 = vpack.c.bf16 %v3482_v10, %v3504_v13  ;;  %v3619_v10 = vld [vmem:[%s9883_s13 + $0x78] sm:$0xff]  ;;  %v3616_v13 = vld [vmem:[%s9883_s13 + $0x60] sm:$0xff] }
 0xa4b   : > { %v6219_v60 = vpack.c.bf16 %v3619_v10, %v3617_v4 }
 0xa4c   : > { %6197 = vmatprep.subr.msk.bf16.mxu1 %vm6196_vm14, %v6195_v3 }
 0xa4d   : > { %6200 = vmatpush3.bf16.msk.msra.mxu1 %vm6196_vm14, %v6195_v3  ;;  %v3494_v7 = vpop.permute.xlu1 %3493  ;;  %v3500_v61 = vpop.permute.xlu0 %3499  ;;  %v3618_v3 = vld [vmem:[%s9883_s13 + $0x70] sm:$0xff]  ;;  %vm10261_vm14 = vcmask 146504  }
 0xa4e   : > { %v6201_v18 = vpack.c.bf16 %v3494_v7, %v3488_v21  ;;  %v6221_v21 = vpack.c.bf16 %v3618_v3, %v3616_v13  ;;  %v3940_v13 = vld [vmem:[%s9878_s8] sm:$0xff] }
 0xa4f   : > { %v4027_v3 = vld [vmem:[#allocation7 + $0x28] sm:$0xff] }
 0xa50   : > { %6203 = vmatprep.subr.msk.bf16.mxu1 %vm6202_vm15, %v6201_v18 }
 0xa51   : > { %6206 = vmatpush3.bf16.msk.msra.mxu1 %vm6202_vm15, %v6201_v18  ;;  %vm10263_vm15 = vmmov %vm10260_vm2 }
 0xa52   : > { %5814 = vmatprep.subr.msk.mxu1 %vm9063_vm9, %v3500_v61 }
 0xa55   : > { %5815 = vmatpush3.msk.msra.mxu1 %vm9063_vm9, %v3500_v61  ;;  %vm10264_vm9 = vmmov %vm10260_vm2 }
 0xa56   : > { %5817 = vmatmul.mubr.msk.f32.vlgmr.msra.gmra.mrb[10].mxu1 %vm10257_vm8, %v3507_v58  ;;  %6208 = vmatprep.subr.bf16.mxu1 %v6207_v25  ;;  %vm10265_vm8 = vmmov %vm10260_vm2 }
 0xa57   : > { %6210 = vmatpush1.bf16.msra.mxu1 %v6209_v2  ;;  %3691 = vmatprep.mubr.f32.mxu1 %v10194_v9 }
 0xa58   : > { %6212 = vmatprep.subr.bf16.mxu1 %v6211_v37 }
 0xa5b   : > { %6214 = vmatpush1.bf16.msra.mxu1 %v6213_v51 }
 0xa5c   : > { %6216 = vmatprep.subr.bf16.mxu1 %v6215_v52 }
 0xa5e   : > { %v3513_v18 = vpop.permute.xlu1 %3512  ;;  %v3518_v56 = vpop.permute.xlu0 %3517 }
 0xa5f   : > { %6218 = vmatpush1.bf16.msra.mxu1 %v6217_v44 }
 0xa60   : > { %6220 = vmatprep.subr.bf16.mxu1 %v6219_v60 }
 0xa63   : > { %6222 = vmatpush1.bf16.msra.mxu1 %v6221_v21  ;;  %v4035_v21 = vld [vmem:[#allocation7 + $0x68] sm:$0xff] }
 0xb29   : > { %v5818_v7 = vpop.f32.mrb[10].mxu1 }
 0xb2a   : > { %v3593_v61 = vpop.f32.mrb[11].mxu1  ;;  %v3599_v38 = vadd.f32 %v5818_v7, %v3518_v56  ;;  %v6403_v7 = vpack.c.bf16 %v4035_v21, %v4027_v3  ;;  %v4043_v56 = vld [vmem:[#allocation7 + $0xa8] sm:$0xff] }
 0xb2b   : > { %v3594_v45 = vadd.f32 %v3593_v61, %v3513_v18  ;;  %v4026_v18 = vld [vmem:[#allocation7 + $0x20] sm:$0xff] }
 0xb2c   : > { %v3603_v19 = vmax.f32 %v3599_v38, 0.0  ;;  %v4034_v61 = vld [vmem:[#allocation7 + $0x60] sm:$0xff]  ;;  %6404 = vmatprep.subr.bf16.mxu0 %v6403_v7  ;;  %v4051_v38 = vld [vmem:[#allocation7 + $0xe8] sm:$0xff] }
 0xb2d   : > { %v3602_v26 = vmax.f32 %v3594_v45, 0.0  ;;  %v6405_v45 = vpack.c.bf16 %v4034_v61, %v4026_v18  ;;  %v4106_v7 = vld [vmem:[#allocation7 + $0x2a0] sm:$0xff]  ;;  %v4123_v61 = vld [vmem:[#allocation7 + $0x328] sm:$0xff] }
 0xb2e   : > { %v4114_v18 = vld [vmem:[#allocation7 + $0x2e0] sm:$0xff] }
 0xb2f   : > { %5647 = vmatmul.mubr.msk.f32.vlgmr.msra.gmra.mrb[12].mxu1 %vm3620_vm1, %v3602_v26  ;;  %v4042_v26 = vld [vmem:[#allocation7 + $0xa0] sm:$0xff]  ;;  %6406 = vmatpush1.bf16.msra.mxu0 %v6405_v45  ;;  %v4131_v45 = vld [vmem:[#allocation7 + $0x368] sm:$0xff] }
 0xb30   : > { %3697 = vmatprep.mubr.f32.mxu1 %v10194_v9 }
 0xb33   : > { %5648 = vmatmul.mubr.msk.f32.gmra.mrb[14].mxu1 %vm3620_vm1, %v3603_v19  ;;  %vm10266_vm1 = vmmov %vm10261_vm14  ;;  %v6407_v19 = vpack.c.bf16 %v4051_v38, %v4043_v56  ;;  %v6425_v56 = vpack.c.bf16 %v4114_v18, %v4106_v7  ;;  %v6427_v38 = vpack.c.bf16 %v4131_v45, %v4123_v61  ;;  %v4194_v7 = vld [vmem:[#allocation7 + $0x560] sm:$0xff]  ;;  %v4203_v18 = vld [vmem:[#allocation7 + $0x5a8] sm:$0xff] }
 0xb34   : > { %v4211_v61 = vld [vmem:[#allocation7 + $0x5e8] sm:$0xff] }
 0xb35   : > { %6408 = vmatprep.subr.bf16.mxu0 %v6407_v19  ;;  %v4130_v19 = vld [vmem:[#allocation7 + $0x360] sm:$0xff] }
 0xc02   : > { %v3693_v46 = vpop.f32.mrb[12].mxu1 }
 0xc03   : > { %3710 = vrot.lane.b32.xlu1 %v3693_v46, %s10258_s30  ;;  %v3695_v48 = vpop.f32.mrb[13].mxu1  ;;  %v4050_v46 = vld [vmem:[#allocation7 + $0xe0] sm:$0xff] }
 0xc04   : > { %3712 = vrot.lane.b32.xlu0 %v3695_v48, %s10258_s30  ;;  %v6409_v48 = vpack.c.bf16 %v4050_v46, %v4042_v26  ;;  %v4122_v26 = vld [vmem:[#allocation7 + $0x320] sm:$0xff]  ;;  %v4139_v46 = vld [vmem:[#allocation7 + $0x3a8] sm:$0xff] }
 0xc06   : > { %v3699_v25 = vpop.f32.mrb[14].mxu1  ;;  %6410 = vmatpush1.bf16.msra.mxu0 %v6409_v48  ;;  %v4147_v48 = vld [vmem:[#allocation7 + $0x3e8] sm:$0xff] }
 0xc07   : > { %3714 = vrot.lane.b32.xlu1 %v3699_v25, %s10258_s30  ;;  %v3701_v58 = vpop.f32.mrb[15].mxu1  ;;  %v4059_v25 = vld [vmem:[#allocation7 + $0x128] sm:$0xff] }
 0xc08   : > { %3716 = vrot.lane.b32.xlu0 %v3701_v58, %s10258_s30  ;;  %v4067_v58 = vld [vmem:[#allocation7 + $0x168] sm:$0xff]  ;;  %s10329_s30 = smov 94  }
 0xc75   : > { %v3711_v2 = vpop.permute.xlu1 %3710 }
 0xc76   : > { %3726 = vst.msk [vmem:[#allocation2] sm:$0xff] %vm10259_vm5, %v3711_v2  ;;  %v3713_v37 = vpop.permute.xlu0 %3712  ;;  %vm10267_vm5 = vcmask 138240  }
 0xc77   : > { %3728 = vst.msk [vmem:[#allocation2 + $0x10] sm:$0xff] %vm10260_vm2, %v3713_v37  ;;  %v3718_v35 = vsel %vm10263_vm15, %v3711_v2, %v3713_v37  ;;  %v4058_v2 = vld [vmem:[#allocation7 + $0x120] sm:$0xff]  ;;  %vm10276_vm15 = vnez %v10193_v17 }
 0xc78   : > { %3732 = vst.msk [vmem:[#allocation2 + $0x10] sm:$0xff] %vm10261_vm14, %v10194_v9  ;;  %v4066_v37 = vld [vmem:[#allocation7 + $0x160] sm:$0xff] }
 0xc79   : > { %v3715_v15 = vpop.permute.xlu1 %3714 }
 0xc7a   : > { %3729 = vst.msk [vmem:[#allocation2 + $0x48] sm:$0xff] %vm10262_vm7, %v3715_v15  ;;  %v3717_v29 = vpop.permute.xlu0 %3716 }
 0xc7b   : > { %v3719_v43 = vsel %vm10264_vm9, %v3715_v15, %v3717_v29  ;;  %3731 = vst.msk [vmem:[#allocation2 + $0x58] sm:$0xff] %vm10265_vm8, %v3717_v29  ;;  %v6411_v15 = vpack.c.bf16 %v4067_v58, %v4059_v25  ;;  %v6413_v29 = vpack.c.bf16 %v4066_v37, %v4058_v2  ;;  %v6429_v25 = vpack.c.bf16 %v4130_v19, %v4122_v26  ;;  %v4138_v2 = vld [vmem:[#allocation7 + $0x3a0] sm:$0xff]  ;;  %v4219_v19 = vld [vmem:[#allocation7 + $0x628] sm:$0xff]  ;;  %vm10277_vm9 = vmpackc.low %vm10276_vm15, %vm10276_vm15 }
 0xc7c   : > { %3733 = vst.msk [vmem:[#allocation2 + $0x58] sm:$0xff] %vm10266_vm1, %v10194_v9  ;;  %v6223_v51 = vpack.c.bf16 %v3719_v43, %v3718_v35  ;;  %v6431_v58 = vpack.c.bf16 %v4147_v48, %v4139_v46  ;;  %v4146_v37 = vld [vmem:[#allocation7 + $0x3e0] sm:$0xff]  ;;  %v4227_v46 = vld [vmem:[#allocation7 + $0x668] sm:$0xff]  ;;  %vm10278_vm8 = vnez %v10201_v57 }
 0xc7d   : > { %v3734_v52 = vld [vmem:[#allocation2] sm:$0xff]  ;;  %6412 = vmatprep.subr.bf16.mxu0 %v6411_v15  ;;  %v4210_v26 = vld [vmem:[#allocation7 + $0x5e0] sm:$0xff]  ;;  %vm10279_vm1 = vmpackc.low %vm10278_vm8, %vm10278_vm8 }
 0xc7e   : > { %4562 = vst.msk [vmem:[#allocation2] sm:$0xff] %vm10267_vm5, %v10194_v9  ;;  %6225 = vmatprep.subr.msk.bf16.mxu1 %vm8632_vm10, %v6223_v51  ;;  %vm10270_vm10 = vcmask 130048   ;;  %6414 = vmatpush1.bf16.msra.mxu0 %v6413_v29  ;;  %v4155_v15 = vld [vmem:[#allocation7 + $0x428] sm:$0xff]  ;;  %vm10280_vm5 = vcmask 1031168  }
 0xc7f   : > { %v3742_v6 = vld [vmem:[#allocation2 + $0x10] sm:$0xff]  ;;  %5681 = vmatprep.mubr.msk.f32.mxu1 %vm10270_vm10, %v3939_v14  ;;  %v4107_v14 = vld [vmem:[#allocation7 + $0x2a8] sm:$0xff]  ;;  %vm10281_vm10 = vmmov %vm10280_vm5 }
 0xc80   : > { %v6907_v22 = vpack.i.bf16 %v3742_v6, %v3718_v35  ;;  %v4075_v35 = vld [vmem:[#allocation7 + $0x1a8] sm:$0xff]  ;;  %v4082_v6 = vld [vmem:[#allocation7 + $0x1e0] sm:$0xff] }
 0xc81   : > { %v3736_v44 = vld [vmem:[#allocation2 + $0x48] sm:$0xff]  ;;  %v4163_v29 = vld [vmem:[#allocation7 + $0x468] sm:$0xff] }
 0xc82   : > { %6908 = vrot.lane.b32.xlu1 %v6907_v22, %s7286_s20  ;;  %6913 = vrot.lane.b32.xlu0 %v6907_v22, %s7281_s16  ;;  %v6226_v4 = vpack.c.bf16 %v3736_v44, %v3734_v52  ;;  %v6932_v10 = vpack.i.bf16 %v3736_v44, %v3734_v52  ;;  %v4074_v52 = vld [vmem:[#allocation7 + $0x1a0] sm:$0xff]  ;;  %v4099_v44 = vld [vmem:[#allocation7 + $0x268] sm:$0xff] }
 0xc83   : > { %v3743_v60 = vld [vmem:[#allocation2 + $0x58] sm:$0xff] }
 0xc84   : > { %6228 = vmatpush1.bf16.msk.msra.mxu1 %vm8660_vm13, %v6226_v4  ;;  %v6942_v31 = vpack.i.bf16 %v3743_v60, %v3719_v43  ;;  %v4083_v43 = vld [vmem:[#allocation7 + $0x1e8] sm:$0xff]  ;;  %v6417_v4 = vpack.c.bf16 %v4082_v6, %v4074_v52  ;;  %v4090_v60 = vld [vmem:[#allocation7 + $0x220] sm:$0xff]  ;;  %vm10272_vm13 = vcmask 1039360  }
 0xc85   : > { %v6415_v51 = vpack.c.bf16 %v4083_v43, %v4075_v35  ;;  %v6433_v35 = vpack.c.bf16 %v4146_v37, %v4138_v2  ;;  %v6435_v43 = vpack.c.bf16 %v4163_v29, %v4155_v15  ;;  %v4162_v52 = vld [vmem:[#allocation7 + $0x460] sm:$0xff]  ;;  %v4171_v6 = vld [vmem:[#allocation7 + $0x4a8] sm:$0xff]  ;;  %vm10273_vm2 = vmmov %vm10272_vm13 }
 0xc86   : > { %6918 = vrot.lane.b32.xlu1 %v6907_v22, %s7291_s28  ;;  %6923 = vrot.lane.b32.xlu0 %v6907_v22, %s7292_s24  ;;  %v4226_v2 = vld [vmem:[#allocation7 + $0x660] sm:$0xff]  ;;  %v4235_v37 = vld [vmem:[#allocation7 + $0x6a8] sm:$0xff]  ;;  %vm10274_vm14 = vmmov %vm10273_vm2 }
 0xc87   : > { %6416 = vmatprep.subr.bf16.mxu0 %v6415_v51  ;;  %v4154_v51 = vld [vmem:[#allocation7 + $0x420] sm:$0xff]  ;;  %v4243_v15 = vld [vmem:[#allocation7 + $0x6e8] sm:$0xff]  ;;  %vm10275_vm7 = vmmov %vm10273_vm2 }
 0xc88   : > { %6418 = vmatpush1.bf16.msra.mxu0 %v6417_v4 }
 0xc8a   : > { %6933 = vrot.lane.b32.xlu0 %v6932_v10, %s7281_s16  ;;  %6928 = vrot.lane.b32.xlu1 %v6932_v10, %s7286_s20 }
 0xc8e   : > { %6943 = vrot.lane.b32.xlu0 %v6942_v31, %s7286_s20  ;;  %6938 = vrot.lane.b32.xlu1 %v6932_v10, %s7291_s28 }
 0xc92   : > { %6948 = vrot.lane.b32.xlu0 %v6932_v10, %s7292_s24  ;;  %6953 = vrot.lane.b32.xlu1 %v6907_v22, %s7293_s27 }
 0xc96   : > { %6968 = vrot.lane.b32.xlu0 %v6942_v31, %s7291_s28  ;;  %6958 = vrot.lane.b32.xlu1 %v6942_v31, %s7281_s16 }
 0xc9a   : > { %6973 = vrot.lane.b32.xlu0 %v6907_v22, %s10268_s26  ;;  %6963 = vrot.lane.b32.xlu1 %v6932_v10, %s7293_s27 }
 0xc9e   : > { %6983 = vrot.lane.b32.xlu0 %v6942_v31, %s7293_s27  ;;  %6978 = vrot.lane.b32.xlu1 %v6942_v31, %s7292_s24 }
 0xca2   : > { %6988 = vrot.lane.b32.xlu0 %v6932_v10, %s10268_s26  ;;  %6993 = vrot.lane.b32.xlu1 %v6907_v22, %s10269_s22 }
 0xca6   : > { %7008 = vrot.lane.b32.xlu0 %v6942_v31, %s10269_s22  ;;  %6998 = vrot.lane.b32.xlu1 %v6942_v31, %s10268_s26 }
 0xcaa   : > { %7013 = vrot.lane.b32.xlu0 %v6907_v22, %s10271_s29  ;;  %7003 = vrot.lane.b32.xlu1 %v6932_v10, %s10269_s22  ;;  %v4091_v22 = vld [vmem:[#allocation7 + $0x228] sm:$0xff] }
 0xcae   : > { %7023 = vrot.lane.b32.xlu0 %v6932_v10, %s10271_s29  ;;  %7018 = vrot.lane.b32.xlu1 %v6942_v31, %s10271_s29  ;;  %v6419_v10 = vpack.c.bf16 %v4099_v44, %v4091_v22  ;;  %v4098_v31 = vld [vmem:[#allocation7 + $0x260] sm:$0xff]  ;;  %v4179_v22 = vld [vmem:[#allocation7 + $0x4e8] sm:$0xff]  ;;  %v6437_v44 = vpack.c.bf16 %v4162_v52, %v4154_v51 }
 0xcaf   : > { %v6421_v3 = vpack.c.bf16 %v4098_v31, %v4090_v60  ;;  %v6439_v4 = vpack.c.bf16 %v4179_v22, %v4171_v6  ;;  %v4178_v60 = vld [vmem:[#allocation7 + $0x4e0] sm:$0xff]  ;;  %v4187_v31 = vld [vmem:[#allocation7 + $0x528] sm:$0xff] }
 0xcb0   : > { %6420 = vmatprep.subr.bf16.mxu0 %v6419_v10  ;;  %v4170_v10 = vld [vmem:[#allocation7 + $0x4a0] sm:$0xff]  ;;  %v4251_v52 = vld [vmem:[#allocation7 + $0x728] sm:$0xff] }
 0xcb1   : > { %6422 = vmatpush1.bf16.msra.mxu0 %v6421_v3  ;;  %v4242_v51 = vld [vmem:[#allocation7 + $0x6e0] sm:$0xff]  ;;  %v4259_v6 = vld [vmem:[#allocation7 + $0x768] sm:$0xff] }
 0xcb2   : > { %3943 = vperm.xlu1 %6696, %v3940_v13   ;;  %v4115_v13 = vld [vmem:[#allocation7 + $0x2e8] sm:$0xff] }
 0xcb3   : > { %v6423_v21 = vpack.c.bf16 %v4115_v13, %v4107_v14  ;;  %v4195_v14 = vld [vmem:[#allocation7 + $0x568] sm:$0xff]  ;;  %v6441_v13 = vpack.c.bf16 %v4178_v60, %v4170_v10 }
 0xcb4   : > { %v6443_v3 = vpack.c.bf16 %v4195_v14, %v4187_v31 }
 0xcb5   : > { %6424 = vmatprep.subr.bf16.mxu0 %v6423_v21  ;;  %v4186_v21 = vld [vmem:[#allocation7 + $0x520] sm:$0xff] }
 0xcb6   : > { %6426 = vmatpush1.bf16.msra.mxu0 %v6425_v56  ;;  %v6445_v45 = vpack.c.bf16 %v4194_v7, %v4186_v21  ;;  %v6447_v56 = vpack.c.bf16 %v4211_v61, %v4203_v18 }
 0xcb7   : > { %6428 = vmatprep.subr.bf16.mxu0 %v6427_v38  ;;  %v4202_v38 = vld [vmem:[#allocation7 + $0x5a0] sm:$0xff] }
 0xcb8   : > { %v6449_v48 = vpack.c.bf16 %v4210_v26, %v4202_v38 }
 0xcba   : > { %6430 = vmatpush1.bf16.msra.mxu0 %v6429_v25  ;;  %v6451_v25 = vpack.c.bf16 %v4227_v46, %v4219_v19 }
 0xcbb   : > { %6432 = vmatprep.subr.bf16.mxu0 %v6431_v58  ;;  %v4218_v58 = vld [vmem:[#allocation7 + $0x620] sm:$0xff] }
 0xcbc   : > { %v6453_v29 = vpack.c.bf16 %v4226_v2, %v4218_v58 }
 0xcbe   : > { %6434 = vmatpush1.bf16.msra.mxu0 %v6433_v35  ;;  %v6455_v35 = vpack.c.bf16 %v4243_v15, %v4235_v37 }
 0xcbf   : > { %6436 = vmatprep.subr.bf16.mxu0 %v6435_v43  ;;  %v4234_v43 = vld [vmem:[#allocation7 + $0x6a0] sm:$0xff] }
 0xcc0   : > { %v6457_v22 = vpack.c.bf16 %v4242_v51, %v4234_v43 }
 0xcc2   : > { %6438 = vmatpush1.bf16.msra.mxu0 %v6437_v44  ;;  %v6459_v44 = vpack.c.bf16 %v4259_v6, %v4251_v52 }
 0xcc3   : > { %6440 = vmatprep.subr.bf16.mxu0 %v6439_v4 }
 0xcc6   : > { %6442 = vmatpush1.bf16.msra.mxu0 %v6441_v13 }
 0xcc7   : > { %6444 = vmatprep.subr.bf16.mxu0 %v6443_v3 }
 0xcca   : > { %6446 = vmatpush1.bf16.msra.mxu0 %v6445_v45 }
 0xccb   : > { %6448 = vmatprep.subr.bf16.mxu0 %v6447_v56 }
 0xcce   : > { %6450 = vmatpush1.bf16.msra.mxu0 %v6449_v48 }
 0xccf   : > { %6452 = vmatprep.subr.bf16.mxu0 %v6451_v25 }
 0xcd2   : > { %6454 = vmatpush1.bf16.msra.mxu0 %v6453_v29 }
 0xcd3   : > { %6456 = vmatprep.subr.bf16.mxu0 %v6455_v35 }
 0xcd6   : > { %6458 = vmatpush1.bf16.msra.mxu0 %v6457_v22 }
 0xcd7   : > { %6460 = vmatprep.subr.bf16.mxu0 %v6459_v44 }
 0xcf4   : > { %v6909_v4 = vpop.permute.xlu1 %6908  ;;  %v6914_v10 = vpop.permute.xlu0 %6913 }
 0xcf5   : > { %v6911_v3 = vunpack.i.h.bf16 %v6909_v4  ;;  %v6910_v21 = vunpack.i.l.bf16 %v6909_v4  ;;  %v6916_v15 = vunpack.i.h.bf16 %v6914_v10  ;;  %v6915_v29 = vunpack.i.l.bf16 %v6914_v10 }
 0xcf7   : > { %v3763_v26 = vsel %vm10272_vm13, %v6910_v21, %v6911_v3  ;;  %v3787_v3 = vsel %vm10280_vm5, %v6915_v29, %v6916_v15  ;;  %vm10282_vm13 = vcmask 982016  }
 0xcf8   : > { %v6919_v60 = vpop.permute.xlu1 %6918  ;;  %v9176_v31 = vpop.permute.xlu0 %6923 }
 0xcf9   : > { %v6921_v43 = vunpack.i.h.bf16 %v6919_v60  ;;  %v6920_v51 = vunpack.i.l.bf16 %v6919_v60 }
 0xcfc   : > { %v6934_v14 = vpop.permute.xlu0 %6933  ;;  %v6929_v13 = vpop.permute.xlu1 %6928 }
 0xcfd   : > { %v6930_v7 = vunpack.i.l.bf16 %v6929_v13  ;;  %v6931_v45 = vunpack.i.h.bf16 %v6929_v13  ;;  %v6935_v35 = vunpack.i.l.bf16 %v6934_v14  ;;  %v6936_v52 = vunpack.i.h.bf16 %v6934_v14 }
 0xcff   : > { %v3762_v19 = vsel %vm10273_vm2, %v6930_v7, %v6910_v21  ;;  %v3786_v17 = vsel %vm10281_vm10, %v6935_v35, %v6915_v29  ;;  %vm10283_vm2 = vmmov %vm10280_vm5  ;;  %vm10290_vm5 = vnez %v10191_v62 }
 0xd00   : > { %v6944_v18 = vpop.permute.xlu0 %6943  ;;  %v6939_v61 = vpop.permute.xlu1 %6938  ;;  %vm10291_vm10 = vmpackc.low %vm10290_vm5, %vm10290_vm5 }
 0xd01   : > { %v6946_v56 = vunpack.i.h.bf16 %v6944_v18  ;;  %v6945_v38 = vunpack.i.l.bf16 %v6944_v18  ;;  %v6941_v21 = vunpack.i.h.bf16 %v6939_v61  ;;  %v6940_v7 = vunpack.i.l.bf16 %v6939_v61 }
 0xd03   : > { %v3764_v46 = vsel %vm10274_vm14, %v6931_v45, %v6945_v38  ;;  %v3765_v48 = vsel %vm10275_vm7, %v6945_v38, %v6946_v56  ;;  %vm10284_vm14 = vmmov %vm10283_vm2 }
 0xd04   : > { %v6229_v25 = vpack.c.bf16 %v3765_v48, %v3763_v26  ;;  %v6232_v58 = vpack.c.bf16 %v3764_v46, %v3762_v19  ;;  %v6949_v2 = vpop.permute.xlu0 %6948  ;;  %v9182_v37 = vpop.permute.xlu1 %6953  ;;  %vm10285_vm7 = vmmov %vm10282_vm13  ;;  %v6926_v46 = vunpack.i.h.bf16 %v9176_v31  ;;  %v6925_v48 = vunpack.i.l.bf16 %v9176_v31 }
 0xd05   : > { %v3811_v26 = vsel %vm10285_vm7, %v6920_v51, %v6921_v43  ;;  %vm10286_vm15 = vmmov %vm10285_vm7  ;;  %v6951_v15 = vunpack.i.h.bf16 %v6949_v2  ;;  %v6956_v29 = vunpack.i.h.bf16 %v9182_v37  ;;  %v6955_v35 = vunpack.i.l.bf16 %v9182_v37 }
 0xd06   : > { %6231 = vmatprep.subr.msk.bf16.mxu1 %vm10277_vm9, %v6229_v25  ;;  %v6950_v25 = vunpack.i.l.bf16 %v6949_v2  ;;  %vm10287_vm9 = vnez %v10218_v23  ;;  %vm10288_vm8 = vmmov %vm10285_vm7 }
 0xd07   : > { %6234 = vmatpush1.bf16.msk.msra.mxu1 %vm10279_vm1, %v6232_v58  ;;  %v3810_v58 = vsel %vm10288_vm8, %v6940_v7, %v6920_v51  ;;  %vm10289_vm1 = vnez %v10220_v11 }
 0xd08   : > { %v6969_v6 = vpop.permute.xlu0 %6968  ;;  %v6959_v22 = vpop.permute.xlu1 %6958 }
 0xd09   : > { %v6971_v44 = vunpack.i.h.bf16 %v6969_v6  ;;  %v6970_v4 = vunpack.i.l.bf16 %v6969_v6  ;;  %v6961_v10 = vunpack.i.h.bf16 %v6959_v22  ;;  %v6960_v13 = vunpack.i.l.bf16 %v6959_v22 }
 0xd0b   : > { %v3813_v18 = vsel %vm10282_vm13, %v6970_v4, %v6971_v44  ;;  %v3788_v57 = vsel %vm10283_vm2, %v6936_v52, %v6960_v13  ;;  %v3789_v45 = vsel %vm10284_vm14, %v6960_v13, %v6961_v10  ;;  %v3812_v19 = vsel %vm10286_vm15, %v6941_v21, %v6970_v4  ;;  %vm10296_vm15 = vmpackc.low %vm8638_vm11, %vm8638_vm11 }
 0xd0c   : > { %v6235_v60 = vpack.c.bf16 %v3789_v45, %v3787_v3  ;;  %v6238_v14 = vpack.c.bf16 %v3788_v57, %v3786_v17  ;;  %v6974_v56 = vpop.permute.xlu0 %6973  ;;  %v6964_v38 = vpop.permute.xlu1 %6963  ;;  %v6241_v61 = vpack.c.bf16 %v3813_v18, %v3811_v26  ;;  %v6244_v43 = vpack.c.bf16 %v3812_v19, %v3810_v58  ;;  %vm10301_vm11 = vmpackc.low %vm8717_vm12, %vm8717_vm12 }
 0xd0d   : > { %vm10292_vm13 = vcmask 973824   ;;  %v6966_v2 = vunpack.i.h.bf16 %v6964_v38  ;;  %v6965_v4 = vunpack.i.l.bf16 %v6964_v38  ;;  %vm10294_vm14 = vcmask 965632   ;;  %vm10307_vm12 = vmpackc.low %vm8728_vm3, %vm8728_vm3 }
 0xd0e   : > { %6237 = vmatprep.subr.msk.bf16.mxu1 %vm10287_vm9, %v6235_v60  ;;  %v3930_v11 = vsel %vm10292_vm13, %v6950_v25, %v6925_v48  ;;  %vm10293_vm2 = vmmov %vm10292_vm13  ;;  %v6976_v57 = vunpack.i.h.bf16 %v6974_v56  ;;  %v6975_v45 = vunpack.i.l.bf16 %v6974_v56  ;;  %vm10311_vm3 = vnez %v10234_v5 }
 0xd0f   : > { %6240 = vmatpush1.bf16.msk.msra.mxu1 %vm10289_vm1, %v6238_v14  ;;  %v3931_v44 = vsel %vm10293_vm2, %v6925_v48, %v6926_v46  ;;  %vm10295_vm7 = vmmov %vm10293_vm2 }
 0xd10   : > { %v6984_v52 = vpop.permute.xlu0 %6983  ;;  %v6979_v6 = vpop.permute.xlu1 %6978  ;;  %6243 = vmatprep.subr.msk.bf16.mxu1 %vm10291_vm10, %v6241_v61  ;;  %vm10297_vm9 = vmmov %vm10293_vm2  ;;  %vm10302_vm10 = vcmask 916480   ;;  %vm10304_vm2 = vcmask 908288  }
 0xd11   : > { %v6986_v23 = vunpack.i.h.bf16 %v6984_v52  ;;  %v6985_v31 = vunpack.i.l.bf16 %v6984_v52  ;;  %v6981_v51 = vunpack.i.h.bf16 %v6979_v6  ;;  %v6980_v22 = vunpack.i.l.bf16 %v6979_v6  ;;  %vm10298_vm8 = vmmov %vm10294_vm14 }
 0xd12   : > { %v3835_v7 = vsel %vm10298_vm8, %v6955_v35, %v6956_v29  ;;  %vm10299_vm1 = vmmov %vm10298_vm8  ;;  %v3859_v29 = vsel %vm10302_vm10, %v6975_v45, %v6976_v57  ;;  %v4031_v57 = vld [vmem:[#allocation7 + $0x48] sm:$0xff] }
 0xd13   : > { %v3837_v37 = vsel %vm10294_vm14, %v6985_v31, %v6986_v23  ;;  %v3932_v10 = vsel %vm10295_vm7, %v6951_v15, %v6980_v22  ;;  %6246 = vmatpush1.bf16.msk.msra.mxu1 %vm10296_vm15, %v6244_v43  ;;  %v3933_v62 = vsel %vm10297_vm9, %v6980_v22, %v6981_v51  ;;  %v3836_v18 = vsel %vm10299_vm1, %v6966_v2, %v6985_v31  ;;  %vm10300_vm5 = vmmov %vm10299_vm1 }
 0xd14   : > { %v6249_v13 = vpack.c.bf16 %v3932_v10, %v3930_v11  ;;  %v6989_v3 = vpop.permute.xlu0 %6988  ;;  %v6994_v17 = vpop.permute.xlu1 %6993  ;;  %v6247_v21 = vpack.c.bf16 %v3933_v62, %v3931_v44  ;;  %v6251_v60 = vpack.c.bf16 %v3837_v37, %v3835_v7  ;;  %v3834_v14 = vsel %vm10300_vm5, %v6965_v4, %v6955_v35  ;;  %vm10303_vm13 = vmmov %vm10302_vm10 }
 0xd15   : > { %v6990_v38 = vunpack.i.l.bf16 %v6989_v3  ;;  %v6254_v8 = vpack.c.bf16 %v3836_v18, %v3834_v14  ;;  %v6991_v26 = vunpack.i.h.bf16 %v6989_v3  ;;  %v6996_v19 = vunpack.i.h.bf16 %v6994_v17  ;;  %vm10305_vm14 = vmmov %vm10302_vm10  ;;  %v4023_v18 = vld [vmem:[#allocation7 + $0x8] sm:$0xff] }
 0xd16   : > { %6248 = vmatprep.subr.bf16.mxu1 %v6247_v21  ;;  %v6995_v46 = vunpack.i.l.bf16 %v6994_v17  ;;  %vm10306_vm7 = vmmov %vm10302_vm10  ;;  %vm10312_vm1 = vnez %v10222_v0 }
 0xd17   : > { %6250 = vmatpush1.bf16.msra.mxu1 %v6249_v13  ;;  %v3858_v35 = vsel %vm10303_vm13, %v6990_v38, %v6975_v45  ;;  %vm10308_vm15 = vmmov %vm10304_vm2 }
 0xd18   : > { %v7009_v48 = vpop.permute.xlu0 %7008  ;;  %v6999_v25 = vpop.permute.xlu1 %6998  ;;  %6253 = vmatprep.subr.msk.bf16.mxu1 %vm10301_vm11, %v6251_v60  ;;  %v3883_v22 = vsel %vm10308_vm15, %v6995_v46, %v6996_v19  ;;  %vm10309_vm9 = vmmov %vm10304_vm2  ;;  %v4030_v19 = vld [vmem:[#allocation7 + $0x40] sm:$0xff] }
 0xd19   : > { %v7011_v61 = vunpack.i.h.bf16 %v7009_v48  ;;  %v7010_v56 = vunpack.i.l.bf16 %v7009_v48  ;;  %v7001_v58 = vunpack.i.h.bf16 %v6999_v25  ;;  %v7000_v15 = vunpack.i.l.bf16 %v6999_v25  ;;  %vm10310_vm8 = vmmov %vm10304_vm2  ;;  %v4047_v48 = vld [vmem:[#allocation7 + $0xc8] sm:$0xff] }
 0xd1a   : > { %vm10313_vm5 = vmpackc.low %vm10312_vm1, %vm10312_vm1  ;;  %v3938_v25 = vld [vmem:[%s9877_s7] sm:$0xff]  ;;  %vm4613_vm1 = vcmask 277640  }
 0xd1b   : > { %v3885_v43 = vsel %vm10304_vm2, %v7010_v56, %v7011_v61  ;;  %v3860_v52 = vsel %vm10305_vm14, %v6991_v26, %v7000_v15  ;;  %v3861_v6 = vsel %vm10306_vm7, %v7000_v15, %v7001_v58  ;;  %6256 = vmatpush1.bf16.msk.msra.mxu1 %vm10307_vm12, %v6254_v8  ;;  %vm10318_vm2 = vmpackc.low %vm8811_vm6, %vm8811_vm6  ;;  %v6275_v8 = vpack.c.bf16 %v4031_v57, %v4023_v18  ;;  %v4022_v26 = vld [vmem:[#allocation7] sm:$0xff]  ;;  %v4055_v15 = vld [vmem:[#allocation7 + $0x108] sm:$0xff] }
 0xd1c   : > { %v6257_v28 = vpack.c.bf16 %v3861_v6, %v3859_v29  ;;  %v6260_v23 = vpack.c.bf16 %v3860_v52, %v3858_v35  ;;  %v7014_v31 = vpop.permute.xlu0 %7013  ;;  %v7004_v51 = vpop.permute.xlu1 %7003  ;;  %v6263_v44 = vpack.c.bf16 %v3885_v43, %v3883_v22  ;;  %vm10319_vm14 = vnez %v10242_v30  ;;  %v4046_v58 = vld [vmem:[#allocation7 + $0xc0] sm:$0xff]  ;;  %v4063_v29 = vld [vmem:[#allocation7 + $0x148] sm:$0xff] }
 0xd1d   : > { %v7006_v11 = vunpack.i.h.bf16 %v7004_v51  ;;  %v7005_v2 = vunpack.i.l.bf16 %v7004_v51  ;;  %v7016_v4 = vunpack.i.h.bf16 %v7014_v31  ;;  %v7015_v37 = vunpack.i.l.bf16 %v7014_v31  ;;  %v4054_v43 = vld [vmem:[#allocation7 + $0x100] sm:$0xff]  ;;  %v4079_v6 = vld [vmem:[#allocation7 + $0x1c8] sm:$0xff] }
 0xd1e   : > { %6259 = vmatprep.subr.msk.bf16.mxu1 %vm8842_vm4, %v6257_v28  ;;  %vm10314_vm4 = vcmask 900096   ;;  %vm10320_vm7 = vnez %v10244_v34  ;;  %v6277_v27 = vpack.c.bf16 %v4030_v19, %v4022_v26  ;;  %v6283_v30 = vpack.c.bf16 %v4063_v29, %v4055_v15  ;;  %v4062_v52 = vld [vmem:[#allocation7 + $0x140] sm:$0xff]  ;;  %v4071_v34 = vld [vmem:[#allocation7 + $0x188] sm:$0xff] }
 0xd1f   : > { %v3884_v10 = vsel %vm10309_vm9, %v7006_v11, %v7010_v56  ;;  %v3882_v59 = vsel %vm10310_vm8, %v7005_v2, %v6995_v46  ;;  %6262 = vmatpush1.bf16.msk.msra.mxu1 %vm10311_vm3, %v6260_v23  ;;  %v3907_v45 = vsel %vm10314_vm4, %v7015_v37, %v7016_v4  ;;  %vm10315_vm11 = vmmov %vm10314_vm4  ;;  %v4039_v46 = vld [vmem:[#allocation7 + $0x88] sm:$0xff]  ;;  %v4038_v56 = vld [vmem:[#allocation7 + $0x80] sm:$0xff]  ;;  %v6285_v28 = vpack.c.bf16 %v4062_v52, %v4054_v43 }
 0xd20   : > { %v6266_v62 = vpack.c.bf16 %v3884_v10, %v3882_v59  ;;  %v7024_v13 = vpop.permute.xlu0 %7023  ;;  %v7019_v3 = vpop.permute.xlu1 %7018  ;;  %6265 = vmatprep.subr.msk.bf16.mxu1 %vm10313_vm5, %v6263_v44  ;;  %vm10316_vm10 = vmmov %vm10314_vm4  ;;  %v6279_v61 = vpack.c.bf16 %v4047_v48, %v4039_v46  ;;  %v6281_v35 = vpack.c.bf16 %v4046_v58, %v4038_v56  ;;  %v6287_v23 = vpack.c.bf16 %v4079_v6, %v4071_v34  ;;  %v4070_v31 = vld [vmem:[#allocation7 + $0x180] sm:$0xff]  ;;  %v4087_v22 = vld [vmem:[#allocation7 + $0x208] sm:$0xff] }
 0xd21   : > { %v7026_v1 = vunpack.i.h.bf16 %v7024_v13  ;;  %v7025_v17 = vunpack.i.l.bf16 %v7024_v13  ;;  %v7021_v21 = vunpack.i.h.bf16 %v7019_v3  ;;  %v7020_v7 = vunpack.i.l.bf16 %v7019_v3  ;;  %vm10317_vm13 = vmmov %vm10314_vm4  ;;  %v4078_v51 = vld [vmem:[#allocation7 + $0x1c0] sm:$0xff]  ;;  %v4095_v11 = vld [vmem:[#allocation7 + $0x248] sm:$0xff] }
 0xd22   : > { %v6289_v2 = vpack.c.bf16 %v4078_v51, %v4070_v31  ;;  %v6291_v44 = vpack.c.bf16 %v4095_v11, %v4087_v22  ;;  %v4086_v4 = vld [vmem:[#allocation7 + $0x200] sm:$0xff]  ;;  %v4103_v10 = vld [vmem:[#allocation7 + $0x288] sm:$0xff]  ;;  %vm4603_vm6 = vcmask 1047688   ;;  %vm10322_vm12 = vcmask 138240  }
 0xd23   : > { %v3906_v5 = vsel %vm10315_vm11, %v7025_v17, %v7015_v37  ;;  %v3908_v60 = vsel %vm10316_vm10, %v7026_v1, %v7020_v7  ;;  %v3909_v14 = vsel %vm10317_vm13, %v7020_v7, %v7021_v21  ;;  %6268 = vmatpush1.bf16.msk.msra.mxu1 %vm10318_vm2, %v6266_v62  ;;  %v4094_v37 = vld [vmem:[#allocation7 + $0x240] sm:$0xff]  ;;  %v4111_v59 = vld [vmem:[#allocation7 + $0x2c8] sm:$0xff]  ;;  %vm10323_vm15 = vmmov %vm10322_vm12  ;;  %vm10333_vm10 = vcmask 1039360  }
 0xd24   : > { %v6269_v0 = vpack.c.bf16 %v3909_v14, %v3907_v45  ;;  %v6272_v38 = vpack.c.bf16 %v3908_v60, %v3906_v5  ;;  %v6293_v62 = vpack.c.bf16 %v4094_v37, %v4086_v4  ;;  %v6295_v13 = vpack.c.bf16 %v4111_v59, %v4103_v10  ;;  %v4102_v3 = vld [vmem:[#allocation7 + $0x280] sm:$0xff]  ;;  %v4119_v17 = vld [vmem:[#allocation7 + $0x308] sm:$0xff]  ;;  %vm10324_vm9 = vmmov %vm10322_vm12 }
 0xd25   : > { %v4110_v1 = vld [vmem:[#allocation7 + $0x2c0] sm:$0xff]  ;;  %v4127_v21 = vld [vmem:[#allocation7 + $0x348] sm:$0xff]  ;;  %vm10325_vm8 = vmmov %vm10324_vm9  ;;  %vm10335_vm2 = vnez %v10075_v53 }
 0xd26   : > { %6271 = vmatprep.subr.msk.bf16.mxu1 %vm10319_vm14, %v6269_v0  ;;  %v6297_v7 = vpack.c.bf16 %v4110_v1, %v4102_v3  ;;  %v6299_v18 = vpack.c.bf16 %v4127_v21, %v4119_v17  ;;  %v4118_v57 = vld [vmem:[#allocation7 + $0x300] sm:$0xff]  ;;  %v4135_v5 = vld [vmem:[#allocation7 + $0x388] sm:$0xff]  ;;  %vm10326_vm3 = vmmov %vm10325_vm8 }
 0xd27   : > { %6274 = vmatpush1.bf16.msk.msra.mxu1 %vm10320_vm7, %v6272_v38  ;;  %v4126_v45 = vld [vmem:[#allocation7 + $0x340] sm:$0xff]  ;;  %v4143_v60 = vld [vmem:[#allocation7 + $0x3c8] sm:$0xff]  ;;  %vm10330_vm5 = vmmov %vm10326_vm3  ;;  %vm10336_vm7 = vnez %v10070_v50 }
 0xd28   : > { %6276 = vmatprep.subr.bf16.mxu1 %v6275_v8  ;;  %v6301_v14 = vpack.c.bf16 %v4126_v45, %v4118_v57  ;;  %v6303_v0 = vpack.c.bf16 %v4143_v60, %v4135_v5  ;;  %v4134_v38 = vld [vmem:[#allocation7 + $0x380] sm:$0xff]  ;;  %v4151_v26 = vld [vmem:[#allocation7 + $0x408] sm:$0xff]  ;;  %vm10331_vm4 = vmmov %vm10326_vm3 }
 0xd29   : > { %v4142_v8 = vld [vmem:[#allocation7 + $0x3c0] sm:$0xff]  ;;  %v4159_v19 = vld [vmem:[#allocation7 + $0x448] sm:$0xff]  ;;  %vm10332_vm11 = vmmov %vm10326_vm3 }
 0xd2a   : > { %4014 = vmatmul.mubr.f32.vlgmr.msra.gmra.mrb[16].mxu1 %v3938_v25  ;;  %v6305_v46 = vpack.c.bf16 %v4142_v8, %v4134_v38  ;;  %v6307_v48 = vpack.c.bf16 %v4159_v19, %v4151_v26  ;;  %v4150_v25 = vld [vmem:[#allocation7 + $0x400] sm:$0xff]  ;;  %v4175_v56 = vld [vmem:[#allocation7 + $0x4c8] sm:$0xff]  ;;  %vm10334_vm13 = vmmov %vm10333_vm10 }
 0xd2b   : > { %6278 = vmatpush1.bf16.msra.mxu1 %v6277_v27  ;;  %v4158_v27 = vld [vmem:[#allocation7 + $0x440] sm:$0xff]  ;;  %v4191_v43 = vld [vmem:[#allocation7 + $0x548] sm:$0xff]  ;;  %vm6532_vm14 = vmpackc.low %vm10254_vm0, %vm10335_vm2 }
 0xd2c   : > { %6280 = vmatprep.subr.bf16.mxu1 %v6279_v61  ;;  %v4167_v61 = vld [vmem:[#allocation7 + $0x488] sm:$0xff]  ;;  %v6309_v58 = vpack.c.bf16 %v4158_v27, %v4150_v25  ;;  %v4166_v29 = vld [vmem:[#allocation7 + $0x480] sm:$0xff] }
 0xd2d   : > { %v6311_v15 = vpack.c.bf16 %v4175_v56, %v4167_v61  ;;  %v4182_v6 = vld [vmem:[#allocation7 + $0x500] sm:$0xff]  ;;  %v4207_v31 = vld [vmem:[#allocation7 + $0x5c8] sm:$0xff] }
 0xd2e   : > { %v4198_v11 = vld [vmem:[#allocation7 + $0x580] sm:$0xff]  ;;  %v4223_v4 = vld [vmem:[#allocation7 + $0x648] sm:$0xff] }
 0xd2f   : > { %6282 = vmatpush1.bf16.msra.mxu1 %v6281_v35  ;;  %v4174_v35 = vld [vmem:[#allocation7 + $0x4c0] sm:$0xff]  ;;  %v4239_v3 = vld [vmem:[#allocation7 + $0x6c8] sm:$0xff] }
 0xd30   : > { %6284 = vmatprep.subr.bf16.mxu1 %v6283_v30  ;;  %v4183_v30 = vld [vmem:[#allocation7 + $0x508] sm:$0xff]  ;;  %v6313_v52 = vpack.c.bf16 %v4174_v35, %v4166_v29  ;;  %v4214_v59 = vld [vmem:[#allocation7 + $0x600] sm:$0xff] }
 0xd31   : > { %v6315_v34 = vpack.c.bf16 %v4191_v43, %v4183_v30  ;;  %v4230_v21 = vld [vmem:[#allocation7 + $0x680] sm:$0xff]  ;;  %v4255_v57 = vld [vmem:[#allocation7 + $0x748] sm:$0xff]  ;;  %v4025_v43 = vld [vmem:[#allocation7 + $0x18] sm:$0xff] }
 0xd32   : > { %v4246_v60 = vld [vmem:[#allocation7 + $0x700] sm:$0xff]  ;;  %v4263_v19 = vld [vmem:[#allocation7 + $0x788] sm:$0xff] }
 0xd33   : > { %6286 = vmatpush1.bf16.msra.mxu1 %v6285_v28  ;;  %v4190_v28 = vld [vmem:[#allocation7 + $0x540] sm:$0xff]  ;;  %v4267_v61 = vld [vmem:[#allocation7 + $0x7a8] sm:$0xff] }
 0xd34   : > { %6288 = vmatprep.subr.bf16.mxu1 %v6287_v23  ;;  %v4199_v23 = vld [vmem:[#allocation7 + $0x588] sm:$0xff]  ;;  %v6317_v51 = vpack.c.bf16 %v4190_v28, %v4182_v6  ;;  %v4250_v38 = vld [vmem:[#allocation7 + $0x720] sm:$0xff]  ;;  %v3944_v6 = vpop.permute.xlu1 %3943 }
 0xd35   : > { %v6319_v22 = vpack.c.bf16 %v4207_v31, %v4199_v23  ;;  %v4258_v8 = vld [vmem:[#allocation7 + $0x760] sm:$0xff] }
 0xd36   : > { %v6461_v26 = vpack.c.bf16 %v4258_v8, %v4250_v38  ;;  %v4262_v25 = vld [vmem:[#allocation7 + $0x780] sm:$0xff]  ;;  %v4089_v38 = vld [vmem:[#allocation7 + $0x218] sm:$0xff] }
 0xd37   : > { %6290 = vmatpush1.bf16.msra.mxu1 %v6289_v2  ;;  %v4206_v2 = vld [vmem:[#allocation7 + $0x5c0] sm:$0xff]  ;;  %v4097_v8 = vld [vmem:[#allocation7 + $0x258] sm:$0xff] }
 0xd38   : > { %6292 = vmatprep.subr.bf16.mxu1 %v6291_v44  ;;  %v4215_v44 = vld [vmem:[#allocation7 + $0x608] sm:$0xff]  ;;  %v6321_v37 = vpack.c.bf16 %v4206_v2, %v4198_v11  ;;  %6462 = vmatpush1.bf16.msra.mxu0 %v6461_v26  ;;  %v4270_v27 = vld [vmem:[#allocation7 + $0x7c0] sm:$0xff]  ;;  %v4041_v2 = vld [vmem:[#allocation7 + $0x98] sm:$0xff] }
 0xd39   : > { %v6323_v10 = vpack.c.bf16 %v4223_v4, %v4215_v44  ;;  %v6337_v56 = vpack.c.bf16 %v4270_v27, %v4262_v25  ;;  %v4274_v29 = vld [vmem:[#allocation7 + $0x7e0] sm:$0xff]  ;;  %v4049_v44 = vld [vmem:[#allocation7 + $0xd8] sm:$0xff] }
 0xd3a   : > { %v4105_v25 = vld [vmem:[#allocation7 + $0x298] sm:$0xff] }
 0xd3b   : > { %6294 = vmatpush1.bf16.msra.mxu1 %v6293_v62  ;;  %v4222_v62 = vld [vmem:[#allocation7 + $0x640] sm:$0xff]  ;;  %v4113_v27 = vld [vmem:[#allocation7 + $0x2d8] sm:$0xff] }
 0xd3c   : > { %6296 = vmatprep.subr.bf16.mxu1 %v6295_v13  ;;  %v4231_v13 = vld [vmem:[#allocation7 + $0x688] sm:$0xff]  ;;  %v6325_v1 = vpack.c.bf16 %v4222_v62, %v4214_v59  ;;  %v6343_v59 = vpack.c.bf16 %v4049_v44, %v4041_v2  ;;  %v4040_v62 = vld [vmem:[#allocation7 + $0x90] sm:$0xff]  ;;  %v4161_v2 = vld [vmem:[#allocation7 + $0x458] sm:$0xff] }
 0xd3d   : > { %v6327_v17 = vpack.c.bf16 %v4239_v3, %v4231_v13  ;;  %v4048_v13 = vld [vmem:[#allocation7 + $0xd0] sm:$0xff]  ;;  %v4057_v3 = vld [vmem:[#allocation7 + $0x118] sm:$0xff] }
 0xd3f   : > { %6298 = vmatpush1.bf16.msra.mxu1 %v6297_v7  ;;  %v4238_v7 = vld [vmem:[#allocation7 + $0x6c0] sm:$0xff] }
 0xd40   : > { %6300 = vmatprep.subr.bf16.mxu1 %v6299_v18  ;;  %v4247_v18 = vld [vmem:[#allocation7 + $0x708] sm:$0xff]  ;;  %v6329_v45 = vpack.c.bf16 %v4238_v7, %v4230_v21  ;;  %v4056_v7 = vld [vmem:[#allocation7 + $0x110] sm:$0xff] }
 0xd41   : > { %v6331_v5 = vpack.c.bf16 %v4255_v57, %v4247_v18  ;;  %v4064_v18 = vld [vmem:[#allocation7 + $0x150] sm:$0xff]  ;;  %v4073_v57 = vld [vmem:[#allocation7 + $0x198] sm:$0xff] }
 0xd43   : > { %6302 = vmatpush1.bf16.msra.mxu1 %v6301_v14  ;;  %v4254_v14 = vld [vmem:[#allocation7 + $0x740] sm:$0xff] }
 0xd44   : > { %6304 = vmatprep.subr.bf16.mxu1 %v6303_v0  ;;  %v6333_v0 = vpack.c.bf16 %v4254_v14, %v4246_v60  ;;  %v4072_v14 = vld [vmem:[#allocation7 + $0x190] sm:$0xff] }
 0xd47   : > { %6306 = vmatpush1.bf16.msra.mxu1 %v6305_v46  ;;  %v4271_v46 = vld [vmem:[#allocation7 + $0x7c8] sm:$0xff] }
 0xd48   : > { %6308 = vmatprep.subr.bf16.mxu1 %v6307_v48  ;;  %v6335_v48 = vpack.c.bf16 %v4271_v46, %v4263_v19  ;;  %v6355_v19 = vpack.c.bf16 %v4097_v8, %v4089_v38  ;;  %v4088_v46 = vld [vmem:[#allocation7 + $0x210] sm:$0xff]  ;;  %v4209_v38 = vld [vmem:[#allocation7 + $0x5d8] sm:$0xff] }
 0xd4b   : > { %6310 = vmatpush1.bf16.msra.mxu1 %v6309_v58  ;;  %v4275_v58 = vld [vmem:[#allocation7 + $0x7e8] sm:$0xff] }
 0xd4c   : > { %6312 = vmatprep.subr.bf16.mxu1 %v6311_v15  ;;  %v4266_v15 = vld [vmem:[#allocation7 + $0x7a0] sm:$0xff]  ;;  %v6463_v35 = vpack.c.bf16 %v4275_v58, %v4267_v61  ;;  %v4104_v58 = vld [vmem:[#allocation7 + $0x290] sm:$0xff] }
 0xd4d   : > { %v6465_v30 = vpack.c.bf16 %v4274_v29, %v4266_v15  ;;  %v4112_v15 = vld [vmem:[#allocation7 + $0x2d0] sm:$0xff]  ;;  %v4121_v29 = vld [vmem:[#allocation7 + $0x318] sm:$0xff] }
 0xd4e   : > { %6464 = vmatprep.subr.bf16.mxu0 %v6463_v35  ;;  %v4129_v35 = vld [vmem:[#allocation7 + $0x358] sm:$0xff] }
 0xd4f   : > { %6314 = vmatpush1.bf16.msra.mxu1 %v6313_v52  ;;  %v4033_v52 = vld [vmem:[#allocation7 + $0x58] sm:$0xff]  ;;  %6466 = vmatpush1.bf16.msra.mxu0 %v6465_v30  ;;  %v6361_v30 = vpack.c.bf16 %v4112_v15, %v4104_v58  ;;  %v4224_v58 = vld [vmem:[#allocation7 + $0x650] sm:$0xff] }
 0xd50   : > { %6316 = vmatprep.subr.bf16.mxu1 %v6315_v34  ;;  %v6339_v34 = vpack.c.bf16 %v4033_v52, %v4025_v43  ;;  %v6363_v43 = vpack.c.bf16 %v4129_v35, %v4121_v29  ;;  %v4120_v52 = vld [vmem:[#allocation7 + $0x310] sm:$0xff]  ;;  %v4233_v15 = vld [vmem:[#allocation7 + $0x698] sm:$0xff] }
 0xd51   : > { %v4241_v29 = vld [vmem:[#allocation7 + $0x6d8] sm:$0xff] }
 0xd53   : > { %6318 = vmatpush1.bf16.msra.mxu1 %v6317_v51  ;;  %v4024_v51 = vld [vmem:[#allocation7 + $0x10] sm:$0xff] }
 0xd54   : > { %6320 = vmatprep.subr.bf16.mxu1 %v6319_v22  ;;  %v4032_v22 = vld [vmem:[#allocation7 + $0x50] sm:$0xff] }
 0xd57   : > { %6322 = vmatpush1.bf16.msra.mxu1 %v6321_v37  ;;  %v6341_v37 = vpack.c.bf16 %v4032_v22, %v4024_v51  ;;  %v4136_v51 = vld [vmem:[#allocation7 + $0x390] sm:$0xff] }
 0xd58   : > { %6324 = vmatprep.subr.bf16.mxu1 %v6323_v10  ;;  %v4144_v22 = vld [vmem:[#allocation7 + $0x3d0] sm:$0xff] }
 0xd59   : > { %v6369_v44 = vpack.c.bf16 %v4144_v22, %v4136_v51  ;;  %v4256_v51 = vld [vmem:[#allocation7 + $0x750] sm:$0xff]  ;;  %v4265_v22 = vld [vmem:[#allocation7 + $0x798] sm:$0xff] }
 0xd5b   : > { %6326 = vmatpush1.bf16.msra.mxu1 %v6325_v1  ;;  %v4065_v1 = vld [vmem:[#allocation7 + $0x158] sm:$0xff] }
 0xd5c   : > { %6328 = vmatprep.subr.bf16.mxu1 %v6327_v17  ;;  %v6345_v17 = vpack.c.bf16 %v4048_v13, %v4040_v62  ;;  %v6347_v21 = vpack.c.bf16 %v4065_v1, %v4057_v3  ;;  %v4160_v62 = vld [vmem:[#allocation7 + $0x450] sm:$0xff]  ;;  %v4169_v13 = vld [vmem:[#allocation7 + $0x498] sm:$0xff] }
 0xd5d   : > { %v4177_v3 = vld [vmem:[#allocation7 + $0x4d8] sm:$0xff] }
 0xd5f   : > { %6330 = vmatpush1.bf16.msra.mxu1 %v6329_v45  ;;  %v4081_v45 = vld [vmem:[#allocation7 + $0x1d8] sm:$0xff] }
 0xd60   : > { %6332 = vmatprep.subr.bf16.mxu1 %v6331_v5  ;;  %v6349_v5 = vpack.c.bf16 %v4064_v18, %v4056_v7  ;;  %v6351_v60 = vpack.c.bf16 %v4081_v45, %v4073_v57  ;;  %v4176_v7 = vld [vmem:[#allocation7 + $0x4d0] sm:$0xff]  ;;  %v4185_v18 = vld [vmem:[#allocation7 + $0x518] sm:$0xff] }
 0xd61   : > { %v4193_v57 = vld [vmem:[#allocation7 + $0x558] sm:$0xff] }
 0xd63   : > { %6334 = vmatpush1.bf16.msra.mxu1 %v6333_v0  ;;  %v4080_v0 = vld [vmem:[#allocation7 + $0x1d0] sm:$0xff] }
 0xd64   : > { %6336 = vmatprep.subr.bf16.mxu1 %v6335_v48  ;;  %v6353_v26 = vpack.c.bf16 %v4080_v0, %v4072_v14  ;;  %v4096_v48 = vld [vmem:[#allocation7 + $0x250] sm:$0xff]  ;;  %v4201_v0 = vld [vmem:[#allocation7 + $0x598] sm:$0xff] }
 0xd65   : > { %v6357_v61 = vpack.c.bf16 %v4096_v48, %v4088_v46  ;;  %v4192_v14 = vld [vmem:[#allocation7 + $0x550] sm:$0xff]  ;;  %v4217_v48 = vld [vmem:[#allocation7 + $0x618] sm:$0xff] }
 0xd66   : > { %v4208_v46 = vld [vmem:[#allocation7 + $0x5d0] sm:$0xff] }
 0xd67   : > { %6338 = vmatpush1.bf16.msra.mxu1 %v6337_v56  ;;  %v6359_v56 = vpack.c.bf16 %v4113_v27, %v4105_v25  ;;  %v4225_v25 = vld [vmem:[#allocation7 + $0x658] sm:$0xff] }
 0xd68   : > { %6340 = vmatprep.subr.bf16.mxu1 %v6339_v34  ;;  %v4128_v34 = vld [vmem:[#allocation7 + $0x350] sm:$0xff] }
 0xdfd   : > { %v4015_v28 = vpop.f32.mrb[16].mxu1 }
 0xdfe   : > { %v4016_v23 = vadd.f32 %v4015_v28, %v3944_v6  ;;  %v4017_v31 = vpop.f32.mrb[17].mxu1  ;;  %v4145_v28 = vld [vmem:[#allocation7 + $0x3d8] sm:$0xff] }
 0xdff   : > { %v4018_v11 = vadd.f32 %v4017_v31, %v3944_v6  ;;  %v4137_v6 = vld [vmem:[#allocation7 + $0x398] sm:$0xff] }
 0xe00   : > { %v9273_v10 = vmax.f32 %v4016_v23, 0.0  ;;  %v6365_v23 = vpack.c.bf16 %v4128_v34, %v4120_v52  ;;  %v6367_v31 = vpack.c.bf16 %v4145_v28, %v4137_v6  ;;  %v4240_v52 = vld [vmem:[#allocation7 + $0x6d0] sm:$0xff]  ;;  %v4249_v34 = vld [vmem:[#allocation7 + $0x718] sm:$0xff] }
 0xe01   : > { %v9271_v4 = vmax.f32 %v4018_v11, 0.0  ;;  %v4153_v11 = vld [vmem:[#allocation7 + $0x418] sm:$0xff] }
 0xe02   : > { %v4257_v6 = vld [vmem:[#allocation7 + $0x758] sm:$0xff] }
 0xe03   : > { %4342 = vmatprep.mubr.f32.mxu1 %v9271_v4  ;;  %4484 = vmatprep.mubr.f32.mxu0 %v9271_v4 }
 0xe04   : > { %4343 = vmatmul.mubr.f32.vlgmr.msra.gmra.mrb[18].mxu1 %v9273_v10  ;;  %4485 = vmatmul.mubr.f32.vlgmr.msra.gmra.mrb[14].mxu0 %v9273_v10 }
 0xe05   : > { %6342 = vmatpush1.bf16.msra.mxu1 %v6341_v37  ;;  %4413 = vmatprep.mubr.f32.mxu1 %v9271_v4  ;;  %v6371_v37 = vpack.c.bf16 %v4161_v2, %v4153_v11  ;;  %v4273_v11 = vld [vmem:[#allocation7 + $0x7d8] sm:$0xff] }
 0xe06   : > { %6344 = vmatprep.subr.bf16.mxu1 %v6343_v59  ;;  %5175 = vmatprep.mubr.f32.mxu0 %v10194_v9  ;;  %v4152_v59 = vld [vmem:[#allocation7 + $0x410] sm:$0xff] }
 0xe07   : > { %v6373_v1 = vpack.c.bf16 %v4160_v62, %v4152_v59  ;;  %v4272_v59 = vld [vmem:[#allocation7 + $0x7d0] sm:$0xff]  ;;  %v4029_v62 = vld [vmem:[#allocation7 + $0x38] sm:$0xff] }
 0xe09   : > { %6346 = vmatpush1.bf16.msra.mxu1 %v6345_v17  ;;  %v6375_v17 = vpack.c.bf16 %v4177_v3, %v4169_v13  ;;  %v4037_v13 = vld [vmem:[#allocation7 + $0x78] sm:$0xff] }
 0xe0a   : > { %6348 = vmatprep.subr.bf16.mxu1 %v6347_v21  ;;  %v4168_v21 = vld [vmem:[#allocation7 + $0x490] sm:$0xff] }
 0xe0b   : > { %v6377_v45 = vpack.c.bf16 %v4176_v7, %v4168_v21  ;;  %v4036_v21 = vld [vmem:[#allocation7 + $0x70] sm:$0xff]  ;;  %v4045_v7 = vld [vmem:[#allocation7 + $0xb8] sm:$0xff] }
 0xe0d   : > { %6350 = vmatpush1.bf16.msra.mxu1 %v6349_v5  ;;  %v6379_v5 = vpack.c.bf16 %v4193_v57, %v4185_v18  ;;  %v4053_v18 = vld [vmem:[#allocation7 + $0xf8] sm:$0xff] }
 0xe0e   : > { %6352 = vmatprep.subr.bf16.mxu1 %v6351_v60  ;;  %v4184_v60 = vld [vmem:[#allocation7 + $0x510] sm:$0xff] }
 0xe0f   : > { %v6381_v8 = vpack.c.bf16 %v4192_v14, %v4184_v60  ;;  %v4052_v60 = vld [vmem:[#allocation7 + $0xf0] sm:$0xff]  ;;  %v4061_v14 = vld [vmem:[#allocation7 + $0x138] sm:$0xff] }
 0xe11   : > { %6354 = vmatpush1.bf16.msra.mxu1 %v6353_v26  ;;  %v6383_v26 = vpack.c.bf16 %v4209_v38, %v4201_v0  ;;  %v4069_v0 = vld [vmem:[#allocation7 + $0x178] sm:$0xff] }
 0xe12   : > { %6356 = vmatprep.subr.bf16.mxu1 %v6355_v19  ;;  %v4200_v19 = vld [vmem:[#allocation7 + $0x590] sm:$0xff] }
 0xe13   : > { %v6385_v27 = vpack.c.bf16 %v4208_v46, %v4200_v19  ;;  %v4068_v19 = vld [vmem:[#allocation7 + $0x170] sm:$0xff]  ;;  %v4077_v46 = vld [vmem:[#allocation7 + $0x1b8] sm:$0xff] }
 0xe15   : > { %6358 = vmatpush1.bf16.msra.mxu1 %v6357_v61  ;;  %v6387_v61 = vpack.c.bf16 %v4225_v25, %v4217_v48  ;;  %v4085_v48 = vld [vmem:[#allocation7 + $0x1f8] sm:$0xff] }
 0xe16   : > { %6360 = vmatprep.subr.bf16.mxu1 %v6359_v56  ;;  %v4216_v56 = vld [vmem:[#allocation7 + $0x610] sm:$0xff] }
 0xe17   : > { %v6389_v35 = vpack.c.bf16 %v4224_v58, %v4216_v56  ;;  %v4084_v56 = vld [vmem:[#allocation7 + $0x1f0] sm:$0xff]  ;;  %v4093_v58 = vld [vmem:[#allocation7 + $0x238] sm:$0xff] }
 0xe19   : > { %6362 = vmatpush1.bf16.msra.mxu1 %v6361_v30  ;;  %v6391_v30 = vpack.c.bf16 %v4241_v29, %v4233_v15  ;;  %v4101_v15 = vld [vmem:[#allocation7 + $0x278] sm:$0xff] }
 0xe1a   : > { %6364 = vmatprep.subr.bf16.mxu1 %v6363_v43  ;;  %v4232_v43 = vld [vmem:[#allocation7 + $0x690] sm:$0xff] }
 0xe1b   : > { %v6393_v28 = vpack.c.bf16 %v4240_v52, %v4232_v43  ;;  %v4109_v43 = vld [vmem:[#allocation7 + $0x2b8] sm:$0xff] }
 0xe1c   : > { %v4117_v52 = vld [vmem:[#allocation7 + $0x2f8] sm:$0xff] }
 0xe1d   : > { %6366 = vmatpush1.bf16.msra.mxu1 %v6365_v23  ;;  %v6395_v23 = vpack.c.bf16 %v4257_v6, %v4249_v34  ;;  %v6487_v6 = vpack.c.bf16 %v4117_v52, %v4109_v43 }
 0xe1e   : > { %6368 = vmatprep.subr.bf16.mxu1 %v6367_v31  ;;  %v4248_v31 = vld [vmem:[#allocation7 + $0x710] sm:$0xff] }
 0xe1f   : > { %v6397_v2 = vpack.c.bf16 %v4256_v51, %v4248_v31  ;;  %v4125_v31 = vld [vmem:[#allocation7 + $0x338] sm:$0xff] }
 0xe20   : > { %v4133_v51 = vld [vmem:[#allocation7 + $0x378] sm:$0xff] }
 0xe21   : > { %6370 = vmatpush1.bf16.msra.mxu1 %v6369_v44  ;;  %v6399_v44 = vpack.c.bf16 %v4273_v11, %v4265_v22  ;;  %v6491_v11 = vpack.c.bf16 %v4133_v51, %v4125_v31 }
 0xe22   : > { %6372 = vmatprep.subr.bf16.mxu1 %v6371_v37  ;;  %v4264_v37 = vld [vmem:[#allocation7 + $0x790] sm:$0xff] }
 0xe23   : > { %v6401_v3 = vpack.c.bf16 %v4272_v59, %v4264_v37  ;;  %v4141_v37 = vld [vmem:[#allocation7 + $0x3b8] sm:$0xff] }
 0xe24   : > { %v4149_v59 = vld [vmem:[#allocation7 + $0x3f8] sm:$0xff] }
 0xe25   : > { %6374 = vmatpush1.bf16.msra.mxu1 %v6373_v1  ;;  %v6467_v1 = vpack.c.bf16 %v4037_v13, %v4029_v62  ;;  %v6495_v13 = vpack.c.bf16 %v4149_v59, %v4141_v37 }
 0xe26   : > { %6376 = vmatprep.subr.bf16.mxu1 %v6375_v17  ;;  %v4028_v17 = vld [vmem:[#allocation7 + $0x30] sm:$0xff] }
 0xe27   : > { %v6469_v57 = vpack.c.bf16 %v4036_v21, %v4028_v17  ;;  %v4157_v17 = vld [vmem:[#allocation7 + $0x438] sm:$0xff] }
 0xe28   : > { %v4165_v21 = vld [vmem:[#allocation7 + $0x478] sm:$0xff] }
 0xe29   : > { %6378 = vmatpush1.bf16.msra.mxu1 %v6377_v45  ;;  %v6471_v45 = vpack.c.bf16 %v4053_v18, %v4045_v7  ;;  %v6499_v18 = vpack.c.bf16 %v4165_v21, %v4157_v17 }
 0xe2a   : > { %6380 = vmatprep.subr.bf16.mxu1 %v6379_v5  ;;  %v4044_v5 = vld [vmem:[#allocation7 + $0xb0] sm:$0xff] }
 0xe2b   : > { %v6473_v38 = vpack.c.bf16 %v4052_v60, %v4044_v5  ;;  %v4173_v5 = vld [vmem:[#allocation7 + $0x4b8] sm:$0xff] }
 0xe2c   : > { %v4181_v60 = vld [vmem:[#allocation7 + $0x4f8] sm:$0xff] }
 0xe2d   : > { %6382 = vmatpush1.bf16.msra.mxu1 %v6381_v8  ;;  %v6475_v8 = vpack.c.bf16 %v4069_v0, %v4061_v14  ;;  %v6503_v0 = vpack.c.bf16 %v4181_v60, %v4173_v5 }
 0xe2e   : > { %6384 = vmatprep.subr.bf16.mxu1 %v6383_v26  ;;  %v4060_v26 = vld [vmem:[#allocation7 + $0x130] sm:$0xff] }
 0xe2f   : > { %v6477_v25 = vpack.c.bf16 %v4068_v19, %v4060_v26  ;;  %v4189_v26 = vld [vmem:[#allocation7 + $0x538] sm:$0xff] }
 0xe30   : > { %v4197_v19 = vld [vmem:[#allocation7 + $0x578] sm:$0xff] }
 0xe31   : > { %6386 = vmatpush1.bf16.msra.mxu1 %v6385_v27  ;;  %v6479_v27 = vpack.c.bf16 %v4085_v48, %v4077_v46  ;;  %v6507_v48 = vpack.c.bf16 %v4197_v19, %v4189_v26 }
 0xe32   : > { %6388 = vmatprep.subr.bf16.mxu1 %v6387_v61  ;;  %v4076_v61 = vld [vmem:[#allocation7 + $0x1b0] sm:$0xff] }
 0xe33   : > { %v6481_v29 = vpack.c.bf16 %v4084_v56, %v4076_v61  ;;  %v4205_v61 = vld [vmem:[#allocation7 + $0x5b8] sm:$0xff] }
 0xe34   : > { %v4213_v56 = vld [vmem:[#allocation7 + $0x5f8] sm:$0xff] }
 0xe35   : > { %6390 = vmatpush1.bf16.msra.mxu1 %v6389_v35  ;;  %v6483_v35 = vpack.c.bf16 %v4101_v15, %v4093_v58  ;;  %v6511_v15 = vpack.c.bf16 %v4213_v56, %v4205_v61 }
 0xe36   : > { %6392 = vmatprep.subr.bf16.mxu1 %v6391_v30  ;;  %v4100_v30 = vld [vmem:[#allocation7 + $0x270] sm:$0xff] }
 0xe39   : > { %6394 = vmatpush1.bf16.msra.mxu1 %v6393_v28  ;;  %v4108_v28 = vld [vmem:[#allocation7 + $0x2b0] sm:$0xff] }
 0xe3a   : > { %6396 = vmatprep.subr.bf16.mxu1 %v6395_v23  ;;  %v4116_v23 = vld [vmem:[#allocation7 + $0x2f0] sm:$0xff] }
 0xe3b   : > { %v6489_v22 = vpack.c.bf16 %v4116_v23, %v4108_v28  ;;  %v4237_v28 = vld [vmem:[#allocation7 + $0x6b8] sm:$0xff] }
 0xe3c   : > { %v4245_v23 = vld [vmem:[#allocation7 + $0x6f8] sm:$0xff] }
 0xe3d   : > { %6398 = vmatpush1.bf16.msra.mxu1 %v6397_v2  ;;  %v4124_v2 = vld [vmem:[#allocation7 + $0x330] sm:$0xff]  ;;  %v6519_v51 = vpack.c.bf16 %v4245_v23, %v4237_v28 }
 0xe3e   : > { %6400 = vmatprep.subr.bf16.mxu1 %v6399_v44  ;;  %v4132_v44 = vld [vmem:[#allocation7 + $0x370] sm:$0xff] }
 0xe3f   : > { %v6493_v62 = vpack.c.bf16 %v4132_v44, %v4124_v2  ;;  %v4253_v2 = vld [vmem:[#allocation7 + $0x738] sm:$0xff] }
 0xe40   : > { %v4261_v44 = vld [vmem:[#allocation7 + $0x778] sm:$0xff] }
 0xe41   : > { %6402 = vmatpush1.bf16.msra.mxu1 %v6401_v3  ;;  %v4140_v3 = vld [vmem:[#allocation7 + $0x3b0] sm:$0xff]  ;;  %v6523_v59 = vpack.c.bf16 %v4261_v44, %v4253_v2 }
 0xe42   : > { %6468 = vmatprep.subr.bf16.mxu1 %v6467_v1  ;;  %v4148_v1 = vld [vmem:[#allocation7 + $0x3f0] sm:$0xff] }
 0xe43   : > { %v6497_v7 = vpack.c.bf16 %v4148_v1, %v4140_v3  ;;  %v4269_v3 = vld [vmem:[#allocation7 + $0x7b8] sm:$0xff] }
 0xe44   : > { %4414 = vmatmul.mubr.f32.vlgmr.msra.gmra.mrb[20].mxu1 %v9273_v10  ;;  %v4277_v1 = vld [vmem:[#allocation7 + $0x7f8] sm:$0xff] }
 0xe45   : > { %6470 = vmatpush1.bf16.msra.mxu1 %v6469_v57  ;;  %4555 = vmatprep.mubr.f32.mxu1 %v9271_v4  ;;  %v4092_v4 = vld [vmem:[#allocation7 + $0x230] sm:$0xff]  ;;  %v6527_v21 = vpack.c.bf16 %v4277_v1, %v4269_v3 }
 0xe46   : > { %6472 = vmatprep.subr.bf16.mxu1 %v6471_v45  ;;  %v6485_v34 = vpack.c.bf16 %v4100_v30, %v4092_v4  ;;  %v4156_v57 = vld [vmem:[#allocation7 + $0x430] sm:$0xff]  ;;  %v4221_v4 = vld [vmem:[#allocation7 + $0x638] sm:$0xff] }
 0xe47   : > { %v4164_v45 = vld [vmem:[#allocation7 + $0x470] sm:$0xff]  ;;  %v4229_v30 = vld [vmem:[#allocation7 + $0x678] sm:$0xff] }
 0xe48   : > { %v6501_v14 = vpack.c.bf16 %v4164_v45, %v4156_v57  ;;  %v6515_v52 = vpack.c.bf16 %v4229_v30, %v4221_v4 }
 0xe49   : > { %6474 = vmatpush1.bf16.msra.mxu1 %v6473_v38  ;;  %v4172_v38 = vld [vmem:[#allocation7 + $0x4b0] sm:$0xff] }
 0xe4a   : > { %6476 = vmatprep.subr.bf16.mxu1 %v6475_v8  ;;  %v4180_v8 = vld [vmem:[#allocation7 + $0x4f0] sm:$0xff] }
 0xe4b   : > { %v6505_v46 = vpack.c.bf16 %v4180_v8, %v4172_v38 }
 0xe4d   : > { %6478 = vmatpush1.bf16.msra.mxu1 %v6477_v25  ;;  %v4188_v25 = vld [vmem:[#allocation7 + $0x530] sm:$0xff] }
 0xe4e   : > { %6480 = vmatprep.subr.bf16.mxu1 %v6479_v27  ;;  %v4196_v27 = vld [vmem:[#allocation7 + $0x570] sm:$0xff] }
 0xe4f   : > { %v6509_v58 = vpack.c.bf16 %v4196_v27, %v4188_v25 }
 0xe51   : > { %6482 = vmatpush1.bf16.msra.mxu1 %v6481_v29  ;;  %v4204_v29 = vld [vmem:[#allocation7 + $0x5b0] sm:$0xff] }
 0xe52   : > { %6484 = vmatprep.subr.bf16.mxu1 %v6483_v35  ;;  %v4212_v35 = vld [vmem:[#allocation7 + $0x5f0] sm:$0xff] }
 0xe53   : > { %v6513_v43 = vpack.c.bf16 %v4212_v35, %v4204_v29 }
 0xe55   : > { %6486 = vmatpush1.bf16.msra.mxu1 %v6485_v34  ;;  %v4220_v34 = vld [vmem:[#allocation7 + $0x630] sm:$0xff] }
 0xe56   : > { %6488 = vmatprep.subr.bf16.mxu1 %v6487_v6  ;;  %v4228_v6 = vld [vmem:[#allocation7 + $0x670] sm:$0xff] }
 0xe57   : > { %v6517_v31 = vpack.c.bf16 %v4228_v6, %v4220_v34 }
 0xe59   : > { %6490 = vmatpush1.bf16.msra.mxu1 %v6489_v22  ;;  %v4236_v22 = vld [vmem:[#allocation7 + $0x6b0] sm:$0xff] }
 0xe5a   : > { %6492 = vmatprep.subr.bf16.mxu1 %v6491_v11  ;;  %v4244_v11 = vld [vmem:[#allocation7 + $0x6f0] sm:$0xff] }
 0xe5b   : > { %v6521_v37 = vpack.c.bf16 %v4244_v11, %v4236_v22  ;;  %v5098_v11 = vld [vmem:[#allocation4] sm:$0x1] }
 0xe5d   : > { %6494 = vmatpush1.bf16.msra.mxu1 %v6493_v62  ;;  %v4252_v62 = vld [vmem:[#allocation7 + $0x730] sm:$0xff] }
 0xe5e   : > { %6496 = vmatprep.subr.bf16.mxu1 %v6495_v13  ;;  %v4260_v13 = vld [vmem:[#allocation7 + $0x770] sm:$0xff] }
 0xe5f   : > { %v6525_v17 = vpack.c.bf16 %v4260_v13, %v4252_v62 }
 0xe61   : > { %6498 = vmatpush1.bf16.msra.mxu1 %v6497_v7  ;;  %v4268_v7 = vld [vmem:[#allocation7 + $0x7b0] sm:$0xff] }
 0xe62   : > { %6500 = vmatprep.subr.bf16.mxu1 %v6499_v18  ;;  %v4276_v18 = vld [vmem:[#allocation7 + $0x7f0] sm:$0xff] }
 0xe63   : > { %v6529_v57 = vpack.c.bf16 %v4276_v18, %v4268_v7 }
 0xe65   : > { %6502 = vmatpush1.bf16.msra.mxu1 %v6501_v14 }
 0xe66   : > { %6504 = vmatprep.subr.bf16.mxu1 %v6503_v0 }
 0xe69   : > { %6506 = vmatpush1.bf16.msra.mxu1 %v6505_v46 }
 0xe6a   : > { %6508 = vmatprep.subr.bf16.mxu1 %v6507_v48 }
 0xe6d   : > { %6510 = vmatpush1.bf16.msra.mxu1 %v6509_v58 }
 0xe6e   : > { %6512 = vmatprep.subr.bf16.mxu1 %v6511_v15 }
 0xe71   : > { %6514 = vmatpush1.bf16.msra.mxu1 %v6513_v43 }
 0xe72   : > { %6516 = vmatprep.subr.bf16.mxu1 %v6515_v52 }
 0xe75   : > { %6518 = vmatpush1.bf16.msra.mxu1 %v6517_v31 }
 0xe76   : > { %6520 = vmatprep.subr.bf16.mxu1 %v6519_v51 }
 0xe79   : > { %6522 = vmatpush1.bf16.msra.mxu1 %v6521_v37 }
 0xe7a   : > { %6524 = vmatprep.subr.bf16.mxu1 %v6523_v59 }
 0xe7d   : > { %6526 = vmatpush1.bf16.msra.mxu1 %v6525_v17 }
 0xe7e   : > { %6528 = vmatprep.subr.bf16.mxu1 %v6527_v21 }
 0xe81   : > { %6530 = vmatpush1.bf16.msra.mxu1 %v6529_v57 }
 0xe84   : > { %4556 = vmatmul.mubr.f32.vlgmr.msra.gmra.mrb[22].mxu1 %v9273_v10 }
 0xe85   : > { %5246 = vmatprep.mubr.f32.mxu1 %v10194_v9 }
 0xed7   : > { %v4344_v45 = vpop.f32.mrb[18].mxu1  ;;  %v4486_v5 = vpop.f32.mrb[14].mxu0 }
 0xed8   : > { %v4488_v60 = vpop.f32.mrb[15].mxu0  ;;  %4571 = vrot.lane.b32.xlu0 %v4344_v45, %s10321_s10  ;;  %v4346_v14 = vpop.f32.mrb[19].mxu1 }
 0xed9   : > { %4573 = vrot.lane.b32.xlu1 %v4346_v14, %s10321_s10 }
 0xf17   : > { %v4415_v0 = vpop.f32.mrb[20].mxu1 }
 0xf18   : > { %4575 = vrot.lane.b32.xlu0 %v4415_v0, %s10321_s10  ;;  %v4417_v38 = vpop.f32.mrb[21].mxu1 }
 0xf19   : > { %4577 = vrot.lane.b32.xlu1 %v4417_v38, %s10321_s10 }
 0xf1c   : > { %4579 = vrot.lane.b32.xlu0 %v4486_v5, %s10321_s10 }
 0xf1d   : > { %4581 = vrot.lane.b32.xlu1 %v4488_v60, %s10321_s10 }
 0xf4a   : > { %v4572_v10 = vpop.permute.xlu0 %4571 }
 0xf4b   : > { %4604 = vst.msk [vmem:[#allocation2] sm:$0xff] %vm4603_vm6, %v4572_v10  ;;  %v4574_v8 = vpop.permute.xlu1 %4573  ;;  %vm10337_vm6 = vnez %v10057_v32 }
 0xf4c   : > { %v9292_v26 = vsel %vm10322_vm12, %v4572_v10, %v4574_v8  ;;  %vm6535_vm12 = vmpackc.low %vm10337_vm6, %vm10336_vm7  ;;  %vm10347_vm7 = vcmask 900096  }
 0xf4d   : > { %4605 = vst [vmem:[#allocation2 + $0x8] sm:$0xff] %v9292_v26  ;;  %vm10348_vm6 = vmmov %vm10347_vm7 }
 0xf52   : > { %v9312_v35 = vld [vmem:[#allocation2] sm:$0xff] }
 0xf57   : > { %v4557_v19 = vpop.f32.mrb[22].mxu1 }
 0xf58   : > { %4583 = vrot.lane.b32.xlu0 %v4557_v19, %s10321_s10  ;;  %v4559_v46 = vpop.f32.mrb[23].mxu1 }
 0xf59   : > { %4585 = vrot.lane.b32.xlu1 %v4559_v46, %s10321_s10 }
 0xf8a   : > { %v4576_v48 = vpop.permute.xlu0 %4575 }
 0xf8b   : > { %v9298_v25 = vsel %vm10323_vm15, %v4574_v8, %v4576_v48  ;;  %v4578_v27 = vpop.permute.xlu1 %4577  ;;  %vm10338_vm15 = vcmask 1031168  }
 0xf8c   : > { %4606 = vst [vmem:[#allocation2 + $0x10] sm:$0xff] %v9298_v25  ;;  %v9302_v61 = vsel %vm10324_vm9, %v4576_v48, %v4578_v27  ;;  %v7057_v30 = vpack.i.bf16 %v9298_v25, %v9292_v26  ;;  %vm10339_vm9 = vcmask 916480  }
 0xf8d   : > { %4607 = vst [vmem:[#allocation2 + $0x18] sm:$0xff] %v9302_v61 }
 0xf8e   : > { %v4580_v56 = vpop.permute.xlu0 %4579 }
 0xf8f   : > { %v9306_v58 = vsel %vm10325_vm8, %v4578_v27, %v4580_v56  ;;  %v4582_v15 = vpop.permute.xlu1 %4581  ;;  %vm10340_vm8 = vmmov %vm10338_vm15 }
 0xf90   : > { %4608 = vst [vmem:[#allocation2 + $0x20] sm:$0xff] %v9306_v58  ;;  %v9310_v29 = vsel %vm10326_vm3, %v4580_v56, %v4582_v15  ;;  %v7097_v43 = vpack.i.bf16 %v9306_v58, %v9302_v61  ;;  %vm10341_vm3 = vmmov %vm10339_vm9 }
 0xf91   : > { %4609 = vst [vmem:[#allocation2 + $0x28] sm:$0xff] %v9310_v29  ;;  %v7027_v4 = vpack.i.bf16 %v9310_v29, %v9312_v35 }
 0xf93   : > { %7028 = vrot.lane.b32.xlu0 %v7027_v4, %s7286_s20  ;;  %7033 = vrot.lane.b32.xlu1 %v7027_v4, %s7281_s16 }
 0xf97   : > { %7038 = vrot.lane.b32.xlu0 %v7027_v4, %s10268_s26  ;;  %7043 = vrot.lane.b32.xlu1 %v7027_v4, %s10271_s29 }
 0xf9b   : > { %7048 = vrot.lane.b32.xlu0 %v7027_v4, %s10269_s22  ;;  %7053 = vrot.lane.b32.xlu1 %v7027_v4, %s10327_s21 }
 0xf9f   : > { %4963 = vrot.lane.b32.xlu0 %v9312_v35, %s10328_s19  ;;  %5023 = vrot.lane.b32.xlu1 %v9292_v26, %s10329_s30 }
 0xfa3   : > { %7058 = vrot.lane.b32.xlu0 %v7057_v30, %s7286_s20  ;;  %5021 = vrot.lane.b32.xlu1 %v9312_v35, %s10329_s30 }
 0xfa7   : > { %5025 = vrot.lane.b32.xlu0 %v9298_v25, %s10329_s30  ;;  %7063 = vrot.lane.b32.xlu1 %v7057_v30, %s7281_s16 }
 0xfab   : > { %7098 = vrot.lane.b32.xlu0 %v7097_v43, %s7281_s16  ;;  %7068 = vrot.lane.b32.xlu1 %v7057_v30, %s10268_s26 }
 0xfaf   : > { %7103 = vrot.lane.b32.xlu0 %v7097_v43, %s10268_s26  ;;  %7073 = vrot.lane.b32.xlu1 %v7057_v30, %s10271_s29 }
 0xfb3   : > { %7108 = vrot.lane.b32.xlu0 %v7097_v43, %s10271_s29  ;;  %7078 = vrot.lane.b32.xlu1 %v7057_v30, %s10269_s22 }
 0xfb7   : > { %7113 = vrot.lane.b32.xlu0 %v7097_v43, %s10269_s22  ;;  %7083 = vrot.lane.b32.xlu1 %v7057_v30, %s10327_s21 }
 0xfbb   : > { %7118 = vrot.lane.b32.xlu0 %v7097_v43, %s10327_s21  ;;  %7088 = vrot.lane.b32.xlu1 %v7057_v30, %s10328_s19 }
 0xfbf   : > { %7123 = vrot.lane.b32.xlu0 %v7097_v43, %s10328_s19  ;;  %7093 = vrot.lane.b32.xlu1 %v7097_v43, %s7286_s20 }
 0xfc3   : > { %5029 = vrot.lane.b32.xlu0 %v9306_v58, %s10329_s30  ;;  %5027 = vrot.lane.b32.xlu1 %v9302_v61, %s10329_s30 }
 0xfca   : > { %v4584_v52 = vpop.permute.xlu0 %4583 }
 0xfcb   : > { %v9354_v34 = vsel %vm10330_vm5, %v4582_v15, %v4584_v52  ;;  %v4586_v6 = vpop.permute.xlu1 %4585 }
 0xfcc   : > { %4610 = vst [vmem:[#allocation2 + $0x30] sm:$0xff] %v9354_v34  ;;  %v9358_v28 = vsel %vm10331_vm4, %v4584_v52, %v4586_v6  ;;  %4612 = vst.msk [vmem:[#allocation2 + $0x40] sm:$0xff] %vm10332_vm11, %v4586_v6  ;;  %v7127_v23 = vpack.i.bf16 %v9354_v34, %v9310_v29  ;;  %vm10343_vm4 = vnez %v10087_v16  ;;  %vm10344_vm11 = vcmp.ne.s32.totalorder %v7502_v20, 0 }
 0xfcd   : > { %4611 = vst [vmem:[#allocation2 + $0x38] sm:$0xff] %v9358_v28  ;;  %4614 = vst.msk [vmem:[#allocation2 + $0x40] sm:$0xff] %vm4613_vm1, %v10194_v9  ;;  %v7132_v31 = vpack.i.bf16 %v9358_v28, %v9354_v34  ;;  %vm10342_vm1 = vnez %v10085_v12  ;;  %v9588_v12 = vld [vmem:[%s9879_s9] sm:$0x1] }
 0xfce   : > { %7128 = vrot.lane.b32.xlu0 %v7127_v23, %s10328_s19  ;;  %vm6538_vm5 = vmpackc.low %vm10335_vm2, %vm10342_vm1 }
 0xfcf   : > { %7133 = vrot.lane.b32.xlu1 %v7132_v31, %s7286_s20 }
 0xfd4   : > { %v4647_v51 = vld [vmem:[#allocation2 + $0x40] sm:$0xff] }
 0xfd5   : > { %4689 = vrot.lane.b32.xlu0 %v4647_v51, %s7286_s20  ;;  %4747 = vrot.lane.b32.xlu1 %v4647_v51, %s7281_s16  ;;  %v7162_v22 = vpack.i.bf16 %v4647_v51, %v9358_v28 }
 0xfd9   : > { %7138 = vrot.lane.b32.xlu0 %v7132_v31, %s7281_s16  ;;  %4805 = vrot.lane.b32.xlu1 %v4647_v51, %s10268_s26 }
 0xfdd   : > { %7143 = vrot.lane.b32.xlu0 %v7132_v31, %s10268_s26  ;;  %4863 = vrot.lane.b32.xlu1 %v4647_v51, %s10271_s29  ;;  %s10477_s26 = sshll.u32 %s10480_s23, 3 }
 0xfde   : > { %s521_s28 = scalar_lea.vmem %s9885_s15, %s10477_s26 }
 0xfe1   : > { %7148 = vrot.lane.b32.xlu0 %v7132_v31, %s10271_s29  ;;  %5079 = vrot.lane.b32.xlu1 %v4647_v51, %s10269_s22 }
 0xfe5   : > { %7153 = vrot.lane.b32.xlu0 %v7132_v31, %s10269_s22  ;;  %4921 = vrot.lane.b32.xlu1 %v4647_v51, %s10327_s21 }
 0xfe9   : > { %7158 = vrot.lane.b32.xlu0 %v7132_v31, %s10327_s21  ;;  %7163 = vrot.lane.b32.xlu1 %v7162_v22, %s10328_s19 }
 0xfed   : > { %5031 = vrot.lane.b32.xlu0 %v9310_v29, %s10329_s30  ;;  %5033 = vrot.lane.b32.xlu1 %v9354_v34, %s10329_s30 }
 0xff1   : > { %5035 = vrot.lane.b32.xlu0 %v9358_v28, %s10329_s30  ;;  %5037 = vrot.lane.b32.xlu1 %v4647_v51, %s10329_s30 }
 0xff5   : > { %5101 = vperm.xlu0 %6695, %v5098_v11  }
0x1005   : > { %v9389_v2 = vpop.permute.xlu0 %7028  ;;  %v9391_v44 = vpop.permute.xlu1 %7033 }
0x1006   : > { %v7030_v7 = vunpack.i.l.bf16 %v9389_v2  ;;  %v7035_v46 = vunpack.i.l.bf16 %v9391_v44  ;;  %v10035_v6 = vunpack.i.h.bf16 %v9391_v44 }
0x1009   : > { %v9393_v37 = vpop.permute.xlu0 %7038  ;;  %v9395_v59 = vpop.permute.xlu1 %7043 }
0x100a   : > { %v7040_v48 = vunpack.i.l.bf16 %v9393_v37  ;;  %v10034_v23 = vunpack.i.h.bf16 %v9393_v37 }
0x100d   : > { %v9397_v62 = vpop.permute.xlu0 %7048  ;;  %v9399_v13 = vpop.permute.xlu1 %7053 }
0x1011   : > { %v9401_v3 = vpop.permute.xlu0 %4963  ;;  %v9403_v1 = vpop.permute.xlu1 %5023 }
0x1015   : > { %v9405_v17 = vpop.permute.xlu0 %7058  ;;  %v9407_v21 = vpop.permute.xlu1 %5021 }
0x1016   : > { %v7061_v18 = vunpack.i.h.bf16 %v9405_v17  ;;  %v7060_v57 = vunpack.i.l.bf16 %v9405_v17 }
0x1018   : > { %v4691_v45 = vsel %vm10333_vm10, %v7030_v7, %v7060_v57  ;;  %v4692_v5 = vsel %vm10334_vm13, %v7060_v57, %v7061_v18  ;;  %vm6541_vm10 = vmpackc.low %vm10344_vm11, %vm10343_vm4  ;;  %vm10354_vm11 = vcmask 785408  }
0x1019   : > { %v6531_v60 = vpack.c.bf16 %v4692_v5, %v9292_v26  ;;  %v6534_v14 = vpack.c.bf16 %v4691_v45, %v9312_v35  ;;  %v9421_v0 = vpop.permute.xlu0 %5025  ;;  %v9423_v38 = vpop.permute.xlu1 %7063  ;;  %vm10345_vm13 = vmmov %vm10340_vm8 }
0x101a   : > { %v7065_v10 = vunpack.i.l.bf16 %v9423_v38  ;;  %v7066_v8 = vunpack.i.h.bf16 %v9423_v38 }
0x101b   : > { %6533 = vmatprep.subr.msk.bf16.mxu0 %vm6532_vm14, %v6531_v60  ;;  %vm10346_vm14 = vmmov %vm10341_vm3 }
0x101c   : > { %6536 = vmatpush1.bf16.msk.msra.mxu0 %vm6535_vm12, %v6534_v14  ;;  %v4749_v32 = vsel %vm10338_vm15, %v7035_v46, %v7065_v10  ;;  %v4750_v35 = vsel %vm10340_vm8, %v7065_v10, %v7066_v8  ;;  %v7045_v14 = vunpack.i.l.bf16 %v9395_v59  ;;  %v7050_v10 = vunpack.i.l.bf16 %v9397_v62 }
0x101d   : > { %v9431_v19 = vpop.permute.xlu0 %7098  ;;  %v9433_v26 = vpop.permute.xlu1 %7068  ;;  %vm10349_vm12 = vcmask 908288   ;;  %vm10351_vm8 = vcmp.ne.s32.totalorder %v7502_v20, 15 }
0x101e   : > { %v7071_v27 = vunpack.i.h.bf16 %v9433_v26  ;;  %v7070_v50 = vunpack.i.l.bf16 %v9433_v26  ;;  %v7101_v56 = vunpack.i.h.bf16 %v9431_v19  ;;  %vm10350_vm15 = vmmov %vm10349_vm12 }
0x101f   : > { %vm10353_vm4 = vmmov %vm10349_vm12 }
0x1020   : > { %v4807_v15 = vsel %vm10339_vm9, %v7040_v48, %v7070_v50  ;;  %v4808_v4 = vsel %vm10341_vm3, %v7070_v50, %v7071_v27  ;;  %v9468_v22 = vsel %vm10345_vm13, %v7101_v56, %v10035_v6  ;;  %v10036_v48 = vunpack.i.h.bf16 %v9395_v59  ;;  %vm6544_vm9 = vmpackc.low %vm10342_vm1, %vm10254_vm0 }
0x1021   : > { %v6540_v30 = vpack.c.bf16 %v4807_v15, %v4749_v32  ;;  %v9448_v43 = vpop.permute.xlu0 %7103  ;;  %v9450_v52 = vpop.permute.xlu1 %7073  ;;  %v6537_v31 = vpack.c.bf16 %v4808_v4, %v4750_v35  ;;  %vm6547_vm3 = vmpackc.low %vm10351_vm8, %vm10254_vm0  ;;  %vm10356_vm13 = vcmask 777216   ;;  %vm10362_vm8 = vcmask 1039360  }
0x1022   : > { %v7106_v51 = vunpack.i.h.bf16 %v9448_v43  ;;  %v10037_v16 = vunpack.i.h.bf16 %v9450_v52  ;;  %v7075_v57 = vunpack.i.l.bf16 %v9450_v52 }
0x1023   : > { %6539 = vmatprep.subr.msk.bf16.mxu0 %vm6538_vm5, %v6537_v31  ;;  %vm10352_vm5 = vmmov %vm10348_vm6 }
0x1024   : > { %v9473_v11 = vsel %vm10346_vm14, %v7106_v51, %v10034_v23  ;;  %6542 = vmatpush1.bf16.msk.msra.mxu0 %vm6541_vm10, %v6540_v30  ;;  %v4865_v32 = vsel %vm10347_vm7, %v7045_v14, %v7075_v57  ;;  %v4866_v15 = vsel %vm10348_vm6, %v7075_v57, %v10037_v16  ;;  %v10038_v14 = vunpack.i.h.bf16 %v9397_v62  ;;  %vm10355_vm10 = vmmov %vm10354_vm11 }
0x1025   : > { %v9479_v45 = vpop.permute.xlu0 %7108  ;;  %v9481_v5 = vpop.permute.xlu1 %7078  ;;  %vm10357_vm14 = vmmov %vm10356_vm13  ;;  %vm10358_vm7 = vnez %v10116_v40 }
0x1026   : > { %v10039_v60 = vunpack.i.h.bf16 %v9481_v5  ;;  %v7080_v46 = vunpack.i.l.bf16 %v9481_v5  ;;  %v10040_v50 = vunpack.i.h.bf16 %v9479_v45  ;;  %vm10359_vm6 = vmand %vm10358_vm7, %vm10335_vm2  ;;  %vm10361_vm2 = vcmask 769024  }
0x1027   : > { %v5040_v53 = vsel %vm10361_vm2, %v9403_v1, %v9421_v0 }
0x1028   : > { %v5081_v35 = vsel %vm10349_vm12, %v7050_v10, %v7080_v46  ;;  %v5082_v4 = vsel %vm10350_vm15, %v7080_v46, %v10039_v60  ;;  %v9514_v10 = vsel %vm10352_vm5, %v10040_v50, %v10036_v48  ;;  %v7055_v48 = vunpack.i.l.bf16 %v9399_v13  ;;  %vm6550_vm12 = vmpackc.low %vm10358_vm7, %vm10359_vm6 }
0x1029   : > { %v9497_v30 = vpop.permute.xlu0 %7113  ;;  %v9499_v31 = vpop.permute.xlu1 %7083  ;;  %v6543_v7 = vpack.c.bf16 %v4866_v15, %v5082_v4  ;;  %v6546_v23 = vpack.c.bf16 %v4865_v32, %v5081_v35  ;;  %vm10360_vm15 = vcmp.ne.s32.totalorder %v7502_v20, 0  ;;  %vm10364_vm5 = vmmov %vm10362_vm8 }
0x102a   : > { %v7116_v57 = vunpack.i.h.bf16 %v9497_v30  ;;  %v10041_v15 = vunpack.i.h.bf16 %v9499_v31  ;;  %v7085_v35 = vunpack.i.l.bf16 %v9499_v31 }
0x102b   : > { %6545 = vmatprep.subr.msk.bf16.mxu0 %vm6544_vm9, %v6543_v7  ;;  %vm6553_vm9 = vmpackc.low %vm10254_vm0, %vm10360_vm15  ;;  %vm10372_vm15 = vnez %v10089_v36 }
0x102c   : > { %v9519_v46 = vsel %vm10353_vm4, %v7116_v57, %v10038_v14  ;;  %6548 = vmatpush1.bf16.msk.msra.mxu0 %vm6547_vm3, %v6546_v23  ;;  %v4923_v14 = vsel %vm10354_vm11, %v7055_v48, %v7085_v35  ;;  %v4924_v7 = vsel %vm10355_vm10, %v7085_v35, %v10041_v15  ;;  %v7105_v48 = vunpack.i.l.bf16 %v9448_v43  ;;  %vm10365_vm4 = vmand %vm10358_vm7, %vm10342_vm1 }
0x102d   : > { %v9525_v4 = vpop.permute.xlu1 %7088  ;;  %v9534_v32 = vpop.permute.xlu0 %7118  ;;  %vm10363_vm3 = vcmask 916480   ;;  %vm10366_vm11 = vnez %v10077_v54  ;;  %vm10370_vm1 = vmmov %vm10361_vm2  ;;  %vm10371_vm7 = vcmask 1031168  }
0x102e   : > { %v10042_v6 = vunpack.i.h.bf16 %v9525_v4  ;;  %v7090_v16 = vunpack.i.l.bf16 %v9525_v4  ;;  %vm6556_vm10 = vmpackc.low %vm10254_vm0, %vm10366_vm11  ;;  %v5039_v40 = vsel %vm10370_vm1, %v9407_v21, %v9403_v1  ;;  %v7121_v38 = vunpack.i.h.bf16 %v9534_v32 }
0x102f   : > { %vm10373_vm2 = vmmov %vm10363_vm3 }
0x1030   : > { %v4981_v60 = vsel %vm10356_vm13, %v9401_v3, %v7090_v16  ;;  %v4982_v23 = vsel %vm10357_vm14, %v7090_v16, %v10042_v6  ;;  %v7100_v6 = vunpack.i.l.bf16 %v9431_v19  ;;  %vm10367_vm13 = vnez %v10059_v33 }
0x1031   : > { %v9541_v50 = vpop.permute.xlu1 %7093  ;;  %v6549_v35 = vpack.c.bf16 %v4982_v23, %v4924_v7  ;;  %v6552_v15 = vpack.c.bf16 %v4981_v60, %v4923_v14  ;;  %v4810_v60 = vsel %vm10363_vm3, %v7105_v48, %v7106_v51  ;;  %v7115_v14 = vunpack.i.l.bf16 %v9497_v30  ;;  %v9575_v17 = vpop.permute.xlu0 %7123 }
0x1032   : > { %v7096_v3 = vunpack.i.h.bf16 %v9541_v50  ;;  %v7095_v16 = vunpack.i.l.bf16 %v9541_v50  ;;  %vm10368_vm14 = vnez %v10063_v41  ;;  %v4809_v51 = vsel %vm10373_vm2, %v7071_v27, %v7105_v48 }
0x1033   : > { %6551 = vmatprep.subr.msk.bf16.mxu0 %vm6550_vm12, %v6549_v35  ;;  %vm10369_vm6 = vmand %vm10367_vm13, %vm10368_vm14  ;;  %vm10375_vm3 = vcmask 908288   ;;  %v7126_v21 = vunpack.i.h.bf16 %v9575_v17  ;;  %v7125_v19 = vunpack.i.l.bf16 %v9575_v17  ;;  %v10380_v27 = vunpack.i.h.bf16 %v9479_v45 }
0x1034   : > { %v4693_v43 = vsel %vm10362_vm8, %v7061_v18, %v7095_v16  ;;  %6554 = vmatpush1.bf16.msk.msra.mxu0 %vm6553_vm9, %v6552_v15  ;;  %v4694_v7 = vsel %vm10364_vm5, %v7095_v16, %v7096_v3  ;;  %vm6559_vm12 = vmpackc.low %vm10367_vm13, %vm10369_vm6  ;;  %vm10374_vm8 = vcmp.ne.s32.totalorder %v7502_v20, 15  ;;  %v5084_v1 = vsel %vm10375_vm3, %v7115_v14, %v7116_v57 }
0x1035   : > { %v6558_v50 = vpack.c.bf16 %v4693_v43, %v9298_v25  ;;  %5694 = vmatprep.subr.msk.mxu0 %vm10365_vm4, %v5040_v53  ;;  %v6555_v18 = vpack.c.bf16 %v4694_v7, %v9302_v61  ;;  %v4752_v25 = vsel %vm10371_vm7, %v7100_v6, %v7101_v56  ;;  %v7110_v61 = vunpack.i.l.bf16 %v9479_v45  ;;  %vm6562_vm9 = vmpackc.low %vm10366_vm11, %vm10372_vm15  ;;  %v5028_v15 = vpop.permute.xlu1 %5027  ;;  %v9639_v35 = vpop.permute.xlu0 %5029 }
0x1036   : > { %v6561_v30 = vpack.c.bf16 %v4810_v60, %v4752_v25  ;;  %vm10376_vm5 = vcmask 588800   ;;  %vm10377_vm4 = vmmov %vm10371_vm7  ;;  %v10382_v33 = vunpack.i.h.bf16 %v9481_v5  ;;  %v10385_v23 = vunpack.i.h.bf16 %v9450_v52 }
0x1037   : > { %6557 = vmatprep.subr.msk.bf16.mxu1 %vm6556_vm10, %v6555_v18  ;;  %v4751_v26 = vsel %vm10377_vm4, %v7066_v8, %v7100_v6  ;;  %vm10378_vm10 = vnez %v10083_v47  ;;  %v7120_v8 = vunpack.i.l.bf16 %v9534_v32  ;;  %vm6568_vm7 = vmpackc.low %vm10372_vm15, %vm10254_vm0  ;;  %v7031_v52 = vunpack.i.h.bf16 %v9389_v2 }
0x1038   : > { %5695 = vmatpush1.msk.msra.mxu0 %vm10374_vm8, %v5039_v40  ;;  %6560 = vmatpush1.bf16.msk.msra.mxu1 %vm6559_vm12, %v6558_v50  ;;  %vm10379_vm6 = vmand %vm10367_vm13, %vm10378_vm10  ;;  %v6564_v20 = vpack.c.bf16 %v4809_v51, %v4751_v26  ;;  %vm10381_vm12 = vcmask 900096   ;;  %v10390_v53 = vunpack.i.h.bf16 %v9525_v4  ;;  %v10392_v50 = vunpack.i.h.bf16 %v9499_v31 }
0x1039   : > { %5696 = vmatmul.mubr.msk.f32.vlgmr.msra.gmra.mrb[16].mxu0 %vm10376_vm5, %v9588_v12  ;;  %6563 = vmatprep.subr.msk.bf16.mxu1 %vm6562_vm9, %v6561_v30  ;;  %vm6565_vm1 = vmpackc.low %vm10368_vm14, %vm10379_vm6  ;;  %v4868_v56 = vsel %vm10381_vm12, %v7110_v61, %v10380_v27  ;;  %vm10384_vm9 = vcmask 777216   ;;  %vm10388_vm5 = vnez %v10118_v24  ;;  %v10407_v24 = vld [vmem:[#allocation14_spill] sm:$0xff]  ;;  %v10413_v47 = vunpack.i.h.bf16 %v9391_v44  ;;  %v10423_v44 = vld [vmem:[#allocation15_spill] sm:$0xff] }
0x103a   : > { %5317 = vmatprep.mubr.f32.mxu0 %v10194_v9  ;;  %vm10383_vm13 = vmmov %vm10375_vm3  ;;  %v6567_v57 = vpack.c.bf16 %v4868_v56, %v5084_v1  ;;  %v4984_v45 = vsel %vm10384_vm9, %v7125_v19, %v7126_v21  ;;  %vm10387_vm3 = vcmask 785408  }
0x103b   : > { %v5083_v6 = vsel %vm10383_vm13, %v10382_v33, %v7115_v14  ;;  %vm10386_vm2 = vmmov %vm10381_vm12  ;;  %v4926_v16 = vsel %vm10387_vm3, %v7120_v8, %v7121_v38  ;;  %v10411_v33 = vld [vmem:[#allocation17_spill] sm:$0xff] }
0x103c   : > { %6566 = vmatpush1.bf16.msk.msra.mxu1 %vm6565_vm1, %v6564_v20  ;;  %v4867_v48 = vsel %vm10386_vm2, %v10385_v23, %v7110_v61  ;;  %vm6571_vm8 = vmpackc.low %vm10378_vm10, %vm10254_vm0  ;;  %v6573_v60 = vpack.c.bf16 %v4984_v45, %v4926_v16 }
0x103d   : > { %6569 = vmatprep.subr.msk.bf16.mxu1 %vm6568_vm7, %v6567_v57  ;;  %v6570_v5 = vpack.c.bf16 %v4867_v48, %v5083_v6  ;;  %vm10389_vm4 = vmand %vm10388_vm5, %vm10366_vm11  ;;  %vm10394_vm7 = vcmask 1039360   ;;  %v10416_v57 = vld [vmem:[#allocation18_spill] sm:$0xff] }
0x103e   : > { %vm6574_vm6 = vmpackc.low %vm10388_vm5, %vm10389_vm4  ;;  %v4695_v54 = vsel %vm10394_vm7, %v7096_v3, %v7031_v52 }
0x103f   : > { %vm10391_vm1 = vmmov %vm10384_vm9  ;;  %vm10396_vm9 = vnez %v10079_v55  ;;  %v6582_v41 = vpack.c.bf16 %v4695_v54, %v9306_v58 }
0x1040   : > { %v4983_v43 = vsel %vm10391_vm1, %v10390_v53, %v7125_v19  ;;  %6572 = vmatpush1.bf16.msk.msra.mxu1 %vm6571_vm8, %v6570_v5  ;;  %vm10393_vm12 = vmmov %vm10387_vm3  ;;  %v9662_v40 = vpop.permute.xlu0 %7128  ;;  %vm10397_vm8 = vnez %v10061_v39  ;;  %vm10398_vm3 = vnez %v10065_v42 }
0x1041   : > { %v7134_v14 = vpop.permute.xlu1 %7133  ;;  %v4925_v18 = vsel %vm10393_vm12, %v10392_v50, %v7120_v8  ;;  %6575 = vmatprep.subr.msk.bf16.mxu1 %vm6574_vm6, %v6573_v60  ;;  %vm6577_vm11 = vmpackc.low %vm10254_vm0, %vm10368_vm14  ;;  %vm10400_vm14 = vcmask 769024   ;;  %v7131_v54 = vunpack.i.h.bf16 %v9662_v40 }
0x1042   : > { %v7135_v7 = vunpack.i.l.bf16 %v7134_v14  ;;  %v7136_v25 = vunpack.i.h.bf16 %v7134_v14  ;;  %v6576_v2 = vpack.c.bf16 %v4983_v43, %v4925_v18  ;;  %vm10395_vm13 = vmmov %vm10394_vm7  ;;  %v5042_v3 = vsel %vm10400_vm14, %v5028_v15, %v9639_v35 }
0x1043   : > { %vm6580_vm2 = vmpackc.low %vm10254_vm0, %vm10396_vm9  ;;  %v10431_v14 = vpack.c.bf16 %v9473_v11, %v9468_v22 }
0x1044   : > { %v4696_v4 = vsel %vm10395_vm13, %v7031_v52, %v7135_v7  ;;  %vm10399_vm4 = vmand %vm10397_vm8, %vm10398_vm3  ;;  %6578 = vmatpush1.bf16.msk.msra.mxu1 %vm6577_vm11, %v6576_v2  ;;  %vm10404_vm13 = vnez %v10081_v63  ;;  %v10432_v2 = vunpack.i.h.bf16 %v9395_v59 }
0x1045   : > { %v6579_v31 = vpack.c.bf16 %v4696_v4, %v9310_v29  ;;  %vm6583_vm6 = vmpackc.low %vm10397_vm8, %vm10399_vm4 }
0x1046   : > { %vm10401_vm1 = vmmov %vm10394_vm7 }
0x1047   : > { %v4697_v61 = vsel %vm10401_vm1, %v7135_v7, %v7136_v25  ;;  %v4690_v51 = vpop.permute.xlu0 %4689  ;;  %v4748_v30 = vpop.permute.xlu1 %4747  ;;  %vm10402_vm12 = vmand %vm10388_vm5, %vm10372_vm15  ;;  %6581 = vmatprep.subr.msk.bf16.mxu0 %vm6580_vm2, %v6579_v31  ;;  %vm10410_vm5 = vcmask 588800   ;;  %vm10412_vm2 = vnez %v10411_v33 }
0x1048   : > { %5709 = vmatprep.subr.msk.mxu1 %vm10402_vm12, %v5042_v3  ;;  %vm10403_vm7 = vmmov %vm10401_vm1  ;;  %6584 = vmatpush1.bf16.msk.msra.mxu0 %vm6583_vm6, %v6582_v41  ;;  %vm10408_vm1 = vnez %v10407_v24  ;;  %v6606_v36 = vpack.c.bf16 %v4697_v61, %v9354_v34  ;;  %vm10417_vm12 = vnez %v10416_v57  ;;  %v10439_v41 = vunpack.i.h.bf16 %v9397_v62 }
0x1049   : > { %v4698_v29 = vsel %vm10403_vm7, %v7136_v25, %v4690_v51  ;;  %vm6604_vm4 = vmpackc.low %vm10254_vm0, %vm10404_vm13  ;;  %v7130_v25 = vunpack.i.l.bf16 %v9662_v40  ;;  %v7056_v51 = vunpack.i.h.bf16 %v9399_v13 }
0x104a   : > { %vm10405_vm11 = vmmov %vm10400_vm14  ;;  %v6603_v1 = vpack.c.bf16 %v4698_v29, %v9358_v28  ;;  %vm10406_vm14 = vnez %v10068_v49 }
0x104b   : > { %v5041_v58 = vsel %vm10405_vm11, %v9421_v0, %v5028_v15  ;;  %vm10409_vm3 = vmand %vm10406_vm14, %vm10408_vm1  ;;  %v7139_v19 = vpop.permute.xlu0 %7138  ;;  %v4806_v26 = vpop.permute.xlu1 %4805  ;;  %v10419_v15 = vunpack.i.h.bf16 %v9393_v37  ;;  %vm10420_vm11 = vcmask 916480   ;;  %v10427_v37 = vld [vmem:[#allocation16_spill] sm:$0xff] }
0x104c   : > { %vm6607_vm15 = vmpackc.low %vm10406_vm14, %vm10409_vm3  ;;  %5710 = vmatpush1.msk.msra.mxu1 %vm10378_vm10, %v5041_v58  ;;  %v7141_v28 = vunpack.i.h.bf16 %v7139_v19  ;;  %v7140_v0 = vunpack.i.l.bf16 %v7139_v19  ;;  %vm10414_vm3 = vcmask 1031168   ;;  %vm10426_vm10 = vnez %v10065_v42 }
0x104d   : > { %5711 = vmatmul.mubr.msk.f32.vlgmr.msra.gmra.mrb[24].mxu1 %vm10410_vm5, %v9588_v12  ;;  %6605 = vmatprep.subr.msk.bf16.mxu1 %vm6604_vm4, %v6603_v1  ;;  %vm10415_vm6 = vmmov %vm10414_vm3 }
0x104e   : > { %6608 = vmatpush1.bf16.msk.msra.mxu1 %vm6607_vm15, %v6606_v36  ;;  %5388 = vmatprep.mubr.f32.mxu1 %v10194_v9  ;;  %v4754_v34 = vsel %vm10414_vm3, %v10413_v47, %v7140_v0  ;;  %v4755_v6 = vsel %vm10415_vm6, %v7140_v0, %v7141_v28  ;;  %vm6610_vm7 = vmpackc.low %vm10404_vm13, %vm10417_vm12 }
0x104f   : > { %v7144_v20 = vpop.permute.xlu0 %7143  ;;  %v4864_v27 = vpop.permute.xlu1 %4863  ;;  %vm10418_vm4 = vmmov %vm10414_vm3  ;;  %vm10424_vm3 = vnez %v10423_v44 }
0x1050   : > { %v7146_v56 = vunpack.i.h.bf16 %v7144_v20  ;;  %v7145_v8 = vunpack.i.l.bf16 %v7144_v20  ;;  %v4756_v9 = vsel %vm10418_vm4, %v7141_v28, %v4748_v30  ;;  %vm10421_vm15 = vmmov %vm10420_vm11  ;;  %vm10428_vm4 = vnez %v10427_v37 }
0x1051   : > { %vm10422_vm5 = vmmov %vm10420_vm11 }
0x1052   : > { %v4812_v45 = vsel %vm10420_vm11, %v10419_v15, %v7145_v8  ;;  %v4813_v23 = vsel %vm10421_vm15, %v7145_v8, %v7146_v56  ;;  %v4814_v48 = vsel %vm10422_vm5, %v7146_v56, %v4806_v26  ;;  %vm10425_vm6 = vmand %vm10397_vm8, %vm10424_vm3 }
0x1053   : > { %vm6589_vm0 = vmpackc.low %vm10426_vm10, %vm10425_vm6  ;;  %v6585_v5 = vpack.c.bf16 %v4812_v45, %v4754_v34  ;;  %v6609_v16 = vpack.c.bf16 %v4814_v48, %v4756_v9  ;;  %v6612_v52 = vpack.c.bf16 %v4813_v23, %v4755_v6  ;;  %v7149_v53 = vpop.permute.xlu0 %7148  ;;  %v5080_v43 = vpop.permute.xlu1 %5079  ;;  %v10458_v34 = vpack.c.bf16 %v9514_v10, %v9519_v46  ;;  %v10461_v48 = vld [vmem:[#allocation19_spill] sm:$0xff] }
0x1054   : > { %vm10429_vm11 = vmand %vm10406_vm14, %vm10428_vm4  ;;  %v7151_v39 = vunpack.i.h.bf16 %v7149_v53  ;;  %v7150_v60 = vunpack.i.l.bf16 %v7149_v53  ;;  %vm10433_vm14 = vcmask 900096  }
0x1055   : > { %vm6613_vm15 = vmpackc.low %vm10408_vm1, %vm10429_vm11  ;;  %6611 = vmatprep.subr.msk.bf16.mxu1 %vm6610_vm7, %v6609_v16  ;;  %vm10435_vm7 = vmmov 1   ;;  %vm10440_vm11 = vcmask 908288  }
0x1056   : > { %vm10430_vm8 = vmpackc.low %vm10396_vm9, %vm10412_vm2  ;;  %6614 = vmatpush1.bf16.msk.msra.mxu1 %vm6613_vm15, %v6612_v52  ;;  %v4870_v4 = vsel %vm10433_vm14, %v10432_v2, %v7150_v60 }
0x1057   : > { %6587 = vmatprep.subr.msk.bf16.mxu0 %vm10430_vm8, %v6585_v5  ;;  %v7154_v49 = vpop.permute.xlu0 %7153  ;;  %v4922_v7 = vpop.permute.xlu1 %4921  ;;  %vm10434_vm5 = vmmov %vm10433_vm14 }
0x1058   : > { %6590 = vmatpush1.bf16.msk.msra.mxu0 %vm6589_vm0, %v10431_v14  ;;  %v7156_v50 = vunpack.i.h.bf16 %v7154_v49  ;;  %v7155_v18 = vunpack.i.l.bf16 %v7154_v49  ;;  %v4871_v31 = vsel %vm10434_vm5, %v7150_v60, %v7151_v39  ;;  %vm9757_vm6 = vmpackc.low %vm10412_vm2, %vm10435_vm7 }
0x1059   : > { %vm10438_vm0 = vmmov %vm10434_vm5 }
0x105a   : > { %v4872_v11 = vsel %vm10438_vm0, %v7151_v39, %v4864_v27  ;;  %v5086_v3 = vsel %vm10440_vm11, %v10439_v41, %v7155_v18  ;;  %vm10441_vm15 = vmmov %vm10440_vm11  ;;  %v10449_v27 = vld [vmem:[#allocation20_spill] sm:$0xff] }
0x105b   : > { %v5087_v40 = vsel %vm10441_vm15, %v7155_v18, %v7156_v50  ;;  %vm10442_vm8 = vmmov %vm10440_vm11  ;;  %v6591_v30 = vpack.c.bf16 %v4870_v4, %v5086_v3  ;;  %v7159_v1 = vpop.permute.xlu0 %7158  ;;  %v7164_v62 = vpop.permute.xlu1 %7163  ;;  %vm10447_vm11 = vcmask 777216  }
0x105c   : > { %v5088_v59 = vsel %vm10442_vm8, %v7156_v50, %v5080_v43  ;;  %vm9770_vm14 = vmpackc.low %vm10417_vm12, %vm10435_vm7  ;;  %v6618_v58 = vpack.c.bf16 %v4871_v31, %v5087_v40  ;;  %v7161_v36 = vunpack.i.h.bf16 %v7159_v1  ;;  %v7160_v19 = vunpack.i.l.bf16 %v7159_v1 }
0x105d   : > { %v6615_v29 = vpack.c.bf16 %v4872_v11, %v5088_v59  ;;  %vm6595_vm5 = vmpackc.low %vm10424_vm3, %vm10435_vm7  ;;  %v7166_v26 = vunpack.i.h.bf16 %v7164_v62  ;;  %v7165_v28 = vunpack.i.l.bf16 %v7164_v62  ;;  %v4985_v13 = vsel %vm10447_vm11, %v7126_v21, %v7130_v25  ;;  %6593 = vmatprep.subr.msk.bf16.mxu0 %vm9757_vm6, %v6591_v30 }
0x105e   : > { %vm9781_vm0 = vmpackc.low %vm10428_vm4, %vm10435_vm7  ;;  %vm10450_vm8 = vnez %v10449_v27  ;;  %vm10457_vm6 = vcmask 777216   ;;  %6596 = vmatpush1.bf16.msk.msra.mxu0 %vm6595_vm5, %v10458_v34 }
0x105f   : > { %vm10448_vm15 = vmmov %vm10447_vm11  ;;  %6617 = vmatprep.subr.msk.bf16.mxu1 %vm9770_vm14, %v6615_v29  ;;  %vm10454_vm11 = vcmask 785408   ;;  %v4987_v47 = vsel %vm10457_vm6, %v7131_v54, %v7165_v28  ;;  %v5032_v45 = vpop.permute.xlu0 %5031  ;;  %v5034_v23 = vpop.permute.xlu1 %5033 }
0x1060   : > { %v4986_v20 = vsel %vm10448_vm15, %v7130_v25, %v7131_v54  ;;  %vm10451_vm4 = vmand %vm10450_vm8, %vm10396_vm9  ;;  %v4928_v17 = vsel %vm10454_vm11, %v7056_v51, %v7160_v19  ;;  %6620 = vmatpush1.bf16.msk.msra.mxu1 %vm9781_vm0, %v6618_v58  ;;  %vm10464_vm0 = vcmask 769024  }
0x1061   : > { %vm9800_vm3 = vmpackc.low %vm10450_vm8, %vm10451_vm4  ;;  %v6597_v6 = vpack.c.bf16 %v4986_v20, %v4928_v17  ;;  %v5044_v46 = vsel %vm10464_vm0, %v5032_v45, %v5034_v23 }
0x1062   : > { %vm10455_vm15 = vmmov %vm10454_vm11 }
0x1063   : > { %v4929_v21 = vsel %vm10455_vm15, %v7160_v19, %v7161_v36  ;;  %vm10456_vm12 = vmmov %vm10454_vm11  ;;  %6599 = vmatprep.subr.msk.bf16.mxu0 %vm9800_vm3, %v6597_v6  ;;  %v5036_v32 = vpop.permute.xlu0 %5035  ;;  %v5038_v63 = vpop.permute.xlu1 %5037  ;;  %vm10469_vm3 = vnez %v10416_v57 }
0x1064   : > { %v4930_v8 = vsel %vm10456_vm12, %v7161_v36, %v4922_v7  ;;  %vm6601_vm9 = vmpackc.low %vm10435_vm7, %vm10426_vm10  ;;  %v6624_v15 = vpack.c.bf16 %v4987_v47, %v4929_v21  ;;  %vm10462_vm12 = vnez %v10461_v48 }
0x1065   : > { %vm10459_vm4 = vmmov %vm10454_vm11 }
0x1066   : > { %v4927_v55 = vsel %vm10459_vm4, %v7121_v38, %v7056_v51  ;;  %vm10460_vm14 = vmmov %vm10457_vm6 }
0x1067   : > { %v4988_v9 = vsel %vm10460_vm14, %v7165_v28, %v7166_v26  ;;  %vm10463_vm5 = vmand %vm10462_vm12, %vm10404_vm13  ;;  %v6600_v42 = vpack.c.bf16 %v4985_v13, %v4927_v55  ;;  %v10476_v28 = vld [vmem:[#allocation13_spill] sm:$0xff] }
0x1068   : > { %vm6622_vm10 = vmpackc.low %vm10462_vm12, %vm10463_vm5  ;;  %v6621_v10 = vpack.c.bf16 %v4988_v9, %v4930_v8 }
0x1069   : > { %vm6625_vm11 = vmpackc.low %vm10435_vm7, %vm10408_vm1  ;;  %6602 = vmatpush1.bf16.msk.msra.mxu0 %vm6601_vm9, %v6600_v42  ;;  %vm10471_vm9 = vnez %v10423_v44 }
0x106a   : > { %6623 = vmatprep.subr.msk.bf16.mxu1 %vm6622_vm10, %v6621_v10  ;;  %vm10465_vm13 = vmand %vm10450_vm8, %vm10412_vm2  ;;  %vm10472_vm2 = vcmask 588800   ;;  %vm10473_vm8 = vnez %v10427_v37 }
0x106b   : > { %5724 = vmatprep.subr.msk.mxu0 %vm10465_vm13, %v5044_v46  ;;  %6626 = vmatpush1.bf16.msk.msra.mxu1 %vm6625_vm11, %v6624_v15  ;;  %vm10466_vm15 = vmmov %vm10464_vm0 }
0x106c   : > { %v5045_v38 = vsel %vm10466_vm15, %v5034_v23, %v5036_v32  ;;  %vm10467_vm6 = vmmov %vm10464_vm0 }
0x106d   : > { %v5046_v24 = vsel %vm10467_vm6, %v5036_v32, %v5038_v63  ;;  %vm10468_vm1 = vmmov %vm10464_vm0 }
0x106e   : > { %v5043_v5 = vsel %vm10468_vm1, %v9639_v35, %v5032_v45  ;;  %vm10470_vm7 = vmand %vm10462_vm12, %vm10469_vm3  ;;  %v10475_v35 = vld [vmem:[#allocation12_spill] sm:$0xff] }
0x106f   : > { %5739 = vmatprep.subr.msk.mxu1 %vm10470_vm7, %v5046_v24  ;;  %5725 = vmatpush1.msk.msra.mxu0 %vm10471_vm9, %v5043_v5  ;;  %vm10474_vm4 = vmmov %vm10472_vm2 }
0x1070   : > { %5726 = vmatmul.mubr.msk.f32.vlgmr.msra.gmra.mrb[18].mxu0 %vm10472_vm2, %v9588_v12  ;;  %5740 = vmatpush1.msk.msra.mxu1 %vm10473_vm8, %v5045_v38 }
0x1071   : > { %5741 = vmatmul.mubr.msk.f32.vlgmr.msra.gmra.mrb[26].mxu1 %vm10474_vm4, %v9588_v12 }
0x1074   : > { %v5102_v33 = vpop.permute.xlu0 %5101 }
0x1075   : > { %v5107_v16 = vrot.slane %v5102_v33, %v10475_v35 }
0x110c   : > { %v5177_v52 = vpop.f32.mrb[16].mxu0 }
0x110d   : > { %v5178_v53 = vadd.f32 %v5177_v52, %v5107_v16  ;;  %v5179_v57 = vpop.f32.mrb[17].mxu0 }
0x110e   : > { %v5180_v43 = vadd.f32 %v5179_v57, %v5107_v16 }
0x110f   : > { %v5742_v39 = vmul.f32 -1.442695, %v5178_v53 }
0x1110   : > { %v5743_v60 = vmul.f32 -1.442695, %v5180_v43 }
0x1111   : > { %7167 = vpow2.f32 %v5742_v39 }
0x1112   : > { %7169 = vpow2.f32 %v5743_v60 }
0x111b   : > { %v7168_v44 = vpop.eup %7167 }
0x111c   : > { %v7170_v14 = vpop.eup %7169  ;;  %v5419_v49 = vadd.f32 1.0, %v7168_v44 }
0x111d   : > { %v5420_v7 = vadd.f32 1.0, %v7170_v14 }
0x111e   : > { %7171 = vrcp.f32 %v5419_v49 }
0x111f   : > { %7173 = vrcp.f32 %v5420_v7 }
0x1120   : > { %v5248_v37 = vpop.f32.mrb[24].mxu1 }
0x1121   : > { %v5249_v50 = vadd.f32 %v5248_v37, %v5107_v16  ;;  %v5250_v18 = vpop.f32.mrb[25].mxu1 }
0x1122   : > { %v5251_v12 = vadd.f32 %v5250_v18, %v5107_v16 }
0x1123   : > { %v5744_v54 = vmul.f32 -1.442695, %v5249_v50 }
0x1124   : > { %v5745_v25 = vmul.f32 -1.442695, %v5251_v12 }
0x1125   : > { %7175 = vpow2.f32 %v5744_v54 }
0x1126   : > { %7177 = vpow2.f32 %v5745_v25 }
0x1128   : > { %v7172_v2 = vpop.eup %7171 }
0x1129   : > { %v7174_v4 = vpop.eup %7173 }
0x112a   : > { %v5451_v31 = vcombine.low %v7172_v2, %v7174_v4 }
0x112c   : > { %v5461_v0 = vrot.slane %v5451_v31, %v10476_v28 }
0x112f   : > { %v7176_v22 = vpop.eup %7175 }
0x1130   : > { %v7178_v11 = vpop.eup %7177  ;;  %v5421_v41 = vadd.f32 1.0, %v7176_v22 }
0x1131   : > { %v5422_v3 = vadd.f32 1.0, %v7178_v11 }
0x1132   : > { %7179 = vrcp.f32 %v5421_v41 }
0x1133   : > { %7181 = vrcp.f32 %v5422_v3 }
0x113c   : > { %v7180_v40 = vpop.eup %7179 }
0x113d   : > { %v7182_v61 = vpop.eup %7181 }
0x113e   : > { %v5452_v58 = vcombine.low %v7180_v40, %v7182_v61 }
0x1140   : > { %v5468_v13 = vrot.slane %v5452_v58, %v10476_v28 }
0x1142   : > { %v5483_v17 = vcombine.low %v5461_v0, %v5468_v13 }
0x1143   : > { %v5319_v59 = vpop.f32.mrb[18].mxu0 }
0x1144   : > { %v5320_v51 = vadd.f32 %v5319_v59, %v5107_v16  ;;  %v5321_v30 = vpop.f32.mrb[19].mxu0  ;;  %v5390_v29 = vpop.f32.mrb[26].mxu1  ;;  %v5491_v24 = vrot.slane %v5483_v17, %v10476_v28 }
0x1145   : > { %v5322_v1 = vadd.f32 %v5321_v30, %v5107_v16  ;;  %v5391_v62 = vadd.f32 %v5390_v29, %v5107_v16  ;;  %v5392_v36 = vpop.f32.mrb[27].mxu1 }
0x1146   : > { %v5746_v19 = vmul.f32 -1.442695, %v5320_v51  ;;  %v5393_v26 = vadd.f32 %v5392_v36, %v5107_v16 }
0x1147   : > { %v5747_v20 = vmul.f32 -1.442695, %v5322_v1  ;;  %v5748_v27 = vmul.f32 -1.442695, %v5391_v62 }
0x1148   : > { %7183 = vpow2.f32 %v5746_v19  ;;  %v5749_v56 = vmul.f32 -1.442695, %v5393_v26 }
0x1149   : > { %7185 = vpow2.f32 %v5747_v20 }
0x114a   : > { %7187 = vpow2.f32 %v5748_v27 }
0x114b   : > { %7189 = vpow2.f32 %v5749_v56 }
0x1152   : > { %v7184_v21 = vpop.eup %7183 }
0x1153   : > { %v7186_v8 = vpop.eup %7185  ;;  %v5423_v47 = vadd.f32 1.0, %v7184_v21 }
0x1154   : > { %v7188_v34 = vpop.eup %7187  ;;  %v5424_v55 = vadd.f32 1.0, %v7186_v8 }
0x1155   : > { %v7190_v6 = vpop.eup %7189  ;;  %7191 = vrcp.f32 %v5423_v47  ;;  %v5425_v9 = vadd.f32 1.0, %v7188_v34 }
0x1156   : > { %7193 = vrcp.f32 %v5424_v55  ;;  %v5426_v15 = vadd.f32 1.0, %v7190_v6 }
0x1157   : > { %7195 = vrcp.f32 %v5425_v9 }
0x1158   : > { %7197 = vrcp.f32 %v5426_v15 }
0x115f   : > { %v7192_v45 = vpop.eup %7191 }
0x1160   : > { %v7194_v23 = vpop.eup %7193 }
0x1161   : > { %v7196_v48 = vpop.eup %7195  ;;  %v5453_v42 = vcombine.low %v7192_v45, %v7194_v23 }
0x1162   : > { %v7198_v10 = vpop.eup %7197 }
0x1163   : > { %v5475_v46 = vrot.slane %v5453_v42, %v10476_v28  ;;  %v5454_v32 = vcombine.low %v7196_v48, %v7198_v10 }
0x1165   : > { %v5482_v63 = vrot.slane %v5454_v32, %v10476_v28 }
0x1167   : > { %v5484_v38 = vcombine.low %v5475_v46, %v5482_v63 }
0x1169   : > { %v5498_v5 = vrot.slane %v5484_v38, %v10476_v28 }
0x116b   : > { %v5499_v33 = vcombine.low %v5491_v24, %v5498_v5 }
0x116d   : > { %5501 = vst [vmem:[%s521_s28] sm:$0xff] %v5499_v33 }
0x116e PF: > { %s10478_s29 = sld [smem:[#allocation11_spill]] }
0x1174   : > { %s29_s20 = sadd.s32 1, %s10478_s29  }
0x1175   : > { %p26_p5 = scmp.ge.s32.totalorder %s29_s20, 4  }
0x1177   :  { %28 = sbr.rel (!%p26_p5) target bundleno = 5 (0x5), region = 128 }
0x117e   :  { %5521 = vsyncpa [#allocation6], 1 }
0x117f   :  { %5523 = vsyncpa [#allocation6 + $0x1], 1 }
0x1180   :  { %5524 = vsyncpa [#allocation8], 1 }

</bundles_post_ra>
